<compile_context>
chip_gen: v6e
topology: v6e:2x2x1
jax: 0.10.0
libtpu: 0.0.40
codegen_flags: <defaults>
</compile_context>

<pallas_src>
import functools

import numpy as np
import jax
import jax.numpy as jnp
from jax import lax
from jax.experimental import pallas as pl
from jax.experimental.pallas import tpu as pltpu


_HALO = 4                       # 1 (shift 3x3) + 2 (dw 5x5) + 1 (shift 3x3)
_GELU_K = 0.7978845608028654    # sqrt(2 / pi)


def _cdiv(a, b):
    return -(-a // b)


def _gelu_tanh(x):
    # tanh-form GELU: the tanh runs on the EUP (free VLIW slot); deviation
    # from the exact-erf nn.GELU() is ~1e-3, far inside the check tolerance.
    return 0.5 * x * (1.0 + jnp.tanh(_GELU_K * (x + 0.044715 * x * x * x)))


# ------------------------------------------------------------------
# fused ELFEB kernel
# ------------------------------------------------------------------

def _elfeb_kernel(xpad_ref, w0_ref, b0_ref, w5_ref, b5_ref, w2_ref, b2_ref,
                  o_ref, xbuf, sem, *, TH, H, W, C):
    """One (batch, row-tile) grid step of the fused ELFEB chain.

    Layout: activations are (rows, C, cols) with the image width in lanes.
      xpad_ref : (B, Hp+8, C, W+8) f32 in HBM (pl.ANY), zero-padded halo.
      o_ref    : (1, TH, C, W) output block.
    """
    b = pl.program_id(0)
    t = pl.program_id(1)
    r0 = t * TH

    # --- fetch the overlapping halo'd row window for this tile -------------
    # (overlapping windows cannot be expressed with Blocked BlockSpecs)
    # TODO(synk): double-buffer this DMA across the inner grid axis.
    cp = pltpu.make_async_copy(
        xpad_ref.at[b, pl.ds(r0, TH + 8), :, :], xbuf, sem)
    cp.start()
    cp.wait()
    xt = xbuf[...]                               # (TH+8, C, W+8)

    # --- static channel-group masks of the fixed one-hot "shift" conv ------
    g = C // 5
    cidx = lax.broadcasted_iota(jnp.int32, (1, C, 1), 1)
    m_left = (cidx >= g) & (cidx < 2 * g)
    m_down = (cidx >= 2 * g) & (cidx < 3 * g)
    m_up = (cidx >= 3 * g) & (cidx < 4 * g)
    m_id = cidx >= 4 * g

    def shift3x3(v, oh, ow):
        # Fixed depthwise 3x3 whose per-channel filter is one-hot:
        #   g0:(1,2) g1:(1,0) g2:(2,1) g3:(0,1) g4..:(1,1)   (dy, dx) taps.
        # dy -> free major-dim slice, dx -> lane shift, one select per group.
        out = v[1:1 + oh, :, 2:2 + ow]                           # right
        out = jnp.where(m_left, v[1:1 + oh, :, 0:ow], out)       # left
        out = jnp.where(m_down, v[2:2 + oh, :, 1:1 + ow], out)   # down
        out = jnp.where(m_up, v[0:oh, :, 1:1 + ow], out)         # up
        out = jnp.where(m_id, v[1:1 + oh, :, 1:1 + ow], out)     # identity
        return out

    def conv1x1(v, w, bias):
        # Pointwise conv as one batched MXU contraction over the channel
        # (sublane) dim: (rows, Cout, Cin) x (rows, Cin, cols) -> (rows, Cout, cols)
        rows = v.shape[0]
        wb = jnp.broadcast_to(w, (rows, C, C))
        return jnp.einsum('roc,rcl->rol', wb, v,
                          preferred_element_type=jnp.float32) + bias

    def mask_inside(v, row_off, col_off):
        # Zero everything outside the real image; reproduces the zero padding
        # every conv of the original module sees at the image border.
        rows, _, cols = v.shape
        ri = lax.broadcasted_iota(jnp.int32, (rows, 1, cols), 0) + (r0 + row_off)
        ci = lax.broadcasted_iota(jnp.int32, (rows, 1, cols), 2) + col_off
        ok = (ri >= 0) & (ri < H) & (ci >= 0) & (ci < W)
        return jnp.where(ok, v, 0.0)

    # 1) shift conv over the extended window       rows: r0-3+p, cols: q-3
    t1 = shift3x3(xt, TH + 6, W + 6)
    # 2) 1x1 conv + bias, re-zero the halo region
    t2 = mask_inside(conv1x1(t1, w0_ref[...], b0_ref[...]), -3, -3)
    # 3) depthwise 5x5 conv + bias (lane-shifted copies shared across all dy)
    xs = [t2[:, :, dx:dx + W + 2] for dx in range(5)]
    acc = xs[0][0:TH + 2] * w5_ref[0, 0]
    for dy in range(5):
        for dx in range(5):
            if dy == 0 and dx == 0:
                continue
            acc = acc + xs[dx][dy:dy + TH + 2] * w5_ref[dy, dx]
    t3 = acc + b5_ref[...]
    # 4) GELU (tanh form), re-zero the halo         rows: r0-1+p, cols: q-1
    t4 = mask_inside(_gelu_tanh(t3), -1, -1)
    # 5) second shift conv                          rows: r0+p,   cols: q
    t5 = shift3x3(t4, TH, W)
    # 6) final 1x1 conv + bias + residual (shortcut from the window interior)
    out = conv1x1(t5, w2_ref[...], b2_ref[...]) + xt[4:4 + TH, :, 4:4 + W]
    o_ref[0] = out.astype(o_ref.dtype)


def _pick_row_tile(H, B, target=32, min_steps=4):
    # Big enough tiles to amortize per-step overhead, but enough grid steps
    # that both v7x TensorCores get work and the pipeline can overlap.
    th = min(target, H)
    while th > 8 and B * _cdiv(H, th) < min_steps:
        th = max(8, th // 2)
    return max(th, 1)


def elfeb_forward(params, x_nchw, row_tile=None):
    """ELFEB forward.  x_nchw: (B, C, H, W) float32 -> (B, C, H, W)."""
    B, C, H, W = x_nchw.shape
    assert C >= 5, "ELFEB needs in_channels >= n_div (5)"
    TH = _pick_row_tile(H, B) if row_tile is None else row_tile
    nT = _cdiv(H, TH)
    Hp = nT * TH

    # One NCHW -> (B, H, C, W) relayout so the image width lands in the lane
    # dimension inside the kernel; zero-pad by the fused halo plus the cdiv
    # remainder rows at the bottom.  No gather, no duplicate shortcut array.
    xr = jnp.transpose(x_nchw, (0, 2, 1, 3)).astype(jnp.float32)
    xpad = jnp.pad(xr, ((0, 0), (_HALO, _HALO + Hp - H), (0, 0), (_HALO, _HALO)))

    w0 = params['cb0_w'].astype(jnp.float32)                               # (Cout, Cin)
    b0 = params['cb0_b'].reshape(C, 1).astype(jnp.float32)
    w5 = jnp.transpose(params['cb1_w'], (1, 2, 0))[..., None].astype(jnp.float32)  # (5,5,C,1)
    b5 = params['cb1_b'].reshape(C, 1).astype(jnp.float32)
    w2 = params['conv2_w'].astype(jnp.float32)
    b2 = params['conv2_b'].reshape(C, 1).astype(jnp.float32)

    kern = functools.partial(_elfeb_kernel, TH=TH, H=H, W=W, C=C)
    out = pl.pallas_call(
        kern,
        out_shape=jax.ShapeDtypeStruct((B, Hp, C, W), jnp.float32),
        grid=(B, nT),
        in_specs=[
            pl.BlockSpec(memory_space=pl.ANY),                         # padded image (HBM)
            pl.BlockSpec((C, C), lambda b, t: (0, 0)),                 # cb0 weight
            pl.BlockSpec((C, 1), lambda b, t: (0, 0)),                 # cb0 bias
            pl.BlockSpec((5, 5, C, 1), lambda b, t: (0, 0, 0, 0)),     # cb1 dw5x5 weight
            pl.BlockSpec((C, 1), lambda b, t: (0, 0)),                 # cb1 bias
            pl.BlockSpec((C, C), lambda b, t: (0, 0)),                 # conv2 weight
            pl.BlockSpec((C, 1), lambda b, t: (0, 0)),                 # conv2 bias
        ],
        out_specs=pl.BlockSpec((1, TH, C, W), lambda b, t: (b, t, 0, 0)),
        scratch_shapes=[
            pltpu.VMEM((TH + 8, C, W + 8), jnp.float32),               # halo'd row window
            pltpu.SemaphoreType.DMA,
        ],
        compiler_params=pltpu.CompilerParams(
            dimension_semantics=("parallel", "parallel"),
            vmem_limit_bytes=32 * 1024 * 1024),
    )(xpad, w0, b0, w5, b5, w2, b2)

    # (B, Hp, C, W) -> NCHW, dropping the cdiv padding rows.
    return jnp.transpose(out, (0, 2, 1, 3))[:, :, :H, :]


# ------------------------------------------------------------------
# plain-JAX reference (direct transcription of the PyTorch module)
# ------------------------------------------------------------------

def _elfeb_reference(params, x):
    x = x.astype(jnp.float32)
    B, C, H, W = x.shape

    def dwconv(v, w, k):
        # depthwise kxk cross-correlation, zero padding k//2; w: (C, k, k)
        p = k // 2
        vp = jnp.pad(v, ((0, 0), (0, 0), (p, p), (p, p)))
        acc = jnp.zeros_like(v)
        for dy in range(k):
            for dx in range(k):
                acc = acc + vp[:, :, dy:dy + H, dx:dx + W] * w[:, dy, dx][None, :, None, None]
        return acc

    def c1x1(v, w, bias):
        return (jnp.einsum('oc,bchw->bohw', w, v,
                           precision=lax.Precision.HIGHEST)
                + bias[None, :, None, None])

    sc = x
    y = dwconv(x, params['shift_w'], 3)                              # fixed shift conv
    y = c1x1(y, params['cb0_w'], params['cb0_b'])                    # 1x1
    y = dwconv(y, params['cb1_w'], 5) + params['cb1_b'][None, :, None, None]
    y = jax.nn.gelu(y, approximate=False)                            # exact GELU; Dropout = id
    y = dwconv(y, params['shift_w'], 3)                              # fixed shift conv
    y = c1x1(y, params['conv2_w'], params['conv2_b']) + sc
    return y


# ------------------------------------------------------------------
# deterministic parameter init (mirrors the PyTorch module's parameters)
# ------------------------------------------------------------------

def init_params(key, C):
    ks = jax.random.split(key, 6)

    def nrm(k, shape, scale=0.1):
        return jax.random.normal(k, shape, jnp.float32) * scale

    # fixed, non-trainable shift weights (torch layout (C,1,3,3) -> (C,3,3))
    g = C // 5
    sw = np.zeros((C, 3, 3), np.float32)
    sw[0 * g:1 * g, 1, 2] = 1.0   # right
    sw[1 * g:2 * g, 1, 0] = 1.0   # left
    sw[2 * g:3 * g, 2, 1] = 1.0   # down
    sw[3 * g:4 * g, 0, 1] = 1.0   # up
    sw[4 * g:, 1, 1] = 1.0        # identity

    return dict(
        shift_w=jnp.asarray(sw),
        cb0_w=nrm(ks[0], (C, C)), cb0_b=nrm(ks[1], (C,)),
        cb1_w=nrm(ks[2], (C, 5, 5)), cb1_b=nrm(ks[3], (C,)),
        conv2_w=nrm(ks[4], (C, C)), conv2_b=nrm(ks[5], (C,)),
    )


# ------------------------------------------------------------------
# main
# ------------------------------------------------------------------

if __name__ == "__main__":
    key = jax.random.PRNGKey(0)
    B, C, H, W = 2, 16, 16, 16                # NCHW, like the PyTorch module

    pkey, xkey = jax.random.split(key)
    params = init_params(pkey, C)
    x = jax.random.normal(xkey, (B, C, H, W), jnp.float32)

    fwd = jax.jit(elfeb_forward)
    out = fwd(params, x)
    jax.block_until_ready(out)

    assert out.shape == (B, C, H, W)
    assert bool(jnp.all(jnp.isfinite(out)))

    ref = _elfeb_reference(params, x)
    err = float(jnp.max(jnp.abs(out - ref)))
    assert err < 2e-2, f"mismatch vs reference: max abs err = {err}"

    print("KERNEL_OK")
</pallas_src>

<mosaic_0001>
module attributes {stable_mosaic.version = 11 : i64} {
  func.func @_elfeb_kernel(%arg0: i32, %arg1: i32, %arg2: memref<2x24x16x24xf32, #tpu.memory_space<any>>, %arg3: memref<16x16xf32, #tpu.memory_space<vmem>>, %arg4: memref<16x1xf32, #tpu.memory_space<vmem>>, %arg5: memref<5x5x16x1xf32, #tpu.memory_space<vmem>>, %arg6: memref<16x1xf32, #tpu.memory_space<vmem>>, %arg7: memref<16x16xf32, #tpu.memory_space<vmem>>, %arg8: memref<16x1xf32, #tpu.memory_space<vmem>>, %arg9: memref<1x8x16x16xf32, #tpu.memory_space<vmem>>, %arg10: memref<16x16x24xf32, #tpu.memory_space<vmem>>, %arg11: memref<!tpu.dma_semaphore, #tpu.memory_space<semaphore_mem>>) attributes {dimension_semantics = [#tpu.dimension_semantics<parallel>, #tpu.dimension_semantics<parallel>], iteration_bounds = array<i64: 2, 2>, scalar_prefetch = 0 : i64, scratch_operands = 2 : i64, tpu.core_type = #tpu.core_type<tc>, window_params = [{}, {pipeline_mode = #tpu.pipeline_mode<synchronous>, transform_indices = @transform_1, window_bounds = array<i64: 16, 16>}, {pipeline_mode = #tpu.pipeline_mode<synchronous>, transform_indices = @transform_2, window_bounds = array<i64: 16, 1>}, {pipeline_mode = #tpu.pipeline_mode<synchronous>, transform_indices = @transform_3, window_bounds = array<i64: 5, 5, 16, 1>}, {pipeline_mode = #tpu.pipeline_mode<synchronous>, transform_indices = @transform_4, window_bounds = array<i64: 16, 1>}, {pipeline_mode = #tpu.pipeline_mode<synchronous>, transform_indices = @transform_5, window_bounds = array<i64: 16, 16>}, {pipeline_mode = #tpu.pipeline_mode<synchronous>, transform_indices = @transform_6, window_bounds = array<i64: 16, 1>}, {transform_indices = @transform_7, window_bounds = array<i64: 1, 8, 16, 16>}]} {
    %c8_i32 = arith.constant 8 : i32
    %0 = arith.muli %arg1, %c8_i32 : i32
    %c0_i32 = arith.constant 0 : i32
    %c0_i32_0 = arith.constant 0 : i32
    %1 = tpu.memref_slice %arg2[%arg0, %0, %c0_i32, %c0_i32_0] : memref<2x24x16x24xf32, #tpu.memory_space<any>> -> memref<1x16x16x24xf32, #tpu.memory_space<any>>
    %2 = tpu.memref_squeeze %1 : memref<1x16x16x24xf32, #tpu.memory_space<any>> -> memref<16x16x24xf32, #tpu.memory_space<any>>
    tpu.enqueue_dma source(%2 : memref<16x16x24xf32, #tpu.memory_space<any>>) target(%arg10 : memref<16x16x24xf32, #tpu.memory_space<vmem>>) target_semaphore(%arg11 : memref<!tpu.dma_semaphore, #tpu.memory_space<semaphore_mem>>)
    %c0_i32_1 = arith.constant 0 : i32
    %c0_i32_2 = arith.constant 0 : i32
    %3 = tpu.memref_slice %arg2[%arg0, %0, %c0_i32_1, %c0_i32_2] : memref<2x24x16x24xf32, #tpu.memory_space<any>> -> memref<1x16x16x24xf32, #tpu.memory_space<any>>
    %4 = tpu.memref_squeeze %3 : memref<1x16x16x24xf32, #tpu.memory_space<any>> -> memref<16x16x24xf32, #tpu.memory_space<any>>
    tpu.wait_dma2 semaphore(%arg11 : memref<!tpu.dma_semaphore, #tpu.memory_space<semaphore_mem>>) src(%4 : memref<16x16x24xf32, #tpu.memory_space<any>>) dst(%arg10 : memref<16x16x24xf32, #tpu.memory_space<vmem>>)
    %c0 = arith.constant 0 : index
    %c0_3 = arith.constant 0 : index
    %c0_4 = arith.constant 0 : index
    %5 = vector.load %arg10[%c0, %c0_3, %c0_4] : memref<16x16x24xf32, #tpu.memory_space<vmem>>, vector<16x16x24xf32>
    %6 = tpu.iota {dimensions = array<i32: 1>} : vector<1x16x1xi32>
    %c3_i32 = arith.constant 3 : i32
    %7 = vector.broadcast %c3_i32 : i32 to vector<1x16x1xi32>
    %8 = arith.cmpi sge, %6, %7 : vector<1x16x1xi32>
    %c6_i32 = arith.constant 6 : i32
    %9 = vector.broadcast %c6_i32 : i32 to vector<1x16x1xi32>
    %10 = arith.cmpi slt, %6, %9 : vector<1x16x1xi32>
    %11 = arith.andi %8, %10 : vector<1x16x1xi1>
    %c6_i32_5 = arith.constant 6 : i32
    %12 = vector.broadcast %c6_i32_5 : i32 to vector<1x16x1xi32>
    %13 = arith.cmpi sge, %6, %12 : vector<1x16x1xi32>
    %c9_i32 = arith.constant 9 : i32
    %14 = vector.broadcast %c9_i32 : i32 to vector<1x16x1xi32>
    %15 = arith.cmpi slt, %6, %14 : vector<1x16x1xi32>
    %16 = arith.andi %13, %15 : vector<1x16x1xi1>
    %c9_i32_6 = arith.constant 9 : i32
    %17 = vector.broadcast %c9_i32_6 : i32 to vector<1x16x1xi32>
    %18 = arith.cmpi sge, %6, %17 : vector<1x16x1xi32>
    %c12_i32 = arith.constant 12 : i32
    %19 = vector.broadcast %c12_i32 : i32 to vector<1x16x1xi32>
    %20 = arith.cmpi slt, %6, %19 : vector<1x16x1xi32>
    %21 = arith.andi %18, %20 : vector<1x16x1xi1>
    %c12_i32_7 = arith.constant 12 : i32
    %22 = vector.broadcast %c12_i32_7 : i32 to vector<1x16x1xi32>
    %23 = arith.cmpi sge, %6, %22 : vector<1x16x1xi32>
    %24 = vector.extract_strided_slice %5 {offsets = [1, 0, 2], sizes = [14, 16, 22], strides = [1, 1, 1]} : vector<16x16x24xf32> to vector<14x16x22xf32>
    %25 = vector.extract_strided_slice %5 {offsets = [1, 0, 0], sizes = [14, 16, 22], strides = [1, 1, 1]} : vector<16x16x24xf32> to vector<14x16x22xf32>
    %26 = vector.shape_cast %11 : vector<1x16x1xi1> to vector<1x16x1xi1>
    %27 = vector.broadcast %26 : vector<1x16x1xi1> to vector<14x16x22xi1>
    %28 = arith.select %27, %25, %24 : vector<14x16x22xi1>, vector<14x16x22xf32>
    %29 = vector.extract_strided_slice %5 {offsets = [2, 0, 1], sizes = [14, 16, 22], strides = [1, 1, 1]} : vector<16x16x24xf32> to vector<14x16x22xf32>
    %30 = vector.shape_cast %16 : vector<1x16x1xi1> to vector<1x16x1xi1>
    %31 = vector.broadcast %30 : vector<1x16x1xi1> to vector<14x16x22xi1>
    %32 = arith.select %31, %29, %28 : vector<14x16x22xi1>, vector<14x16x22xf32>
    %33 = vector.extract_strided_slice %5 {offsets = [0, 0, 1], sizes = [14, 16, 22], strides = [1, 1, 1]} : vector<16x16x24xf32> to vector<14x16x22xf32>
    %34 = vector.shape_cast %21 : vector<1x16x1xi1> to vector<1x16x1xi1>
    %35 = vector.broadcast %34 : vector<1x16x1xi1> to vector<14x16x22xi1>
    %36 = arith.select %35, %33, %32 : vector<14x16x22xi1>, vector<14x16x22xf32>
    %37 = vector.extract_strided_slice %5 {offsets = [1, 0, 1], sizes = [14, 16, 22], strides = [1, 1, 1]} : vector<16x16x24xf32> to vector<14x16x22xf32>
    %38 = vector.shape_cast %23 : vector<1x16x1xi1> to vector<1x16x1xi1>
    %39 = vector.broadcast %38 : vector<1x16x1xi1> to vector<14x16x22xi1>
    %40 = arith.select %39, %37, %36 : vector<14x16x22xi1>, vector<14x16x22xf32>
    %c0_8 = arith.constant 0 : index
    %c0_9 = arith.constant 0 : index
    %41 = vector.load %arg3[%c0_8, %c0_9] : memref<16x16xf32, #tpu.memory_space<vmem>>, vector<16x16xf32>
    %c0_10 = arith.constant 0 : index
    %c0_11 = arith.constant 0 : index
    %42 = vector.load %arg4[%c0_10, %c0_11] : memref<16x1xf32, #tpu.memory_space<vmem>>, vector<16x1xf32>
    %43 = vector.shape_cast %41 : vector<16x16xf32> to vector<1x16x16xf32>
    %44 = vector.broadcast %43 : vector<1x16x16xf32> to vector<14x16x16xf32>
    "tpu.trace_start"() <{level = 10 : i32, message = "roc,rcl->rol"}> : () -> ()
    %cst = arith.constant dense<0.000000e+00> : vector<14x16x22xf32>
    %45 = tpu.matmul %44, %40, %cst {dimension_numbers = #tpu.dot_dimension_numbers<[2], [1], [1], [2], [0, 0, 0, 1, 1, 2], [0], [0]>} : vector<14x16x16xf32>, vector<14x16x22xf32>, vector<14x16x22xf32> -> vector<14x16x22xf32>
    "tpu.trace_stop"() : () -> ()
    %46 = vector.shape_cast %42 : vector<16x1xf32> to vector<1x16x1xf32>
    %47 = vector.broadcast %46 : vector<1x16x1xf32> to vector<14x16x22xf32>
    %48 = arith.addf %45, %47 : vector<14x16x22xf32>
    %49 = tpu.iota {dimensions = array<i32: 0>} : vector<14x1x22xi32>
    %c-3_i32 = arith.constant -3 : i32
    %50 = arith.addi %0, %c-3_i32 : i32
    %51 = vector.broadcast %50 : i32 to vector<14x1x22xi32>
    %52 = arith.addi %49, %51 : vector<14x1x22xi32>
    %53 = tpu.iota {dimensions = array<i32: 2>} : vector<14x1x22xi32>
    %c-3_i32_12 = arith.constant -3 : i32
    %54 = vector.broadcast %c-3_i32_12 : i32 to vector<14x1x22xi32>
    %55 = arith.addi %53, %54 : vector<14x1x22xi32>
    %c0_i32_13 = arith.constant 0 : i32
    %56 = vector.broadcast %c0_i32_13 : i32 to vector<14x1x22xi32>
    %57 = arith.cmpi sge, %52, %56 : vector<14x1x22xi32>
    %c16_i32 = arith.constant 16 : i32
    %58 = vector.broadcast %c16_i32 : i32 to vector<14x1x22xi32>
    %59 = arith.cmpi slt, %52, %58 : vector<14x1x22xi32>
    %60 = arith.andi %57, %59 : vector<14x1x22xi1>
    %c0_i32_14 = arith.constant 0 : i32
    %61 = vector.broadcast %c0_i32_14 : i32 to vector<14x1x22xi32>
    %62 = arith.cmpi sge, %55, %61 : vector<14x1x22xi32>
    %63 = arith.andi %60, %62 : vector<14x1x22xi1>
    %c16_i32_15 = arith.constant 16 : i32
    %64 = vector.broadcast %c16_i32_15 : i32 to vector<14x1x22xi32>
    %65 = arith.cmpi slt, %55, %64 : vector<14x1x22xi32>
    %66 = arith.andi %63, %65 : vector<14x1x22xi1>
    %cst_16 = arith.constant 0.000000e+00 : f32
    %67 = vector.shape_cast %66 : vector<14x1x22xi1> to vector<14x1x22xi1>
    %68 = vector.broadcast %67 : vector<14x1x22xi1> to vector<14x16x22xi1>
    %69 = vector.broadcast %cst_16 : f32 to vector<14x16x22xf32>
    %70 = arith.select %68, %48, %69 : vector<14x16x22xi1>, vector<14x16x22xf32>
    %71 = vector.extract_strided_slice %70 {offsets = [0, 0, 0], sizes = [14, 16, 18], strides = [1, 1, 1]} : vector<14x16x22xf32> to vector<14x16x18xf32>
    %72 = vector.extract_strided_slice %70 {offsets = [0, 0, 1], sizes = [14, 16, 18], strides = [1, 1, 1]} : vector<14x16x22xf32> to vector<14x16x18xf32>
    %73 = vector.extract_strided_slice %70 {offsets = [0, 0, 2], sizes = [14, 16, 18], strides = [1, 1, 1]} : vector<14x16x22xf32> to vector<14x16x18xf32>
    %74 = vector.extract_strided_slice %70 {offsets = [0, 0, 3], sizes = [14, 16, 18], strides = [1, 1, 1]} : vector<14x16x22xf32> to vector<14x16x18xf32>
    %75 = vector.extract_strided_slice %70 {offsets = [0, 0, 4], sizes = [14, 16, 18], strides = [1, 1, 1]} : vector<14x16x22xf32> to vector<14x16x18xf32>
    %76 = vector.extract_strided_slice %71 {offsets = [0, 0, 0], sizes = [10, 16, 18], strides = [1, 1, 1]} : vector<14x16x18xf32> to vector<10x16x18xf32>
    %c0_17 = arith.constant 0 : index
    %c0_18 = arith.constant 0 : index
    %c0_19 = arith.constant 0 : index
    %c0_20 = arith.constant 0 : index
    %77 = vector.load %arg5[%c0_17, %c0_18, %c0_19, %c0_20] : memref<5x5x16x1xf32, #tpu.memory_space<vmem>>, vector<1x1x16x1xf32>
    %78 = vector.shape_cast %77 : vector<1x1x16x1xf32> to vector<16x1xf32>
    %79 = vector.shape_cast %78 : vector<16x1xf32> to vector<1x16x1xf32>
    %80 = vector.broadcast %79 : vector<1x16x1xf32> to vector<10x16x18xf32>
    %81 = arith.mulf %76, %80 : vector<10x16x18xf32>
    %82 = vector.extract_strided_slice %72 {offsets = [0, 0, 0], sizes = [10, 16, 18], strides = [1, 1, 1]} : vector<14x16x18xf32> to vector<10x16x18xf32>
    %c0_21 = arith.constant 0 : index
    %c1 = arith.constant 1 : index
    %c0_22 = arith.constant 0 : index
    %c0_23 = arith.constant 0 : index
    %83 = vector.load %arg5[%c0_21, %c1, %c0_22, %c0_23] : memref<5x5x16x1xf32, #tpu.memory_space<vmem>>, vector<1x1x16x1xf32>
    %84 = vector.shape_cast %83 : vector<1x1x16x1xf32> to vector<16x1xf32>
    %85 = vector.shape_cast %84 : vector<16x1xf32> to vector<1x16x1xf32>
    %86 = vector.broadcast %85 : vector<1x16x1xf32> to vector<10x16x18xf32>
    %87 = arith.mulf %82, %86 : vector<10x16x18xf32>
    %88 = arith.addf %81, %87 : vector<10x16x18xf32>
    %89 = vector.extract_strided_slice %73 {offsets = [0, 0, 0], sizes = [10, 16, 18], strides = [1, 1, 1]} : vector<14x16x18xf32> to vector<10x16x18xf32>
    %c0_24 = arith.constant 0 : index
    %c2 = arith.constant 2 : index
    %c0_25 = arith.constant 0 : index
    %c0_26 = arith.constant 0 : index
    %90 = vector.load %arg5[%c0_24, %c2, %c0_25, %c0_26] : memref<5x5x16x1xf32, #tpu.memory_space<vmem>>, vector<1x1x16x1xf32>
    %91 = vector.shape_cast %90 : vector<1x1x16x1xf32> to vector<16x1xf32>
    %92 = vector.shape_cast %91 : vector<16x1xf32> to vector<1x16x1xf32>
    %93 = vector.broadcast %92 : vector<1x16x1xf32> to vector<10x16x18xf32>
    %94 = arith.mulf %89, %93 : vector<10x16x18xf32>
    %95 = arith.addf %88, %94 : vector<10x16x18xf32>
    %96 = vector.extract_strided_slice %74 {offsets = [0, 0, 0], sizes = [10, 16, 18], strides = [1, 1, 1]} : vector<14x16x18xf32> to vector<10x16x18xf32>
    %c0_27 = arith.constant 0 : index
    %c3 = arith.constant 3 : index
    %c0_28 = arith.constant 0 : index
    %c0_29 = arith.constant 0 : index
    %97 = vector.load %arg5[%c0_27, %c3, %c0_28, %c0_29] : memref<5x5x16x1xf32, #tpu.memory_space<vmem>>, vector<1x1x16x1xf32>
    %98 = vector.shape_cast %97 : vector<1x1x16x1xf32> to vector<16x1xf32>
    %99 = vector.shape_cast %98 : vector<16x1xf32> to vector<1x16x1xf32>
    %100 = vector.broadcast %99 : vector<1x16x1xf32> to vector<10x16x18xf32>
    %101 = arith.mulf %96, %100 : vector<10x16x18xf32>
    %102 = arith.addf %95, %101 : vector<10x16x18xf32>
    %103 = vector.extract_strided_slice %75 {offsets = [0, 0, 0], sizes = [10, 16, 18], strides = [1, 1, 1]} : vector<14x16x18xf32> to vector<10x16x18xf32>
    %c0_30 = arith.constant 0 : index
    %c4 = arith.constant 4 : index
    %c0_31 = arith.constant 0 : index
    %c0_32 = arith.constant 0 : index
    %104 = vector.load %arg5[%c0_30, %c4, %c0_31, %c0_32] : memref<5x5x16x1xf32, #tpu.memory_space<vmem>>, vector<1x1x16x1xf32>
    %105 = vector.shape_cast %104 : vector<1x1x16x1xf32> to vector<16x1xf32>
    %106 = vector.shape_cast %105 : vector<16x1xf32> to vector<1x16x1xf32>
    %107 = vector.broadcast %106 : vector<1x16x1xf32> to vector<10x16x18xf32>
    %108 = arith.mulf %103, %107 : vector<10x16x18xf32>
    %109 = arith.addf %102, %108 : vector<10x16x18xf32>
    %110 = vector.extract_strided_slice %71 {offsets = [1, 0, 0], sizes = [10, 16, 18], strides = [1, 1, 1]} : vector<14x16x18xf32> to vector<10x16x18xf32>
    %c1_33 = arith.constant 1 : index
    %c0_34 = arith.constant 0 : index
    %c0_35 = arith.constant 0 : index
    %c0_36 = arith.constant 0 : index
    %111 = vector.load %arg5[%c1_33, %c0_34, %c0_35, %c0_36] : memref<5x5x16x1xf32, #tpu.memory_space<vmem>>, vector<1x1x16x1xf32>
    %112 = vector.shape_cast %111 : vector<1x1x16x1xf32> to vector<16x1xf32>
    %113 = vector.shape_cast %112 : vector<16x1xf32> to vector<1x16x1xf32>
    %114 = vector.broadcast %113 : vector<1x16x1xf32> to vector<10x16x18xf32>
    %115 = arith.mulf %110, %114 : vector<10x16x18xf32>
    %116 = arith.addf %109, %115 : vector<10x16x18xf32>
    %117 = vector.extract_strided_slice %72 {offsets = [1, 0, 0], sizes = [10, 16, 18], strides = [1, 1, 1]} : vector<14x16x18xf32> to vector<10x16x18xf32>
    %c1_37 = arith.constant 1 : index
    %c1_38 = arith.constant 1 : index
    %c0_39 = arith.constant 0 : index
    %c0_40 = arith.constant 0 : index
    %118 = vector.load %arg5[%c1_37, %c1_38, %c0_39, %c0_40] : memref<5x5x16x1xf32, #tpu.memory_space<vmem>>, vector<1x1x16x1xf32>
    %119 = vector.shape_cast %118 : vector<1x1x16x1xf32> to vector<16x1xf32>
    %120 = vector.shape_cast %119 : vector<16x1xf32> to vector<1x16x1xf32>
    %121 = vector.broadcast %120 : vector<1x16x1xf32> to vector<10x16x18xf32>
    %122 = arith.mulf %117, %121 : vector<10x16x18xf32>
    %123 = arith.addf %116, %122 : vector<10x16x18xf32>
    %124 = vector.extract_strided_slice %73 {offsets = [1, 0, 0], sizes = [10, 16, 18], strides = [1, 1, 1]} : vector<14x16x18xf32> to vector<10x16x18xf32>
    %c1_41 = arith.constant 1 : index
    %c2_42 = arith.constant 2 : index
    %c0_43 = arith.constant 0 : index
    %c0_44 = arith.constant 0 : index
    %125 = vector.load %arg5[%c1_41, %c2_42, %c0_43, %c0_44] : memref<5x5x16x1xf32, #tpu.memory_space<vmem>>, vector<1x1x16x1xf32>
    %126 = vector.shape_cast %125 : vector<1x1x16x1xf32> to vector<16x1xf32>
    %127 = vector.shape_cast %126 : vector<16x1xf32> to vector<1x16x1xf32>
    %128 = vector.broadcast %127 : vector<1x16x1xf32> to vector<10x16x18xf32>
    %129 = arith.mulf %124, %128 : vector<10x16x18xf32>
    %130 = arith.addf %123, %129 : vector<10x16x18xf32>
    %131 = vector.extract_strided_slice %74 {offsets = [1, 0, 0], sizes = [10, 16, 18], strides = [1, 1, 1]} : vector<14x16x18xf32> to vector<10x16x18xf32>
    %c1_45 = arith.constant 1 : index
    %c3_46 = arith.constant 3 : index
    %c0_47 = arith.constant 0 : index
    %c0_48 = arith.constant 0 : index
    %132 = vector.load %arg5[%c1_45, %c3_46, %c0_47, %c0_48] : memref<5x5x16x1xf32, #tpu.memory_space<vmem>>, vector<1x1x16x1xf32>
    %133 = vector.shape_cast %132 : vector<1x1x16x1xf32> to vector<16x1xf32>
    %134 = vector.shape_cast %133 : vector<16x1xf32> to vector<1x16x1xf32>
    %135 = vector.broadcast %134 : vector<1x16x1xf32> to vector<10x16x18xf32>
    %136 = arith.mulf %131, %135 : vector<10x16x18xf32>
    %137 = arith.addf %130, %136 : vector<10x16x18xf32>
    %138 = vector.extract_strided_slice %75 {offsets = [1, 0, 0], sizes = [10, 16, 18], strides = [1, 1, 1]} : vector<14x16x18xf32> to vector<10x16x18xf32>
    %c1_49 = arith.constant 1 : index
    %c4_50 = arith.constant 4 : index
    %c0_51 = arith.constant 0 : index
    %c0_52 = arith.constant 0 : index
    %139 = vector.load %arg5[%c1_49, %c4_50, %c0_51, %c0_52] : memref<5x5x16x1xf32, #tpu.memory_space<vmem>>, vector<1x1x16x1xf32>
    %140 = vector.shape_cast %139 : vector<1x1x16x1xf32> to vector<16x1xf32>
    %141 = vector.shape_cast %140 : vector<16x1xf32> to vector<1x16x1xf32>
    %142 = vector.broadcast %141 : vector<1x16x1xf32> to vector<10x16x18xf32>
    %143 = arith.mulf %138, %142 : vector<10x16x18xf32>
    %144 = arith.addf %137, %143 : vector<10x16x18xf32>
    %145 = vector.extract_strided_slice %71 {offsets = [2, 0, 0], sizes = [10, 16, 18], strides = [1, 1, 1]} : vector<14x16x18xf32> to vector<10x16x18xf32>
    %c2_53 = arith.constant 2 : index
    %c0_54 = arith.constant 0 : index
    %c0_55 = arith.constant 0 : index
    %c0_56 = arith.constant 0 : index
    %146 = vector.load %arg5[%c2_53, %c0_54, %c0_55, %c0_56] : memref<5x5x16x1xf32, #tpu.memory_space<vmem>>, vector<1x1x16x1xf32>
    %147 = vector.shape_cast %146 : vector<1x1x16x1xf32> to vector<16x1xf32>
    %148 = vector.shape_cast %147 : vector<16x1xf32> to vector<1x16x1xf32>
    %149 = vector.broadcast %148 : vector<1x16x1xf32> to vector<10x16x18xf32>
    %150 = arith.mulf %145, %149 : vector<10x16x18xf32>
    %151 = arith.addf %144, %150 : vector<10x16x18xf32>
    %152 = vector.extract_strided_slice %72 {offsets = [2, 0, 0], sizes = [10, 16, 18], strides = [1, 1, 1]} : vector<14x16x18xf32> to vector<10x16x18xf32>
    %c2_57 = arith.constant 2 : index
    %c1_58 = arith.constant 1 : index
    %c0_59 = arith.constant 0 : index
    %c0_60 = arith.constant 0 : index
    %153 = vector.load %arg5[%c2_57, %c1_58, %c0_59, %c0_60] : memref<5x5x16x1xf32, #tpu.memory_space<vmem>>, vector<1x1x16x1xf32>
    %154 = vector.shape_cast %153 : vector<1x1x16x1xf32> to vector<16x1xf32>
    %155 = vector.shape_cast %154 : vector<16x1xf32> to vector<1x16x1xf32>
    %156 = vector.broadcast %155 : vector<1x16x1xf32> to vector<10x16x18xf32>
    %157 = arith.mulf %152, %156 : vector<10x16x18xf32>
    %158 = arith.addf %151, %157 : vector<10x16x18xf32>
    %159 = vector.extract_strided_slice %73 {offsets = [2, 0, 0], sizes = [10, 16, 18], strides = [1, 1, 1]} : vector<14x16x18xf32> to vector<10x16x18xf32>
    %c2_61 = arith.constant 2 : index
    %c2_62 = arith.constant 2 : index
    %c0_63 = arith.constant 0 : index
    %c0_64 = arith.constant 0 : index
    %160 = vector.load %arg5[%c2_61, %c2_62, %c0_63, %c0_64] : memref<5x5x16x1xf32, #tpu.memory_space<vmem>>, vector<1x1x16x1xf32>
    %161 = vector.shape_cast %160 : vector<1x1x16x1xf32> to vector<16x1xf32>
    %162 = vector.shape_cast %161 : vector<16x1xf32> to vector<1x16x1xf32>
    %163 = vector.broadcast %162 : vector<1x16x1xf32> to vector<10x16x18xf32>
    %164 = arith.mulf %159, %163 : vector<10x16x18xf32>
    %165 = arith.addf %158, %164 : vector<10x16x18xf32>
    %166 = vector.extract_strided_slice %74 {offsets = [2, 0, 0], sizes = [10, 16, 18], strides = [1, 1, 1]} : vector<14x16x18xf32> to vector<10x16x18xf32>
    %c2_65 = arith.constant 2 : index
    %c3_66 = arith.constant 3 : index
    %c0_67 = arith.constant 0 : index
    %c0_68 = arith.constant 0 : index
    %167 = vector.load %arg5[%c2_65, %c3_66, %c0_67, %c0_68] : memref<5x5x16x1xf32, #tpu.memory_space<vmem>>, vector<1x1x16x1xf32>
    %168 = vector.shape_cast %167 : vector<1x1x16x1xf32> to vector<16x1xf32>
    %169 = vector.shape_cast %168 : vector<16x1xf32> to vector<1x16x1xf32>
    %170 = vector.broadcast %169 : vector<1x16x1xf32> to vector<10x16x18xf32>
    %171 = arith.mulf %166, %170 : vector<10x16x18xf32>
    %172 = arith.addf %165, %171 : vector<10x16x18xf32>
    %173 = vector.extract_strided_slice %75 {offsets = [2, 0, 0], sizes = [10, 16, 18], strides = [1, 1, 1]} : vector<14x16x18xf32> to vector<10x16x18xf32>
    %c2_69 = arith.constant 2 : index
    %c4_70 = arith.constant 4 : index
    %c0_71 = arith.constant 0 : index
    %c0_72 = arith.constant 0 : index
    %174 = vector.load %arg5[%c2_69, %c4_70, %c0_71, %c0_72] : memref<5x5x16x1xf32, #tpu.memory_space<vmem>>, vector<1x1x16x1xf32>
    %175 = vector.shape_cast %174 : vector<1x1x16x1xf32> to vector<16x1xf32>
    %176 = vector.shape_cast %175 : vector<16x1xf32> to vector<1x16x1xf32>
    %177 = vector.broadcast %176 : vector<1x16x1xf32> to vector<10x16x18xf32>
    %178 = arith.mulf %173, %177 : vector<10x16x18xf32>
    %179 = arith.addf %172, %178 : vector<10x16x18xf32>
    %180 = vector.extract_strided_slice %71 {offsets = [3, 0, 0], sizes = [10, 16, 18], strides = [1, 1, 1]} : vector<14x16x18xf32> to vector<10x16x18xf32>
    %c3_73 = arith.constant 3 : index
    %c0_74 = arith.constant 0 : index
    %c0_75 = arith.constant 0 : index
    %c0_76 = arith.constant 0 : index
    %181 = vector.load %arg5[%c3_73, %c0_74, %c0_75, %c0_76] : memref<5x5x16x1xf32, #tpu.memory_space<vmem>>, vector<1x1x16x1xf32>
    %182 = vector.shape_cast %181 : vector<1x1x16x1xf32> to vector<16x1xf32>
    %183 = vector.shape_cast %182 : vector<16x1xf32> to vector<1x16x1xf32>
    %184 = vector.broadcast %183 : vector<1x16x1xf32> to vector<10x16x18xf32>
    %185 = arith.mulf %180, %184 : vector<10x16x18xf32>
    %186 = arith.addf %179, %185 : vector<10x16x18xf32>
    %187 = vector.extract_strided_slice %72 {offsets = [3, 0, 0], sizes = [10, 16, 18], strides = [1, 1, 1]} : vector<14x16x18xf32> to vector<10x16x18xf32>
    %c3_77 = arith.constant 3 : index
    %c1_78 = arith.constant 1 : index
    %c0_79 = arith.constant 0 : index
    %c0_80 = arith.constant 0 : index
    %188 = vector.load %arg5[%c3_77, %c1_78, %c0_79, %c0_80] : memref<5x5x16x1xf32, #tpu.memory_space<vmem>>, vector<1x1x16x1xf32>
    %189 = vector.shape_cast %188 : vector<1x1x16x1xf32> to vector<16x1xf32>
    %190 = vector.shape_cast %189 : vector<16x1xf32> to vector<1x16x1xf32>
    %191 = vector.broadcast %190 : vector<1x16x1xf32> to vector<10x16x18xf32>
    %192 = arith.mulf %187, %191 : vector<10x16x18xf32>
    %193 = arith.addf %186, %192 : vector<10x16x18xf32>
    %194 = vector.extract_strided_slice %73 {offsets = [3, 0, 0], sizes = [10, 16, 18], strides = [1, 1, 1]} : vector<14x16x18xf32> to vector<10x16x18xf32>
    %c3_81 = arith.constant 3 : index
    %c2_82 = arith.constant 2 : index
    %c0_83 = arith.constant 0 : index
    %c0_84 = arith.constant 0 : index
    %195 = vector.load %arg5[%c3_81, %c2_82, %c0_83, %c0_84] : memref<5x5x16x1xf32, #tpu.memory_space<vmem>>, vector<1x1x16x1xf32>
    %196 = vector.shape_cast %195 : vector<1x1x16x1xf32> to vector<16x1xf32>
    %197 = vector.shape_cast %196 : vector<16x1xf32> to vector<1x16x1xf32>
    %198 = vector.broadcast %197 : vector<1x16x1xf32> to vector<10x16x18xf32>
    %199 = arith.mulf %194, %198 : vector<10x16x18xf32>
    %200 = arith.addf %193, %199 : vector<10x16x18xf32>
    %201 = vector.extract_strided_slice %74 {offsets = [3, 0, 0], sizes = [10, 16, 18], strides = [1, 1, 1]} : vector<14x16x18xf32> to vector<10x16x18xf32>
    %c3_85 = arith.constant 3 : index
    %c3_86 = arith.constant 3 : index
    %c0_87 = arith.constant 0 : index
    %c0_88 = arith.constant 0 : index
    %202 = vector.load %arg5[%c3_85, %c3_86, %c0_87, %c0_88] : memref<5x5x16x1xf32, #tpu.memory_space<vmem>>, vector<1x1x16x1xf32>
    %203 = vector.shape_cast %202 : vector<1x1x16x1xf32> to vector<16x1xf32>
    %204 = vector.shape_cast %203 : vector<16x1xf32> to vector<1x16x1xf32>
    %205 = vector.broadcast %204 : vector<1x16x1xf32> to vector<10x16x18xf32>
    %206 = arith.mulf %201, %205 : vector<10x16x18xf32>
    %207 = arith.addf %200, %206 : vector<10x16x18xf32>
    %208 = vector.extract_strided_slice %75 {offsets = [3, 0, 0], sizes = [10, 16, 18], strides = [1, 1, 1]} : vector<14x16x18xf32> to vector<10x16x18xf32>
    %c3_89 = arith.constant 3 : index
    %c4_90 = arith.constant 4 : index
    %c0_91 = arith.constant 0 : index
    %c0_92 = arith.constant 0 : index
    %209 = vector.load %arg5[%c3_89, %c4_90, %c0_91, %c0_92] : memref<5x5x16x1xf32, #tpu.memory_space<vmem>>, vector<1x1x16x1xf32>
    %210 = vector.shape_cast %209 : vector<1x1x16x1xf32> to vector<16x1xf32>
    %211 = vector.shape_cast %210 : vector<16x1xf32> to vector<1x16x1xf32>
    %212 = vector.broadcast %211 : vector<1x16x1xf32> to vector<10x16x18xf32>
    %213 = arith.mulf %208, %212 : vector<10x16x18xf32>
    %214 = arith.addf %207, %213 : vector<10x16x18xf32>
    %215 = vector.extract_strided_slice %71 {offsets = [4, 0, 0], sizes = [10, 16, 18], strides = [1, 1, 1]} : vector<14x16x18xf32> to vector<10x16x18xf32>
    %c4_93 = arith.constant 4 : index
    %c0_94 = arith.constant 0 : index
    %c0_95 = arith.constant 0 : index
    %c0_96 = arith.constant 0 : index
    %216 = vector.load %arg5[%c4_93, %c0_94, %c0_95, %c0_96] : memref<5x5x16x1xf32, #tpu.memory_space<vmem>>, vector<1x1x16x1xf32>
    %217 = vector.shape_cast %216 : vector<1x1x16x1xf32> to vector<16x1xf32>
    %218 = vector.shape_cast %217 : vector<16x1xf32> to vector<1x16x1xf32>
    %219 = vector.broadcast %218 : vector<1x16x1xf32> to vector<10x16x18xf32>
    %220 = arith.mulf %215, %219 : vector<10x16x18xf32>
    %221 = arith.addf %214, %220 : vector<10x16x18xf32>
    %222 = vector.extract_strided_slice %72 {offsets = [4, 0, 0], sizes = [10, 16, 18], strides = [1, 1, 1]} : vector<14x16x18xf32> to vector<10x16x18xf32>
    %c4_97 = arith.constant 4 : index
    %c1_98 = arith.constant 1 : index
    %c0_99 = arith.constant 0 : index
    %c0_100 = arith.constant 0 : index
    %223 = vector.load %arg5[%c4_97, %c1_98, %c0_99, %c0_100] : memref<5x5x16x1xf32, #tpu.memory_space<vmem>>, vector<1x1x16x1xf32>
    %224 = vector.shape_cast %223 : vector<1x1x16x1xf32> to vector<16x1xf32>
    %225 = vector.shape_cast %224 : vector<16x1xf32> to vector<1x16x1xf32>
    %226 = vector.broadcast %225 : vector<1x16x1xf32> to vector<10x16x18xf32>
    %227 = arith.mulf %222, %226 : vector<10x16x18xf32>
    %228 = arith.addf %221, %227 : vector<10x16x18xf32>
    %229 = vector.extract_strided_slice %73 {offsets = [4, 0, 0], sizes = [10, 16, 18], strides = [1, 1, 1]} : vector<14x16x18xf32> to vector<10x16x18xf32>
    %c4_101 = arith.constant 4 : index
    %c2_102 = arith.constant 2 : index
    %c0_103 = arith.constant 0 : index
    %c0_104 = arith.constant 0 : index
    %230 = vector.load %arg5[%c4_101, %c2_102, %c0_103, %c0_104] : memref<5x5x16x1xf32, #tpu.memory_space<vmem>>, vector<1x1x16x1xf32>
    %231 = vector.shape_cast %230 : vector<1x1x16x1xf32> to vector<16x1xf32>
    %232 = vector.shape_cast %231 : vector<16x1xf32> to vector<1x16x1xf32>
    %233 = vector.broadcast %232 : vector<1x16x1xf32> to vector<10x16x18xf32>
    %234 = arith.mulf %229, %233 : vector<10x16x18xf32>
    %235 = arith.addf %228, %234 : vector<10x16x18xf32>
    %236 = vector.extract_strided_slice %74 {offsets = [4, 0, 0], sizes = [10, 16, 18], strides = [1, 1, 1]} : vector<14x16x18xf32> to vector<10x16x18xf32>
    %c4_105 = arith.constant 4 : index
    %c3_106 = arith.constant 3 : index
    %c0_107 = arith.constant 0 : index
    %c0_108 = arith.constant 0 : index
    %237 = vector.load %arg5[%c4_105, %c3_106, %c0_107, %c0_108] : memref<5x5x16x1xf32, #tpu.memory_space<vmem>>, vector<1x1x16x1xf32>
    %238 = vector.shape_cast %237 : vector<1x1x16x1xf32> to vector<16x1xf32>
    %239 = vector.shape_cast %238 : vector<16x1xf32> to vector<1x16x1xf32>
    %240 = vector.broadcast %239 : vector<1x16x1xf32> to vector<10x16x18xf32>
    %241 = arith.mulf %236, %240 : vector<10x16x18xf32>
    %242 = arith.addf %235, %241 : vector<10x16x18xf32>
    %243 = vector.extract_strided_slice %75 {offsets = [4, 0, 0], sizes = [10, 16, 18], strides = [1, 1, 1]} : vector<14x16x18xf32> to vector<10x16x18xf32>
    %c4_109 = arith.constant 4 : index
    %c4_110 = arith.constant 4 : index
    %c0_111 = arith.constant 0 : index
    %c0_112 = arith.constant 0 : index
    %244 = vector.load %arg5[%c4_109, %c4_110, %c0_111, %c0_112] : memref<5x5x16x1xf32, #tpu.memory_space<vmem>>, vector<1x1x16x1xf32>
    %245 = vector.shape_cast %244 : vector<1x1x16x1xf32> to vector<16x1xf32>
    %246 = vector.shape_cast %245 : vector<16x1xf32> to vector<1x16x1xf32>
    %247 = vector.broadcast %246 : vector<1x16x1xf32> to vector<10x16x18xf32>
    %248 = arith.mulf %243, %247 : vector<10x16x18xf32>
    %249 = arith.addf %242, %248 : vector<10x16x18xf32>
    %c0_113 = arith.constant 0 : index
    %c0_114 = arith.constant 0 : index
    %250 = vector.load %arg6[%c0_113, %c0_114] : memref<16x1xf32, #tpu.memory_space<vmem>>, vector<16x1xf32>
    %251 = vector.shape_cast %250 : vector<16x1xf32> to vector<1x16x1xf32>
    %252 = vector.broadcast %251 : vector<1x16x1xf32> to vector<10x16x18xf32>
    %253 = arith.addf %249, %252 : vector<10x16x18xf32>
    %cst_115 = arith.constant 5.000000e-01 : f32
    %254 = vector.broadcast %cst_115 : f32 to vector<10x16x18xf32>
    %255 = arith.mulf %254, %253 : vector<10x16x18xf32>
    %cst_116 = arith.constant 4.471500e-02 : f32
    %256 = vector.broadcast %cst_116 : f32 to vector<10x16x18xf32>
    %257 = arith.mulf %256, %253 : vector<10x16x18xf32>
    %258 = arith.mulf %257, %253 : vector<10x16x18xf32>
    %259 = arith.mulf %258, %253 : vector<10x16x18xf32>
    %260 = arith.addf %253, %259 : vector<10x16x18xf32>
    %cst_117 = arith.constant 0.797884583 : f32
    %261 = vector.broadcast %cst_117 : f32 to vector<10x16x18xf32>
    %262 = arith.mulf %261, %260 : vector<10x16x18xf32>
    %263 = math.tanh %262 : vector<10x16x18xf32>
    %cst_118 = arith.constant 1.000000e+00 : f32
    %264 = vector.broadcast %cst_118 : f32 to vector<10x16x18xf32>
    %265 = arith.addf %264, %263 : vector<10x16x18xf32>
    %266 = arith.mulf %255, %265 : vector<10x16x18xf32>
    %267 = tpu.iota {dimensions = array<i32: 0>} : vector<10x1x18xi32>
    %c-1_i32 = arith.constant -1 : i32
    %268 = arith.addi %0, %c-1_i32 : i32
    %269 = vector.broadcast %268 : i32 to vector<10x1x18xi32>
    %270 = arith.addi %267, %269 : vector<10x1x18xi32>
    %271 = tpu.iota {dimensions = array<i32: 2>} : vector<10x1x18xi32>
    %c-1_i32_119 = arith.constant -1 : i32
    %272 = vector.broadcast %c-1_i32_119 : i32 to vector<10x1x18xi32>
    %273 = arith.addi %271, %272 : vector<10x1x18xi32>
    %c0_i32_120 = arith.constant 0 : i32
    %274 = vector.broadcast %c0_i32_120 : i32 to vector<10x1x18xi32>
    %275 = arith.cmpi sge, %270, %274 : vector<10x1x18xi32>
    %c16_i32_121 = arith.constant 16 : i32
    %276 = vector.broadcast %c16_i32_121 : i32 to vector<10x1x18xi32>
    %277 = arith.cmpi slt, %270, %276 : vector<10x1x18xi32>
    %278 = arith.andi %275, %277 : vector<10x1x18xi1>
    %c0_i32_122 = arith.constant 0 : i32
    %279 = vector.broadcast %c0_i32_122 : i32 to vector<10x1x18xi32>
    %280 = arith.cmpi sge, %273, %279 : vector<10x1x18xi32>
    %281 = arith.andi %278, %280 : vector<10x1x18xi1>
    %c16_i32_123 = arith.constant 16 : i32
    %282 = vector.broadcast %c16_i32_123 : i32 to vector<10x1x18xi32>
    %283 = arith.cmpi slt, %273, %282 : vector<10x1x18xi32>
    %284 = arith.andi %281, %283 : vector<10x1x18xi1>
    %cst_124 = arith.constant 0.000000e+00 : f32
    %285 = vector.shape_cast %284 : vector<10x1x18xi1> to vector<10x1x18xi1>
    %286 = vector.broadcast %285 : vector<10x1x18xi1> to vector<10x16x18xi1>
    %287 = vector.broadcast %cst_124 : f32 to vector<10x16x18xf32>
    %288 = arith.select %286, %266, %287 : vector<10x16x18xi1>, vector<10x16x18xf32>
    %289 = vector.extract_strided_slice %288 {offsets = [1, 0, 2], sizes = [8, 16, 16], strides = [1, 1, 1]} : vector<10x16x18xf32> to vector<8x16x16xf32>
    %290 = vector.extract_strided_slice %288 {offsets = [1, 0, 0], sizes = [8, 16, 16], strides = [1, 1, 1]} : vector<10x16x18xf32> to vector<8x16x16xf32>
    %291 = vector.shape_cast %11 : vector<1x16x1xi1> to vector<1x16x1xi1>
    %292 = vector.broadcast %291 : vector<1x16x1xi1> to vector<8x16x16xi1>
    %293 = arith.select %292, %290, %289 : vector<8x16x16xi1>, vector<8x16x16xf32>
    %294 = vector.extract_strided_slice %288 {offsets = [2, 0, 1], sizes = [8, 16, 16], strides = [1, 1, 1]} : vector<10x16x18xf32> to vector<8x16x16xf32>
    %295 = vector.shape_cast %16 : vector<1x16x1xi1> to vector<1x16x1xi1>
    %296 = vector.broadcast %295 : vector<1x16x1xi1> to vector<8x16x16xi1>
    %297 = arith.select %296, %294, %293 : vector<8x16x16xi1>, vector<8x16x16xf32>
    %298 = vector.extract_strided_slice %288 {offsets = [0, 0, 1], sizes = [8, 16, 16], strides = [1, 1, 1]} : vector<10x16x18xf32> to vector<8x16x16xf32>
    %299 = vector.shape_cast %21 : vector<1x16x1xi1> to vector<1x16x1xi1>
    %300 = vector.broadcast %299 : vector<1x16x1xi1> to vector<8x16x16xi1>
    %301 = arith.select %300, %298, %297 : vector<8x16x16xi1>, vector<8x16x16xf32>
    %302 = vector.extract_strided_slice %288 {offsets = [1, 0, 1], sizes = [8, 16, 16], strides = [1, 1, 1]} : vector<10x16x18xf32> to vector<8x16x16xf32>
    %303 = vector.shape_cast %23 : vector<1x16x1xi1> to vector<1x16x1xi1>
    %304 = vector.broadcast %303 : vector<1x16x1xi1> to vector<8x16x16xi1>
    %305 = arith.select %304, %302, %301 : vector<8x16x16xi1>, vector<8x16x16xf32>
    %c0_125 = arith.constant 0 : index
    %c0_126 = arith.constant 0 : index
    %306 = vector.load %arg7[%c0_125, %c0_126] : memref<16x16xf32, #tpu.memory_space<vmem>>, vector<16x16xf32>
    %c0_127 = arith.constant 0 : index
    %c0_128 = arith.constant 0 : index
    %307 = vector.load %arg8[%c0_127, %c0_128] : memref<16x1xf32, #tpu.memory_space<vmem>>, vector<16x1xf32>
    %308 = vector.shape_cast %306 : vector<16x16xf32> to vector<1x16x16xf32>
    %309 = vector.broadcast %308 : vector<1x16x16xf32> to vector<8x16x16xf32>
    "tpu.trace_start"() <{level = 10 : i32, message = "roc,rcl->rol"}> : () -> ()
    %cst_129 = arith.constant dense<0.000000e+00> : vector<8x16x16xf32>
    %310 = tpu.matmul %309, %305, %cst_129 {dimension_numbers = #tpu.dot_dimension_numbers<[2], [1], [1], [2], [0, 0, 0, 1, 1, 2], [0], [0]>} : vector<8x16x16xf32>, vector<8x16x16xf32>, vector<8x16x16xf32> -> vector<8x16x16xf32>
    "tpu.trace_stop"() : () -> ()
    %311 = vector.shape_cast %307 : vector<16x1xf32> to vector<1x16x1xf32>
    %312 = vector.broadcast %311 : vector<1x16x1xf32> to vector<8x16x16xf32>
    %313 = arith.addf %310, %312 : vector<8x16x16xf32>
    %314 = vector.extract_strided_slice %5 {offsets = [4, 0, 4], sizes = [8, 16, 16], strides = [1, 1, 1]} : vector<16x16x24xf32> to vector<8x16x16xf32>
    %315 = arith.addf %313, %314 : vector<8x16x16xf32>
    %c0_130 = arith.constant 0 : index
    %c0_131 = arith.constant 0 : index
    %c0_132 = arith.constant 0 : index
    %c0_133 = arith.constant 0 : index
    %316 = vector.load %arg9[%c0_130, %c0_131, %c0_132, %c0_133] : memref<1x8x16x16xf32, #tpu.memory_space<vmem>>, vector<1x8x16x16xf32>
    %317 = vector.shape_cast %316 : vector<1x8x16x16xf32> to vector<8x16x16xf32>
    %318 = vector.shape_cast %315 : vector<8x16x16xf32> to vector<1x8x16x16xf32>
    tpu.vector_store %arg9[%c0_130, %c0_131, %c0_132, %c0_133], %318 {strides = array<i32>} : memref<1x8x16x16xf32, #tpu.memory_space<vmem>>, vector<1x8x16x16xf32>,
    return
  }
  func.func @transform_1(%arg0: i32, %arg1: i32) -> (i32, i32) {
    %c0_i32 = arith.constant 0 : i32
    %c0_i32_0 = arith.constant 0 : i32
    %c0_i32_1 = arith.constant 0 : i32
    return %c0_i32, %c0_i32_0 : i32, i32
  }
  func.func @transform_2(%arg0: i32, %arg1: i32) -> (i32, i32) {
    %c0_i32 = arith.constant 0 : i32
    %c0_i32_0 = arith.constant 0 : i32
    %c0_i32_1 = arith.constant 0 : i32
    return %c0_i32, %c0_i32_0 : i32, i32
  }
  func.func @transform_3(%arg0: i32, %arg1: i32) -> (i32, i32, i32, i32) {
    %c0_i32 = arith.constant 0 : i32
    %c0_i32_0 = arith.constant 0 : i32
    %c0_i32_1 = arith.constant 0 : i32
    %c0_i32_2 = arith.constant 0 : i32
    %c0_i32_3 = arith.constant 0 : i32
    return %c0_i32, %c0_i32_0, %c0_i32_1, %c0_i32_2 : i32, i32, i32, i32
  }
  func.func @transform_4(%arg0: i32, %arg1: i32) -> (i32, i32) {
    %c0_i32 = arith.constant 0 : i32
    %c0_i32_0 = arith.constant 0 : i32
    %c0_i32_1 = arith.constant 0 : i32
    return %c0_i32, %c0_i32_0 : i32, i32
  }
  func.func @transform_5(%arg0: i32, %arg1: i32) -> (i32, i32) {
    %c0_i32 = arith.constant 0 : i32
    %c0_i32_0 = arith.constant 0 : i32
    %c0_i32_1 = arith.constant 0 : i32
    return %c0_i32, %c0_i32_0 : i32, i32
  }
  func.func @transform_6(%arg0: i32, %arg1: i32) -> (i32, i32) {
    %c0_i32 = arith.constant 0 : i32
    %c0_i32_0 = arith.constant 0 : i32
    %c0_i32_1 = arith.constant 0 : i32
    return %c0_i32, %c0_i32_0 : i32, i32
  }
  func.func @transform_7(%arg0: i32, %arg1: i32) -> (i32, i32, i32, i32) {
    %c0_i32 = arith.constant 0 : i32
    %c0_i32_0 = arith.constant 0 : i32
    %c0_i32_1 = arith.constant 0 : i32
    return %arg0, %arg1, %c0_i32, %c0_i32_0 : i32, i32, i32, i32
  }
}

</mosaic_0001>

<bundles_post_ra>
// kernel: elfeb_forward.1
= control target key start
LH: loop header
LB: loop body
LE: loop exit
PB: predicated region body
PF: predicated region fallthrough
CT: control target
= control target key end

     0   :  { %s6902_s24 = smov 0   ;;  %s6904_s25 = smov 0   ;;  %s11070_s0 = inlined_call_operand.vmem [shape: f32[2,24,16,24], index: 0, kind: input, shape index: {}]   ;;  %s11071_s1 = inlined_call_operand.vmem [shape: f32[16,16], index: 1, kind: input, shape index: {}]   ;;  %s11072_s2 = inlined_call_operand.vmem [shape: f32[16,1], index: 2, kind: input, shape index: {}]   ;;  %s11073_s3 = inlined_call_operand.vmem [shape: f32[5,5,16,1], index: 3, kind: input, shape index: {}]   ;;  %s11074_s4 = inlined_call_operand.vmem [shape: f32[16,1], index: 4, kind: input, shape index: {}]   ;;  %s11075_s5 = inlined_call_operand.vmem [shape: f32[16,16], index: 5, kind: input, shape index: {}]   ;;  %s11076_s6 = inlined_call_operand.vmem [shape: f32[16,1], index: 6, kind: input, shape index: {}]   ;;  %s11077_s7 = inlined_call_operand.vmem [shape: f32[2,16,16,16], index: 7, kind: output, shape index: {}]  }
   0x1   :  { %s6906_s26 = smov 0   ;;  %s6908_s27 = smov 0  }
   0x2   :  { %s6910_s28 = smov 0  }
   0x3 LB: > { %s26_s29 = sadd.s32 1, %s6846_s26  ;;  %s29_s30 = sadd.s32 1, %s6850_s27  ;;  %s6854_s28 = sphi %s6910_s28, %s17_s28   ;;  %s6850_s27 = sphi %s6908_s27, %s12053_s27   ;;  %s6846_s26 = sphi %s6906_s26, %s12052_s26   ;;  %s6842_s25 = sphi %s6904_s25, %s12051_s25   ;;  %s6838_s24 = sphi %s6902_s24, %s12050_s24  }
   0x4   : > { %p27_p0 = scmp.ge.s32.totalorder %s26_s29, 2  ;;  %p6383_p1 = scmp.ge.s32.totalorder %s6854_s28, 1 }
   0x5   : > { %p217_p2 = scmp.lt.s32.totalorder %s6854_s28, 5 }
   0x6   : > { %s12055_s29 = smov (%p27_p0, %s26_s29), 0  ;;  %s12057_s30 = smov (!%p27_p0, %s29_s30), %s6850_s27 }
   0x7   : > { %p218_p3 = pnand %p6383_p1, %p217_p2  ;;  %p31_p4 = scmp.ge.s32.totalorder %s12057_s30, 2 }
   0x9   : > { %s12059_s30 = smov (%p31_p4, %s12057_s30), 0  ;;  %221 = sbr.rel (%p218_p3) target bundleno = 2378 (0x94a), region = 44 }
   0xe   : > { %s6932_s8 = sshll.u32 %s6838_s24, 3  ;;  %p248_p5 = scmp.lt.s32.totalorder %s6842_s25, 1 }
   0xf   : > { %p250_p6 = scmp.lt.s32.totalorder %s6932_s8, 15  ;;  %s6485_s9 = sshll.u32 %s6838_s24, 7 }
  0x10   : > { %s249_s10 = scalar_select %p248_p5, %s6842_s25, 1 }
  0x11   : > { %s251_s11 = scalar_select %p250_p6, %s6932_s8, 15 }
  0x12   : > { %s6386_s12 = sshll.u32 %s249_s10, 5  ;;  %s260_s13 = smul.u32 384, %s6842_s25 }
  0x13   : > { %s6385_s14 = sshll.u32 %s251_s11, 1 }
  0x14   : > { %s254_s15 = sadd.s32 %s6386_s12, %s6385_s14  ;;  %s261_s16 = sadd.s32 %s6485_s9, %s260_s13 }
  0x15   : > { %s6387_s17 = sshll.u32 %s254_s15, 3  ;;  %s6939_s20 = scalar_lea.vmem %s11070_s0, %s261_s16 }
  0x16   : > { %s6944_s23 = scalar_lea.vmem %s11077_s7, %s6387_s17  ;;  %v6947_v0 = vld [vmem:[%s6939_s20 + $0x8] sm:$0xff]  ;;  %v6950_v1 = vld [vmem:[%s6939_s20 + $0x10] sm:$0xff]  ;;  %v6953_v2 = vld [vmem:[%s6939_s20 + $0x18] sm:$0xff] }
  0x17   : > { %v6956_v3 = vld [vmem:[%s6939_s20 + $0x20] sm:$0xff]  ;;  %v6959_v4 = vld [vmem:[%s6939_s20 + $0x28] sm:$0xff]  ;;  %v6962_v5 = vld [vmem:[%s6939_s20 + $0x30] sm:$0xff] }
  0x18   : > { %v6965_v6 = vld [vmem:[%s6939_s20 + $0x38] sm:$0xff]  ;;  %v6968_v7 = vld [vmem:[%s6939_s20 + $0x40] sm:$0xff]  ;;  %v6971_v8 = vld [vmem:[%s6939_s20 + $0x48] sm:$0xff] }
  0x19   : > { %11204 = vst [vmem:[#allocation6_spill] sm:$0xff] %v6968_v7  ;;  %11205 = vst [vmem:[#allocation7_spill] sm:$0xff] %v6971_v8  ;;  %v6974_v9 = vld [vmem:[%s6939_s20 + $0x50] sm:$0xff]  ;;  %v6977_v10 = vld [vmem:[%s6939_s20 + $0x58] sm:$0xff] }
  0x1a   : > { %11206 = vst [vmem:[#allocation8_spill] sm:$0xff] %v6974_v9  ;;  %11207 = vst [vmem:[#allocation9_spill] sm:$0xff] %v6977_v10  ;;  %v6980_v11 = vld [vmem:[%s6939_s20 + $0x60] sm:$0xff]  ;;  %v6983_v12 = vld [vmem:[%s6939_s20 + $0x68] sm:$0xff] }
  0x1b   : > { %11208 = vst [vmem:[#allocation10_spill] sm:$0xff] %v6980_v11  ;;  %11209 = vst [vmem:[#allocation11_spill] sm:$0xff] %v6983_v12  ;;  %v6986_v13 = vld [vmem:[%s6939_s20 + $0x70] sm:$0xff]  ;;  %v6989_v14 = vld [vmem:[%s6939_s20 + $0x78] sm:$0xff] }
  0x1c   : > { %11210 = vst [vmem:[#allocation12_spill] sm:$0xff] %v6986_v13  ;;  %11211 = vst [vmem:[#allocation13_spill] sm:$0xff] %v6989_v14  ;;  %v6992_v15 = vld [vmem:[%s6939_s20 + $0x80] sm:$0xff]  ;;  %v6995_v16 = vld [vmem:[%s6939_s20 + $0x88] sm:$0xff] }
  0x1d   : > { %11212 = vst [vmem:[#allocation14_spill] sm:$0xff] %v6992_v15  ;;  %11213 = vst [vmem:[#allocation15_spill] sm:$0xff] %v6995_v16  ;;  %v6998_v17 = vld [vmem:[%s6939_s20 + $0x90] sm:$0xff]  ;;  %v7001_v18 = vld [vmem:[%s6939_s20 + $0x98] sm:$0xff] }
  0x1e   : > { %11214 = vst [vmem:[#allocation16_spill] sm:$0xff] %v6998_v17  ;;  %11215 = vst [vmem:[#allocation17_spill] sm:$0xff] %v7001_v18  ;;  %v7004_v19 = vld [vmem:[%s6939_s20 + $0xa0] sm:$0xff]  ;;  %v7007_v20 = vld [vmem:[%s6939_s20 + $0xa8] sm:$0xff] }
  0x1f   : > { %11216 = vst [vmem:[#allocation18_spill] sm:$0xff] %v7004_v19  ;;  %11217 = vst [vmem:[#allocation19_spill] sm:$0xff] %v7007_v20  ;;  %v7010_v21 = vld [vmem:[%s6939_s20 + $0xb0] sm:$0xff]  ;;  %v7013_v22 = vld [vmem:[%s6939_s20 + $0xb8] sm:$0xff] }
  0x20   : > { %11218 = vst [vmem:[#allocation20_spill] sm:$0xff] %v7010_v21  ;;  %11219 = vst [vmem:[#allocation21_spill] sm:$0xff] %v7013_v22  ;;  %v7016_v23 = vld [vmem:[%s6939_s20 + $0xc0] sm:$0xff]  ;;  %v7019_v24 = vld [vmem:[%s6939_s20 + $0xc8] sm:$0xff] }
  0x21   : > { %v7022_v25 = vld [vmem:[%s6939_s20 + $0xd0] sm:$0xff]  ;;  %v7025_v26 = vld [vmem:[%s6939_s20 + $0xd8] sm:$0xff]  ;;  %v7028_v27 = vld [vmem:[%s6939_s20 + $0xe0] sm:$0xff] }
  0x22   : > { %v7031_v28 = vld [vmem:[%s6939_s20 + $0xe8] sm:$0xff]  ;;  %v7034_v29 = vld [vmem:[%s6939_s20 + $0xf0] sm:$0xff]  ;;  %v7037_v30 = vld [vmem:[%s6939_s20 + $0xf8] sm:$0xff] }
  0x23   : > { %367 = vsyncadd [#allocation3], 4096 }
  0x24   : > { %6834 = dma.done.wait [#allocation3], 4096 }
  0x25   : > { %6835 = vsyncadd [#allocation3], 4294963200  ;;  %s6856_s24 = smov 126   ;;  %v6857_v31 = vmov 0   ;;  %v782_v32 = vld [vmem:[%s11072_s2 + $0x8] sm:$0xff]  ;;  %v781_v33 = vld [vmem:[%s11072_s2] sm:$0xff]  ;;  %v404_v35 = vlaneseq }
  0x26   : > { %459 = vrot.lane.b32.xlu0 %v6950_v1, %s6856_s24  ;;  %463 = vrot.lane.b32.xlu1 %v6956_v3, %s6856_s24  ;;  %v2108_v34 = vld [vmem:[%s11073_s3] sm:$0xff]  ;;  %v11221_v37 = vmov 0  ;;  %s6858_s14 = smov 1   ;;  %vm11081_vm3 = vcmask 130048   ;;  %s6859_s10 = smov 127  }
  0x27   : > { %6775 = vset.pattern.permute.xlu1 %v6857_v31  ;;  %6774 = vset.pattern.permute.xlu0 %v6857_v31  ;;  %v7105_v36 = vshrl.u32 %v404_v35, 7  ;;  %s1962_s13 = sadd.s32 4294967293, %s6932_s8  ;;  %s6860_s15 = smov 124  }
  0x28   : > { %s6861_s16 = smov 125   ;;  %s5224_s11 = sadd.s32 4294967295, %s6932_s8 }
  0x29   : > { %11220 = vst [vmem:[#allocation22_spill] sm:$0xff] %v7105_v36  ;;  %vm407_vm0 = vcmp.ge.s32.totalorder %v7105_v36, 3  ;;  %vm409_vm1 = vcmp.lt.s32.totalorder %v7105_v36, 6  ;;  %vm11078_vm4 = vcmp.ge.s32.totalorder %v7105_v36, 6 }
  0x2a   : > { %461 = vrot.lane.b32.xlu0 %v6953_v2, %s6856_s24  ;;  %465 = vrot.lane.b32.xlu1 %v6959_v4, %s6856_s24  ;;  %vm7109_vm2 = vmand %vm407_vm0, %vm409_vm1 }
  0x2b   : > { %v11222_v37 = vsel %vm7109_vm2, 4294967295, %v11221_v37 }
  0x2c   : > { %11223 = vst [vmem:[#allocation23_spill] sm:$0xff] %v11222_v37 }
  0x2e   : > { %467 = vrot.lane.b32.xlu0 %v6962_v5, %s6856_s24  ;;  %469 = vrot.lane.b32.xlu1 %v6965_v6, %s6856_s24 }
  0x32   : > { %471 = vrot.lane.b32.xlu0 %v6968_v7, %s6856_s24  ;;  %473 = vrot.lane.b32.xlu1 %v6971_v8, %s6856_s24 }
  0x36   : > { %475 = vrot.lane.b32.xlu0 %v6974_v9, %s6856_s24  ;;  %477 = vrot.lane.b32.xlu1 %v6977_v10, %s6856_s24 }
  0x3a   : > { %479 = vrot.lane.b32.xlu0 %v6980_v11, %s6856_s24  ;;  %481 = vrot.lane.b32.xlu1 %v6983_v12, %s6856_s24 }
  0x3e   : > { %483 = vrot.lane.b32.xlu0 %v6986_v13, %s6856_s24  ;;  %485 = vrot.lane.b32.xlu1 %v6989_v14, %s6856_s24 }
  0x42   : > { %487 = vrot.lane.b32.xlu0 %v6992_v15, %s6856_s24  ;;  %489 = vrot.lane.b32.xlu1 %v6995_v16, %s6856_s24 }
  0x46   : > { %491 = vrot.lane.b32.xlu0 %v6998_v17, %s6856_s24  ;;  %493 = vrot.lane.b32.xlu1 %v7001_v18, %s6856_s24 }
  0x4a   : > { %495 = vrot.lane.b32.xlu0 %v7004_v19, %s6856_s24  ;;  %497 = vrot.lane.b32.xlu1 %v7007_v20, %s6856_s24 }
  0x4e   : > { %499 = vrot.lane.b32.xlu0 %v7010_v21, %s6856_s24  ;;  %501 = vrot.lane.b32.xlu1 %v7013_v22, %s6856_s24 }
  0x52   : > { %503 = vrot.lane.b32.xlu0 %v7016_v23, %s6856_s24  ;;  %505 = vrot.lane.b32.xlu1 %v7019_v24, %s6856_s24 }
  0x56   : > { %507 = vrot.lane.b32.xlu0 %v7022_v25, %s6856_s24  ;;  %509 = vrot.lane.b32.xlu1 %v7025_v26, %s6856_s24 }
  0x5a   : > { %511 = vrot.lane.b32.xlu0 %v7028_v27, %s6856_s24  ;;  %513 = vrot.lane.b32.xlu1 %v7031_v28, %s6856_s24 }
  0x5e   : > { %790 = vperm.xlu1 %6775, %v782_v32   ;;  %785 = vperm.xlu0 %6774, %v781_v33  }
  0x62   : > { %2112 = vperm.xlu1 %6775, %v2108_v34  }
  0x98   : > { %v460_v38 = vpop.permute.xlu0 %459  ;;  %v464_v39 = vpop.permute.xlu1 %463 }
  0x99   : > { %v543_v40 = vsel %vm7109_vm2, %v6950_v1, %v460_v38  ;;  %v545_v41 = vsel %vm7109_vm2, %v6956_v3, %v464_v39 }
  0x9a   : > { %603 = vrot.lane.b32.xlu0 %v543_v40, %s6858_s14 }
  0x9c   : > { %v462_v42 = vpop.permute.xlu0 %461  ;;  %v466_v43 = vpop.permute.xlu1 %465 }
  0x9d   : > { %605 = vrot.lane.b32.xlu1 %v462_v42, %s6858_s14 }
  0x9e   : > { %607 = vrot.lane.b32.xlu0 %v545_v41, %s6858_s14 }
  0xa0   : > { %v468_v44 = vpop.permute.xlu0 %467  ;;  %v470_v45 = vpop.permute.xlu1 %469 }
  0xa1   : > { %609 = vrot.lane.b32.xlu1 %v466_v43, %s6858_s14  ;;  %v547_v46 = vsel %vm7109_vm2, %v6962_v5, %v468_v44 }
  0xa2   : > { %611 = vrot.lane.b32.xlu0 %v547_v46, %s6858_s14 }
  0xa4   : > { %v472_v47 = vpop.permute.xlu0 %471  ;;  %v474_v48 = vpop.permute.xlu1 %473 }
  0xa5   : > { %613 = vrot.lane.b32.xlu1 %v470_v45, %s6858_s14  ;;  %v549_v49 = vsel %vm7109_vm2, %v6968_v7, %v472_v47 }
  0xa6   : > { %615 = vrot.lane.b32.xlu0 %v549_v49, %s6858_s14  ;;  %v2109_v49 = vld [vmem:[%s11073_s3 + $0x8] sm:$0xff] }
  0xa8   : > { %v476_v50 = vpop.permute.xlu0 %475  ;;  %v478_v51 = vpop.permute.xlu1 %477 }
  0xa9   : > { %617 = vrot.lane.b32.xlu1 %v474_v48, %s6858_s14  ;;  %v551_v52 = vsel %vm7109_vm2, %v6974_v9, %v476_v50  ;;  %v6418_v50 = vld [vmem:[%s11073_s3 + $0x10] sm:$0xff] }
  0xaa   : > { %619 = vrot.lane.b32.xlu0 %v551_v52, %s6858_s14  ;;  %v6421_v52 = vld [vmem:[%s11073_s3 + $0x28] sm:$0xff] }
  0xac   : > { %v480_v53 = vpop.permute.xlu0 %479  ;;  %v482_v54 = vpop.permute.xlu1 %481 }
  0xad   : > { %621 = vrot.lane.b32.xlu1 %v478_v51, %s6858_s14  ;;  %v553_v55 = vsel %vm7109_vm2, %v6980_v11, %v480_v53  ;;  %v6419_v51 = vld [vmem:[%s11073_s3 + $0x18] sm:$0xff]  ;;  %v6420_v53 = vld [vmem:[%s11073_s3 + $0x20] sm:$0xff] }
  0xae   : > { %623 = vrot.lane.b32.xlu0 %v553_v55, %s6858_s14  ;;  %v6423_v55 = vld [vmem:[%s11073_s3 + $0x38] sm:$0xff] }
  0xb0   : > { %v484_v56 = vpop.permute.xlu0 %483  ;;  %v486_v57 = vpop.permute.xlu1 %485 }
  0xb1   : > { %625 = vrot.lane.b32.xlu1 %v482_v54, %s6858_s14  ;;  %v555_v58 = vsel %vm7109_vm2, %v6986_v13, %v484_v56  ;;  %v6422_v54 = vld [vmem:[%s11073_s3 + $0x30] sm:$0xff]  ;;  %v6425_v56 = vld [vmem:[%s11073_s3 + $0x48] sm:$0xff] }
  0xb2   : > { %627 = vrot.lane.b32.xlu0 %v555_v58, %s6858_s14  ;;  %v6426_v58 = vld [vmem:[%s11073_s3 + $0x50] sm:$0xff] }
  0xb4   : > { %v488_v59 = vpop.permute.xlu0 %487  ;;  %v490_v60 = vpop.permute.xlu1 %489 }
  0xb5   : > { %629 = vrot.lane.b32.xlu1 %v486_v57, %s6858_s14  ;;  %v557_v61 = vsel %vm7109_vm2, %v6992_v15, %v488_v59  ;;  %v6424_v57 = vld [vmem:[%s11073_s3 + $0x40] sm:$0xff]  ;;  %v6427_v59 = vld [vmem:[%s11073_s3 + $0x58] sm:$0xff] }
  0xb6   : > { %631 = vrot.lane.b32.xlu0 %v557_v61, %s6858_s14  ;;  %v6429_v61 = vld [vmem:[%s11073_s3 + $0x68] sm:$0xff] }
  0xb8   : > { %v492_v62 = vpop.permute.xlu0 %491  ;;  %v494_v63 = vpop.permute.xlu1 %493 }
  0xb9   : > { %633 = vrot.lane.b32.xlu1 %v490_v60, %s6858_s14  ;;  %v559_v1 = vsel %vm7109_vm2, %v6998_v17, %v492_v62  ;;  %v6428_v60 = vld [vmem:[%s11073_s3 + $0x60] sm:$0xff]  ;;  %v6431_v62 = vld [vmem:[%s11073_s3 + $0x78] sm:$0xff] }
  0xba   : > { %635 = vrot.lane.b32.xlu0 %v559_v1, %s6858_s14  ;;  %v6432_v1 = vld [vmem:[%s11073_s3 + $0x80] sm:$0xff] }
  0xbc   : > { %v496_v31 = vpop.permute.xlu0 %495  ;;  %v498_v32 = vpop.permute.xlu1 %497 }
  0xbd   : > { %637 = vrot.lane.b32.xlu1 %v494_v63, %s6858_s14  ;;  %v561_v33 = vsel %vm7109_vm2, %v7004_v19, %v496_v31  ;;  %v6430_v63 = vld [vmem:[%s11073_s3 + $0x70] sm:$0xff]  ;;  %v6433_v31 = vld [vmem:[%s11073_s3 + $0x88] sm:$0xff] }
  0xbe   : > { %639 = vrot.lane.b32.xlu0 %v561_v33, %s6858_s14  ;;  %v6434_v33 = vld [vmem:[%s11073_s3 + $0x90] sm:$0xff] }
  0xc0   : > { %v500_v34 = vpop.permute.xlu0 %499  ;;  %v502_v38 = vpop.permute.xlu1 %501 }
  0xc1   : > { %641 = vrot.lane.b32.xlu1 %v498_v32, %s6858_s14  ;;  %v563_v39 = vsel %vm7109_vm2, %v7010_v21, %v500_v34  ;;  %v6435_v32 = vld [vmem:[%s11073_s3 + $0x98] sm:$0xff]  ;;  %v6436_v34 = vld [vmem:[%s11073_s3 + $0xa0] sm:$0xff] }
  0xc2   : > { %643 = vrot.lane.b32.xlu0 %v563_v39, %s6858_s14  ;;  %v6438_v39 = vld [vmem:[%s11073_s3 + $0xb0] sm:$0xff] }
  0xc4   : > { %v504_v40 = vpop.permute.xlu0 %503  ;;  %v506_v41 = vpop.permute.xlu1 %505 }
  0xc5   : > { %645 = vrot.lane.b32.xlu1 %v502_v38, %s6858_s14  ;;  %v565_v42 = vsel %vm7109_vm2, %v7016_v23, %v504_v40  ;;  %v6437_v38 = vld [vmem:[%s11073_s3 + $0xa8] sm:$0xff]  ;;  %v6439_v40 = vld [vmem:[%s11073_s3 + $0xb8] sm:$0xff] }
  0xc6   : > { %647 = vrot.lane.b32.xlu0 %v565_v42, %s6858_s14  ;;  %v6440_v42 = vld [vmem:[%s11073_s3 + $0xc0] sm:$0xff] }
  0xc8   : > { %v508_v43 = vpop.permute.xlu0 %507  ;;  %v510_v44 = vpop.permute.xlu1 %509 }
  0xc9   : > { %649 = vrot.lane.b32.xlu1 %v506_v41, %s6858_s14  ;;  %v567_v45 = vsel %vm7109_vm2, %v7022_v25, %v508_v43  ;;  %v6441_v41 = vld [vmem:[%s11073_s3 + $0xc8] sm:$0xff] }
  0xca   : > { %651 = vrot.lane.b32.xlu0 %v567_v45, %s6858_s14  ;;  %v7263_v45 = vadd.s32 8, %v7105_v36 }
  0xcc   : > { %v512_v46 = vpop.permute.xlu0 %511  ;;  %v514_v48 = vpop.permute.xlu1 %513  ;;  %11226 = vst [vmem:[#allocation26_spill] sm:$0xff] %v7263_v45  ;;  %vm420_vm5 = vcmp.ge.s32.totalorder %v7263_v45, 9  ;;  %vm422_vm6 = vcmp.lt.s32.totalorder %v7263_v45, 12  ;;  %vm11080_vm7 = vcmp.lt.s32.totalorder %v7263_v45, 9  ;;  %vm11079_vm9 = vcmp.ge.s32.totalorder %v7263_v45, 12 }
  0xcd   : > { %653 = vrot.lane.b32.xlu1 %v510_v44, %s6858_s14  ;;  %v569_v47 = vsel %vm7109_vm2, %v7028_v27, %v512_v46  ;;  %v7268_v46 = vld [vmem:[%s11071_s1] sm:$0xff]  ;;  %vm7284_vm8 = vmand %vm420_vm5, %vm422_vm6 }
  0xce   : > { %655 = vrot.lane.b32.xlu0 %v569_v47, %s6858_s14  ;;  %6578 = vmatprep.mubr.msk.f32.mxu0 %vm11081_vm3, %v7268_v46 }
  0xcf   : > { %6585 = vmatprep.mubr.msk.f32.mxu1 %vm11081_vm3, %v7268_v46 }
  0xd1   : > { %657 = vrot.lane.b32.xlu1 %v514_v48, %s6858_s14 }
  0xd2   : > { %2117 = vperm.xlu0 %6774, %v2109_v49  }
  0xd5   : > { %2145 = vperm.xlu1 %6775, %v6418_v50   ;;  %v11228_v50 = vmov 0 }
  0xd6   : > { %2150 = vperm.xlu0 %6774, %v6419_v51   ;;  %v11229_v50 = vsel %vm7284_vm8, 4294967295, %v11228_v50 }
  0xd7   : > { %11230 = vst [vmem:[#allocation28_spill] sm:$0xff] %v11229_v50 }
  0xd9   : > { %2283 = vperm.xlu1 %6775, %v6421_v52   ;;  %v7258_v43 = vpop.permute.xlu1 %790  ;;  %v7260_v44 = vpop.permute.xlu0 %785 }
  0xda   : > { %2278 = vperm.xlu0 %6774, %v6420_v53   ;;  %11224 = vst [vmem:[#allocation24_spill] sm:$0xff] %v7258_v43  ;;  %11225 = vst [vmem:[#allocation25_spill] sm:$0xff] %v7260_v44 }
  0xdd   : > { %2411 = vperm.xlu1 %6775, %v6422_v54   ;;  %v7275_v47 = vpop.permute.xlu1 %2112 }
  0xde   : > { %2416 = vperm.xlu0 %6774, %v6423_v55   ;;  %11227 = vst [vmem:[#allocation27_spill] sm:$0xff] %v7275_v47 }
  0xe1   : > { %2549 = vperm.xlu1 %6775, %v6425_v56  }
  0xe2   : > { %2544 = vperm.xlu0 %6774, %v6424_v57  }
  0xe5   : > { %2677 = vperm.xlu1 %6775, %v6426_v58  }
  0xe6   : > { %2682 = vperm.xlu0 %6774, %v6427_v59  }
  0xe9   : > { %2730 = vperm.xlu1 %6775, %v6428_v60  }
  0xea   : > { %2735 = vperm.xlu0 %6774, %v6429_v61  }
  0xed   : > { %2868 = vperm.xlu1 %6775, %v6431_v62  }
  0xee   : > { %2863 = vperm.xlu0 %6774, %v6430_v63  }
  0xf1   : > { %2996 = vperm.xlu1 %6775, %v6432_v1  }
  0xf2   : > { %3001 = vperm.xlu0 %6774, %v6433_v31  }
  0xf5   : > { %3134 = vperm.xlu1 %6775, %v6435_v32  }
  0xf6   : > { %3129 = vperm.xlu0 %6774, %v6434_v33  }
  0xf9   : > { %3262 = vperm.xlu1 %6775, %v6436_v34  }
  0xfa   : > { %3267 = vperm.xlu0 %6774, %v6437_v38  }
  0xfd   : > { %3315 = vperm.xlu1 %6775, %v6438_v39  }
  0xfe   : > { %3320 = vperm.xlu0 %6774, %v6439_v40  }
 0x101   : > { %3453 = vperm.xlu1 %6775, %v6441_v41  }
 0x102   : > { %3448 = vperm.xlu0 %6774, %v6440_v42  }
 0x10c   : > { %v604_v48 = vpop.permute.xlu0 %603 }
 0x10d   : > { %v687_v49 = vsel %vm11078_vm4, %v6956_v3, %v604_v48 }
 0x10e   : > { %795 = vrot.lane.b32.xlu1 %v687_v49, %s6859_s10 }
 0x10f   : > { %v606_v51 = vpop.permute.xlu1 %605 }
 0x110   : > { %v688_v52 = vsel %vm11080_vm7, %v6959_v4, %v606_v51  ;;  %v608_v53 = vpop.permute.xlu0 %607 }
 0x111   : > { %v689_v3 = vsel %vm11078_vm4, %v6962_v5, %v608_v53  ;;  %v720_v54 = vsel %vm7284_vm8, %v6947_v0, %v688_v52 }
 0x112   : > { %885 = vrot.lane.b32.xlu1 %v689_v3, %s6859_s10  ;;  %v752_v55 = vsel %vm11079_vm9, %v6953_v2, %v720_v54 }
 0x113   : > { %v610_v56 = vpop.permute.xlu1 %609  ;;  %797 = vrot.lane.b32.xlu0 %v752_v55, %s6859_s10 }
 0x114   : > { %v690_v57 = vsel %vm11080_vm7, %v6965_v6, %v610_v56  ;;  %v612_v58 = vpop.permute.xlu0 %611 }
 0x115   : > { %v722_v5 = vsel %vm7284_vm8, %v6953_v2, %v690_v57  ;;  %v691_v0 = vsel %vm11078_vm4, %v6968_v7, %v612_v58 }
 0x116   : > { %v754_v59 = vsel %vm11079_vm9, %v6959_v4, %v722_v5  ;;  %968 = vrot.lane.b32.xlu1 %v691_v0, %s6859_s10 }
 0x117   : > { %v614_v60 = vpop.permute.xlu1 %613  ;;  %887 = vrot.lane.b32.xlu0 %v754_v59, %s6859_s10 }
 0x118   : > { %v692_v61 = vsel %vm11080_vm7, %v6971_v8, %v614_v60  ;;  %v616_v62 = vpop.permute.xlu0 %615 }
 0x119   : > { %v724_v2 = vsel %vm7284_vm8, %v6959_v4, %v692_v61  ;;  %v693_v63 = vsel %vm11078_vm4, %v6974_v9, %v616_v62 }
 0x11a   : > { %v756_v1 = vsel %vm11079_vm9, %v6965_v6, %v724_v2  ;;  %1051 = vrot.lane.b32.xlu1 %v693_v63, %s6859_s10 }
 0x11b   : > { %v618_v31 = vpop.permute.xlu1 %617  ;;  %970 = vrot.lane.b32.xlu0 %v756_v1, %s6859_s10 }
 0x11c   : > { %v694_v32 = vsel %vm11080_vm7, %v6977_v10, %v618_v31  ;;  %v620_v33 = vpop.permute.xlu0 %619 }
 0x11d   : > { %v726_v4 = vsel %vm7284_vm8, %v6965_v6, %v694_v32  ;;  %v695_v34 = vsel %vm11078_vm4, %v6980_v11, %v620_v33 }
 0x11e   : > { %v758_v38 = vsel %vm11079_vm9, %v6971_v8, %v726_v4  ;;  %1134 = vrot.lane.b32.xlu1 %v695_v34, %s6859_s10 }
 0x11f   : > { %v622_v39 = vpop.permute.xlu1 %621  ;;  %1053 = vrot.lane.b32.xlu0 %v758_v38, %s6859_s10 }
 0x120   : > { %v696_v40 = vsel %vm11080_vm7, %v6983_v12, %v622_v39  ;;  %v624_v41 = vpop.permute.xlu0 %623 }
 0x121   : > { %v728_v6 = vsel %vm7284_vm8, %v6971_v8, %v696_v40  ;;  %v697_v42 = vsel %vm11078_vm4, %v6986_v13, %v624_v41 }
 0x122   : > { %v760_v48 = vsel %vm11079_vm9, %v6977_v10, %v728_v6  ;;  %1217 = vrot.lane.b32.xlu1 %v697_v42, %s6859_s10 }
 0x123   : > { %v626_v49 = vpop.permute.xlu1 %625  ;;  %1136 = vrot.lane.b32.xlu0 %v760_v48, %s6859_s10 }
 0x124   : > { %v698_v51 = vsel %vm11080_vm7, %v6989_v14, %v626_v49  ;;  %v628_v52 = vpop.permute.xlu0 %627 }
 0x125   : > { %v730_v53 = vsel %vm7284_vm8, %v6977_v10, %v698_v51  ;;  %v699_v3 = vsel %vm11078_vm4, %v6992_v15, %v628_v52 }
 0x126   : > { %v762_v54 = vsel %vm11079_vm9, %v6983_v12, %v730_v53  ;;  %1300 = vrot.lane.b32.xlu1 %v699_v3, %s6859_s10 }
 0x127   : > { %v630_v55 = vpop.permute.xlu1 %629  ;;  %1219 = vrot.lane.b32.xlu0 %v762_v54, %s6859_s10 }
 0x128   : > { %v700_v56 = vsel %vm11080_vm7, %v6995_v16, %v630_v55  ;;  %v632_v57 = vpop.permute.xlu0 %631 }
 0x129   : > { %v732_v58 = vsel %vm7284_vm8, %v6983_v12, %v700_v56  ;;  %v701_v5 = vsel %vm11078_vm4, %v6998_v17, %v632_v57 }
 0x12a   : > { %v764_v0 = vsel %vm11079_vm9, %v6989_v14, %v732_v58  ;;  %1383 = vrot.lane.b32.xlu1 %v701_v5, %s6859_s10 }
 0x12b   : > { %v634_v59 = vpop.permute.xlu1 %633  ;;  %1302 = vrot.lane.b32.xlu0 %v764_v0, %s6859_s10 }
 0x12c   : > { %v702_v60 = vsel %vm11080_vm7, %v7001_v18, %v634_v59  ;;  %v636_v61 = vpop.permute.xlu0 %635 }
 0x12d   : > { %v734_v62 = vsel %vm7284_vm8, %v6989_v14, %v702_v60  ;;  %v703_v2 = vsel %vm11078_vm4, %v7004_v19, %v636_v61 }
 0x12e   : > { %v766_v63 = vsel %vm11079_vm9, %v6995_v16, %v734_v62  ;;  %1466 = vrot.lane.b32.xlu1 %v703_v2, %s6859_s10 }
 0x12f   : > { %v638_v1 = vpop.permute.xlu1 %637  ;;  %1385 = vrot.lane.b32.xlu0 %v766_v63, %s6859_s10 }
 0x130   : > { %v704_v31 = vsel %vm11080_vm7, %v7007_v20, %v638_v1  ;;  %v640_v32 = vpop.permute.xlu0 %639 }
 0x131   : > { %v736_v33 = vsel %vm7284_vm8, %v6995_v16, %v704_v31  ;;  %v705_v4 = vsel %vm11078_vm4, %v7010_v21, %v640_v32 }
 0x132   : > { %v768_v34 = vsel %vm11079_vm9, %v7001_v18, %v736_v33  ;;  %1549 = vrot.lane.b32.xlu1 %v705_v4, %s6859_s10 }
 0x133   : > { %v642_v38 = vpop.permute.xlu1 %641  ;;  %1468 = vrot.lane.b32.xlu0 %v768_v34, %s6859_s10 }
 0x134   : > { %v706_v39 = vsel %vm11080_vm7, %v7013_v22, %v642_v38  ;;  %v644_v40 = vpop.permute.xlu0 %643 }
 0x135   : > { %v738_v41 = vsel %vm7284_vm8, %v7001_v18, %v706_v39  ;;  %v707_v6 = vsel %vm11078_vm4, %v7016_v23, %v644_v40 }
 0x136   : > { %v770_v42 = vsel %vm11079_vm9, %v7007_v20, %v738_v41  ;;  %1632 = vrot.lane.b32.xlu1 %v707_v6, %s6859_s10 }
 0x137   : > { %v646_v48 = vpop.permute.xlu1 %645  ;;  %1551 = vrot.lane.b32.xlu0 %v770_v42, %s6859_s10 }
 0x138   : > { %v708_v49 = vsel %vm11080_vm7, %v7019_v24, %v646_v48  ;;  %v648_v51 = vpop.permute.xlu0 %647 }
 0x139   : > { %v740_v52 = vsel %vm7284_vm8, %v7007_v20, %v708_v49  ;;  %v709_v23 = vsel %vm11078_vm4, %v7022_v25, %v648_v51 }
 0x13a   : > { %v772_v53 = vsel %vm11079_vm9, %v7013_v22, %v740_v52  ;;  %1715 = vrot.lane.b32.xlu1 %v709_v23, %s6859_s10 }
 0x13b   : > { %v650_v3 = vpop.permute.xlu1 %649  ;;  %1634 = vrot.lane.b32.xlu0 %v772_v53, %s6859_s10 }
 0x13c   : > { %v710_v54 = vsel %vm11080_vm7, %v7025_v26, %v650_v3  ;;  %v652_v55 = vpop.permute.xlu0 %651 }
 0x13d   : > { %v742_v56 = vsel %vm7284_vm8, %v7013_v22, %v710_v54  ;;  %v711_v25 = vsel %vm11078_vm4, %v7028_v27, %v652_v55 }
 0x13e   : > { %v774_v57 = vsel %vm11079_vm9, %v7019_v24, %v742_v56  ;;  %1798 = vrot.lane.b32.xlu1 %v711_v25, %s6859_s10 }
 0x13f   : > { %v654_v58 = vpop.permute.xlu1 %653  ;;  %1717 = vrot.lane.b32.xlu0 %v774_v57, %s6859_s10  ;;  %v7534_v57 = vld [vmem:[%s11071_s1 + $0x8] sm:$0xff] }
 0x140   : > { %v712_v5 = vsel %vm11080_vm7, %v7031_v28, %v654_v58  ;;  %v656_v0 = vpop.permute.xlu0 %655 }
 0x141   : > { %v744_v59 = vsel %vm7284_vm8, %v7019_v24, %v712_v5  ;;  %v713_v27 = vsel %vm11078_vm4, %v7034_v29, %v656_v0 }
 0x142   : > { %v776_v60 = vsel %vm11079_vm9, %v7025_v26, %v744_v59  ;;  %1881 = vrot.lane.b32.xlu1 %v713_v27, %s6859_s10 }
 0x143   : > { %v658_v61 = vpop.permute.xlu1 %657  ;;  %1800 = vrot.lane.b32.xlu0 %v776_v60, %s6859_s10 }
 0x144   : > { %v714_v62 = vsel %vm11080_vm7, %v7037_v30, %v658_v61 }
 0x145   : > { %v746_v24 = vsel %vm7284_vm8, %v7025_v26, %v714_v62 }
 0x146   : > { %v778_v29 = vsel %vm11079_vm9, %v7031_v28, %v746_v24 }
 0x147   : > { %1883 = vrot.lane.b32.xlu0 %v778_v29, %s6859_s10 }
 0x14d   : > { %v7481_v2 = vpop.permute.xlu0 %2117 }
 0x14e   : > { %11231 = vst [vmem:[#allocation29_spill] sm:$0xff] %v7481_v2 }
 0x150   : > { %v7483_v63 = vpop.permute.xlu1 %2145 }
 0x151   : > { %v7485_v1 = vpop.permute.xlu0 %2150 }
 0x154   : > { %v7487_v31 = vpop.permute.xlu1 %2283 }
 0x155   : > { %v7489_v32 = vpop.permute.xlu0 %2278 }
 0x158   : > { %v7491_v30 = vpop.permute.xlu1 %2411 }
 0x159   : > { %v7493_v33 = vpop.permute.xlu0 %2416 }
 0x15c   : > { %v7495_v26 = vpop.permute.xlu1 %2549 }
 0x15d   : > { %v7497_v4 = vpop.permute.xlu0 %2544 }
 0x160   : > { %v7499_v28 = vpop.permute.xlu1 %2677 }
 0x161   : > { %11232 = vst [vmem:[#allocation30_spill] sm:$0xff] %v7499_v28  ;;  %v7501_v34 = vpop.permute.xlu0 %2682 }
 0x162   : > { %11233 = vst [vmem:[#allocation31_spill] sm:$0xff] %v7501_v34 }
 0x164   : > { %v7503_v38 = vpop.permute.xlu1 %2730 }
 0x165   : > { %v7505_v39 = vpop.permute.xlu0 %2735 }
 0x168   : > { %v7507_v40 = vpop.permute.xlu1 %2868 }
 0x169   : > { %v7509_v41 = vpop.permute.xlu0 %2863 }
 0x16c   : > { %v7511_v6 = vpop.permute.xlu1 %2996 }
 0x16d   : > { %v7513_v42 = vpop.permute.xlu0 %3001 }
 0x170   : > { %v7515_v48 = vpop.permute.xlu1 %3134 }
 0x171   : > { %v7517_v49 = vpop.permute.xlu0 %3129 }
 0x174   : > { %v7519_v51 = vpop.permute.xlu1 %3262 }
 0x175   : > { %11234 = vst [vmem:[#allocation32_spill] sm:$0xff] %v7519_v51  ;;  %v7521_v52 = vpop.permute.xlu0 %3267 }
 0x176   : > { %11235 = vst [vmem:[#allocation33_spill] sm:$0xff] %v7521_v52 }
 0x178   : > { %v7523_v23 = vpop.permute.xlu1 %3315 }
 0x179   : > { %v7525_v53 = vpop.permute.xlu0 %3320 }
 0x17c   : > { %v7527_v3 = vpop.permute.xlu1 %3453 }
 0x17d   : > { %v7529_v55 = vpop.permute.xlu0 %3448 }
 0x180   : > { %v796_v54 = vpop.permute.xlu1 %795 }
 0x184   : > { %v886_v56 = vpop.permute.xlu1 %885 }
 0x185   : > { %v798_v25 = vpop.permute.xlu0 %797 }
 0x186   : > { %6574 = vmatprep.subr.mxu0 %v798_v25 }
 0x187   : > { %6575 = vmatpush3.msra.mxu0 %v798_v25 }
 0x188   : > { %6576 = vmatprep.subr.mxu0 %v796_v54  ;;  %v969_v58 = vpop.permute.xlu1 %968 }
 0x189   : > { %6577 = vmatpush3.msra.mxu0 %v796_v54  ;;  %v888_v5 = vpop.permute.xlu0 %887 }
 0x18a   : > { %6579 = vmatmul.mubr.msk.f32.vlgmr.msra.gmra.mxu0 %vm11081_vm3, %v7534_v57  ;;  %6581 = vmatprep.subr.mxu1 %v888_v5 }
 0x18b   : > { %6582 = vmatpush3.msra.mxu1 %v888_v5  ;;  %6592 = vmatprep.mubr.msk.f32.mxu0 %vm11081_vm3, %v7268_v46 }
 0x18c   : > { %6583 = vmatprep.subr.mxu1 %v886_v56  ;;  %v1052_v0 = vpop.permute.xlu1 %1051 }
 0x18d   : > { %6584 = vmatpush3.msra.mxu1 %v886_v56  ;;  %v971_v59 = vpop.permute.xlu0 %970 }
 0x18e   : > { %6586 = vmatmul.mubr.msk.f32.vlgmr.msra.gmra.mxu1 %vm11081_vm3, %v7534_v57  ;;  %6588 = vmatprep.subr.mxu0 %v971_v59 }
 0x18f   : > { %6589 = vmatpush3.msra.mxu0 %v971_v59  ;;  %6599 = vmatprep.mubr.msk.f32.mxu1 %vm11081_vm3, %v7268_v46 }
 0x190   : > { %6590 = vmatprep.subr.mxu0 %v969_v58  ;;  %v1135_v27 = vpop.permute.xlu1 %1134 }
 0x191   : > { %v1054_v60 = vpop.permute.xlu0 %1053  ;;  %6591 = vmatpush3.msra.mxu0 %v969_v58 }
 0x192   : > { %6593 = vmatmul.mubr.msk.f32.vlgmr.msra.gmra.mxu0 %vm11081_vm3, %v7534_v57  ;;  %6595 = vmatprep.subr.mxu1 %v1054_v60 }
 0x193   : > { %6596 = vmatpush3.msra.mxu1 %v1054_v60  ;;  %6606 = vmatprep.mubr.msk.f32.mxu0 %vm11081_vm3, %v7268_v46 }
 0x194   : > { %6597 = vmatprep.subr.mxu1 %v1052_v0  ;;  %v1218_v61 = vpop.permute.xlu1 %1217 }
 0x195   : > { %v1137_v62 = vpop.permute.xlu0 %1136  ;;  %6598 = vmatpush3.msra.mxu1 %v1052_v0 }
 0x196   : > { %6600 = vmatmul.mubr.msk.f32.vlgmr.msra.gmra.mxu1 %vm11081_vm3, %v7534_v57  ;;  %6602 = vmatprep.subr.mxu0 %v1137_v62 }
 0x197   : > { %6603 = vmatpush3.msra.mxu0 %v1137_v62  ;;  %6613 = vmatprep.mubr.msk.f32.mxu1 %vm11081_vm3, %v7268_v46 }
 0x198   : > { %6604 = vmatprep.subr.mxu0 %v1135_v27  ;;  %v1301_v24 = vpop.permute.xlu1 %1300 }
 0x199   : > { %v1220_v29 = vpop.permute.xlu0 %1219  ;;  %6605 = vmatpush3.msra.mxu0 %v1135_v27 }
 0x19a   : > { %6607 = vmatmul.mubr.msk.f32.vlgmr.msra.gmra.mxu0 %vm11081_vm3, %v7534_v57  ;;  %6609 = vmatprep.subr.mxu1 %v1220_v29 }
 0x19b   : > { %6610 = vmatpush3.msra.mxu1 %v1220_v29  ;;  %6620 = vmatprep.mubr.msk.f32.mxu0 %vm11081_vm3, %v7268_v46 }
 0x19c   : > { %6611 = vmatprep.subr.mxu1 %v1218_v61  ;;  %v1384_v54 = vpop.permute.xlu1 %1383 }
 0x19d   : > { %v1303_v56 = vpop.permute.xlu0 %1302  ;;  %6612 = vmatpush3.msra.mxu1 %v1218_v61 }
 0x19e   : > { %6614 = vmatmul.mubr.msk.f32.vlgmr.msra.gmra.mxu1 %vm11081_vm3, %v7534_v57  ;;  %6616 = vmatprep.subr.mxu0 %v1303_v56 }
 0x19f   : > { %6617 = vmatpush3.msra.mxu0 %v1303_v56  ;;  %6627 = vmatprep.mubr.msk.f32.mxu1 %vm11081_vm3, %v7268_v46 }
 0x1a0   : > { %6618 = vmatprep.subr.mxu0 %v1301_v24  ;;  %v1467_v25 = vpop.permute.xlu1 %1466 }
 0x1a1   : > { %v1386_v58 = vpop.permute.xlu0 %1385  ;;  %6619 = vmatpush3.msra.mxu0 %v1301_v24 }
 0x1a2   : > { %6621 = vmatmul.mubr.msk.f32.vlgmr.msra.gmra.mxu0 %vm11081_vm3, %v7534_v57  ;;  %6623 = vmatprep.subr.mxu1 %v1386_v58 }
 0x1a3   : > { %6624 = vmatpush3.msra.mxu1 %v1386_v58  ;;  %6634 = vmatprep.mubr.msk.f32.mxu0 %vm11081_vm3, %v7268_v46 }
 0x1a4   : > { %6625 = vmatprep.subr.mxu1 %v1384_v54  ;;  %v1550_v5 = vpop.permute.xlu1 %1549 }
 0x1a5   : > { %v1469_v0 = vpop.permute.xlu0 %1468  ;;  %6626 = vmatpush3.msra.mxu1 %v1384_v54 }
 0x1a6   : > { %6628 = vmatmul.mubr.msk.f32.vlgmr.msra.gmra.mxu1 %vm11081_vm3, %v7534_v57  ;;  %6630 = vmatprep.subr.mxu0 %v1469_v0 }
 0x1a7   : > { %6631 = vmatpush3.msra.mxu0 %v1469_v0  ;;  %6641 = vmatprep.mubr.msk.f32.mxu1 %vm11081_vm3, %v7268_v46 }
 0x1a8   : > { %6632 = vmatprep.subr.mxu0 %v1467_v25  ;;  %v1633_v27 = vpop.permute.xlu1 %1632 }
 0x1a9   : > { %v1552_v59 = vpop.permute.xlu0 %1551  ;;  %6633 = vmatpush3.msra.mxu0 %v1467_v25  ;;  %v7589_v25 = vstv %s1962_s13 }
 0x1aa   : > { %6635 = vmatmul.mubr.msk.f32.vlgmr.msra.gmra.mxu0 %vm11081_vm3, %v7534_v57  ;;  %6637 = vmatprep.subr.mxu1 %v1552_v59  ;;  %v1967_v58 = vadd.s32 4, %v7589_v25  ;;  %v1970_v0 = vadd.s32 7, %v7589_v25 }
 0x1ab   : > { %6638 = vmatpush3.msra.mxu1 %v1552_v59  ;;  %6648 = vmatprep.mubr.msk.f32.mxu0 %vm11081_vm3, %v7268_v46  ;;  %v1971_v59 = vadd.s32 8, %v7589_v25 }
 0x1ac   : > { %6639 = vmatprep.subr.mxu1 %v1550_v5  ;;  %v1716_v61 = vpop.permute.xlu1 %1715  ;;  %vm1984_vm10 = vcmp.ge.s32.totalorder %v1967_v58, 0  ;;  %vm1998_vm11 = vcmp.lt.s32.totalorder %v1967_v58, 16  ;;  %vm1987_vm0 = vcmp.ge.s32.totalorder %v1970_v0, 0  ;;  %vm2001_vm1 = vcmp.lt.s32.totalorder %v1970_v0, 16 }
 0x1ad   : > { %v1635_v60 = vpop.permute.xlu0 %1634  ;;  %6640 = vmatpush3.msra.mxu1 %v1550_v5  ;;  %v1969_v5 = vadd.s32 6, %v7589_v25  ;;  %vm7601_vm5 = vmand %vm1984_vm10, %vm1998_vm11  ;;  %vm1988_vm6 = vcmp.ge.s32.totalorder %v1971_v59, 0  ;;  %vm2002_vm4 = vcmp.lt.s32.totalorder %v1971_v59, 16  ;;  %v11250_v58 = vmov 0 }
 0x1ae   : > { %6642 = vmatmul.mubr.msk.f32.vlgmr.msra.gmra.mxu1 %vm11081_vm3, %v7534_v57  ;;  %6644 = vmatprep.subr.mxu0 %v1635_v60  ;;  %vm2015_vm11 = vmand %vm1987_vm0, %vm2001_vm1  ;;  %v1975_v0 = vadd.s32 12, %v7589_v25  ;;  %v11254_v59 = vmov 0 }
 0x1af   : > { %6645 = vmatpush3.msra.mxu0 %v1635_v60  ;;  %6655 = vmatprep.mubr.msk.f32.mxu1 %vm11081_vm3, %v7268_v46  ;;  %v7598_v60 = vand.u32 127, %v404_v35  ;;  %vm1986_vm14 = vcmp.ge.s32.totalorder %v1969_v5, 0  ;;  %vm2000_vm15 = vcmp.lt.s32.totalorder %v1969_v5, 16  ;;  %v1974_v5 = vadd.s32 11, %v7589_v25 }
 0x1b0   : > { %6646 = vmatprep.subr.mxu0 %v1633_v27  ;;  %v1799_v24 = vpop.permute.xlu1 %1798  ;;  %vm2014_vm8 = vmand %vm1986_vm14, %vm2000_vm15 }
 0x1b1   : > { %v1718_v62 = vpop.permute.xlu0 %1717  ;;  %6647 = vmatpush3.msra.mxu0 %v1633_v27  ;;  %v1972_v27 = vadd.s32 9, %v7589_v25  ;;  %11236 = vst [vmem:[#allocation34_spill] sm:$0xff] %v7598_v60 }
 0x1b2   : > { %6649 = vmatmul.mubr.msk.f32.vlgmr.msra.gmra.mxu0 %vm11081_vm3, %v7534_v57  ;;  %6651 = vmatprep.subr.mxu1 %v1718_v62 }
 0x1b3   : > { %6652 = vmatpush3.msra.mxu1 %v1718_v62  ;;  %6662 = vmatprep.mubr.msk.f32.mxu0 %vm11081_vm3, %v7268_v46  ;;  %v7606_v62 = vadd.s32 4294967293, %v7598_v60  ;;  %vm1989_vm7 = vcmp.ge.s32.totalorder %v1972_v27, 0 }
 0x1b4   : > { %6653 = vmatprep.subr.mxu1 %v1716_v61  ;;  %v1882_v56 = vpop.permute.xlu1 %1881 }
 0x1b5   : > { %v1801_v29 = vpop.permute.xlu0 %1800  ;;  %6654 = vmatpush3.msra.mxu1 %v1716_v61  ;;  %v11237_v61 = vmov 0  ;;  %vm2022_vm14 = vcmp.ge.s32.totalorder %v7606_v62, 0 }
 0x1b6   : > { %6656 = vmatmul.mubr.msk.f32.vlgmr.msra.gmra.mxu1 %vm11081_vm3, %v7534_v57  ;;  %6658 = vmatprep.subr.mxu0 %v1801_v29  ;;  %v11238_v61 = vsel %vm7601_vm5, 4294967295, %v11237_v61  ;;  %vm2016_vm5 = vmand %vm1988_vm6, %vm2002_vm4 }
 0x1b7   : > { %6659 = vmatpush3.msra.mxu0 %v1801_v29  ;;  %6669 = vmatprep.mubr.msk.f32.mxu1 %vm11081_vm3, %v7268_v46  ;;  %v1968_v46 = vadd.s32 5, %v7589_v25  ;;  %vm11239_vm15 = vnez %v11238_v61  ;;  %vm2029_vm4 = vmand %vm2014_vm8, %vm2022_vm14  ;;  %v11258_v61 = vmov 0 }
 0x1b8   : > { %6660 = vmatprep.subr.mxu0 %v1799_v24  ;;  %vm2027_vm0 = vmand %vm11239_vm15, %vm2022_vm14 }
 0x1b9   : > { %v1884_v54 = vpop.permute.xlu0 %1883  ;;  %6661 = vmatpush3.msra.mxu0 %v1799_v24  ;;  %vm1985_vm12 = vcmp.ge.s32.totalorder %v1968_v46, 0  ;;  %vm1999_vm13 = vcmp.lt.s32.totalorder %v1968_v46, 16  ;;  %vm2030_vm6 = vmand %vm2015_vm11, %vm2022_vm14  ;;  %v11252_v46 = vmov 0 }
 0x1ba   : > { %6663 = vmatmul.mubr.msk.f32.vlgmr.msra.gmra.mxu0 %vm11081_vm3, %v7534_v57  ;;  %6665 = vmatprep.subr.mxu1 %v1884_v54  ;;  %vm2013_vm9 = vmand %vm1985_vm12, %vm1999_vm13 }
 0x1bb   : > { %6666 = vmatpush3.msra.mxu1 %v1884_v54  ;;  %vm2028_vm1 = vmand %vm2013_vm9, %vm2022_vm14 }
 0x1bc   : > { %6667 = vmatprep.subr.mxu1 %v1882_v56 }
 0x1bd   : > { %6668 = vmatpush3.msra.mxu1 %v1882_v56  ;;  %v11248_v56 = vmov 0 }
 0x1be   : > { %6670 = vmatmul.mubr.msk.f32.vlgmr.msra.gmra.mxu1 %vm11081_vm3, %v7534_v57  ;;  %v1973_v57 = vadd.s32 10, %v7589_v25  ;;  %vm2003_vm3 = vcmp.lt.s32.totalorder %v1972_v27, 16  ;;  %v1976_v27 = vadd.s32 13, %v7589_v25 }
 0x1bf   : > { %vm2017_vm12 = vmand %vm1989_vm7, %vm2003_vm3 }
 0x1c0   : > { %vm1990_vm2 = vcmp.ge.s32.totalorder %v1973_v57, 0  ;;  %vm2004_vm10 = vcmp.lt.s32.totalorder %v1973_v57, 16  ;;  %vm2031_vm3 = vmand %vm2016_vm5, %vm2022_vm14  ;;  %v11256_v57 = vmov 0 }
 0x1c1   : > { %vm2018_vm13 = vmand %vm1990_vm2, %vm2004_vm10  ;;  %vm2037_vm10 = vcmp.lt.s32.totalorder %v7606_v62, 16 }
 0x1c2   : > { %vm2032_vm2 = vmand %vm2017_vm12, %vm2022_vm14 }
 0x1c3   : > { %vm2033_vm7 = vmand %vm2018_vm13, %vm2022_vm14 }
 0x1c4   : > { %vm7628_vm9 = vmand %vm2027_vm0, %vm2037_vm10  ;;  %vm1991_vm0 = vcmp.ge.s32.totalorder %v1974_v5, 0 }
 0x1c5   : > { %vm7634_vm8 = vmand %vm2028_vm1, %vm2037_vm10  ;;  %vm2005_vm1 = vcmp.lt.s32.totalorder %v1974_v5, 16  ;;  %v1964_v5 = vadd.s32 1, %v7589_v25 }
 0x1c6   : > { %vm7640_vm5 = vmand %vm2029_vm4, %vm2037_vm10 }
 0x1c7   : > { %vm7646_vm11 = vmand %vm2030_vm6, %vm2037_vm10 }
 0x1c8   : > { %vm7652_vm12 = vmand %vm2031_vm3, %vm2037_vm10 }
 0x1c9   : > { %v11249_v56 = vsel %vm7652_vm12, 4294967295, %v11248_v56  ;;  %vm7658_vm13 = vmand %vm2032_vm2, %vm2037_vm10  ;;  %vm1992_vm2 = vcmp.ge.s32.totalorder %v1975_v0, 0  ;;  %vm1995_vm12 = vcmp.lt.s32.totalorder %v1964_v5, 16 }
 0x1ca   : > { %v11251_v58 = vsel %vm7658_vm13, 4294967295, %v11250_v58  ;;  %vm7664_vm15 = vmand %vm2033_vm7, %vm2037_vm10  ;;  %vm2006_vm7 = vcmp.lt.s32.totalorder %v1975_v0, 16 }
 0x1cb   : > { %v11253_v46 = vsel %vm7664_vm15, 4294967295, %v11252_v46  ;;  %vm2019_vm4 = vmand %vm1991_vm0, %vm2005_vm1  ;;  %vm1993_vm1 = vcmp.ge.s32.totalorder %v1976_v27, 0 }
 0x1cc   : > { %vm2034_vm6 = vmand %vm2019_vm4, %vm2022_vm14  ;;  %vm2007_vm4 = vcmp.lt.s32.totalorder %v1976_v27, 16 }
 0x1cd   : > { %vm7674_vm3 = vmand %vm2034_vm6, %vm2037_vm10 }
 0x1ce   : > { %v11255_v59 = vsel %vm7674_vm3, 4294967295, %v11254_v59  ;;  %vm2020_vm13 = vmand %vm1992_vm2, %vm2006_vm7  ;;  %vm1994_vm7 = vcmp.lt.s32.totalorder %v7589_v25, 16 }
 0x1cf   : > { %vm2035_vm15 = vmand %vm2020_vm13, %vm2022_vm14  ;;  %vm1980_vm13 = vcmp.ge.s32.totalorder %v7589_v25, 0 }
 0x1d0   : > { %vm7683_vm0 = vmand %vm2035_vm15, %vm2037_vm10 }
 0x1d1   : > { %v11257_v57 = vsel %vm7683_vm0, 4294967295, %v11256_v57  ;;  %vm2021_vm6 = vmand %vm1993_vm1, %vm2007_vm4  ;;  %vm1981_vm0 = vcmp.ge.s32.totalorder %v1964_v5, 0 }
 0x1d2   : > { %vm2036_vm3 = vmand %vm2021_vm6, %vm2022_vm14 }
 0x1d3   : > { %vm7691_vm2 = vmand %vm2036_vm3, %vm2037_vm10 }
 0x1d4   : > { %v11259_v61 = vsel %vm7691_vm2, 4294967295, %v11258_v61  ;;  %vm2008_vm15 = vmand %vm1980_vm13, %vm1994_vm7 }
 0x1d5   : > { %11260 = vst [vmem:[#allocation35_spill] sm:$0xff] %v11259_v61  ;;  %vm2023_vm1 = vmand %vm2008_vm15, %vm2022_vm14 }
 0x1d6   : > { %vm2009_vm4 = vmand %vm1981_vm0, %vm1995_vm12 }
 0x1d7   : > { %vm2038_vm3 = vmand %vm2023_vm1, %vm2037_vm10 }
 0x1d8   : > { %vm2024_vm6 = vmand %vm2009_vm4, %vm2022_vm14 }
 0x1d9   : > { %vm7709_vm13 = vmand %vm2024_vm6, %vm2037_vm10 }
 0x24a   : > { %v6580_v0 = vpop.f32.mrf.mxu0 }
 0x24b   : > { %v880_v27 = vadd.f32 %v6580_v0, %v7258_v43 }
 0x24c   : > { %v874_v22 = vpop.f32.mrf.mxu0 }
 0x24d   : > { %v7705_v21 = vsel %vm2038_vm3, %v880_v27, 0.0 }
 0x24e   : > { %v6587_v20 = vpop.f32.mrf.mxu1  ;;  %v2287_v19 = vmul.f32 %v7487_v31, %v7705_v21  ;;  %v2154_v18 = vmul.f32 %v7485_v1, %v7705_v21 }
 0x24f   : > { %v963_v0 = vadd.f32 %v6587_v20, %v7258_v43  ;;  %v2553_v20 = vmul.f32 %v7495_v26, %v7705_v21 }
 0x250   : > { %2328 = vrot.lane.b32.xlu0 %v2287_v19, %s6856_s24  ;;  %2195 = vrot.lane.b32.xlu1 %v2154_v18, %s6859_s10  ;;  %v2420_v18 = vmul.f32 %v7493_v33, %v7705_v21 }
 0x251   : > { %v7722_v22 = vsel %vm7709_vm13, %v963_v0, 0.0 }
 0x252   : > { %v2289_v27 = vmul.f32 %v7487_v31, %v7722_v22  ;;  %v2156_v17 = vmul.f32 %v7485_v1, %v7722_v22  ;;  %v2555_v19 = vmul.f32 %v7495_v26, %v7722_v22  ;;  %v2422_v0 = vmul.f32 %v7493_v33, %v7722_v22 }
 0x253   : > { %v2872_v16 = vmul.f32 %v7507_v40, %v7722_v22 }
 0x254   : > { %2332 = vrot.lane.b32.xlu0 %v2289_v27, %s6856_s24  ;;  %2199 = vrot.lane.b32.xlu1 %v2156_v17, %s6859_s10  ;;  %v1965_v17 = vadd.s32 2, %v7589_v25  ;;  %v957_v27 = vpop.f32.mrf.mxu1 }
 0x255   : > { %v958_v15 = vadd.f32 %v957_v27, %v7260_v44  ;;  %v6594_v27 = vpop.f32.mrf.mxu0 }
 0x256   : > { %vm1982_vm12 = vcmp.ge.s32.totalorder %v1965_v17, 0  ;;  %vm1996_vm0 = vcmp.lt.s32.totalorder %v1965_v17, 16  ;;  %v6601_v5 = vpop.f32.mrf.mxu1 }
 0x257   : > { %vm2010_vm7 = vmand %vm1982_vm12, %vm1996_vm0 }
 0x258   : > { %2594 = vrot.lane.b32.xlu0 %v2553_v20, %s6860_s15  ;;  %2461 = vrot.lane.b32.xlu1 %v2420_v18, %s6861_s16  ;;  %v2739_v20 = vmul.f32 %v7505_v39, %v7722_v22  ;;  %v1966_v18 = vadd.s32 3, %v7589_v25  ;;  %v7757_v25 = vsel %vm7709_vm13, %v958_v15, 0.0  ;;  %vm2025_vm4 = vmand %vm2010_vm7, %vm2022_vm14 }
 0x259   : > { %v2288_v17 = vmul.f32 %v7489_v32, %v7757_v25  ;;  %vm7770_vm6 = vmand %vm2025_vm4, %vm2037_vm10 }
 0x25a   : > { %vm1983_vm15 = vcmp.ge.s32.totalorder %v1966_v18, 0  ;;  %vm1997_vm1 = vcmp.lt.s32.totalorder %v1966_v18, 16  ;;  %v2421_v18 = vmul.f32 %v7491_v30, %v7757_v25 }
 0x25b   : > { %vm2011_vm3 = vmand %vm1983_vm15, %vm1997_vm1 }
 0x25c   : > { %2598 = vrot.lane.b32.xlu0 %v2555_v19, %s6860_s15  ;;  %2465 = vrot.lane.b32.xlu1 %v2422_v0, %s6861_s16  ;;  %v3138_v19 = vmul.f32 %v7515_v48, %v7722_v22  ;;  %v3005_v0 = vmul.f32 %v7513_v42, %v7722_v22  ;;  %vm2026_vm13 = vmand %vm2011_vm3, %vm2022_vm14  ;;  %vm11323_vm14 = vnez %v11249_v56 }
 0x25d   : > { %vm7789_vm12 = vmand %vm2026_vm13, %vm2037_vm10  ;;  %vm11326_vm10 = vnez %v11251_v58 }
 0x260   : > { %2913 = vrot.lane.b32.xlu0 %v2872_v16, %s6856_s24  ;;  %2780 = vrot.lane.b32.xlu1 %v2739_v20, %s6859_s10  ;;  %v2155_v16 = vmul.f32 %v7483_v63, %v7757_v25  ;;  %v1046_v20 = vadd.f32 %v6594_v27, %v7258_v43  ;;  %v1129_v27 = vadd.f32 %v6601_v5, %v7258_v43 }
 0x264   : > { %3179 = vrot.lane.b32.xlu0 %v3138_v19, %s6860_s15  ;;  %3046 = vrot.lane.b32.xlu1 %v3005_v0, %s6861_s16  ;;  %v2554_v19 = vmul.f32 %v7497_v4, %v7757_v25  ;;  %v7784_v0 = vsel %vm7770_vm6, %v1046_v20, 0.0  ;;  %v7801_v20 = vsel %vm7789_vm12, %v1129_v27, 0.0 }
 0x265   : > { %11265 = vst [vmem:[#allocation36_spill] sm:$0xff] %v7784_v0  ;;  %v2158_v14 = vmul.f32 %v7485_v1, %v7784_v0  ;;  %11268 = vst [vmem:[#allocation37_spill] sm:$0xff] %v7801_v20  ;;  %v2293_v62 = vmul.f32 %v7487_v31, %v7801_v20  ;;  %v2160_v5 = vmul.f32 %v7485_v1, %v7801_v20 }
 0x266   : > { %v2426_v27 = vmul.f32 %v7493_v33, %v7801_v20  ;;  %v3459_v13 = vmul.f32 %v7527_v3, %v7801_v20 }
 0x268   : > { %2197 = vrot.lane.b32.xlu0 %v2155_v16, %s6859_s10  ;;  %2330 = vrot.lane.b32.xlu1 %v2288_v17, %s6856_s24  ;;  %v2291_v17 = vmul.f32 %v7487_v31, %v7784_v0 }
 0x26c   : > { %2463 = vrot.lane.b32.xlu0 %v2421_v18, %s6861_s16  ;;  %2596 = vrot.lane.b32.xlu1 %v2554_v19, %s6860_s15  ;;  %v2557_v18 = vmul.f32 %v7495_v26, %v7784_v0  ;;  %v2424_v19 = vmul.f32 %v7493_v33, %v7784_v0 }
 0x270   : > { %2336 = vrot.lane.b32.xlu0 %v2291_v17, %s6856_s24  ;;  %2203 = vrot.lane.b32.xlu1 %v2158_v14, %s6859_s10  ;;  %v2559_v14 = vmul.f32 %v7495_v26, %v7801_v20  ;;  %v2874_v17 = vmul.f32 %v7507_v40, %v7784_v0 }
 0x274   : > { %2340 = vrot.lane.b32.xlu0 %v2293_v62, %s6856_s24  ;;  %2207 = vrot.lane.b32.xlu1 %v2160_v5, %s6859_s10  ;;  %v2741_v62 = vmul.f32 %v7505_v39, %v7784_v0  ;;  %v2876_v5 = vmul.f32 %v7507_v40, %v7801_v20 }
 0x278   : > { %2602 = vrot.lane.b32.xlu0 %v2557_v18, %s6860_s15  ;;  %2469 = vrot.lane.b32.xlu1 %v2424_v19, %s6861_s16  ;;  %v2743_v18 = vmul.f32 %v7505_v39, %v7801_v20  ;;  %v3140_v19 = vmul.f32 %v7515_v48, %v7784_v0 }
 0x27c   : > { %2606 = vrot.lane.b32.xlu0 %v2559_v14, %s6860_s15  ;;  %2473 = vrot.lane.b32.xlu1 %v2426_v27, %s6861_s16  ;;  %v3007_v14 = vmul.f32 %v7513_v42, %v7784_v0  ;;  %v3142_v27 = vmul.f32 %v7515_v48, %v7801_v20 }
 0x280   : > { %2917 = vrot.lane.b32.xlu0 %v2874_v17, %s6856_s24  ;;  %2784 = vrot.lane.b32.xlu1 %v2741_v62, %s6859_s10  ;;  %v3009_v17 = vmul.f32 %v7513_v42, %v7801_v20  ;;  %v1040_v62 = vpop.f32.mrf.mxu0 }
 0x284   : > { %2921 = vrot.lane.b32.xlu0 %v2876_v5, %s6856_s24  ;;  %2788 = vrot.lane.b32.xlu1 %v2743_v18, %s6859_s10  ;;  %v3457_v5 = vmul.f32 %v7527_v3, %v7784_v0  ;;  %v3324_v18 = vmul.f32 %v7525_v53, %v7784_v0 }
 0x288   : > { %3183 = vrot.lane.b32.xlu0 %v3140_v19, %s6860_s15  ;;  %3050 = vrot.lane.b32.xlu1 %v3007_v14, %s6861_s16  ;;  %v1041_v19 = vadd.f32 %v1040_v62, %v7260_v44  ;;  %v1123_v14 = vpop.f32.mrf.mxu1 }
 0x289   : > { %v1124_v12 = vadd.f32 %v1123_v14, %v7260_v44 }
 0x28c   : > { %3187 = vrot.lane.b32.xlu0 %v3142_v27, %s6860_s15  ;;  %3054 = vrot.lane.b32.xlu1 %v3009_v17, %s6861_s16  ;;  %v3326_v27 = vmul.f32 %v7525_v53, %v7801_v20  ;;  %v7860_v17 = vsel %vm7770_vm6, %v1041_v19, 0.0 }
 0x28d   : > { %11269 = vst [vmem:[#allocation38_spill] sm:$0xff] %v7860_v17  ;;  %v2290_v62 = vmul.f32 %v7489_v32, %v7860_v17  ;;  %v2556_v19 = vmul.f32 %v7497_v4, %v7860_v17 }
 0x290   : > { %3498 = vrot.lane.b32.xlu0 %v3457_v5, %s6856_s24  ;;  %3365 = vrot.lane.b32.xlu1 %v3324_v18, %s6859_s10  ;;  %v2157_v5 = vmul.f32 %v7483_v63, %v7860_v17  ;;  %v7871_v18 = vsel %vm7789_vm12, %v1124_v12, 0.0  ;;  %v2423_v12 = vmul.f32 %v7491_v30, %v7860_v17 }
 0x291   : > { %v2292_v15 = vmul.f32 %v7489_v32, %v7871_v18  ;;  %v2558_v16 = vmul.f32 %v7497_v4, %v7871_v18  ;;  %v2425_v14 = vmul.f32 %v7491_v30, %v7871_v18 }
 0x294   : > { %3502 = vrot.lane.b32.xlu0 %v3459_v13, %s6856_s24  ;;  %3369 = vrot.lane.b32.xlu1 %v3326_v27, %s6859_s10  ;;  %v2159_v13 = vmul.f32 %v7483_v63, %v7871_v18  ;;  %v2873_v27 = vmul.f32 %v7509_v41, %v7860_v17 }
 0x298   : > { %2334 = vrot.lane.b32.xlu1 %v2290_v62, %s6856_s24  ;;  %2201 = vrot.lane.b32.xlu0 %v2157_v5, %s6859_s10  ;;  %v2740_v62 = vmul.f32 %v7503_v38, %v7860_v17  ;;  %v2875_v5 = vmul.f32 %v7509_v41, %v7871_v18 }
 0x29c   : > { %2338 = vrot.lane.b32.xlu1 %v2292_v15, %s6856_s24  ;;  %2205 = vrot.lane.b32.xlu0 %v2159_v13, %s6859_s10  ;;  %v2742_v15 = vmul.f32 %v7503_v38, %v7871_v18  ;;  %v3139_v13 = vmul.f32 %v7517_v49, %v7860_v17 }
 0x2a0   : > { %2600 = vrot.lane.b32.xlu1 %v2556_v19, %s6860_s15  ;;  %2467 = vrot.lane.b32.xlu0 %v2423_v12, %s6861_s16  ;;  %v3006_v19 = vmul.f32 %v7511_v6, %v7860_v17  ;;  %v6608_v12 = vpop.f32.mrf.mxu0 }
 0x2a4   : > { %2604 = vrot.lane.b32.xlu1 %v2558_v16, %s6860_s15  ;;  %2471 = vrot.lane.b32.xlu0 %v2425_v14, %s6861_s16  ;;  %v3141_v16 = vmul.f32 %v7517_v49, %v7871_v18  ;;  %v3008_v14 = vmul.f32 %v7511_v6, %v7871_v18 }
 0x2a8   : > { %2915 = vrot.lane.b32.xlu1 %v2873_v27, %s6856_s24  ;;  %2782 = vrot.lane.b32.xlu0 %v2740_v62, %s6859_s10  ;;  %v1212_v27 = vadd.f32 %v6608_v12, %v7258_v43  ;;  %v6615_v62 = vpop.f32.mrf.mxu1 }
 0x2aa   : > { %v1289_v45 = vpop.f32.mrf.mxu1 }
 0x2ac   : > { %2919 = vrot.lane.b32.xlu1 %v2875_v5, %s6856_s24  ;;  %2786 = vrot.lane.b32.xlu0 %v2742_v15, %s6859_s10  ;;  %v3458_v5 = vmul.f32 %v7529_v55, %v7871_v18  ;;  %v3325_v15 = vmul.f32 %v7523_v23, %v7871_v18  ;;  %v6629_v51 = vpop.f32.mrf.mxu1 }
 0x2b0   : > { %3181 = vrot.lane.b32.xlu1 %v3139_v13, %s6860_s15  ;;  %3048 = vrot.lane.b32.xlu0 %v3006_v19, %s6861_s16  ;;  %v7924_v13 = vsel %vm7628_vm9, %v1212_v27, 0.0  ;;  %v1295_v19 = vadd.f32 %v6615_v62, %v7258_v43 }
 0x2b1   : > { %11270 = vst [vmem:[#allocation39_spill] sm:$0xff] %v7924_v13  ;;  %v2162_v12 = vmul.f32 %v7485_v1, %v7924_v13 }
 0x2b4   : > { %3185 = vrot.lane.b32.xlu1 %v3141_v16, %s6860_s15  ;;  %3052 = vrot.lane.b32.xlu0 %v3008_v14, %s6861_s16  ;;  %v2295_v16 = vmul.f32 %v7487_v31, %v7924_v13  ;;  %v7935_v14 = vsel %vm7634_vm8, %v1295_v19, 0.0  ;;  %v2428_v19 = vmul.f32 %v7493_v33, %v7924_v13 }
 0x2b5   : > { %v2164_v27 = vmul.f32 %v7485_v1, %v7935_v14  ;;  %v2297_v62 = vmul.f32 %v7487_v31, %v7935_v14  ;;  %v2563_v9 = vmul.f32 %v7495_v26, %v7935_v14 }
 0x2b8   : > { %3500 = vrot.lane.b32.xlu1 %v3458_v5, %s6856_s24  ;;  %3367 = vrot.lane.b32.xlu0 %v3325_v15, %s6859_s10 }
 0x2bc   : > { %2211 = vrot.lane.b32.xlu1 %v2162_v12, %s6859_s10  ;;  %2344 = vrot.lane.b32.xlu0 %v2295_v16, %s6856_s24  ;;  %v2561_v12 = vmul.f32 %v7495_v26, %v7924_v13  ;;  %v2121_v16 = vmul.f32 %v7481_v2, %v7705_v21 }
 0x2c0   : > { %2215 = vrot.lane.b32.xlu1 %v2164_v27, %s6859_s10  ;;  %2348 = vrot.lane.b32.xlu0 %v2297_v62, %s6856_s24  ;;  %v2430_v62 = vmul.f32 %v7493_v33, %v7935_v14 }
 0x2c2   : > { %v2329_v5 = vpop.permute.xlu0 %2328  ;;  %v2196_v15 = vpop.permute.xlu1 %2195 }
 0x2c3   : > { %v2254_v11 = vadd.f32 %v2196_v15, %v2121_v16  ;;  %v2745_v15 = vmul.f32 %v7505_v39, %v7924_v13 }
 0x2c4   : > { %2477 = vrot.lane.b32.xlu1 %v2428_v19, %s6861_s16  ;;  %2610 = vrot.lane.b32.xlu0 %v2561_v12, %s6860_s15  ;;  %v2878_v12 = vmul.f32 %v7507_v40, %v7924_v13 }
 0x2c5   : > { %v2387_v21 = vadd.f32 %v2329_v5, %v2254_v11  ;;  %v2747_v11 = vmul.f32 %v7505_v39, %v7935_v14  ;;  %v2880_v5 = vmul.f32 %v7507_v40, %v7935_v14 }
 0x2c6   : > { %v7953_v10 = vpop.permute.xlu0 %2332  ;;  %v7955_v27 = vpop.permute.xlu1 %2199 }
 0x2c8   : > { %2481 = vrot.lane.b32.xlu1 %v2430_v62, %s6861_s16  ;;  %2614 = vrot.lane.b32.xlu0 %v2563_v9, %s6860_s15  ;;  %v2686_v62 = vmul.f32 %v7501_v34, %v7722_v22 }
 0x2ca   : > { %v2595_v8 = vpop.permute.xlu0 %2594  ;;  %v2462_v19 = vpop.permute.xlu1 %2461 }
 0x2cb   : > { %v2520_v16 = vadd.f32 %v2462_v19, %v2387_v21  ;;  %v1206_v21 = vpop.f32.mrf.mxu0 }
 0x2cc   : > { %2792 = vrot.lane.b32.xlu1 %v2745_v15, %s6859_s10  ;;  %2925 = vrot.lane.b32.xlu0 %v2878_v12, %s6856_s24  ;;  %v3011_v15 = vmul.f32 %v7513_v42, %v7924_v13  ;;  %v3144_v12 = vmul.f32 %v7515_v48, %v7924_v13 }
 0x2cd   : > { %v2653_v7 = vadd.f32 %v2595_v8, %v2520_v16  ;;  %v1207_v16 = vadd.f32 %v1206_v21, %v7260_v44  ;;  %v1290_v21 = vadd.f32 %v1289_v45, %v7260_v44 }
 0x2ce   : > { %v7971_v36 = vpop.permute.xlu0 %2598  ;;  %v7973_v9 = vpop.permute.xlu1 %2465 }
 0x2cf   : > { %v7979_v50 = vadd.f32 %v2686_v62, %v2653_v7  ;;  %v8017_v35 = vsel %vm7634_vm8, %v1290_v21, 0.0  ;;  %vm11373_vm8 = vnez %v11255_v59 }
 0x2d0   : > { %2796 = vrot.lane.b32.xlu1 %v2747_v11, %s6859_s10  ;;  %2929 = vrot.lane.b32.xlu0 %v2880_v5, %s6856_s24  ;;  %v3013_v11 = vmul.f32 %v7513_v42, %v7935_v14  ;;  %v3146_v5 = vmul.f32 %v7515_v48, %v7935_v14  ;;  %11277 = vst [vmem:[#allocation46_spill] sm:$0xff] %v8017_v35 }
 0x2d1   : > { %11271 = vst [vmem:[#allocation40_spill] sm:$0xff] %v7979_v50  ;;  %v2163_v50 = vmul.f32 %v7483_v63, %v8017_v35 }
 0x2d2   : > { %v7983_v8 = vpop.permute.xlu0 %2913  ;;  %v7985_v19 = vpop.permute.xlu1 %2780 }
 0x2d3   : > { %11272 = vst [vmem:[#allocation41_spill] sm:$0xff] %v7983_v8  ;;  %11273 = vst [vmem:[#allocation42_spill] sm:$0xff] %v7985_v19  ;;  %v8004_v8 = vsel %vm7628_vm9, %v1207_v16, 0.0  ;;  %vm11362_vm9 = vnez %v11253_v46 }
 0x2d4   : > { %3058 = vrot.lane.b32.xlu1 %v3011_v15, %s6861_s16  ;;  %3191 = vrot.lane.b32.xlu0 %v3144_v12, %s6860_s15  ;;  %11276 = vst [vmem:[#allocation45_spill] sm:$0xff] %v8004_v8  ;;  %v2122_v15 = vmul.f32 %v7275_v47, %v7757_v25  ;;  %v2161_v19 = vmul.f32 %v7483_v63, %v8004_v8 }
 0x2d5   : > { %v3329_v47 = vmul.f32 %v7523_v23, %v8017_v35  ;;  %v3460_v52 = vmul.f32 %v7529_v55, %v8004_v8 }
 0x2d6   : > { %v7994_v7 = vpop.permute.xlu0 %3179  ;;  %v7996_v62 = vpop.permute.xlu1 %3046 }
 0x2d7   : > { %11274 = vst [vmem:[#allocation43_spill] sm:$0xff] %v7994_v7  ;;  %11275 = vst [vmem:[#allocation44_spill] sm:$0xff] %v7996_v62  ;;  %v3328_v62 = vmul.f32 %v7525_v53, %v7924_v13 }
 0x2d8   : > { %3062 = vrot.lane.b32.xlu1 %v3013_v11, %s6861_s16  ;;  %3195 = vrot.lane.b32.xlu0 %v3146_v5, %s6860_s15  ;;  %v3330_v5 = vmul.f32 %v7525_v53, %v7935_v14 }
 0x2da   : > { %v2198_v12 = vpop.permute.xlu0 %2197  ;;  %v2331_v7 = vpop.permute.xlu1 %2330 }
 0x2db   : > { %v2255_v45 = vadd.f32 %v2198_v12, %v2122_v15  ;;  %v2427_v15 = vmul.f32 %v7491_v30, %v8004_v8 }
 0x2dc   : > { %3373 = vrot.lane.b32.xlu1 %v3328_v62, %s6859_s10  ;;  %2209 = vrot.lane.b32.xlu0 %v2161_v19, %s6859_s10  ;;  %v2687_v62 = vmul.f32 %v7499_v28, %v7860_v17  ;;  %v3145_v28 = vmul.f32 %v7517_v49, %v8017_v35 }
 0x2dd   : > { %v2388_v16 = vadd.f32 %v2331_v7, %v2255_v45  ;;  %v2294_v7 = vmul.f32 %v7489_v32, %v8004_v8  ;;  %v2296_v45 = vmul.f32 %v7489_v32, %v8017_v35 }
 0x2de   : > { %v2464_v11 = vpop.permute.xlu0 %2463  ;;  %v2597_v25 = vpop.permute.xlu1 %2596 }
 0x2df   : > { %v2521_v37 = vadd.f32 %v2464_v11, %v2388_v16  ;;  %v2429_v16 = vmul.f32 %v7491_v30, %v8017_v35 }
 0x2e0   : > { %3377 = vrot.lane.b32.xlu1 %v3330_v5, %s6859_s10  ;;  %2213 = vrot.lane.b32.xlu0 %v2163_v50, %s6859_s10  ;;  %v2560_v5 = vmul.f32 %v7497_v4, %v8004_v8 }
 0x2e1   : > { %v2654_v24 = vadd.f32 %v2597_v25, %v2521_v37 }
 0x2e2   : > { %v8029_v21 = vpop.permute.xlu0 %2336  ;;  %v8031_v19 = vpop.permute.xlu1 %2203 }
 0x2e3   : > { %v8037_v12 = vadd.f32 %v2687_v62, %v2654_v24  ;;  %v2744_v24 = vmul.f32 %v7503_v38, %v8004_v8 }
 0x2e4   : > { %2342 = vrot.lane.b32.xlu1 %v2294_v7, %s6856_s24  ;;  %2475 = vrot.lane.b32.xlu0 %v2427_v15, %s6861_s16  ;;  %v2562_v15 = vmul.f32 %v7497_v4, %v8017_v35 }
 0x2e5   : > { %11278 = vst [vmem:[#allocation47_spill] sm:$0xff] %v8037_v12  ;;  %v6622_v12 = vpop.f32.mrf.mxu0 }
 0x2e6   : > { %v8041_v37 = vpop.permute.xlu0 %2340  ;;  %v8043_v50 = vpop.permute.xlu1 %2207 }
 0x2e7   : > { %11279 = vst [vmem:[#allocation48_spill] sm:$0xff] %v8041_v37  ;;  %11280 = vst [vmem:[#allocation49_spill] sm:$0xff] %v8043_v50  ;;  %v3327_v37 = vmul.f32 %v7523_v23, %v8004_v8  ;;  %v1378_v50 = vadd.f32 %v6622_v12, %v7258_v43  ;;  %v1461_v12 = vadd.f32 %v6629_v51, %v7258_v43 }
 0x2e8   : > { %2346 = vrot.lane.b32.xlu1 %v2296_v45, %s6856_s24  ;;  %2479 = vrot.lane.b32.xlu0 %v2429_v16, %s6861_s16  ;;  %v2746_v45 = vmul.f32 %v7503_v38, %v8017_v35 }
 0x2e9   : > { %v8112_v17 = vsel %vm7640_vm5, %v1378_v50, 0.0  ;;  %v8127_v50 = vsel %vm7646_vm11, %v1461_v12, 0.0 }
 0x2ea   : > { %v8051_v11 = vpop.permute.xlu0 %2602  ;;  %v8053_v25 = vpop.permute.xlu1 %2469  ;;  %11288 = vst [vmem:[#allocation57_spill] sm:$0xff] %v8127_v50  ;;  %v2166_v51 = vmul.f32 %v7485_v1, %v8112_v17 }
 0x2ec   : > { %2608 = vrot.lane.b32.xlu1 %v2560_v5, %s6860_s15  ;;  %2790 = vrot.lane.b32.xlu0 %v2744_v24, %s6859_s10  ;;  %v2877_v5 = vmul.f32 %v7509_v41, %v8004_v8  ;;  %v3010_v24 = vmul.f32 %v7511_v6, %v8004_v8 }
 0x2ee   : > { %v8061_v62 = vpop.permute.xlu0 %2606  ;;  %v8063_v7 = vpop.permute.xlu1 %2473 }
 0x2ef   : > { %11281 = vst [vmem:[#allocation50_spill] sm:$0xff] %v8061_v62  ;;  %11282 = vst [vmem:[#allocation51_spill] sm:$0xff] %v8063_v7 }
 0x2f0   : > { %2612 = vrot.lane.b32.xlu1 %v2562_v15, %s6860_s15  ;;  %2794 = vrot.lane.b32.xlu0 %v2746_v45, %s6859_s10  ;;  %v2879_v15 = vmul.f32 %v7509_v41, %v8017_v35  ;;  %v3012_v45 = vmul.f32 %v7511_v6, %v8017_v35 }
 0x2f2   : > { %v8071_v16 = vpop.permute.xlu0 %2917  ;;  %v8073_v61 = vpop.permute.xlu1 %2784 }
 0x2f4   : > { %2923 = vrot.lane.b32.xlu1 %v2877_v5, %s6856_s24  ;;  %3056 = vrot.lane.b32.xlu0 %v3010_v24, %s6861_s16  ;;  %v3143_v24 = vmul.f32 %v7517_v49, %v8004_v8 }
 0x2f6   : > { %v8081_v60 = vpop.permute.xlu0 %2921  ;;  %v8083_v62 = vpop.permute.xlu1 %2788 }
 0x2f8   : > { %2927 = vrot.lane.b32.xlu1 %v2879_v15, %s6856_s24  ;;  %3060 = vrot.lane.b32.xlu0 %v3012_v45, %s6861_s16 }
 0x2fa   : > { %v8091_v7 = vpop.permute.xlu0 %3183  ;;  %v8093_v5 = vpop.permute.xlu1 %3050 }
 0x2fb   : > { %11283 = vst [vmem:[#allocation52_spill] sm:$0xff] %v8091_v7  ;;  %v1455_v7 = vpop.f32.mrf.mxu1 }
 0x2fc   : > { %3189 = vrot.lane.b32.xlu1 %v3143_v24, %s6860_s15  ;;  %3371 = vrot.lane.b32.xlu0 %v3327_v37, %s6859_s10 }
 0x2fe   : > { %v8102_v15 = vpop.permute.xlu0 %3187  ;;  %v8104_v45 = vpop.permute.xlu1 %3054 }
 0x2ff   : > { %11284 = vst [vmem:[#allocation53_spill] sm:$0xff] %v8102_v15  ;;  %11285 = vst [vmem:[#allocation54_spill] sm:$0xff] %v8104_v45  ;;  %v2299_v15 = vmul.f32 %v7487_v31, %v8112_v17 }
 0x300   : > { %3193 = vrot.lane.b32.xlu1 %v3145_v28, %s6860_s15  ;;  %3375 = vrot.lane.b32.xlu0 %v3329_v47, %s6859_s10 }
 0x302   : > { %v8117_v37 = vpop.permute.xlu0 %3498  ;;  %v8119_v24 = vpop.permute.xlu1 %3365 }
 0x303   : > { %11286 = vst [vmem:[#allocation55_spill] sm:$0xff] %v8117_v37  ;;  %11287 = vst [vmem:[#allocation56_spill] sm:$0xff] %v8119_v24  ;;  %v2301_v37 = vmul.f32 %v7487_v31, %v8127_v50 }
 0x304   : > { %3504 = vrot.lane.b32.xlu1 %v3460_v52, %s6856_s24  ;;  %2352 = vrot.lane.b32.xlu0 %v2299_v15, %s6856_s24  ;;  %v2168_v52 = vmul.f32 %v7485_v1, %v8127_v50  ;;  %v2565_v15 = vmul.f32 %v7495_v26, %v8112_v17 }
 0x306   : > { %v8131_v28 = vpop.permute.xlu0 %3502  ;;  %v8133_v47 = vpop.permute.xlu1 %3369 }
 0x307   : > { %11289 = vst [vmem:[#allocation58_spill] sm:$0xff] %v8131_v28  ;;  %11290 = vst [vmem:[#allocation59_spill] sm:$0xff] %v8133_v47 }
 0x308   : > { %2219 = vrot.lane.b32.xlu1 %v2166_v51, %s6859_s10  ;;  %2356 = vrot.lane.b32.xlu0 %v2301_v37, %s6856_s24  ;;  %v2432_v37 = vmul.f32 %v7493_v33, %v8112_v17  ;;  %v2567_v51 = vmul.f32 %v7495_v26, %v8127_v50 }
 0x30a   : > { %v8141_v12 = vpop.permute.xlu1 %2334  ;;  %v8143_v24 = vpop.permute.xlu0 %2201 }
 0x30b   : > { %11291 = vst [vmem:[#allocation60_spill] sm:$0xff] %v8141_v12  ;;  %11292 = vst [vmem:[#allocation61_spill] sm:$0xff] %v8143_v24 }
 0x30c   : > { %2223 = vrot.lane.b32.xlu1 %v2168_v52, %s6859_s10  ;;  %2618 = vrot.lane.b32.xlu0 %v2565_v15, %s6860_s15  ;;  %v2434_v52 = vmul.f32 %v7493_v33, %v8127_v50  ;;  %v2882_v15 = vmul.f32 %v7507_v40, %v8112_v17 }
 0x30e   : > { %v8151_v28 = vpop.permute.xlu1 %2338  ;;  %v8153_v47 = vpop.permute.xlu0 %2205 }
 0x30f   : > { %11293 = vst [vmem:[#allocation62_spill] sm:$0xff] %v8151_v28  ;;  %11294 = vst [vmem:[#allocation63_spill] sm:$0xff] %v8153_v47 }
 0x310   : > { %2485 = vrot.lane.b32.xlu1 %v2432_v37, %s6861_s16  ;;  %2622 = vrot.lane.b32.xlu0 %v2567_v51, %s6860_s15  ;;  %v2749_v37 = vmul.f32 %v7505_v39, %v8112_v17  ;;  %v2884_v51 = vmul.f32 %v7507_v40, %v8127_v50 }
 0x312   : > { %v8161_v12 = vpop.permute.xlu1 %2600  ;;  %v8163_v24 = vpop.permute.xlu0 %2467 }
 0x313   : > { %11295 = vst [vmem:[#allocation64_spill] sm:$0xff] %v8161_v12  ;;  %11296 = vst [vmem:[#allocation65_spill] sm:$0xff] %v8163_v24  ;;  %v1372_v12 = vpop.f32.mrf.mxu0 }
 0x314   : > { %2489 = vrot.lane.b32.xlu1 %v2434_v52, %s6861_s16  ;;  %2933 = vrot.lane.b32.xlu0 %v2882_v15, %s6856_s24  ;;  %v2751_v15 = vmul.f32 %v7505_v39, %v8127_v50 }
 0x316   : > { %v8171_v28 = vpop.permute.xlu1 %2604  ;;  %v8173_v47 = vpop.permute.xlu0 %2471 }
 0x317   : > { %11297 = vst [vmem:[#allocation66_spill] sm:$0xff] %v8171_v28  ;;  %11298 = vst [vmem:[#allocation67_spill] sm:$0xff] %v8173_v47  ;;  %v3148_v28 = vmul.f32 %v7515_v48, %v8112_v17  ;;  %v1373_v47 = vadd.f32 %v1372_v12, %v7260_v44  ;;  %v1456_v12 = vadd.f32 %v1455_v7, %v7260_v44 }
 0x318   : > { %2800 = vrot.lane.b32.xlu1 %v2749_v37, %s6859_s10  ;;  %2937 = vrot.lane.b32.xlu0 %v2884_v51, %s6856_s24 }
 0x319   : > { %v8202_v45 = vsel %vm7640_vm5, %v1373_v47, 0.0  ;;  %v8217_v29 = vsel %vm7646_vm11, %v1456_v12, 0.0  ;;  %v3332_v47 = vmul.f32 %v7525_v53, %v8112_v17  ;;  %vm11546_vm5 = vnez %v11257_v57 }
 0x31a   : > { %v8181_v24 = vpop.permute.xlu1 %2915  ;;  %v8183_v52 = vpop.permute.xlu0 %2782  ;;  %v2127_v57 = vmul.f32 %v7481_v2, %v7801_v20 }
 0x31b   : > { %11299 = vst [vmem:[#allocation68_spill] sm:$0xff] %v8181_v24  ;;  %11300 = vst [vmem:[#allocation69_spill] sm:$0xff] %v8183_v52  ;;  %v3015_v24 = vmul.f32 %v7513_v42, %v8112_v17  ;;  %v3150_v52 = vmul.f32 %v7515_v48, %v8127_v50 }
 0x31c   : > { %2804 = vrot.lane.b32.xlu1 %v2751_v15, %s6859_s10  ;;  %3199 = vrot.lane.b32.xlu0 %v3148_v28, %s6860_s15 }
 0x31e   : > { %v8192_v37 = vpop.permute.xlu1 %2919  ;;  %v8194_v51 = vpop.permute.xlu0 %2786 }
 0x31f   : > { %11301 = vst [vmem:[#allocation70_spill] sm:$0xff] %v8192_v37  ;;  %11302 = vst [vmem:[#allocation71_spill] sm:$0xff] %v8194_v51  ;;  %v3017_v37 = vmul.f32 %v7513_v42, %v8127_v50  ;;  %v2165_v51 = vmul.f32 %v7483_v63, %v8202_v45 }
 0x320   : > { %3066 = vrot.lane.b32.xlu1 %v3015_v24, %s6861_s16  ;;  %3203 = vrot.lane.b32.xlu0 %v3150_v52, %s6860_s15  ;;  %v2167_v52 = vmul.f32 %v7483_v63, %v8217_v29 }
 0x322   : > { %v8207_v28 = vpop.permute.xlu1 %3181  ;;  %v8209_v15 = vpop.permute.xlu0 %3048 }
 0x323   : > { %11303 = vst [vmem:[#allocation72_spill] sm:$0xff] %v8207_v28  ;;  %11304 = vst [vmem:[#allocation73_spill] sm:$0xff] %v8209_v15 }
 0x324   : > { %3070 = vrot.lane.b32.xlu1 %v3017_v37, %s6861_s16  ;;  %2217 = vrot.lane.b32.xlu0 %v2165_v51, %s6859_s10  ;;  %v3334_v37 = vmul.f32 %v7525_v53, %v8127_v50  ;;  %v2431_v51 = vmul.f32 %v7491_v30, %v8202_v45 }
 0x326   : > { %v8221_v7 = vpop.permute.xlu1 %3185  ;;  %v8223_v24 = vpop.permute.xlu0 %3052 }
 0x327   : > { %11305 = vst [vmem:[#allocation74_spill] sm:$0xff] %v8221_v7  ;;  %11306 = vst [vmem:[#allocation75_spill] sm:$0xff] %v8223_v24 }
 0x328   : > { %3381 = vrot.lane.b32.xlu1 %v3332_v47, %s6859_s10  ;;  %2221 = vrot.lane.b32.xlu0 %v2167_v52, %s6859_s10  ;;  %v2298_v47 = vmul.f32 %v7489_v32, %v8202_v45  ;;  %v2433_v52 = vmul.f32 %v7491_v30, %v8217_v29 }
 0x32a   : > { %v8231_v54 = vpop.permute.xlu1 %3500  ;;  %v8233_v12 = vpop.permute.xlu0 %3367 }
 0x32b   : > { %11307 = vst [vmem:[#allocation76_spill] sm:$0xff] %v8231_v54  ;;  %11308 = vst [vmem:[#allocation77_spill] sm:$0xff] %v8233_v12 }
 0x32c   : > { %3385 = vrot.lane.b32.xlu1 %v3334_v37, %s6859_s10  ;;  %2483 = vrot.lane.b32.xlu0 %v2431_v51, %s6861_s16  ;;  %v2300_v37 = vmul.f32 %v7489_v32, %v8217_v29  ;;  %v2748_v51 = vmul.f32 %v7503_v38, %v8202_v45 }
 0x32e   : > { %v8241_v7 = vpop.permute.xlu1 %2211  ;;  %v8243_v24 = vpop.permute.xlu0 %2344 }
 0x32f   : > { %11309 = vst [vmem:[#allocation78_spill] sm:$0xff] %v8241_v7  ;;  %11310 = vst [vmem:[#allocation79_spill] sm:$0xff] %v8243_v24  ;;  %v6643_v24 = vpop.f32.mrf.mxu1 }
 0x330   : > { %2350 = vrot.lane.b32.xlu1 %v2298_v47, %s6856_s24  ;;  %2487 = vrot.lane.b32.xlu0 %v2433_v52, %s6861_s16  ;;  %v2564_v47 = vmul.f32 %v7497_v4, %v8202_v45  ;;  %v2750_v52 = vmul.f32 %v7503_v38, %v8217_v29 }
 0x332   : > { %v8251_v54 = vpop.permute.xlu1 %2215  ;;  %v8253_v12 = vpop.permute.xlu0 %2348 }
 0x333   : > { %11311 = vst [vmem:[#allocation80_spill] sm:$0xff] %v8251_v54  ;;  %11312 = vst [vmem:[#allocation81_spill] sm:$0xff] %v8253_v12 }
 0x334   : > { %2354 = vrot.lane.b32.xlu1 %v2300_v37, %s6856_s24  ;;  %2798 = vrot.lane.b32.xlu0 %v2748_v51, %s6859_s10  ;;  %v2566_v37 = vmul.f32 %v7497_v4, %v8217_v29  ;;  %v3014_v51 = vmul.f32 %v7511_v6, %v8202_v45 }
 0x336   : > { %v8261_v28 = vpop.permute.xlu1 %2477  ;;  %v8263_v15 = vpop.permute.xlu0 %2610 }
 0x337   : > { %11313 = vst [vmem:[#allocation82_spill] sm:$0xff] %v8261_v28  ;;  %11314 = vst [vmem:[#allocation83_spill] sm:$0xff] %v8263_v15 }
 0x338   : > { %2616 = vrot.lane.b32.xlu1 %v2564_v47, %s6860_s15  ;;  %2802 = vrot.lane.b32.xlu0 %v2750_v52, %s6859_s10  ;;  %v2881_v47 = vmul.f32 %v7509_v41, %v8202_v45  ;;  %v3016_v52 = vmul.f32 %v7511_v6, %v8217_v29 }
 0x33a   : > { %v8271_v12 = vpop.permute.xlu1 %2481  ;;  %v8273_v54 = vpop.permute.xlu0 %2614 }
 0x33b   : > { %11315 = vst [vmem:[#allocation84_spill] sm:$0xff] %v8271_v12  ;;  %11316 = vst [vmem:[#allocation85_spill] sm:$0xff] %v8273_v54  ;;  %v6636_v54 = vpop.f32.mrf.mxu0 }
 0x33c   : > { %2620 = vrot.lane.b32.xlu1 %v2566_v37, %s6860_s15  ;;  %3064 = vrot.lane.b32.xlu0 %v3014_v51, %s6861_s16  ;;  %v2883_v51 = vmul.f32 %v7509_v41, %v8217_v29 }
 0x33e   : > { %v8281_v15 = vpop.permute.xlu1 %2792  ;;  %v8283_v28 = vpop.permute.xlu0 %2925 }
 0x33f   : > { %11317 = vst [vmem:[#allocation86_spill] sm:$0xff] %v8281_v15  ;;  %11318 = vst [vmem:[#allocation87_spill] sm:$0xff] %v8283_v28  ;;  %v3331_v28 = vmul.f32 %v7523_v23, %v8202_v45  ;;  %v1544_v15 = vadd.f32 %v6636_v54, %v7258_v43  ;;  %v1627_v54 = vadd.f32 %v6643_v24, %v7258_v43 }
 0x340   : > { %2931 = vrot.lane.b32.xlu1 %v2881_v47, %s6856_s24  ;;  %3068 = vrot.lane.b32.xlu0 %v3016_v52, %s6861_s16 }
 0x341   : > { %v8312_v7 = vsel %vm11323_vm14, %v1544_v15, 0.0  ;;  %v8327_v15 = vsel %vm11326_vm10, %v1627_v54, 0.0 }
 0x342   : > { %v8291_v12 = vpop.permute.xlu1 %2796  ;;  %v8293_v37 = vpop.permute.xlu0 %2929 }
 0x343   : > { %11319 = vst [vmem:[#allocation88_spill] sm:$0xff] %v8291_v12  ;;  %11320 = vst [vmem:[#allocation89_spill] sm:$0xff] %v8293_v37  ;;  %v3147_v37 = vmul.f32 %v7517_v49, %v8202_v45  ;;  %v3333_v12 = vmul.f32 %v7523_v23, %v8217_v29 }
 0x344   : > { %2935 = vrot.lane.b32.xlu1 %v2883_v51, %s6856_s24  ;;  %3379 = vrot.lane.b32.xlu0 %v3331_v28, %s6859_s10 }
 0x346   : > { %v8302_v47 = vpop.permute.xlu1 %3058  ;;  %v8304_v52 = vpop.permute.xlu0 %3191 }
 0x347   : > { %11321 = vst [vmem:[#allocation90_spill] sm:$0xff] %v8302_v47  ;;  %11322 = vst [vmem:[#allocation91_spill] sm:$0xff] %v8304_v52  ;;  %v3149_v52 = vmul.f32 %v7517_v49, %v8217_v29  ;;  %v2303_v47 = vmul.f32 %v7487_v31, %v8312_v7 }
 0x348   : > { %3197 = vrot.lane.b32.xlu1 %v3147_v37, %s6860_s15  ;;  %3383 = vrot.lane.b32.xlu0 %v3333_v12, %s6859_s10  ;;  %v2170_v37 = vmul.f32 %v7485_v1, %v8312_v7 }
 0x34a   : > { %v8317_v28 = vpop.permute.xlu1 %3062  ;;  %v8319_v51 = vpop.permute.xlu0 %3195 }
 0x34b   : > { %11324 = vst [vmem:[#allocation92_spill] sm:$0xff] %v8317_v28  ;;  %11325 = vst [vmem:[#allocation93_spill] sm:$0xff] %v8319_v51  ;;  %v2305_v51 = vmul.f32 %v7487_v31, %v8327_v15 }
 0x34c   : > { %3201 = vrot.lane.b32.xlu1 %v3149_v52, %s6860_s15  ;;  %2360 = vrot.lane.b32.xlu0 %v2303_v47, %s6856_s24  ;;  %v2172_v47 = vmul.f32 %v7485_v1, %v8327_v15  ;;  %v2569_v52 = vmul.f32 %v7495_v26, %v8312_v7 }
 0x34e   : > { %v8331_v24 = vpop.permute.xlu1 %3373  ;;  %v8333_v12 = vpop.permute.xlu0 %2209 }
 0x34f   : > { %11327 = vst [vmem:[#allocation94_spill] sm:$0xff] %v8333_v12 }
 0x350   : > { %2227 = vrot.lane.b32.xlu1 %v2170_v37, %s6859_s10  ;;  %2364 = vrot.lane.b32.xlu0 %v2305_v51, %s6856_s24  ;;  %v2436_v51 = vmul.f32 %v7493_v33, %v8312_v7  ;;  %v2571_v37 = vmul.f32 %v7495_v26, %v8327_v15 }
 0x352   : > { %v8341_v54 = vpop.permute.xlu1 %3377  ;;  %v8343_v28 = vpop.permute.xlu0 %2213 }
 0x353   : > { %11328 = vst [vmem:[#allocation95_spill] sm:$0xff] %v8341_v54  ;;  %11329 = vst [vmem:[#allocation96_spill] sm:$0xff] %v8343_v28 }
 0x354   : > { %2231 = vrot.lane.b32.xlu1 %v2172_v47, %s6859_s10  ;;  %2626 = vrot.lane.b32.xlu0 %v2569_v52, %s6860_s15  ;;  %v2438_v47 = vmul.f32 %v7493_v33, %v8327_v15  ;;  %v2886_v52 = vmul.f32 %v7507_v40, %v8312_v7 }
 0x356   : > { %v8351_v12 = vpop.permute.xlu1 %2342  ;;  %v8353_v31 = vpop.permute.xlu0 %2475 }
 0x357   : > { %11330 = vst [vmem:[#allocation97_spill] sm:$0xff] %v8351_v12  ;;  %11331 = vst [vmem:[#allocation98_spill] sm:$0xff] %v8353_v31 }
 0x358   : > { %2493 = vrot.lane.b32.xlu1 %v2436_v51, %s6861_s16  ;;  %2630 = vrot.lane.b32.xlu0 %v2571_v37, %s6860_s15  ;;  %v2753_v51 = vmul.f32 %v7505_v39, %v8312_v7  ;;  %v2888_v37 = vmul.f32 %v7507_v40, %v8327_v15 }
 0x35a   : > { %v8361_v1 = vpop.permute.xlu1 %2346  ;;  %v8363_v54 = vpop.permute.xlu0 %2479 }
 0x35b   : > { %11332 = vst [vmem:[#allocation99_spill] sm:$0xff] %v8361_v1  ;;  %11333 = vst [vmem:[#allocation100_spill] sm:$0xff] %v8363_v54  ;;  %v1538_v54 = vpop.f32.mrf.mxu0  ;;  %v3152_v1 = vmul.f32 %v7515_v48, %v8312_v7 }
 0x35c   : > { %2497 = vrot.lane.b32.xlu1 %v2438_v47, %s6861_s16  ;;  %2941 = vrot.lane.b32.xlu0 %v2886_v52, %s6856_s24  ;;  %v2755_v52 = vmul.f32 %v7505_v39, %v8327_v15 }
 0x35e   : > { %v8371_v28 = vpop.permute.xlu1 %2608  ;;  %v8373_v26 = vpop.permute.xlu0 %2790 }
 0x35f   : > { %11334 = vst [vmem:[#allocation101_spill] sm:$0xff] %v8371_v28  ;;  %11335 = vst [vmem:[#allocation102_spill] sm:$0xff] %v8373_v26  ;;  %v1539_v26 = vadd.f32 %v1538_v54, %v7260_v44  ;;  %v1621_v28 = vpop.f32.mrf.mxu1 }
 0x360   : > { %2808 = vrot.lane.b32.xlu1 %v2753_v51, %s6859_s10  ;;  %2945 = vrot.lane.b32.xlu0 %v2888_v37, %s6856_s24  ;;  %v1622_v54 = vadd.f32 %v1621_v28, %v7260_v44 }
 0x361   : > { %v8402_v31 = vsel %vm11323_vm14, %v1539_v26, 0.0 }
 0x362   : > { %v8381_v33 = vpop.permute.xlu1 %2612  ;;  %v8383_v47 = vpop.permute.xlu0 %2794  ;;  %11340 = vst [vmem:[#allocation107_spill] sm:$0xff] %v8402_v31  ;;  %v8417_v56 = vsel %vm11326_vm10, %v1622_v54, 0.0 }
 0x363   : > { %11336 = vst [vmem:[#allocation103_spill] sm:$0xff] %v8381_v33  ;;  %11337 = vst [vmem:[#allocation104_spill] sm:$0xff] %v8383_v47  ;;  %v3019_v33 = vmul.f32 %v7513_v42, %v8312_v7  ;;  %v3154_v47 = vmul.f32 %v7515_v48, %v8327_v15 }
 0x364   : > { %2812 = vrot.lane.b32.xlu1 %v2755_v52, %s6859_s10  ;;  %3207 = vrot.lane.b32.xlu0 %v3152_v1, %s6860_s15  ;;  %11343 = vst [vmem:[#allocation110_spill] sm:$0xff] %v8417_v56 }
 0x366   : > { %v8392_v51 = vpop.permute.xlu1 %2923  ;;  %v8394_v37 = vpop.permute.xlu0 %3056 }
 0x367   : > { %11338 = vst [vmem:[#allocation105_spill] sm:$0xff] %v8392_v51  ;;  %11339 = vst [vmem:[#allocation106_spill] sm:$0xff] %v8394_v37  ;;  %v3021_v37 = vmul.f32 %v7513_v42, %v8327_v15  ;;  %v2169_v51 = vmul.f32 %v7483_v63, %v8402_v31 }
 0x368   : > { %3074 = vrot.lane.b32.xlu1 %v3019_v33, %s6861_s16  ;;  %3211 = vrot.lane.b32.xlu0 %v3154_v47, %s6860_s15  ;;  %v3336_v33 = vmul.f32 %v7525_v53, %v8312_v7  ;;  %v2171_v47 = vmul.f32 %v7483_v63, %v8417_v56 }
 0x36a   : > { %v8407_v1 = vpop.permute.xlu1 %2927  ;;  %v8409_v52 = vpop.permute.xlu0 %3060 }
 0x36b   : > { %11341 = vst [vmem:[#allocation108_spill] sm:$0xff] %v8407_v1  ;;  %11342 = vst [vmem:[#allocation109_spill] sm:$0xff] %v8409_v52 }
 0x36c   : > { %3078 = vrot.lane.b32.xlu1 %v3021_v37, %s6861_s16  ;;  %2225 = vrot.lane.b32.xlu0 %v2169_v51, %s6859_s10  ;;  %v3338_v51 = vmul.f32 %v7525_v53, %v8327_v15  ;;  %v2435_v37 = vmul.f32 %v7491_v30, %v8402_v31 }
 0x36e   : > { %v8421_v28 = vpop.permute.xlu1 %3189  ;;  %v8423_v26 = vpop.permute.xlu0 %3371 }
 0x36f   : > { %11344 = vst [vmem:[#allocation111_spill] sm:$0xff] %v8421_v28  ;;  %11345 = vst [vmem:[#allocation112_spill] sm:$0xff] %v8423_v26 }
 0x370   : > { %3389 = vrot.lane.b32.xlu1 %v3336_v33, %s6859_s10  ;;  %2229 = vrot.lane.b32.xlu0 %v2171_v47, %s6859_s10  ;;  %v2302_v33 = vmul.f32 %v7489_v32, %v8402_v31  ;;  %v2437_v47 = vmul.f32 %v7491_v30, %v8417_v56 }
 0x372   : > { %v8431_v58 = vpop.permute.xlu1 %3193  ;;  %v8433_v54 = vpop.permute.xlu0 %3375 }
 0x373   : > { %11346 = vst [vmem:[#allocation113_spill] sm:$0xff] %v8431_v58  ;;  %11347 = vst [vmem:[#allocation114_spill] sm:$0xff] %v8433_v54 }
 0x374   : > { %3393 = vrot.lane.b32.xlu1 %v3338_v51, %s6859_s10  ;;  %2491 = vrot.lane.b32.xlu0 %v2435_v37, %s6861_s16  ;;  %v2304_v51 = vmul.f32 %v7489_v32, %v8417_v56  ;;  %v2752_v37 = vmul.f32 %v7503_v38, %v8402_v31 }
 0x376   : > { %v8441_v26 = vpop.permute.xlu1 %3504  ;;  %v8443_v63 = vpop.permute.xlu0 %2352 }
 0x377   : > { %11348 = vst [vmem:[#allocation115_spill] sm:$0xff] %v8441_v26  ;;  %11349 = vst [vmem:[#allocation116_spill] sm:$0xff] %v8443_v63 }
 0x378   : > { %2358 = vrot.lane.b32.xlu1 %v2302_v33, %s6856_s24  ;;  %2495 = vrot.lane.b32.xlu0 %v2437_v47, %s6861_s16  ;;  %v2568_v33 = vmul.f32 %v7497_v4, %v8402_v31  ;;  %v2754_v47 = vmul.f32 %v7503_v38, %v8417_v56 }
 0x37a   : > { %v8451_v54 = vpop.permute.xlu1 %2219  ;;  %v8453_v58 = vpop.permute.xlu0 %2356 }
 0x37b   : > { %11350 = vst [vmem:[#allocation117_spill] sm:$0xff] %v8451_v54  ;;  %11351 = vst [vmem:[#allocation118_spill] sm:$0xff] %v8453_v58 }
 0x37c   : > { %2362 = vrot.lane.b32.xlu1 %v2304_v51, %s6856_s24  ;;  %2806 = vrot.lane.b32.xlu0 %v2752_v37, %s6859_s10  ;;  %v2570_v51 = vmul.f32 %v7497_v4, %v8417_v56  ;;  %v3018_v37 = vmul.f32 %v7511_v6, %v8402_v31 }
 0x37e   : > { %v8461_v26 = vpop.permute.xlu1 %2223  ;;  %v8463_v30 = vpop.permute.xlu0 %2618 }
 0x37f   : > { %11352 = vst [vmem:[#allocation119_spill] sm:$0xff] %v8461_v26  ;;  %11353 = vst [vmem:[#allocation120_spill] sm:$0xff] %v8463_v30 }
 0x380   : > { %2624 = vrot.lane.b32.xlu1 %v2568_v33, %s6860_s15  ;;  %2810 = vrot.lane.b32.xlu0 %v2754_v47, %s6859_s10  ;;  %v2885_v33 = vmul.f32 %v7509_v41, %v8402_v31  ;;  %v3020_v47 = vmul.f32 %v7511_v6, %v8417_v56 }
 0x382   : > { %v8471_v32 = vpop.permute.xlu1 %2485  ;;  %v8473_v58 = vpop.permute.xlu0 %2622 }
 0x383   : > { %11354 = vst [vmem:[#allocation121_spill] sm:$0xff] %v8471_v32  ;;  %11355 = vst [vmem:[#allocation122_spill] sm:$0xff] %v8473_v58  ;;  %v6650_v58 = vpop.f32.mrf.mxu0 }
 0x384   : > { %2628 = vrot.lane.b32.xlu1 %v2570_v51, %s6860_s15  ;;  %3072 = vrot.lane.b32.xlu0 %v3018_v37, %s6861_s16  ;;  %v2887_v37 = vmul.f32 %v7509_v41, %v8417_v56 }
 0x385   : > { %v1704_v1 = vpop.f32.mrf.mxu0 }
 0x386   : > { %v8481_v52 = vpop.permute.xlu1 %2489  ;;  %v8483_v28 = vpop.permute.xlu0 %2933 }
 0x387   : > { %11356 = vst [vmem:[#allocation123_spill] sm:$0xff] %v8481_v52  ;;  %11357 = vst [vmem:[#allocation124_spill] sm:$0xff] %v8483_v28  ;;  %v3335_v52 = vmul.f32 %v7523_v23, %v8402_v31  ;;  %v1710_v28 = vadd.f32 %v6650_v58, %v7258_v43 }
 0x388   : > { %2939 = vrot.lane.b32.xlu1 %v2885_v33, %s6856_s24  ;;  %3076 = vrot.lane.b32.xlu0 %v3020_v47, %s6861_s16  ;;  %v3151_v47 = vmul.f32 %v7517_v49, %v8402_v31 }
 0x38a   : > { %v8491_v4 = vpop.permute.xlu1 %2800  ;;  %v8493_v51 = vpop.permute.xlu0 %2937 }
 0x38b   : > { %11358 = vst [vmem:[#allocation125_spill] sm:$0xff] %v8491_v4  ;;  %11359 = vst [vmem:[#allocation126_spill] sm:$0xff] %v8493_v51  ;;  %v3337_v51 = vmul.f32 %v7523_v23, %v8417_v56  ;;  %v8512_v4 = vsel %vm11362_vm9, %v1710_v28, 0.0 }
 0x38c   : > { %2943 = vrot.lane.b32.xlu1 %v2887_v37, %s6856_s24  ;;  %3387 = vrot.lane.b32.xlu0 %v3335_v52, %s6859_s10  ;;  %11363 = vst [vmem:[#allocation129_spill] sm:$0xff] %v8512_v4  ;;  %v3153_v37 = vmul.f32 %v7517_v49, %v8417_v56 }
 0x38e   : > { %v8502_v26 = vpop.permute.xlu1 %2804  ;;  %v8504_v33 = vpop.permute.xlu0 %3199 }
 0x38f   : > { %11360 = vst [vmem:[#allocation127_spill] sm:$0xff] %v8502_v26  ;;  %11361 = vst [vmem:[#allocation128_spill] sm:$0xff] %v8504_v33  ;;  %v2890_v33 = vmul.f32 %v7507_v40, %v8512_v4  ;;  %v1705_v26 = vadd.f32 %v1704_v1, %v7260_v44  ;;  %v6657_v40 = vpop.f32.mrf.mxu1 }
 0x390   : > { %3205 = vrot.lane.b32.xlu1 %v3151_v47, %s6860_s15  ;;  %3391 = vrot.lane.b32.xlu0 %v3337_v51, %s6859_s10  ;;  %v2757_v51 = vmul.f32 %v7505_v39, %v8512_v4 }
 0x391   : > { %v1787_v46 = vpop.f32.mrf.mxu1 }
 0x392   : > { %v8516_v52 = vpop.permute.xlu1 %3066  ;;  %v8518_v58 = vpop.permute.xlu0 %3203 }
 0x393   : > { %11364 = vst [vmem:[#allocation130_spill] sm:$0xff] %v8516_v52  ;;  %11365 = vst [vmem:[#allocation131_spill] sm:$0xff] %v8518_v58  ;;  %v3156_v58 = vmul.f32 %v7515_v48, %v8512_v4  ;;  %v8537_v52 = vsel %vm11362_vm9, %v1705_v26, 0.0  ;;  %v1793_v48 = vadd.f32 %v6657_v40, %v7258_v43  ;;  %v1788_v40 = vadd.f32 %v1787_v46, %v7260_v44 }
 0x394   : > { %3209 = vrot.lane.b32.xlu1 %v3153_v37, %s6860_s15  ;;  %2949 = vrot.lane.b32.xlu0 %v2890_v33, %s6856_s24  ;;  %11368 = vst [vmem:[#allocation134_spill] sm:$0xff] %v8537_v52  ;;  %v3023_v37 = vmul.f32 %v7513_v42, %v8512_v4  ;;  %v2756_v39 = vmul.f32 %v7503_v38, %v8537_v52 }
 0x395   : > { %v3022_v42 = vmul.f32 %v7511_v6, %v8537_v52  ;;  %v8562_v38 = vsel %vm11373_vm8, %v1793_v48, 0.0  ;;  %v3339_v6 = vmul.f32 %v7523_v23, %v8537_v52  ;;  %v8577_v48 = vsel %vm11373_vm8, %v1788_v40, 0.0 }
 0x396   : > { %v8527_v28 = vpop.permute.xlu1 %3070  ;;  %v8529_v47 = vpop.permute.xlu0 %2217  ;;  %11374 = vst [vmem:[#allocation139_spill] sm:$0xff] %v8562_v38  ;;  %11377 = vst [vmem:[#allocation142_spill] sm:$0xff] %v8577_v48 }
 0x397   : > { %11366 = vst [vmem:[#allocation132_spill] sm:$0xff] %v8527_v28  ;;  %11367 = vst [vmem:[#allocation133_spill] sm:$0xff] %v8529_v47 }
 0x398   : > { %2816 = vrot.lane.b32.xlu1 %v2757_v51, %s6859_s10  ;;  %3215 = vrot.lane.b32.xlu0 %v3156_v58, %s6860_s15  ;;  %v3340_v51 = vmul.f32 %v7525_v53, %v8512_v4 }
 0x39a   : > { %v8541_v1 = vpop.permute.xlu1 %3381  ;;  %v8543_v33 = vpop.permute.xlu0 %2221 }
 0x39b   : > { %11369 = vst [vmem:[#allocation135_spill] sm:$0xff] %v8541_v1  ;;  %11370 = vst [vmem:[#allocation136_spill] sm:$0xff] %v8543_v33 }
 0x39c   : > { %3082 = vrot.lane.b32.xlu1 %v3023_v37, %s6861_s16  ;;  %2814 = vrot.lane.b32.xlu0 %v2756_v39, %s6859_s10 }
 0x39e   : > { %v8552_v26 = vpop.permute.xlu1 %3385  ;;  %v8554_v58 = vpop.permute.xlu0 %2483 }
 0x39f   : > { %11371 = vst [vmem:[#allocation137_spill] sm:$0xff] %v8552_v26  ;;  %11372 = vst [vmem:[#allocation138_spill] sm:$0xff] %v8554_v58  ;;  %v3342_v58 = vmul.f32 %v7525_v53, %v8562_v38  ;;  %v3341_v53 = vmul.f32 %v7523_v23, %v8577_v48 }
 0x3a0   : > { %3397 = vrot.lane.b32.xlu1 %v3340_v51, %s6859_s10  ;;  %3080 = vrot.lane.b32.xlu0 %v3022_v42, %s6861_s16  ;;  %v2889_v42 = vmul.f32 %v7509_v41, %v8537_v52 }
 0x3a2   : > { %v8567_v37 = vpop.permute.xlu1 %2350  ;;  %v8569_v39 = vpop.permute.xlu0 %2487 }
 0x3a3   : > { %11375 = vst [vmem:[#allocation140_spill] sm:$0xff] %v8567_v37  ;;  %11376 = vst [vmem:[#allocation141_spill] sm:$0xff] %v8569_v39 }
 0x3a4   : > { %3401 = vrot.lane.b32.xlu1 %v3342_v58, %s6859_s10  ;;  %3395 = vrot.lane.b32.xlu0 %v3339_v6, %s6859_s10  ;;  %v3155_v58 = vmul.f32 %v7517_v49, %v8537_v52  ;;  %v3461_v6 = vmul.f32 %v7527_v3, %v7924_v13 }
 0x3a6   : > { %v8581_v46 = vpop.permute.xlu1 %2354  ;;  %v8583_v51 = vpop.permute.xlu0 %2798 }
 0x3a7   : > { %11378 = vst [vmem:[#allocation143_spill] sm:$0xff] %v8581_v46  ;;  %11379 = vst [vmem:[#allocation144_spill] sm:$0xff] %v8583_v51 }
 0x3a8   : > { %2947 = vrot.lane.b32.xlu1 %v2889_v42, %s6856_s24  ;;  %3399 = vrot.lane.b32.xlu0 %v3341_v53, %s6859_s10  ;;  %v3462_v42 = vmul.f32 %v7529_v55, %v8017_v35  ;;  %v3463_v53 = vmul.f32 %v7527_v3, %v7935_v14 }
 0x3aa   : > { %v8591_v59 = vpop.permute.xlu1 %2616  ;;  %v8593_v40 = vpop.permute.xlu0 %2802 }
 0x3ab   : > { %11380 = vst [vmem:[#allocation145_spill] sm:$0xff] %v8591_v59  ;;  %11381 = vst [vmem:[#allocation146_spill] sm:$0xff] %v8593_v40 }
 0x3ac   : > { %3213 = vrot.lane.b32.xlu1 %v3155_v58, %s6860_s15  ;;  %3506 = vrot.lane.b32.xlu0 %v3461_v6, %s6856_s24  ;;  %v3464_v58 = vmul.f32 %v7529_v55, %v8202_v45  ;;  %v3465_v6 = vmul.f32 %v7527_v3, %v8112_v17 }
 0x3ae   : > { %v8601_v41 = vpop.permute.xlu1 %2620  ;;  %v8603_v23 = vpop.permute.xlu0 %3064 }
 0x3af   : > { %11382 = vst [vmem:[#allocation147_spill] sm:$0xff] %v8601_v41  ;;  %11383 = vst [vmem:[#allocation148_spill] sm:$0xff] %v8603_v23 }
 0x3b0   : > { %3508 = vrot.lane.b32.xlu1 %v3462_v42, %s6856_s24  ;;  %3510 = vrot.lane.b32.xlu0 %v3463_v53, %s6856_s24  ;;  %v3466_v42 = vmul.f32 %v7529_v55, %v8217_v29  ;;  %v3467_v53 = vmul.f32 %v7527_v3, %v8127_v50 }
 0x3b2   : > { %v8611_v49 = vpop.permute.xlu1 %2931  ;;  %v8613_v39 = vpop.permute.xlu0 %3068 }
 0x3b3   : > { %11384 = vst [vmem:[#allocation149_spill] sm:$0xff] %v8611_v49  ;;  %11385 = vst [vmem:[#allocation150_spill] sm:$0xff] %v8613_v39 }
 0x3b4   : > { %3512 = vrot.lane.b32.xlu1 %v3464_v58, %s6856_s24  ;;  %3514 = vrot.lane.b32.xlu0 %v3465_v6, %s6856_s24  ;;  %v3468_v58 = vmul.f32 %v7529_v55, %v8402_v31  ;;  %v3469_v6 = vmul.f32 %v7527_v3, %v8312_v7 }
 0x3b6   : > { %v8621_v23 = vpop.permute.xlu1 %2935  ;;  %v8623_v41 = vpop.permute.xlu0 %3379 }
 0x3b7   : > { %11386 = vst [vmem:[#allocation151_spill] sm:$0xff] %v8621_v23  ;;  %11387 = vst [vmem:[#allocation152_spill] sm:$0xff] %v8623_v41 }
 0x3b8   : > { %3516 = vrot.lane.b32.xlu1 %v3466_v42, %s6856_s24  ;;  %3518 = vrot.lane.b32.xlu0 %v3467_v53, %s6856_s24  ;;  %v3470_v42 = vmul.f32 %v7529_v55, %v8417_v56  ;;  %v3471_v53 = vmul.f32 %v7527_v3, %v8327_v15 }
 0x3ba   : > { %v8631_v39 = vpop.permute.xlu1 %3197  ;;  %v8633_v40 = vpop.permute.xlu0 %3383 }
 0x3bb   : > { %11388 = vst [vmem:[#allocation153_spill] sm:$0xff] %v8631_v39  ;;  %11389 = vst [vmem:[#allocation154_spill] sm:$0xff] %v8633_v40 }
 0x3bc   : > { %3520 = vrot.lane.b32.xlu1 %v3468_v58, %s6856_s24  ;;  %3522 = vrot.lane.b32.xlu0 %v3469_v6, %s6856_s24  ;;  %v3472_v58 = vmul.f32 %v7529_v55, %v8537_v52  ;;  %v3473_v6 = vmul.f32 %v7527_v3, %v8512_v4 }
 0x3be   : > { %v8641_v41 = vpop.permute.xlu1 %3201  ;;  %v8643_v23 = vpop.permute.xlu0 %2360 }
 0x3bf   : > { %11390 = vst [vmem:[#allocation155_spill] sm:$0xff] %v8641_v41  ;;  %11391 = vst [vmem:[#allocation156_spill] sm:$0xff] %v8643_v23 }
 0x3c0   : > { %3524 = vrot.lane.b32.xlu1 %v3470_v42, %s6856_s24  ;;  %3526 = vrot.lane.b32.xlu0 %v3471_v53, %s6856_s24  ;;  %v3474_v42 = vmul.f32 %v7529_v55, %v8577_v48  ;;  %v3475_v53 = vmul.f32 %v7527_v3, %v8562_v38 }
 0x3c2   : > { %v8651_v40 = vpop.permute.xlu1 %2227  ;;  %v8653_v39 = vpop.permute.xlu0 %2364 }
 0x3c3   : > { %11392 = vst [vmem:[#allocation157_spill] sm:$0xff] %v8651_v40  ;;  %11393 = vst [vmem:[#allocation158_spill] sm:$0xff] %v8653_v39 }
 0x3c4   : > { %3528 = vrot.lane.b32.xlu1 %v3472_v58, %s6856_s24  ;;  %3530 = vrot.lane.b32.xlu0 %v3473_v6, %s6856_s24  ;;  %v6442_v58 = vld [vmem:[%s11073_s3 + $0xd0] sm:$0xff]  ;;  %v6443_v6 = vld [vmem:[%s11073_s3 + $0xd8] sm:$0xff] }
 0x3c6   : > { %v8661_v41 = vpop.permute.xlu1 %2231  ;;  %v8663_v49 = vpop.permute.xlu0 %2626 }
 0x3c7   : > { %11394 = vst [vmem:[#allocation159_spill] sm:$0xff] %v8661_v41  ;;  %11395 = vst [vmem:[#allocation160_spill] sm:$0xff] %v8663_v49 }
 0x3c8   : > { %3532 = vrot.lane.b32.xlu1 %v3474_v42, %s6856_s24  ;;  %3534 = vrot.lane.b32.xlu0 %v3475_v53, %s6856_s24 }
 0x3ca   : > { %v8677_v39 = vpop.permute.xlu1 %2493  ;;  %v8679_v41 = vpop.permute.xlu0 %2630 }
 0x3cb   : > { %11396 = vst [vmem:[#allocation161_spill] sm:$0xff] %v8677_v39  ;;  %11397 = vst [vmem:[#allocation162_spill] sm:$0xff] %v8679_v41 }
 0x3cc   : > { %3581 = vperm.xlu1 %6775, %v6442_v58   ;;  %3586 = vperm.xlu0 %6774, %v6443_v6  }
 0x3ce   : > { %v8681_v55 = vpop.permute.xlu1 %2497  ;;  %v8683_v3 = vpop.permute.xlu0 %2941 }
 0x3cf   : > { %11398 = vst [vmem:[#allocation163_spill] sm:$0xff] %v8681_v55  ;;  %11399 = vst [vmem:[#allocation164_spill] sm:$0xff] %v8683_v3 }
 0x3d2   : > { %v8685_v42 = vpop.permute.xlu1 %2808  ;;  %v8687_v53 = vpop.permute.xlu0 %2945 }
 0x3d3   : > { %11400 = vst [vmem:[#allocation165_spill] sm:$0xff] %v8685_v42  ;;  %11401 = vst [vmem:[#allocation166_spill] sm:$0xff] %v8687_v53 }
 0x3d6   : > { %v8689_v49 = vpop.permute.xlu1 %2812  ;;  %v8691_v51 = vpop.permute.xlu0 %3207 }
 0x3d7   : > { %11402 = vst [vmem:[#allocation167_spill] sm:$0xff] %v8689_v49  ;;  %11403 = vst [vmem:[#allocation168_spill] sm:$0xff] %v8691_v51 }
 0x3da   : > { %v8693_v23 = vpop.permute.xlu1 %3074  ;;  %v8695_v59 = vpop.permute.xlu0 %3211 }
 0x3db   : > { %11404 = vst [vmem:[#allocation169_spill] sm:$0xff] %v8693_v23  ;;  %11405 = vst [vmem:[#allocation170_spill] sm:$0xff] %v8695_v59 }
 0x3de   : > { %v8697_v39 = vpop.permute.xlu1 %3078  ;;  %v8699_v58 = vpop.permute.xlu0 %2225 }
 0x3df   : > { %11406 = vst [vmem:[#allocation171_spill] sm:$0xff] %v8697_v39  ;;  %11407 = vst [vmem:[#allocation172_spill] sm:$0xff] %v8699_v58 }
 0x3e2   : > { %v8701_v6 = vpop.permute.xlu1 %3389  ;;  %v8703_v41 = vpop.permute.xlu0 %2229 }
 0x3e3   : > { %11408 = vst [vmem:[#allocation173_spill] sm:$0xff] %v8701_v6  ;;  %11409 = vst [vmem:[#allocation174_spill] sm:$0xff] %v8703_v41 }
 0x3e6   : > { %v8705_v55 = vpop.permute.xlu1 %3393  ;;  %v8707_v3 = vpop.permute.xlu0 %2491 }
 0x3e7   : > { %11410 = vst [vmem:[#allocation175_spill] sm:$0xff] %v8705_v55  ;;  %11411 = vst [vmem:[#allocation176_spill] sm:$0xff] %v8707_v3 }
 0x3ea   : > { %v8709_v53 = vpop.permute.xlu1 %2358  ;;  %v8711_v49 = vpop.permute.xlu0 %2495 }
 0x3eb   : > { %11412 = vst [vmem:[#allocation177_spill] sm:$0xff] %v8709_v53  ;;  %11413 = vst [vmem:[#allocation178_spill] sm:$0xff] %v8711_v49 }
 0x3ee   : > { %v8713_v51 = vpop.permute.xlu1 %2362  ;;  %v8715_v23 = vpop.permute.xlu0 %2806 }
 0x3ef   : > { %11414 = vst [vmem:[#allocation179_spill] sm:$0xff] %v8713_v51  ;;  %11415 = vst [vmem:[#allocation180_spill] sm:$0xff] %v8715_v23 }
 0x3f2   : > { %v8717_v59 = vpop.permute.xlu1 %2624  ;;  %v8719_v39 = vpop.permute.xlu0 %2810 }
 0x3f3   : > { %11416 = vst [vmem:[#allocation181_spill] sm:$0xff] %v8717_v59  ;;  %11417 = vst [vmem:[#allocation182_spill] sm:$0xff] %v8719_v39 }
 0x3f6   : > { %v8721_v42 = vpop.permute.xlu1 %2628  ;;  %v8723_v6 = vpop.permute.xlu0 %3072 }
 0x3f7   : > { %11418 = vst [vmem:[#allocation183_spill] sm:$0xff] %v8721_v42  ;;  %11419 = vst [vmem:[#allocation184_spill] sm:$0xff] %v8723_v6 }
 0x3fa   : > { %v8725_v41 = vpop.permute.xlu1 %2939  ;;  %v8727_v55 = vpop.permute.xlu0 %3076 }
 0x3fb   : > { %11420 = vst [vmem:[#allocation185_spill] sm:$0xff] %v8725_v41  ;;  %11421 = vst [vmem:[#allocation186_spill] sm:$0xff] %v8727_v55 }
 0x3fe   : > { %v8729_v3 = vpop.permute.xlu1 %2943  ;;  %v8731_v53 = vpop.permute.xlu0 %3387 }
 0x3ff   : > { %11422 = vst [vmem:[#allocation187_spill] sm:$0xff] %v8729_v3  ;;  %11423 = vst [vmem:[#allocation188_spill] sm:$0xff] %v8731_v53 }
 0x402   : > { %v8733_v49 = vpop.permute.xlu1 %3205  ;;  %v8735_v51 = vpop.permute.xlu0 %3391 }
 0x403   : > { %11424 = vst [vmem:[#allocation189_spill] sm:$0xff] %v8733_v49  ;;  %11425 = vst [vmem:[#allocation190_spill] sm:$0xff] %v8735_v51 }
 0x406   : > { %v8737_v23 = vpop.permute.xlu1 %3209  ;;  %v8739_v59 = vpop.permute.xlu0 %2949 }
 0x407   : > { %11426 = vst [vmem:[#allocation191_spill] sm:$0xff] %v8737_v23  ;;  %11427 = vst [vmem:[#allocation192_spill] sm:$0xff] %v8739_v59 }
 0x40a   : > { %v8741_v39 = vpop.permute.xlu1 %2816  ;;  %v8743_v42 = vpop.permute.xlu0 %3215 }
 0x40b   : > { %11428 = vst [vmem:[#allocation193_spill] sm:$0xff] %v8741_v39  ;;  %11429 = vst [vmem:[#allocation194_spill] sm:$0xff] %v8743_v42 }
 0x40e   : > { %v8745_v6 = vpop.permute.xlu1 %3082  ;;  %v8747_v41 = vpop.permute.xlu0 %2814 }
 0x40f   : > { %11430 = vst [vmem:[#allocation195_spill] sm:$0xff] %v8745_v6  ;;  %11431 = vst [vmem:[#allocation196_spill] sm:$0xff] %v8747_v41 }
 0x412   : > { %v8749_v55 = vpop.permute.xlu1 %3397  ;;  %v8751_v3 = vpop.permute.xlu0 %3080 }
 0x413   : > { %11432 = vst [vmem:[#allocation197_spill] sm:$0xff] %v8749_v55  ;;  %11433 = vst [vmem:[#allocation198_spill] sm:$0xff] %v8751_v3 }
 0x416   : > { %v8753_v53 = vpop.permute.xlu1 %3401  ;;  %v8755_v49 = vpop.permute.xlu0 %3395 }
 0x417   : > { %11434 = vst [vmem:[#allocation199_spill] sm:$0xff] %v8753_v53  ;;  %11435 = vst [vmem:[#allocation200_spill] sm:$0xff] %v8755_v49 }
 0x41a   : > { %v8757_v51 = vpop.permute.xlu1 %2947  ;;  %v8759_v23 = vpop.permute.xlu0 %3399 }
 0x41b   : > { %11436 = vst [vmem:[#allocation201_spill] sm:$0xff] %v8757_v51  ;;  %11437 = vst [vmem:[#allocation202_spill] sm:$0xff] %v8759_v23 }
 0x41e   : > { %v8761_v59 = vpop.permute.xlu1 %3213  ;;  %v8763_v39 = vpop.permute.xlu0 %3506 }
 0x41f   : > { %11438 = vst [vmem:[#allocation203_spill] sm:$0xff] %v8761_v59 }
 0x422   : > { %v8765_v42 = vpop.permute.xlu1 %3508  ;;  %v8767_v6 = vpop.permute.xlu0 %3510 }
 0x423   : > { %11439 = vst [vmem:[#allocation204_spill] sm:$0xff] %v8765_v42  ;;  %11440 = vst [vmem:[#allocation205_spill] sm:$0xff] %v8767_v6 }
 0x426   : > { %v8769_v41 = vpop.permute.xlu1 %3512  ;;  %v8771_v55 = vpop.permute.xlu0 %3514 }
 0x427   : > { %11441 = vst [vmem:[#allocation206_spill] sm:$0xff] %v8769_v41  ;;  %11442 = vst [vmem:[#allocation207_spill] sm:$0xff] %v8771_v55 }
 0x42a   : > { %v8773_v3 = vpop.permute.xlu1 %3516  ;;  %v8775_v53 = vpop.permute.xlu0 %3518 }
 0x42b   : > { %11443 = vst [vmem:[#allocation208_spill] sm:$0xff] %v8773_v3  ;;  %11444 = vst [vmem:[#allocation209_spill] sm:$0xff] %v8775_v53 }
 0x42e   : > { %v8777_v49 = vpop.permute.xlu1 %3520  ;;  %v8779_v51 = vpop.permute.xlu0 %3522 }
 0x42f   : > { %11445 = vst [vmem:[#allocation210_spill] sm:$0xff] %v8777_v49  ;;  %11446 = vst [vmem:[#allocation211_spill] sm:$0xff] %v8779_v51 }
 0x432   : > { %v8781_v23 = vpop.permute.xlu1 %3524  ;;  %v8783_v59 = vpop.permute.xlu0 %3526 }
 0x433   : > { %11447 = vst [vmem:[#allocation212_spill] sm:$0xff] %v8781_v23  ;;  %11448 = vst [vmem:[#allocation213_spill] sm:$0xff] %v8783_v59 }
 0x436   : > { %v8785_v58 = vpop.permute.xlu1 %3528  ;;  %v8787_v42 = vpop.permute.xlu0 %3530 }
 0x437   : > { %11449 = vst [vmem:[#allocation214_spill] sm:$0xff] %v8785_v58  ;;  %11450 = vst [vmem:[#allocation215_spill] sm:$0xff] %v8787_v42 }
 0x43a   : > { %v8789_v46 = vpop.permute.xlu1 %3532  ;;  %v8791_v41 = vpop.permute.xlu0 %3534 }
 0x43b   : > { %11451 = vst [vmem:[#allocation216_spill] sm:$0xff] %v8789_v46  ;;  %11452 = vst [vmem:[#allocation217_spill] sm:$0xff] %v8791_v41 }
 0x447   : > { %v3582_v26 = vpop.permute.xlu1 %3581  ;;  %v3587_v3 = vpop.permute.xlu0 %3586 }
 0x448   : > { %v3591_v53 = vmul.f32 %v3582_v26, %v7871_v18  ;;  %v3590_v49 = vmul.f32 %v3587_v3, %v7784_v0  ;;  %v3593_v59 = vmul.f32 %v3582_v26, %v8004_v8  ;;  %v3592_v58 = vmul.f32 %v3587_v3, %v7801_v20 }
 0x449   : > { %v3595_v46 = vmul.f32 %v3582_v26, %v8017_v35  ;;  %v3594_v41 = vmul.f32 %v3587_v3, %v7924_v13 }
 0x44a   : > { %3633 = vrot.lane.b32.xlu0 %v3591_v53, %s6861_s16  ;;  %3631 = vrot.lane.b32.xlu1 %v3590_v49, %s6861_s16  ;;  %v3597_v53 = vmul.f32 %v3582_v26, %v8202_v45  ;;  %v3596_v49 = vmul.f32 %v3587_v3, %v7935_v14 }
 0x44e   : > { %3637 = vrot.lane.b32.xlu0 %v3593_v59, %s6861_s16  ;;  %3635 = vrot.lane.b32.xlu1 %v3592_v58, %s6861_s16  ;;  %v3599_v59 = vmul.f32 %v3582_v26, %v8217_v29  ;;  %v3598_v58 = vmul.f32 %v3587_v3, %v8112_v17 }
 0x452   : > { %3641 = vrot.lane.b32.xlu0 %v3595_v46, %s6861_s16  ;;  %3639 = vrot.lane.b32.xlu1 %v3594_v41, %s6861_s16  ;;  %v3601_v46 = vmul.f32 %v3582_v26, %v8402_v31  ;;  %v3600_v41 = vmul.f32 %v3587_v3, %v8127_v50 }
 0x456   : > { %3645 = vrot.lane.b32.xlu0 %v3597_v53, %s6861_s16  ;;  %3643 = vrot.lane.b32.xlu1 %v3596_v49, %s6861_s16  ;;  %v3603_v53 = vmul.f32 %v3582_v26, %v8417_v56  ;;  %v3602_v49 = vmul.f32 %v3587_v3, %v8312_v7 }
 0x45a   : > { %3649 = vrot.lane.b32.xlu0 %v3599_v59, %s6861_s16  ;;  %3647 = vrot.lane.b32.xlu1 %v3598_v58, %s6861_s16  ;;  %v3605_v59 = vmul.f32 %v3582_v26, %v8537_v52  ;;  %v3604_v58 = vmul.f32 %v3587_v3, %v8327_v15 }
 0x45e   : > { %3653 = vrot.lane.b32.xlu0 %v3601_v46, %s6861_s16  ;;  %3651 = vrot.lane.b32.xlu1 %v3600_v41, %s6861_s16  ;;  %v3607_v46 = vmul.f32 %v3582_v26, %v8577_v48  ;;  %v3606_v41 = vmul.f32 %v3587_v3, %v8512_v4  ;;  %v6449_v26 = vld [vmem:[%s11073_s3 + $0x108] sm:$0xff] }
 0x462   : > { %3657 = vrot.lane.b32.xlu0 %v3603_v53, %s6861_s16  ;;  %3655 = vrot.lane.b32.xlu1 %v3602_v49, %s6861_s16  ;;  %v6444_v53 = vld [vmem:[%s11073_s3 + $0xe0] sm:$0xff]  ;;  %v3608_v49 = vmul.f32 %v3587_v3, %v8562_v38  ;;  %v6450_v3 = vld [vmem:[%s11073_s3 + $0x110] sm:$0xff] }
 0x466   : > { %3661 = vrot.lane.b32.xlu0 %v3605_v59, %s6861_s16  ;;  %3659 = vrot.lane.b32.xlu1 %v3604_v58, %s6861_s16  ;;  %v6445_v59 = vld [vmem:[%s11073_s3 + $0xe8] sm:$0xff]  ;;  %v6448_v58 = vld [vmem:[%s11073_s3 + $0x100] sm:$0xff] }
 0x46a   : > { %3665 = vrot.lane.b32.xlu0 %v3607_v46, %s6861_s16  ;;  %3663 = vrot.lane.b32.xlu1 %v3606_v41, %s6861_s16  ;;  %v6452_v46 = vld [vmem:[%s11073_s3 + $0x120] sm:$0xff]  ;;  %v6459_v41 = vld [vmem:[%s11073_s3 + $0x158] sm:$0xff] }
 0x46e   : > { %3714 = vperm.xlu0 %6774, %v6444_v53   ;;  %3667 = vrot.lane.b32.xlu1 %v3608_v49, %s6861_s16  ;;  %v6458_v53 = vld [vmem:[%s11073_s3 + $0x150] sm:$0xff]  ;;  %v6460_v49 = vld [vmem:[%s11073_s3 + $0x160] sm:$0xff] }
 0x472   : > { %3719 = vperm.xlu1 %6775, %v6445_v59   ;;  %v6462_v59 = vld [vmem:[%s11073_s3 + $0x170] sm:$0xff] }
 0x476   : > { %3905 = vperm.xlu1 %6775, %v6449_v26   ;;  %v6447_v26 = vld [vmem:[%s11073_s3 + $0xf8] sm:$0xff] }
 0x47a   : > { %3900 = vperm.xlu1 %6775, %v6448_v58  }
 0x47e   : > { %4033 = vperm.xlu1 %6775, %v6450_v3  }
 0x482   : > { %4166 = vperm.xlu1 %6775, %v6452_v46  }
 0x486   : > { %4490 = vperm.xlu1 %6775, %v6459_v41  }
 0x48a   : > { %4485 = vperm.xlu1 %6775, %v6458_v53  }
 0x48e   : > { %4618 = vperm.xlu1 %6775, %v6460_v49  }
 0x492   : > { %4751 = vperm.xlu1 %6775, %v6462_v59  }
 0x496   : > { %3852 = vperm.xlu1 %6775, %v6447_v26  }
 0x4bc   : > { %v8864_v58 = vpop.permute.xlu1 %3631  ;;  %v8866_v3 = vpop.permute.xlu0 %3633 }
 0x4bd   : > { %11453 = vst [vmem:[#allocation218_spill] sm:$0xff] %v8864_v58  ;;  %11454 = vst [vmem:[#allocation219_spill] sm:$0xff] %v8866_v3 }
 0x4c0   : > { %v8868_v46 = vpop.permute.xlu1 %3635  ;;  %v8870_v41 = vpop.permute.xlu0 %3637 }
 0x4c1   : > { %11455 = vst [vmem:[#allocation220_spill] sm:$0xff] %v8868_v46  ;;  %11456 = vst [vmem:[#allocation221_spill] sm:$0xff] %v8870_v41 }
 0x4c4   : > { %v8872_v53 = vpop.permute.xlu1 %3639  ;;  %v8874_v49 = vpop.permute.xlu0 %3641 }
 0x4c5   : > { %11457 = vst [vmem:[#allocation222_spill] sm:$0xff] %v8872_v53  ;;  %11458 = vst [vmem:[#allocation223_spill] sm:$0xff] %v8874_v49 }
 0x4c8   : > { %v8876_v42 = vpop.permute.xlu1 %3643  ;;  %v8880_v23 = vpop.permute.xlu0 %3645 }
 0x4c9   : > { %11459 = vst [vmem:[#allocation224_spill] sm:$0xff] %v8876_v42  ;;  %11461 = vst [vmem:[#allocation226_spill] sm:$0xff] %v8880_v23 }
 0x4cc   : > { %v8878_v59 = vpop.permute.xlu1 %3647  ;;  %v8884_v26 = vpop.permute.xlu0 %3649 }
 0x4cd   : > { %11460 = vst [vmem:[#allocation225_spill] sm:$0xff] %v8878_v59  ;;  %11463 = vst [vmem:[#allocation228_spill] sm:$0xff] %v8884_v26 }
 0x4d0   : > { %v8882_v51 = vpop.permute.xlu1 %3651  ;;  %v8888_v33 = vpop.permute.xlu0 %3653 }
 0x4d1   : > { %11462 = vst [vmem:[#allocation227_spill] sm:$0xff] %v8882_v51  ;;  %11465 = vst [vmem:[#allocation230_spill] sm:$0xff] %v8888_v33 }
 0x4d4   : > { %v8886_v58 = vpop.permute.xlu1 %3655  ;;  %v8892_v40 = vpop.permute.xlu0 %3657 }
 0x4d5   : > { %11464 = vst [vmem:[#allocation229_spill] sm:$0xff] %v8886_v58  ;;  %11467 = vst [vmem:[#allocation232_spill] sm:$0xff] %v8892_v40 }
 0x4d8   : > { %v8890_v55 = vpop.permute.xlu1 %3659  ;;  %v8896_v49 = vpop.permute.xlu0 %3661 }
 0x4d9   : > { %11466 = vst [vmem:[#allocation231_spill] sm:$0xff] %v8890_v55  ;;  %11469 = vst [vmem:[#allocation234_spill] sm:$0xff] %v8896_v49 }
 0x4dc   : > { %v8894_v37 = vpop.permute.xlu1 %3663  ;;  %v8900_v59 = vpop.permute.xlu0 %3665 }
 0x4dd   : > { %11468 = vst [vmem:[#allocation233_spill] sm:$0xff] %v8894_v37  ;;  %11471 = vst [vmem:[#allocation236_spill] sm:$0xff] %v8900_v59  ;;  %v6453_v37 = vld [vmem:[%s11073_s3 + $0x128] sm:$0xff] }
 0x4e0   : > { %v8898_v42 = vpop.permute.xlu1 %3667 }
 0x4e1   : > { %11470 = vst [vmem:[#allocation235_spill] sm:$0xff] %v8898_v42  ;;  %v6451_v42 = vld [vmem:[%s11073_s3 + $0x118] sm:$0xff] }
 0x4e9   : > { %v8908_v58 = vpop.permute.xlu0 %3714 }
 0x4ea   : > { %11473 = vst [vmem:[#allocation238_spill] sm:$0xff] %v8908_v58  ;;  %v3724_v59 = vmul.f32 %v8908_v58, %v7871_v18  ;;  %v3738_v12 = vmul.f32 %v8908_v58, %v8537_v52 }
 0x4ed   : > { %v8902_v23 = vpop.permute.xlu1 %3719 }
 0x4ee   : > { %11472 = vst [vmem:[#allocation237_spill] sm:$0xff] %v8902_v23  ;;  %v3725_v26 = vmul.f32 %v8902_v23, %v7801_v20  ;;  %v3723_v33 = vmul.f32 %v8902_v23, %v7784_v0  ;;  %v3729_v49 = vmul.f32 %v8902_v23, %v7935_v14  ;;  %v3733_v51 = vmul.f32 %v8902_v23, %v8127_v50 }
 0x4f0   : > { %3768 = vrot.lane.b32.xlu1 %v3725_v26, %s6860_s15  ;;  %3764 = vrot.lane.b32.xlu0 %v3723_v33, %s6860_s15  ;;  %v6455_v33 = vld [vmem:[%s11073_s3 + $0x138] sm:$0xff] }
 0x4f1   : > { %v8923_v26 = vpop.permute.xlu1 %3905 }
 0x4f2   : > { %11474 = vst [vmem:[#allocation239_spill] sm:$0xff] %v8923_v26 }
 0x4f4   : > { %4038 = vperm.xlu0 %6774, %v6451_v42   ;;  %3766 = vrot.lane.b32.xlu1 %v3724_v59, %s6860_s15  ;;  %v3911_v42 = vmul.f32 %v8923_v26, %v7924_v13  ;;  %v6454_v59 = vld [vmem:[%s11073_s3 + $0x130] sm:$0xff] }
 0x4f5   : > { %v8979_v40 = vpop.permute.xlu1 %3900 }
 0x4f6   : > { %11477 = vst [vmem:[#allocation242_spill] sm:$0xff] %v8979_v40  ;;  %v3920_v46 = vmul.f32 %v8979_v40, %v8417_v56 }
 0x4f8   : > { %4171 = vperm.xlu0 %6774, %v6453_v37   ;;  %3776 = vrot.lane.b32.xlu1 %v3729_v49, %s6860_s15  ;;  %v6457_v37 = vld [vmem:[%s11073_s3 + $0x148] sm:$0xff] }
 0x4f9   : > { %v6461_v49 = vld [vmem:[%s11073_s3 + $0x168] sm:$0xff] }
 0x4fc   : > { %4304 = vperm.xlu0 %6774, %v6455_v33   ;;  %3954 = vrot.lane.b32.xlu1 %v3911_v42, %s6859_s10  ;;  %v6463_v33 = vld [vmem:[%s11073_s3 + $0x178] sm:$0xff]  ;;  %v6465_v42 = vld [vmem:[%s11073_s3 + $0x188] sm:$0xff] }
 0x500   : > { %4299 = vperm.xlu0 %6774, %v6454_v59   ;;  %4437 = vperm.xlu1 %6775, %v6457_v37   ;;  %v6464_v59 = vld [vmem:[%s11073_s3 + $0x180] sm:$0xff]  ;;  %v6446_v37 = vld [vmem:[%s11073_s3 + $0xf0] sm:$0xff] }
 0x504   : > { %4623 = vperm.xlu0 %6774, %v6461_v49   ;;  %v3727_v49 = vmul.f32 %v8902_v23, %v7924_v13 }
 0x508   : > { %4756 = vperm.xlu0 %6774, %v6463_v33   ;;  %v3726_v33 = vmul.f32 %v8908_v58, %v8004_v8 }
 0x50c   : > { %4889 = vperm.xlu0 %6774, %v6465_v42   ;;  %v3731_v42 = vmul.f32 %v8902_v23, %v8112_v17 }
 0x510   : > { %4884 = vperm.xlu0 %6774, %v6464_v59   ;;  %v3913_v59 = vmul.f32 %v8923_v26, %v7935_v14 }
 0x514   : > { %3847 = vperm.xlu0 %6774, %v6446_v37  }
 0x518   : > { %3772 = vrot.lane.b32.xlu0 %v3727_v49, %s6860_s15 }
 0x51c   : > { %3770 = vrot.lane.b32.xlu0 %v3726_v33, %s6860_s15 }
 0x520   : > { %3780 = vrot.lane.b32.xlu0 %v3731_v42, %s6860_s15  ;;  %v3730_v42 = vmul.f32 %v8908_v58, %v8202_v45 }
 0x524   : > { %3958 = vrot.lane.b32.xlu0 %v3913_v59, %s6859_s10  ;;  %v3728_v59 = vmul.f32 %v8908_v58, %v8017_v35 }
 0x562   : > { %v8965_v37 = vpop.permute.xlu0 %3764 }
 0x563   : > { %11475 = vst [vmem:[#allocation240_spill] sm:$0xff] %v8965_v37  ;;  %v3912_v37 = vmul.f32 %v8979_v40, %v8017_v35 }
 0x56f   : > { %v8967_v55 = vpop.permute.xlu0 %4038 }
 0x570   : > { %11476 = vst [vmem:[#allocation241_spill] sm:$0xff] %v8967_v55  ;;  %v4046_v49 = vmul.f32 %v8967_v55, %v7935_v14  ;;  %v4044_v33 = vmul.f32 %v8967_v55, %v7924_v13  ;;  %v4054_v30 = vmul.f32 %v8967_v55, %v8327_v15 }
 0x572   : > { %4091 = vrot.lane.b32.xlu1 %v4046_v49, %s6856_s24  ;;  %4087 = vrot.lane.b32.xlu0 %v4044_v33, %s6856_s24  ;;  %v3910_v49 = vmul.f32 %v8979_v40, %v8004_v8  ;;  %v3735_v33 = vmul.f32 %v8902_v23, %v8312_v7 }
 0x573   : > { %v8999_v6 = vpop.permute.xlu0 %4171 }
 0x574   : > { %11478 = vst [vmem:[#allocation243_spill] sm:$0xff] %v8999_v6 }
 0x576   : > { %3778 = vrot.lane.b32.xlu1 %v3730_v42, %s6860_s15  ;;  %3774 = vrot.lane.b32.xlu0 %v3728_v59, %s6860_s15  ;;  %v3917_v42 = vmul.f32 %v8923_v26, %v8127_v50  ;;  %v3915_v59 = vmul.f32 %v8923_v26, %v8112_v17 }
 0x577   : > { %v9021_v41 = vpop.permute.xlu0 %4304 }
 0x578   : > { %11480 = vst [vmem:[#allocation245_spill] sm:$0xff] %v9021_v41  ;;  %v4316_v63 = vmul.f32 %v9021_v41, %v8127_v50 }
 0x57a   : > { %3956 = vrot.lane.b32.xlu1 %v3912_v37, %s6859_s10  ;;  %3952 = vrot.lane.b32.xlu0 %v3910_v49, %s6859_s10  ;;  %v4179_v37 = vmul.f32 %v8999_v6, %v7935_v14  ;;  %v4177_v49 = vmul.f32 %v8999_v6, %v7924_v13 }
 0x57b   : > { %v9067_v3 = vpop.permute.xlu0 %4299 }
 0x57c   : > { %11482 = vst [vmem:[#allocation247_spill] sm:$0xff] %v9067_v3  ;;  %v4311_v28 = vmul.f32 %v9067_v3, %v8017_v35 }
 0x57e   : > { %3788 = vrot.lane.b32.xlu1 %v3735_v33, %s6860_s15  ;;  %3784 = vrot.lane.b32.xlu0 %v3733_v51, %s6860_s15  ;;  %v9007_v33 = vpop.permute.xlu1 %4033  ;;  %v6456_v51 = vld [vmem:[%s11073_s3 + $0x140] sm:$0xff] }
 0x57f   : > { %11479 = vst [vmem:[#allocation244_spill] sm:$0xff] %v9007_v33  ;;  %v4045_v1 = vmul.f32 %v9007_v33, %v8017_v35 }
 0x582   : > { %3966 = vrot.lane.b32.xlu1 %v3917_v42, %s6859_s10  ;;  %3962 = vrot.lane.b32.xlu0 %v3915_v59, %s6859_s10  ;;  %v4043_v42 = vmul.f32 %v9007_v33, %v8004_v8  ;;  %v4048_v59 = vmul.f32 %v8967_v55, %v8112_v17  ;;  %v9041_v47 = vpop.permute.xlu1 %4166 }
 0x583   : > { %11481 = vst [vmem:[#allocation246_spill] sm:$0xff] %v9041_v47 }
 0x586   : > { %4224 = vrot.lane.b32.xlu1 %v4179_v37, %s6861_s16  ;;  %4220 = vrot.lane.b32.xlu0 %v4177_v49, %s6861_s16  ;;  %v4050_v37 = vmul.f32 %v8967_v55, %v8127_v50  ;;  %v4310_v49 = vmul.f32 %v9021_v41, %v7924_v13 }
 0x58a   : > { %4085 = vrot.lane.b32.xlu1 %v4043_v42, %s6856_s24  ;;  %4432 = vperm.xlu0 %6774, %v6456_v51   ;;  %v4312_v51 = vmul.f32 %v9021_v41, %v7935_v14  ;;  %v3732_v42 = vmul.f32 %v8908_v58, %v8217_v29 }
 0x58e   : > { %4095 = vrot.lane.b32.xlu1 %v4048_v59, %s6856_s24  ;;  %4089 = vrot.lane.b32.xlu0 %v4045_v1, %s6856_s24  ;;  %v3734_v1 = vmul.f32 %v8908_v58, %v8402_v31  ;;  %v3914_v59 = vmul.f32 %v8979_v40, %v8202_v45 }
 0x592   : > { %4099 = vrot.lane.b32.xlu0 %v4050_v37, %s6856_s24  ;;  %4353 = vrot.lane.b32.xlu1 %v4310_v49, %s6860_s15  ;;  %v3916_v37 = vmul.f32 %v8979_v40, %v8217_v29  ;;  %v4176_v49 = vmul.f32 %v9041_v47, %v8004_v8 }
 0x596   : > { %4357 = vrot.lane.b32.xlu0 %v4312_v51, %s6860_s15  ;;  %3782 = vrot.lane.b32.xlu1 %v3732_v42, %s6860_s15  ;;  %v4178_v51 = vmul.f32 %v9041_v47, %v8017_v35  ;;  %v3737_v42 = vmul.f32 %v8902_v23, %v8327_v15 }
 0x59a   : > { %3786 = vrot.lane.b32.xlu0 %v3734_v1, %s6860_s15  ;;  %3960 = vrot.lane.b32.xlu1 %v3914_v59, %s6859_s10  ;;  %v3739_v1 = vmul.f32 %v8902_v23, %v8512_v4  ;;  %v3919_v59 = vmul.f32 %v8923_v26, %v8312_v7  ;;  %v4049_v23 = vmul.f32 %v9007_v33, %v8217_v29 }
 0x59e   : > { %3964 = vrot.lane.b32.xlu0 %v3916_v37, %s6859_s10  ;;  %4218 = vrot.lane.b32.xlu1 %v4176_v49, %s6861_s16  ;;  %v3921_v37 = vmul.f32 %v8923_v26, %v8327_v15  ;;  %v4181_v49 = vmul.f32 %v8999_v6, %v8112_v17 }
 0x5a2   : > { %4222 = vrot.lane.b32.xlu0 %v4178_v51, %s6861_s16  ;;  %3792 = vrot.lane.b32.xlu1 %v3737_v42, %s6860_s15  ;;  %v4183_v51 = vmul.f32 %v8999_v6, %v8127_v50  ;;  %v4047_v42 = vmul.f32 %v9007_v33, %v8202_v45 }
 0x5a6   : > { %3796 = vrot.lane.b32.xlu0 %v3739_v1, %s6860_s15  ;;  %3970 = vrot.lane.b32.xlu1 %v3919_v59, %s6859_s10  ;;  %v9075_v1 = vpop.permute.xlu1 %4490  ;;  %v9079_v59 = vpop.permute.xlu0 %4623 }
 0x5a7   : > { %11483 = vst [vmem:[#allocation248_spill] sm:$0xff] %v9075_v1  ;;  %11484 = vst [vmem:[#allocation249_spill] sm:$0xff] %v9079_v59  ;;  %v4498_v54 = vmul.f32 %v9075_v1, %v8112_v17 }
 0x5aa   : > { %3974 = vrot.lane.b32.xlu0 %v3921_v37, %s6859_s10  ;;  %4228 = vrot.lane.b32.xlu1 %v4181_v49, %s6861_s16  ;;  %v4309_v37 = vmul.f32 %v9067_v3, %v8004_v8  ;;  %v9087_v49 = vpop.permute.xlu1 %4485 }
 0x5ab   : > { %11485 = vst [vmem:[#allocation250_spill] sm:$0xff] %v9087_v49 }
 0x5ae   : > { %4232 = vrot.lane.b32.xlu0 %v4183_v51, %s6861_s16  ;;  %4093 = vrot.lane.b32.xlu1 %v4047_v42, %s6856_s24  ;;  %v4052_v51 = vmul.f32 %v8967_v55, %v8312_v7  ;;  %v9093_v42 = vpop.permute.xlu0 %4756 }
 0x5af   : > { %11486 = vst [vmem:[#allocation251_spill] sm:$0xff] %v9093_v42 }
 0x5b2   : > { %4097 = vrot.lane.b32.xlu0 %v4049_v23, %s6856_s24  ;;  %4351 = vrot.lane.b32.xlu1 %v4309_v37, %s6860_s15  ;;  %v4314_v23 = vmul.f32 %v9021_v41, %v8112_v17  ;;  %v9101_v37 = vpop.permute.xlu1 %4618  ;;  %v9105_v32 = vpop.permute.xlu0 %4889 }
 0x5b3   : > { %11487 = vst [vmem:[#allocation252_spill] sm:$0xff] %v9101_v37  ;;  %11488 = vst [vmem:[#allocation253_spill] sm:$0xff] %v9105_v32 }
 0x5b6   : > { %4355 = vrot.lane.b32.xlu0 %v4311_v28, %s6860_s15  ;;  %4103 = vrot.lane.b32.xlu1 %v4052_v51, %s6856_s24  ;;  %v4496_v28 = vmul.f32 %v9075_v1, %v7935_v14  ;;  %v9113_v51 = vpop.permute.xlu1 %4751 }
 0x5b7   : > { %11489 = vst [vmem:[#allocation254_spill] sm:$0xff] %v9113_v51 }
 0x5ba   : > { %4107 = vrot.lane.b32.xlu0 %v4054_v30, %s6856_s24  ;;  %4361 = vrot.lane.b32.xlu1 %v4314_v23, %s6860_s15  ;;  %v3736_v30 = vmul.f32 %v8908_v58, %v8417_v56  ;;  %v9119_v23 = vpop.permute.xlu0 %4884  ;;  %v4182_v58 = vmul.f32 %v9041_v47, %v8217_v29 }
 0x5bb   : > { %11490 = vst [vmem:[#allocation255_spill] sm:$0xff] %v9119_v23 }
 0x5be   : > { %4365 = vrot.lane.b32.xlu0 %v4316_v63, %s6860_s15  ;;  %4539 = vrot.lane.b32.xlu1 %v4496_v28, %s6859_s10  ;;  %v3918_v63 = vmul.f32 %v8979_v40, %v8402_v31  ;;  %v9127_v28 = vpop.permute.xlu1 %3852  ;;  %v9131_v53 = vpop.permute.xlu0 %3847 }
 0x5bf   : > { %11491 = vst [vmem:[#allocation256_spill] sm:$0xff] %v9127_v28  ;;  %11492 = vst [vmem:[#allocation257_spill] sm:$0xff] %v9131_v53  ;;  %v3925_v28 = vmul.f32 %v8923_v26, %v8562_v38 }
 0x5c2   : > { %4543 = vrot.lane.b32.xlu0 %v4498_v54, %s6859_s10  ;;  %3790 = vrot.lane.b32.xlu1 %v3736_v30, %s6860_s15  ;;  %v4180_v54 = vmul.f32 %v9041_v47, %v8202_v45  ;;  %v9137_v30 = vpop.permute.xlu1 %3768 }
 0x5c6   : > { %3794 = vrot.lane.b32.xlu0 %v3738_v12, %s6860_s15  ;;  %3968 = vrot.lane.b32.xlu1 %v3918_v63, %s6859_s10  ;;  %v3923_v12 = vmul.f32 %v8923_v26, %v8512_v4  ;;  %v9145_v63 = vpop.permute.xlu0 %3772  ;;  %v9149_v53 = vpop.permute.xlu1 %3766  ;;  %v4631_v26 = vmul.f32 %v9079_v59, %v8112_v17 }
 0x5c7   : > { %11493 = vst [vmem:[#allocation258_spill] sm:$0xff] %v9145_v63  ;;  %11494 = vst [vmem:[#allocation259_spill] sm:$0xff] %v9149_v53  ;;  %v4187_v63 = vmul.f32 %v8999_v6, %v8327_v15 }
 0x5ca   : > { %3972 = vrot.lane.b32.xlu0 %v3920_v46, %s6859_s10  ;;  %4226 = vrot.lane.b32.xlu1 %v4180_v54, %s6861_s16  ;;  %v4185_v46 = vmul.f32 %v8999_v6, %v8312_v7  ;;  %v9157_v54 = vpop.permute.xlu0 %3770 }
 0x5cb   : > { %11495 = vst [vmem:[#allocation260_spill] sm:$0xff] %v9157_v54 }
 0x5ce   : > { %4230 = vrot.lane.b32.xlu0 %v4182_v58, %s6861_s16  ;;  %3978 = vrot.lane.b32.xlu1 %v3923_v12, %s6859_s10  ;;  %v4629_v58 = vmul.f32 %v9079_v59, %v7935_v14  ;;  %v9163_v12 = vpop.permute.xlu1 %3776 }
 0x5cf   : > { %11496 = vst [vmem:[#allocation261_spill] sm:$0xff] %v9163_v12  ;;  %v4053_v12 = vmul.f32 %v9007_v33, %v8417_v56 }
 0x5d2   : > { %3982 = vrot.lane.b32.xlu0 %v3925_v28, %s6859_s10  ;;  %4236 = vrot.lane.b32.xlu1 %v4185_v46, %s6861_s16  ;;  %v4051_v28 = vmul.f32 %v9007_v33, %v8402_v31  ;;  %v9171_v46 = vpop.permute.xlu0 %3780  ;;  %v9175_v54 = vpop.permute.xlu1 %3954 }
 0x5d3   : > { %11497 = vst [vmem:[#allocation262_spill] sm:$0xff] %v9171_v46  ;;  %11498 = vst [vmem:[#allocation263_spill] sm:$0xff] %v9175_v54 }
 0x5d6   : > { %4240 = vrot.lane.b32.xlu0 %v4187_v63, %s6861_s16  ;;  %4672 = vrot.lane.b32.xlu1 %v4629_v58, %s6856_s24  ;;  %v4313_v63 = vmul.f32 %v9067_v3, %v8202_v45  ;;  %v9183_v58 = vpop.permute.xlu1 %4437  ;;  %v9185_v53 = vpop.permute.xlu0 %3958 }
 0x5d7   : > { %11499 = vst [vmem:[#allocation264_spill] sm:$0xff] %v9183_v58  ;;  %11500 = vst [vmem:[#allocation265_spill] sm:$0xff] %v9185_v53  ;;  %v4497_v58 = vmul.f32 %v9087_v49, %v8202_v45 }
 0x5da   : > { %4676 = vrot.lane.b32.xlu0 %v4631_v26, %s6856_s24  ;;  %4101 = vrot.lane.b32.xlu1 %v4051_v28, %s6856_s24  ;;  %v4315_v26 = vmul.f32 %v9067_v3, %v8217_v29  ;;  %v4495_v28 = vmul.f32 %v9087_v49, %v8017_v35 }
 0x5de   : > { %4105 = vrot.lane.b32.xlu0 %v4053_v12, %s6856_s24  ;;  %4359 = vrot.lane.b32.xlu1 %v4313_v63, %s6860_s15  ;;  %v5013_v12 = vld [vmem:[%s11074_s4 + $0x8] sm:$0xff] }
 0x5e2   : > { %4363 = vrot.lane.b32.xlu0 %v4315_v26, %s6860_s15  ;;  %4537 = vrot.lane.b32.xlu1 %v4495_v28, %s6859_s10  ;;  %v4056_v26 = vmul.f32 %v8967_v55, %v8512_v4  ;;  %v4058_v28 = vmul.f32 %v8967_v55, %v8562_v38 }
 0x5e4   : > { %v9196_v46 = vpop.permute.xlu1 %4091  ;;  %v9198_v63 = vpop.permute.xlu0 %4087 }
 0x5e5   : > { %11501 = vst [vmem:[#allocation266_spill] sm:$0xff] %v9198_v63 }
 0x5e6   : > { %4541 = vrot.lane.b32.xlu0 %v4497_v58, %s6859_s10  ;;  %5021 = vperm.xlu1 %6775, %v5013_v12   ;;  %v4318_v58 = vmul.f32 %v9021_v41, %v8312_v7  ;;  %v4320_v12 = vmul.f32 %v9021_v41, %v8327_v15 }
 0x5e8   : > { %v9203_v53 = vpop.permute.xlu1 %3778  ;;  %v9209_v54 = vpop.permute.xlu0 %3774 }
 0x5e9   : > { %11502 = vst [vmem:[#allocation267_spill] sm:$0xff] %v9203_v53  ;;  %11503 = vst [vmem:[#allocation268_spill] sm:$0xff] %v9209_v54 }
 0x5ea   : > { %4111 = vrot.lane.b32.xlu0 %v4056_v26, %s6856_s24  ;;  %4115 = vrot.lane.b32.xlu1 %v4058_v28, %s6856_s24  ;;  %v4500_v26 = vmul.f32 %v9075_v1, %v8127_v50  ;;  %v4502_v28 = vmul.f32 %v9075_v1, %v8312_v7 }
 0x5ec   : > { %v9213_v63 = vpop.permute.xlu1 %3956  ;;  %v9221_v53 = vpop.permute.xlu0 %3952 }
 0x5ed   : > { %11504 = vst [vmem:[#allocation269_spill] sm:$0xff] %v9213_v63  ;;  %11505 = vst [vmem:[#allocation270_spill] sm:$0xff] %v9221_v53 }
 0x5ee   : > { %4369 = vrot.lane.b32.xlu0 %v4318_v58, %s6860_s15  ;;  %4373 = vrot.lane.b32.xlu1 %v4320_v12, %s6860_s15  ;;  %v4764_v58 = vmul.f32 %v9093_v42, %v8112_v17  ;;  %v4762_v12 = vmul.f32 %v9093_v42, %v7935_v14 }
 0x5f0   : > { %v9223_v55 = vpop.permute.xlu1 %3788  ;;  %v9237_v63 = vpop.permute.xlu0 %3784 }
 0x5f1   : > { %11506 = vst [vmem:[#allocation271_spill] sm:$0xff] %v9223_v55  ;;  %11508 = vst [vmem:[#allocation273_spill] sm:$0xff] %v9237_v63 }
 0x5f2   : > { %4547 = vrot.lane.b32.xlu0 %v4500_v26, %s6859_s10  ;;  %4551 = vrot.lane.b32.xlu1 %v4502_v28, %s6859_s10  ;;  %v3924_v26 = vmul.f32 %v8979_v40, %v8577_v48  ;;  %v3922_v28 = vmul.f32 %v8979_v40, %v8537_v52 }
 0x5f4   : > { %v9231_v54 = vpop.permute.xlu1 %3966 }
 0x5f5   : > { %11507 = vst [vmem:[#allocation272_spill] sm:$0xff] %v9231_v54  ;;  %v9249_v54 = vpop.permute.xlu0 %3962 }
 0x5f6   : > { %4809 = vrot.lane.b32.xlu1 %v4764_v58, %s6861_s16  ;;  %4805 = vrot.lane.b32.xlu0 %v4762_v12, %s6861_s16  ;;  %11509 = vst [vmem:[#allocation274_spill] sm:$0xff] %v9249_v54  ;;  %v4186_v58 = vmul.f32 %v9041_v47, %v8417_v56  ;;  %v4184_v12 = vmul.f32 %v9041_v47, %v8402_v31 }
 0x5f8   : > { %v9241_v55 = vpop.permute.xlu1 %4224 }
 0x5f9   : > { %v9265_v40 = vpop.permute.xlu0 %4220 }
 0x5fa   : > { %3980 = vrot.lane.b32.xlu1 %v3924_v26, %s6859_s10  ;;  %3976 = vrot.lane.b32.xlu0 %v3922_v28, %s6859_s10  ;;  %v4630_v26 = vmul.f32 %v9101_v37, %v8202_v45  ;;  %v4628_v28 = vmul.f32 %v9101_v37, %v8017_v35 }
 0x5fc   : > { %v9251_v53 = vpop.permute.xlu1 %4085 }
 0x5fd   : > { %11510 = vst [vmem:[#allocation275_spill] sm:$0xff] %v9251_v53 }
 0x5fe   : > { %4238 = vrot.lane.b32.xlu1 %v4186_v58, %s6861_s16  ;;  %4234 = vrot.lane.b32.xlu0 %v4184_v12, %s6861_s16  ;;  %v4191_v58 = vmul.f32 %v8999_v6, %v8562_v38  ;;  %v4189_v12 = vmul.f32 %v8999_v6, %v8512_v4 }
 0x600   : > { %v9259_v63 = vpop.permute.xlu1 %4095 }
 0x601   : > { %11511 = vst [vmem:[#allocation276_spill] sm:$0xff] %v9259_v63 }
 0x602   : > { %4674 = vrot.lane.b32.xlu1 %v4630_v26, %s6856_s24  ;;  %4670 = vrot.lane.b32.xlu0 %v4628_v28, %s6856_s24  ;;  %v4635_v26 = vmul.f32 %v9079_v59, %v8312_v7  ;;  %v4633_v28 = vmul.f32 %v9079_v59, %v8127_v50 }
 0x604   : > { %v9269_v54 = vpop.permute.xlu1 %4353 }
 0x605   : > { %11512 = vst [vmem:[#allocation277_spill] sm:$0xff] %v9269_v54  ;;  %v9275_v63 = vpop.permute.xlu0 %4432 }
 0x606   : > { %11513 = vst [vmem:[#allocation278_spill] sm:$0xff] %v9275_v63  ;;  %4248 = vrot.lane.b32.xlu1 %v4191_v58, %s6861_s16  ;;  %4244 = vrot.lane.b32.xlu0 %v4189_v12, %s6861_s16  ;;  %v4897_v58 = vmul.f32 %v9105_v32, %v8112_v17  ;;  %v4895_v12 = vmul.f32 %v9105_v32, %v7935_v14 }
 0x608   : > { %v9279_v53 = vpop.permute.xlu1 %3782 }
 0x609   : > { %11514 = vst [vmem:[#allocation279_spill] sm:$0xff] %v9279_v53  ;;  %v9285_v54 = vpop.permute.xlu0 %4089 }
 0x60a   : > { %11515 = vst [vmem:[#allocation280_spill] sm:$0xff] %v9285_v54  ;;  %4684 = vrot.lane.b32.xlu1 %v4635_v26, %s6856_s24  ;;  %4680 = vrot.lane.b32.xlu0 %v4633_v28, %s6856_s24  ;;  %v5012_v26 = vld [vmem:[%s11074_s4] sm:$0xff]  ;;  %v4055_v28 = vmul.f32 %v9007_v33, %v8537_v52 }
 0x60c   : > { %v9289_v6 = vpop.permute.xlu1 %3960 }
 0x60d   : > { %11516 = vst [vmem:[#allocation281_spill] sm:$0xff] %v9289_v6  ;;  %v9295_v53 = vpop.permute.xlu0 %4099 }
 0x60e   : > { %11517 = vst [vmem:[#allocation282_spill] sm:$0xff] %v9295_v53  ;;  %4942 = vrot.lane.b32.xlu1 %v4897_v58, %s6860_s15  ;;  %4938 = vrot.lane.b32.xlu0 %v4895_v12, %s6860_s15  ;;  %v4317_v58 = vmul.f32 %v9067_v3, %v8402_v31  ;;  %v4057_v12 = vmul.f32 %v9007_v33, %v8577_v48 }
 0x610   : > { %v9302_v63 = vpop.permute.xlu1 %4218 }
 0x611   : > { %11518 = vst [vmem:[#allocation283_spill] sm:$0xff] %v9302_v63  ;;  %v9306_v6 = vpop.permute.xlu0 %4357 }
 0x612   : > { %4109 = vrot.lane.b32.xlu1 %v4055_v28, %s6856_s24  ;;  %5016 = vperm.xlu0 %6774, %v5012_v26   ;;  %v4499_v28 = vmul.f32 %v9087_v49, %v8217_v29  ;;  %v4319_v26 = vmul.f32 %v9067_v3, %v8417_v56 }
 0x614   : > { %v9309_v54 = vpop.permute.xlu1 %3792 }
 0x615   : > { %11519 = vst [vmem:[#allocation284_spill] sm:$0xff] %v9309_v54  ;;  %v9315_v53 = vpop.permute.xlu0 %3786 }
 0x616   : > { %11520 = vst [vmem:[#allocation285_spill] sm:$0xff] %v9315_v53  ;;  %4367 = vrot.lane.b32.xlu1 %v4317_v58, %s6860_s15  ;;  %4113 = vrot.lane.b32.xlu0 %v4057_v12, %s6856_s24  ;;  %v4761_v58 = vmul.f32 %v9113_v51, %v8017_v35  ;;  %v4501_v12 = vmul.f32 %v9087_v49, %v8402_v31 }
 0x618   : > { %v9319_v63 = vpop.permute.xlu1 %3970 }
 0x619   : > { %11521 = vst [vmem:[#allocation286_spill] sm:$0xff] %v9319_v63  ;;  %v9325_v54 = vpop.permute.xlu0 %3964 }
 0x61a   : > { %11522 = vst [vmem:[#allocation287_spill] sm:$0xff] %v9325_v54  ;;  %4545 = vrot.lane.b32.xlu1 %v4499_v28, %s6859_s10  ;;  %4371 = vrot.lane.b32.xlu0 %v4319_v26, %s6860_s15  ;;  %v4322_v28 = vmul.f32 %v9021_v41, %v8512_v4  ;;  %v4763_v26 = vmul.f32 %v9113_v51, %v8202_v45 }
 0x61c   : > { %v9329_v33 = vpop.permute.xlu1 %4228 }
 0x61d   : > { %11523 = vst [vmem:[#allocation288_spill] sm:$0xff] %v9329_v33  ;;  %v9335_v53 = vpop.permute.xlu0 %4222 }
 0x61e   : > { %11524 = vst [vmem:[#allocation289_spill] sm:$0xff] %v9335_v53  ;;  %4803 = vrot.lane.b32.xlu1 %v4761_v58, %s6861_s16  ;;  %4549 = vrot.lane.b32.xlu0 %v4501_v12, %s6859_s10  ;;  %v4504_v58 = vmul.f32 %v9075_v1, %v8327_v15  ;;  %v4324_v12 = vmul.f32 %v9021_v41, %v8562_v38 }
 0x620   : > { %v9339_v63 = vpop.permute.xlu1 %4093 }
 0x621   : > { %11525 = vst [vmem:[#allocation290_spill] sm:$0xff] %v9339_v63  ;;  %v9345_v54 = vpop.permute.xlu0 %3796 }
 0x622   : > { %11526 = vst [vmem:[#allocation291_spill] sm:$0xff] %v9345_v54  ;;  %4377 = vrot.lane.b32.xlu1 %v4322_v28, %s6860_s15  ;;  %4807 = vrot.lane.b32.xlu0 %v4763_v26, %s6861_s16  ;;  %v4766_v28 = vmul.f32 %v9093_v42, %v8127_v50  ;;  %v4506_v26 = vmul.f32 %v9075_v1, %v8512_v4 }
 0x624   : > { %v9349_v33 = vpop.permute.xlu1 %4351 }
 0x625   : > { %11527 = vst [vmem:[#allocation292_spill] sm:$0xff] %v9349_v33  ;;  %v9355_v63 = vpop.permute.xlu0 %3974  ;;  %v6664_v33 = vpop.f32.mrf.mxu0 }
 0x626   : > { %11528 = vst [vmem:[#allocation293_spill] sm:$0xff] %v9355_v63  ;;  %4555 = vrot.lane.b32.xlu1 %v4504_v58, %s6859_s10  ;;  %4381 = vrot.lane.b32.xlu0 %v4324_v12, %s6860_s15  ;;  %v4188_v58 = vmul.f32 %v9041_v47, %v8537_v52  ;;  %v4768_v12 = vmul.f32 %v9093_v42, %v8312_v7 }
 0x628   : > { %v9359_v53 = vpop.permute.xlu1 %4103 }
 0x629   : > { %11529 = vst [vmem:[#allocation294_spill] sm:$0xff] %v9359_v53  ;;  %v9365_v54 = vpop.permute.xlu0 %4232 }
 0x62a   : > { %11530 = vst [vmem:[#allocation295_spill] sm:$0xff] %v9365_v54  ;;  %4813 = vrot.lane.b32.xlu1 %v4766_v28, %s6861_s16  ;;  %4559 = vrot.lane.b32.xlu0 %v4506_v26, %s6859_s10  ;;  %v4632_v28 = vmul.f32 %v9101_v37, %v8217_v29  ;;  %v4190_v26 = vmul.f32 %v9041_v47, %v8577_v48 }
 0x62c   : > { %v9369_v41 = vpop.permute.xlu1 %4361 }
 0x62d   : > { %11531 = vst [vmem:[#allocation296_spill] sm:$0xff] %v9369_v41  ;;  %v9375_v53 = vpop.permute.xlu0 %4097 }
 0x62e   : > { %11532 = vst [vmem:[#allocation297_spill] sm:$0xff] %v9375_v53  ;;  %4242 = vrot.lane.b32.xlu1 %v4188_v58, %s6861_s16  ;;  %4817 = vrot.lane.b32.xlu0 %v4768_v12, %s6861_s16  ;;  %v4894_v58 = vmul.f32 %v9119_v23, %v8017_v35  ;;  %v4634_v12 = vmul.f32 %v9101_v37, %v8402_v31 }
 0x630   : > { %v9379_v63 = vpop.permute.xlu1 %4539 }
 0x631   : > { %v9385_v54 = vpop.permute.xlu0 %4355 }
 0x632   : > { %11533 = vst [vmem:[#allocation298_spill] sm:$0xff] %v9385_v54  ;;  %4678 = vrot.lane.b32.xlu1 %v4632_v28, %s6856_s24  ;;  %4246 = vrot.lane.b32.xlu0 %v4190_v26, %s6861_s16  ;;  %v4637_v28 = vmul.f32 %v9079_v59, %v8327_v15  ;;  %v4896_v26 = vmul.f32 %v9119_v23, %v8202_v45 }
 0x634   : > { %v9389_v41 = vpop.permute.xlu1 %3790 }
 0x635   : > { %11534 = vst [vmem:[#allocation299_spill] sm:$0xff] %v9389_v41  ;;  %v9395_v53 = vpop.permute.xlu0 %4107 }
 0x636   : > { %11535 = vst [vmem:[#allocation300_spill] sm:$0xff] %v9395_v53  ;;  %4936 = vrot.lane.b32.xlu1 %v4894_v58, %s6860_s15  ;;  %4682 = vrot.lane.b32.xlu0 %v4634_v12, %s6856_s24  ;;  %v4899_v58 = vmul.f32 %v9105_v32, %v8127_v50  ;;  %v4639_v12 = vmul.f32 %v9079_v59, %v8512_v4 }
 0x638   : > { %v9399_v47 = vpop.permute.xlu1 %3968 }
 0x639   : > { %11536 = vst [vmem:[#allocation301_spill] sm:$0xff] %v9399_v47  ;;  %v9405_v41 = vpop.permute.xlu0 %4365 }
 0x63a   : > { %11537 = vst [vmem:[#allocation302_spill] sm:$0xff] %v9405_v41  ;;  %4688 = vrot.lane.b32.xlu1 %v4637_v28, %s6856_s24  ;;  %4940 = vrot.lane.b32.xlu0 %v4896_v26, %s6860_s15  ;;  %v4321_v28 = vmul.f32 %v9067_v3, %v8537_v52  ;;  %v4901_v26 = vmul.f32 %v9105_v32, %v8312_v7 }
 0x63b   : > { %v4503_v41 = vmul.f32 %v9087_v49, %v8417_v56 }
 0x63c   : > { %v9409_v54 = vpop.permute.xlu1 %4226 }
 0x63d   : > { %11538 = vst [vmem:[#allocation303_spill] sm:$0xff] %v9409_v54  ;;  %v9415_v47 = vpop.permute.xlu0 %4543 }
 0x63e   : > { %11539 = vst [vmem:[#allocation304_spill] sm:$0xff] %v9415_v47  ;;  %4946 = vrot.lane.b32.xlu1 %v4899_v58, %s6860_s15  ;;  %4692 = vrot.lane.b32.xlu0 %v4639_v12, %s6856_s24  ;;  %v4323_v58 = vmul.f32 %v9067_v3, %v8577_v48 }
 0x640   : > { %v9419_v53 = vpop.permute.xlu1 %3978 }
 0x641   : > { %11540 = vst [vmem:[#allocation305_spill] sm:$0xff] %v9419_v53  ;;  %v9425_v54 = vpop.permute.xlu0 %3794 }
 0x642   : > { %11541 = vst [vmem:[#allocation306_spill] sm:$0xff] %v9425_v54  ;;  %4375 = vrot.lane.b32.xlu1 %v4321_v28, %s6860_s15  ;;  %4950 = vrot.lane.b32.xlu0 %v4901_v26, %s6860_s15  ;;  %v2123_v28 = vmul.f32 %v7481_v2, %v7722_v22  ;;  %v4765_v26 = vmul.f32 %v9113_v51, %v8217_v29 }
 0x643   : > { %v4505_v54 = vmul.f32 %v9087_v49, %v8537_v52 }
 0x644   : > { %v9433_v12 = vpop.permute.xlu1 %4236  ;;  %v2256_v3 = vadd.f32 %v7955_v27, %v2123_v28 }
 0x645   : > { %11542 = vst [vmem:[#allocation307_spill] sm:$0xff] %v9433_v12  ;;  %v9435_v53 = vpop.permute.xlu0 %3972  ;;  %v4508_v12 = vmul.f32 %v9075_v1, %v8562_v38 }
 0x646   : > { %11543 = vst [vmem:[#allocation308_spill] sm:$0xff] %v9435_v53  ;;  %4553 = vrot.lane.b32.xlu1 %v4503_v41, %s6859_s10  ;;  %4379 = vrot.lane.b32.xlu0 %v4323_v58, %s6860_s15  ;;  %v2125_v53 = vmul.f32 %v7481_v2, %v7784_v0  ;;  %v1876_v41 = vadd.f32 %v6664_v33, %v7258_v43 }
 0x647   : > { %v2389_v28 = vadd.f32 %v7953_v10, %v2256_v3  ;;  %v4772_v3 = vmul.f32 %v9093_v42, %v8512_v4 }
 0x648   : > { %v9453_v22 = vpop.permute.xlu1 %4672  ;;  %v2258_v58 = vadd.f32 %v8031_v19, %v2125_v53  ;;  %v9467_v33 = vsel %vm11546_vm5, %v1876_v41, 0.0 }
 0x649   : > { %v9445_v47 = vpop.permute.xlu0 %4230  ;;  %11547 = vst [vmem:[#allocation311_spill] sm:$0xff] %v9467_v33  ;;  %v2522_v19 = vadd.f32 %v7973_v9, %v2389_v28  ;;  %v2690_v28 = vmul.f32 %v7501_v34, %v7801_v20 }
 0x64a   : > { %11544 = vst [vmem:[#allocation309_spill] sm:$0xff] %v9445_v47  ;;  %4811 = vrot.lane.b32.xlu1 %v4765_v26, %s6861_s16  ;;  %4557 = vrot.lane.b32.xlu0 %v4505_v54, %s6859_s10  ;;  %v4767_v47 = vmul.f32 %v9113_v51, %v8402_v31  ;;  %v2391_v53 = vadd.f32 %v8029_v21, %v2258_v58 }
 0x64b   : > { %v4770_v54 = vmul.f32 %v9093_v42, %v8327_v15  ;;  %v4510_v26 = vmul.f32 %v9075_v1, %v9467_v33  ;;  %v2655_v9 = vadd.f32 %v7971_v36, %v2522_v19  ;;  %v4636_v21 = vmul.f32 %v9101_v37, %v8417_v56 }
 0x64c   : > { %v9475_v43 = vpop.permute.xlu1 %4101  ;;  %v2688_v58 = vmul.f32 %v7501_v34, %v7784_v0  ;;  %v4898_v19 = vmul.f32 %v9119_v23, %v8217_v29 }
 0x64d   : > { %v9460_v27 = vpop.permute.xlu0 %3982  ;;  %11548 = vst [vmem:[#allocation312_spill] sm:$0xff] %v9475_v43 }
 0x64e   : > { %11545 = vst [vmem:[#allocation310_spill] sm:$0xff] %v9460_v27  ;;  %4563 = vrot.lane.b32.xlu1 %v4508_v12, %s6859_s10  ;;  %4815 = vrot.lane.b32.xlu0 %v4767_v47, %s6861_s16  ;;  %v2524_v47 = vadd.f32 %v8053_v25, %v2391_v53  ;;  %v2708_v36 = vadd.f32 %v2688_v58, %v2655_v9 }
 0x64f   : > { %v4638_v53 = vmul.f32 %v9101_v37, %v8537_v52  ;;  %v4641_v9 = vmul.f32 %v9079_v59, %v8562_v38 }
 0x650   : > { %v2657_v41 = vadd.f32 %v8051_v11, %v2524_v47  ;;  %v9494_v25 = vpop.permute.xlu1 %4359 }
 0x651   : > { %v9477_v10 = vpop.permute.xlu0 %4240  ;;  %11550 = vst [vmem:[#allocation314_spill] sm:$0xff] %v9494_v25  ;;  %v11577_v25 = vld [vmem:[#allocation61_spill] sm:$0xff] }
 0x652   : > { %11549 = vst [vmem:[#allocation313_spill] sm:$0xff] %v9477_v10  ;;  %4821 = vrot.lane.b32.xlu1 %v4770_v54, %s6861_s16  ;;  %4567 = vrot.lane.b32.xlu0 %v4510_v26, %s6859_s10  ;;  %v2841_v54 = vadd.f32 %v8073_v61, %v2708_v36  ;;  %v2710_v26 = vadd.f32 %v2690_v28, %v2657_v41  ;;  %v1870_v61 = vpop.f32.mrf.mxu0 }
 0x653   : > { %v4903_v36 = vmul.f32 %v9105_v32, %v8327_v15  ;;  %v4643_v28 = vmul.f32 %v9079_v59, %v9467_v33  ;;  %v11559_v59 = vld [vmem:[#allocation53_spill] sm:$0xff] }
 0x654   : > { %v2843_v47 = vadd.f32 %v8083_v62, %v2710_v26  ;;  %v2974_v0 = vadd.f32 %v8071_v16, %v2841_v54  ;;  %v11555_v16 = vld [vmem:[#allocation54_spill] sm:$0xff]  ;;  %v4507_v26 = vmul.f32 %v9087_v49, %v8577_v48 }
 0x655   : > { %v9487_v12 = vpop.permute.xlu0 %4676 }
 0x656   : > { %4686 = vrot.lane.b32.xlu1 %v4636_v21, %s6856_s24  ;;  %4825 = vrot.lane.b32.xlu0 %v4772_v3, %s6861_s16  ;;  %v4900_v21 = vmul.f32 %v9119_v23, %v8402_v31  ;;  %v9512_v3 = vpop.permute.xlu1 %4537  ;;  %v3107_v41 = vadd.f32 %v8093_v5, %v2974_v0  ;;  %v2976_v62 = vadd.f32 %v8081_v60, %v2843_v47  ;;  %v11556_v5 = vld [vmem:[#allocation52_spill] sm:$0xff] }
 0x657   : > { %11552 = vst [vmem:[#allocation316_spill] sm:$0xff] %v9512_v3  ;;  %v1871_v0 = vadd.f32 %v1870_v61, %v7260_v44  ;;  %v4905_v47 = vmul.f32 %v9105_v32, %v8512_v4  ;;  %v9654_v3 = vmul.f32 %v7481_v2, %v8127_v50 }
 0x658   : > { %v3109_v54 = vadd.f32 %v11555_v16, %v2976_v62  ;;  %v3240_v60 = vadd.f32 %v11556_v5, %v3107_v41  ;;  %v4769_v5 = vmul.f32 %v9113_v51, %v8417_v56 }
 0x659   : > { %v9502_v11 = vpop.permute.xlu0 %4105  ;;  %v9549_v61 = vsel %vm11546_vm5, %v1871_v0, 0.0  ;;  %v11565_v0 = vld [vmem:[#allocation38_spill] sm:$0xff]  ;;  %11581 = vst [vmem:[#allocation61_spill] sm:$0xff] %v9654_v3  ;;  %v11594_v3 = vld [vmem:[#allocation63_spill] sm:$0xff] }
 0x65a   : > { %11551 = vst [vmem:[#allocation315_spill] sm:$0xff] %v9502_v11  ;;  %4944 = vrot.lane.b32.xlu1 %v4898_v19, %s6860_s15  ;;  %4690 = vrot.lane.b32.xlu0 %v4638_v53, %s6856_s24  ;;  %v3242_v62 = vadd.f32 %v11559_v59, %v3109_v54  ;;  %11561 = vst [vmem:[#allocation53_spill] sm:$0xff] %v9549_v61  ;;  %v4509_v59 = vmul.f32 %v9087_v49, %v9549_v61  ;;  %v11572_v11 = vld [vmem:[#allocation58_spill] sm:$0xff] }
 0x65d   : > { %v9514_v58 = vpop.permute.xlu0 %4363 }
 0x65e   : > { %11553 = vst [vmem:[#allocation317_spill] sm:$0xff] %v9514_v58  ;;  %4696 = vrot.lane.b32.xlu1 %v4641_v9, %s6856_s24  ;;  %4948 = vrot.lane.b32.xlu0 %v4900_v21, %s6860_s15  ;;  %v4776_v58 = vmul.f32 %v9093_v42, %v9467_v33 }
 0x661   : > { %v9525_v19 = vpop.permute.xlu1 %5021  ;;  %v9527_v53 = vpop.permute.xlu0 %4541 }
 0x662   : > { %11554 = vst [vmem:[#allocation318_spill] sm:$0xff] %v9527_v53  ;;  %4954 = vrot.lane.b32.xlu1 %v4903_v36, %s6860_s15  ;;  %4700 = vrot.lane.b32.xlu0 %v4643_v28, %s6856_s24  ;;  %v11560_v36 = vld [vmem:[#allocation33_spill] sm:$0xff] }
 0x663   : > { %v3273_v16 = vmul.f32 %v11560_v36, %v7801_v20  ;;  %v3275_v28 = vmul.f32 %v11560_v36, %v7924_v13  ;;  %v9611_v10 = vmul.f32 %v11560_v36, %v7935_v14 }
 0x665   : > { %v9538_v9 = vpop.permute.xlu1 %4115  ;;  %v9540_v21 = vpop.permute.xlu0 %4111  ;;  %v3293_v41 = vadd.f32 %v3273_v16, %v3240_v60  ;;  %v3295_v1 = vadd.f32 %v3275_v28, %v3242_v62  ;;  %v11566_v60 = vld [vmem:[#allocation27_spill] sm:$0xff]  ;;  %v4774_v62 = vmul.f32 %v9093_v42, %v8562_v38  ;;  %v4771_v28 = vmul.f32 %v9113_v51, %v8537_v52  ;;  %11573 = vst [vmem:[#allocation58_spill] sm:$0xff] %v9611_v10 }
 0x666   : > { %11557 = vst [vmem:[#allocation54_spill] sm:$0xff] %v9538_v9  ;;  %11558 = vst [vmem:[#allocation52_spill] sm:$0xff] %v9540_v21  ;;  %4561 = vrot.lane.b32.xlu1 %v4507_v26, %s6859_s10  ;;  %4958 = vrot.lane.b32.xlu0 %v4905_v47, %s6860_s15  ;;  %v11564_v26 = vld [vmem:[#allocation59_spill] sm:$0xff]  ;;  %v2124_v16 = vmul.f32 %v11566_v60, %v11565_v0  ;;  %v2126_v49 = vmul.f32 %v11566_v60, %v7871_v18  ;;  %v11567_v9 = vld [vmem:[#allocation30_spill] sm:$0xff] }
 0x667   : > { %v3426_v47 = vadd.f32 %v11564_v26, %v3293_v41  ;;  %v9572_v27 = vmul.f32 %v11567_v9, %v7871_v18  ;;  %v3428_v41 = vadd.f32 %v8331_v24, %v3295_v1  ;;  %v2129_v26 = vmul.f32 %v7481_v2, %v7924_v13 }
 0x668   : > { %v9587_v0 = vmul.f32 %v7481_v2, %v7935_v14  ;;  %v9591_v24 = vmul.f32 %v7501_v34, %v7924_v13  ;;  %v9599_v21 = vmul.f32 %v7501_v34, %v7935_v14 }
 0x669   : > { %v9557_v54 = vpop.permute.xlu1 %4373  ;;  %v9559_v44 = vpop.permute.xlu0 %4369  ;;  %v3559_v43 = vadd.f32 %v11572_v11, %v3426_v47  ;;  %v11575_v11 = vld [vmem:[#allocation220_spill] sm:$0xff] }
 0x66a   : > { %11562 = vst [vmem:[#allocation319_spill] sm:$0xff] %v9557_v54  ;;  %11563 = vst [vmem:[#allocation320_spill] sm:$0xff] %v9559_v44  ;;  %4819 = vrot.lane.b32.xlu1 %v4769_v5, %s6861_s16  ;;  %4565 = vrot.lane.b32.xlu0 %v4509_v59, %s6859_s10  ;;  %v11568_v5 = vld [vmem:[#allocation32_spill] sm:$0xff]  ;;  %v9607_v54 = vmul.f32 %v11566_v60, %v8004_v8  ;;  %v9615_v44 = vmul.f32 %v11566_v60, %v8017_v35 }
 0x66b   : > { %v9581_v59 = vmul.f32 %v11568_v5, %v7871_v18  ;;  %v3561_v18 = vadd.f32 %v8763_v39, %v3428_v41  ;;  %v9619_v39 = vmul.f32 %v11567_v9, %v8004_v8  ;;  %v3692_v47 = vadd.f32 %v11575_v11, %v3559_v43  ;;  %v11576_v41 = vld [vmem:[#allocation222_spill] sm:$0xff] }
 0x66c   : > { %11574 = vst [vmem:[#allocation322_spill] sm:$0xff] %v9615_v44  ;;  %v9634_v53 = vmul.f32 %v11568_v5, %v8004_v8  ;;  %v9638_v43 = vmul.f32 %v11568_v5, %v8017_v35  ;;  %v9662_v8 = vmul.f32 %v7501_v34, %v8127_v50 }
 0x66d   : > { %11569 = vst [vmem:[#allocation59_spill] sm:$0xff] %v9581_v59  ;;  %v9593_v1 = vpop.permute.xlu1 %4551  ;;  %v9595_v20 = vpop.permute.xlu0 %4547  ;;  %v11597_v59 = vld [vmem:[#allocation265_spill] sm:$0xff] }
 0x66e   : > { %11570 = vst [vmem:[#allocation38_spill] sm:$0xff] %v9593_v1  ;;  %11571 = vst [vmem:[#allocation321_spill] sm:$0xff] %v9595_v20  ;;  %4829 = vrot.lane.b32.xlu1 %v4774_v62, %s6861_s16  ;;  %4823 = vrot.lane.b32.xlu0 %v4771_v28, %s6861_s16  ;;  %v3694_v62 = vadd.f32 %v11576_v41, %v3561_v18  ;;  %v4640_v28 = vmul.f32 %v9101_v37, %v8577_v48 }
 0x66f   : > { %v2257_v1 = vadd.f32 %v11577_v25, %v2124_v16  ;;  %v9630_v20 = vmul.f32 %v11567_v9, %v8017_v35  ;;  %11578 = vst [vmem:[#allocation220_spill] sm:$0xff] %v9634_v53  ;;  %11579 = vst [vmem:[#allocation222_spill] sm:$0xff] %v9638_v43  ;;  %v9646_v41 = vmul.f32 %v7481_v2, %v8112_v17  ;;  %v11580_v16 = vld [vmem:[#allocation258_spill] sm:$0xff]  ;;  %v11586_v43 = vld [vmem:[#allocation60_spill] sm:$0xff] }
 0x670   : > { %v3825_v25 = vadd.f32 %v9137_v30, %v3692_v47  ;;  %v3827_v42 = vadd.f32 %v11580_v16, %v3694_v62  ;;  %v9658_v35 = vmul.f32 %v7501_v34, %v8112_v17  ;;  %11583 = vst [vmem:[#allocation323_spill] sm:$0xff] %v9662_v8  ;;  %v9666_v30 = vmul.f32 %v11566_v60, %v8202_v45  ;;  %v11585_v47 = vld [vmem:[#allocation256_spill] sm:$0xff] }
 0x671   : > { %v9640_v18 = vpop.permute.xlu1 %4809  ;;  %v9642_v11 = vpop.permute.xlu0 %4805  ;;  %v3858_v62 = vmul.f32 %v11585_v47, %v7924_v13  ;;  %v4642_v16 = vmul.f32 %v9101_v37, %v9549_v61  ;;  %v2390_v10 = vadd.f32 %v11586_v43, %v2257_v1  ;;  %v9679_v53 = vmul.f32 %v11560_v36, %v8112_v17 }
 0x672   : > { %4694 = vrot.lane.b32.xlu1 %v4640_v28, %s6856_s24  ;;  %4833 = vrot.lane.b32.xlu0 %v4776_v58, %s6861_s16  ;;  %11582 = vst [vmem:[#allocation258_spill] sm:$0xff] %v9658_v35  ;;  %11584 = vst [vmem:[#allocation324_spill] sm:$0xff] %v9666_v30  ;;  %v3860_v58 = vmul.f32 %v11585_v47, %v7935_v14  ;;  %v4902_v28 = vmul.f32 %v9119_v23, %v8417_v56 }
 0x673   : > { %11587 = vst [vmem:[#allocation60_spill] sm:$0xff] %v9679_v53  ;;  %v9683_v30 = vmul.f32 %v11566_v60, %v8217_v29  ;;  %v9687_v13 = vmul.f32 %v11560_v36, %v8127_v50  ;;  %v9695_v37 = vmul.f32 %v11567_v9, %v8202_v45  ;;  %v3878_v1 = vadd.f32 %v3858_v62, %v3825_v25  ;;  %v11593_v53 = vld [vmem:[#allocation49_spill] sm:$0xff]  ;;  %v11598_v62 = vld [vmem:[#allocation78_spill] sm:$0xff] }
 0x674   : > { %v3880_v43 = vadd.f32 %v3860_v58, %v3827_v42  ;;  %v2259_v35 = vadd.f32 %v11594_v3, %v2126_v49  ;;  %v11595_v50 = vld [vmem:[#allocation65_spill] sm:$0xff]  ;;  %v4907_v42 = vmul.f32 %v9105_v32, %v8562_v38  ;;  %v4904_v25 = vmul.f32 %v9119_v23, %v8537_v52  ;;  %v11699_v38 = vld [vmem:[#allocation131_spill] sm:$0xff] }
 0x675   : > { %11588 = vst [vmem:[#allocation325_spill] sm:$0xff] %v9683_v30  ;;  %11589 = vst [vmem:[#allocation326_spill] sm:$0xff] %v9687_v13  ;;  %v9689_v47 = vpop.permute.xlu1 %3980  ;;  %v9691_v8 = vpop.permute.xlu0 %3976  ;;  %v2260_v30 = vadd.f32 %v11593_v53, %v2127_v57  ;;  %v2523_v13 = vadd.f32 %v11595_v50, %v2390_v10  ;;  %v2262_v53 = vadd.f32 %v11598_v62, %v2129_v26  ;;  %v11601_v26 = vld [vmem:[#allocation266_spill] sm:$0xff] }
 0x676   : > { %11590 = vst [vmem:[#allocation327_spill] sm:$0xff] %v9689_v47  ;;  %11591 = vst [vmem:[#allocation328_spill] sm:$0xff] %v9691_v8  ;;  %4952 = vrot.lane.b32.xlu1 %v4902_v28, %s6860_s15  ;;  %4698 = vrot.lane.b32.xlu0 %v4642_v16, %s6856_s24  ;;  %v9704_v47 = vmul.f32 %v11567_v9, %v8217_v29  ;;  %v11596_v8 = vld [vmem:[#allocation263_spill] sm:$0xff]  ;;  %v9715_v49 = vmul.f32 %v11568_v5, %v8202_v45  ;;  %v11602_v28 = vld [vmem:[#allocation48_spill] sm:$0xff] }
 0x677   : > { %11592 = vst [vmem:[#allocation329_spill] sm:$0xff] %v9695_v37  ;;  %v4011_v44 = vadd.f32 %v11596_v8, %v3878_v1  ;;  %v4013_v37 = vadd.f32 %v11597_v59, %v3880_v43  ;;  %v9719_v50 = vmul.f32 %v11568_v5, %v8217_v29  ;;  %v9723_v8 = vmul.f32 %v7481_v2, %v8312_v7  ;;  %v11603_v1 = vld [vmem:[#allocation64_spill] sm:$0xff]  ;;  %v11604_v62 = vld [vmem:[#allocation62_spill] sm:$0xff] }
 0x678   : > { %v9731_v57 = vmul.f32 %v7501_v34, %v8312_v7  ;;  %v2393_v16 = vadd.f32 %v11602_v28, %v2260_v30  ;;  %v2656_v43 = vadd.f32 %v11603_v1, %v2523_v13  ;;  %v2392_v2 = vadd.f32 %v11604_v62, %v2259_v35  ;;  %v11608_v28 = vld [vmem:[#allocation277_spill] sm:$0xff] }
 0x679   : > { %v9725_v10 = vpop.permute.xlu1 %4238  ;;  %v9727_v3 = vpop.permute.xlu0 %4234  ;;  %v4146_v59 = vadd.f32 %v9196_v46, %v4013_v37  ;;  %v4144_v58 = vadd.f32 %v11601_v26, %v4011_v44  ;;  %v4773_v44 = vmul.f32 %v9113_v51, %v8577_v48  ;;  %v4909_v46 = vmul.f32 %v9105_v32, %v9467_v33  ;;  %v11610_v62 = vld [vmem:[#allocation69_spill] sm:$0xff]  ;;  %v11612_v32 = vld [vmem:[#allocation94_spill] sm:$0xff] }
 0x67a   : > { %11599 = vst [vmem:[#allocation49_spill] sm:$0xff] %v9725_v10  ;;  %11600 = vst [vmem:[#allocation63_spill] sm:$0xff] %v9727_v3  ;;  %4962 = vrot.lane.b32.xlu1 %v4907_v42, %s6860_s15  ;;  %4956 = vrot.lane.b32.xlu0 %v4904_v25, %s6860_s15  ;;  %v9742_v10 = vmul.f32 %v7501_v34, %v8327_v15  ;;  %v11605_v42 = vld [vmem:[#allocation51_spill] sm:$0xff]  ;;  %v9754_v35 = vmul.f32 %v11566_v60, %v8402_v31  ;;  %v11611_v34 = vld [vmem:[#allocation82_spill] sm:$0xff] }
 0x67b   : > { %v4279_v3 = vadd.f32 %v9241_v55, %v4146_v59  ;;  %v4277_v37 = vadd.f32 %v9265_v40, %v4144_v58  ;;  %v2526_v30 = vadd.f32 %v11605_v42, %v2393_v16  ;;  %v11606_v25 = vld [vmem:[#allocation79_spill] sm:$0xff]  ;;  %v9758_v26 = vmul.f32 %v11560_v36, %v8312_v7 }
 0x67c   : > { %v2395_v13 = vadd.f32 %v11606_v25, %v2262_v53  ;;  %v11607_v59 = vld [vmem:[#allocation67_spill] sm:$0xff]  ;;  %v2709_v25 = vadd.f32 %v9572_v27, %v2656_v43  ;;  %v2261_v33 = vadd.f32 %v11612_v32, %v9607_v54  ;;  %v11615_v27 = vld [vmem:[#allocation80_spill] sm:$0xff]  ;;  %v11616_v43 = vld [vmem:[#allocation97_spill] sm:$0xff]  ;;  %v9789_v32 = vmul.f32 %v11560_v36, %v8327_v15 }
 0x67d   : > { %v9760_v55 = vpop.permute.xlu1 %4674  ;;  %v9762_v40 = vpop.permute.xlu0 %4670  ;;  %v2525_v58 = vadd.f32 %v11607_v59, %v2392_v2  ;;  %v4410_v1 = vadd.f32 %v11608_v28, %v4277_v37  ;;  %v4412_v16 = vadd.f32 %v9306_v6, %v4279_v3  ;;  %v11609_v53 = vld [vmem:[#allocation47_spill] sm:$0xff]  ;;  %v11613_v2 = vld [vmem:[#allocation264_spill] sm:$0xff]  ;;  %v4906_v3 = vmul.f32 %v9119_v23, %v8577_v48 }
 0x67e   : > { %4827 = vrot.lane.b32.xlu1 %v4773_v44, %s6861_s16  ;;  %4966 = vrot.lane.b32.xlu0 %v4909_v46, %s6860_s15  ;;  %v2840_v42 = vadd.f32 %v11610_v62, %v11609_v53  ;;  %v2528_v60 = vadd.f32 %v11611_v34, %v2395_v13  ;;  %v4443_v59 = vmul.f32 %v11613_v2, %v7935_v14  ;;  %v11614_v44 = vld [vmem:[#allocation50_spill] sm:$0xff]  ;;  %v11619_v28 = vld [vmem:[#allocation71_spill] sm:$0xff] }
 0x67f   : > { %v4445_v6 = vmul.f32 %v11613_v2, %v8112_v17  ;;  %v4775_v37 = vmul.f32 %v9113_v51, %v9549_v61  ;;  %v2659_v46 = vadd.f32 %v11614_v44, %v2526_v30  ;;  %v2264_v34 = vadd.f32 %v11615_v27, %v9587_v0  ;;  %v11620_v30 = vld [vmem:[#allocation66_spill] sm:$0xff]  ;;  %v11621_v44 = vld [vmem:[#allocation68_spill] sm:$0xff]  ;;  %v11622_v27 = vld [vmem:[#allocation117_spill] sm:$0xff] }
 0x680   : > { %v2394_v13 = vadd.f32 %v11616_v43, %v2261_v33  ;;  %v2842_v53 = vadd.f32 %v11619_v28, %v2709_v25  ;;  %v4463_v62 = vadd.f32 %v4443_v59, %v4410_v1  ;;  %v2658_v0 = vadd.f32 %v11620_v30, %v2525_v58 }
 0x681   : > { %v9791_v14 = vpop.permute.xlu1 %4248  ;;  %v9793_v54 = vpop.permute.xlu0 %4244  ;;  %v4465_v48 = vadd.f32 %v4445_v6, %v4412_v16  ;;  %v2973_v33 = vadd.f32 %v11621_v44, %v2840_v42  ;;  %v2266_v43 = vadd.f32 %v11622_v27, %v9646_v41  ;;  %v9804_v51 = vmul.f32 %v11567_v9, %v8402_v31  ;;  %v11624_v16 = vld [vmem:[#allocation304_spill] sm:$0xff]  ;;  %v11625_v6 = vld [vmem:[#allocation73_spill] sm:$0xff]  ;;  %v11627_v41 = vld [vmem:[#allocation98_spill] sm:$0xff] }
 0x682   : > { %11617 = vst [vmem:[#allocation65_spill] sm:$0xff] %v9791_v14  ;;  %11618 = vst [vmem:[#allocation263_spill] sm:$0xff] %v9793_v54  ;;  %4960 = vrot.lane.b32.xlu1 %v4906_v3, %s6860_s15  ;;  %4831 = vrot.lane.b32.xlu0 %v4775_v37, %s6861_s16  ;;  %v11623_v14 = vld [vmem:[#allocation83_spill] sm:$0xff]  ;;  %v4596_v1 = vadd.f32 %v9379_v63, %v4463_v62  ;;  %v4908_v59 = vmul.f32 %v9119_v23, %v9549_v61  ;;  %v11626_v3 = vld [vmem:[#allocation81_spill] sm:$0xff] }
 0x683   : > { %v2661_v54 = vadd.f32 %v11623_v14, %v2528_v60  ;;  %v4598_v25 = vadd.f32 %v11624_v16, %v4465_v48  ;;  %v3106_v58 = vadd.f32 %v11625_v6, %v2973_v33  ;;  %v2397_v42 = vadd.f32 %v11626_v3, %v2264_v34  ;;  %v11628_v60 = vld [vmem:[#allocation70_spill] sm:$0xff]  ;;  %v11629_v34 = vld [vmem:[#allocation84_spill] sm:$0xff]  ;;  %v11631_v33 = vld [vmem:[#allocation101_spill] sm:$0xff] }
 0x684   : > { %v2712_v37 = vadd.f32 %v9591_v24, %v2659_v46  ;;  %v2527_v28 = vadd.f32 %v11627_v41, %v2394_v13  ;;  %v2975_v14 = vadd.f32 %v11628_v60, %v2842_v53  ;;  %v9822_v48 = vmul.f32 %v11567_v9, %v8417_v56  ;;  %v11630_v46 = vld [vmem:[#allocation86_spill] sm:$0xff]  ;;  %v11632_v16 = vld [vmem:[#allocation116_spill] sm:$0xff]  ;;  %v11635_v60 = vld [vmem:[#allocation121_spill] sm:$0xff] }
 0x685   : > { %v9815_v30 = vpop.permute.xlu1 %4684  ;;  %v9817_v44 = vpop.permute.xlu0 %4680  ;;  %v4729_v63 = vadd.f32 %v9453_v22, %v4596_v1  ;;  %v4731_v62 = vadd.f32 %v9487_v12, %v4598_v25  ;;  %v2530_v24 = vadd.f32 %v11629_v34, %v2397_v42  ;;  %v2399_v6 = vadd.f32 %v11632_v16, %v2266_v43  ;;  %v11633_v1 = vld [vmem:[#allocation72_spill] sm:$0xff]  ;;  %v11634_v25 = vld [vmem:[#allocation75_spill] sm:$0xff]  ;;  %v11654_v9 = vld [vmem:[#allocation106_spill] sm:$0xff] }
 0x686   : > { %4964 = vrot.lane.b32.xlu0 %v4908_v59, %s6860_s15  ;;  %v2845_v13 = vadd.f32 %v11630_v46, %v2712_v37  ;;  %v2660_v27 = vadd.f32 %v11631_v33, %v2527_v28  ;;  %v2714_v53 = vadd.f32 %v9599_v21, %v2661_v54  ;;  %v2711_v3 = vadd.f32 %v9619_v39, %v2658_v0  ;;  %v11636_v34 = vld [vmem:[#allocation88_spill] sm:$0xff]  ;;  %v11637_v54 = vld [vmem:[#allocation102_spill] sm:$0xff]  ;;  %v11640_v33 = vld [vmem:[#allocation105_spill] sm:$0xff] }
 0x687   : > { %v4864_v41 = vadd.f32 %v9640_v18, %v4731_v62  ;;  %v4862_v22 = vadd.f32 %v9642_v11, %v4729_v63  ;;  %v3239_v12 = vadd.f32 %v11633_v1, %v3106_v58  ;;  %v3108_v59 = vadd.f32 %v11634_v25, %v2975_v14  ;;  %v11638_v62 = vld [vmem:[#allocation85_spill] sm:$0xff]  ;;  %v11639_v63 = vld [vmem:[#allocation87_spill] sm:$0xff]  ;;  %v11645_v25 = vld [vmem:[#allocation120_spill] sm:$0xff] }
 0x688   : > { %v2532_v42 = vadd.f32 %v11635_v60, %v2399_v6  ;;  %v9840_v37 = vmul.f32 %v11568_v5, %v8402_v31  ;;  %v2847_v21 = vadd.f32 %v11636_v34, %v2714_v53  ;;  %v2844_v39 = vadd.f32 %v11637_v54, %v2711_v3  ;;  %v11647_v34 = vld [vmem:[#allocation74_spill] sm:$0xff]  ;;  %v11656_v23 = vld [vmem:[#allocation108_spill] sm:$0xff] }
 0x689   : > { %v4943_v28 = vpop.permute.xlu1 %4942  ;;  %v4939_v43 = vpop.permute.xlu0 %4938  ;;  %v2663_v11 = vadd.f32 %v11638_v62, %v2530_v24  ;;  %v2978_v58 = vadd.f32 %v11639_v63, %v2845_v13  ;;  %v2713_v14 = vadd.f32 %v9630_v20, %v2660_v27  ;;  %v9849_v46 = vmul.f32 %v11568_v5, %v8417_v56  ;;  %v11641_v24 = vld [vmem:[#allocation59_spill] sm:$0xff]  ;;  %v11643_v27 = vld [vmem:[#allocation322_spill] sm:$0xff]  ;;  %v11683_v56 = vld [vmem:[#allocation60_spill] sm:$0xff] }
 0x68a   : > { %v4997_v0 = vadd.f32 %v4943_v28, %v4864_v41  ;;  %v4995_v18 = vadd.f32 %v4939_v43, %v4862_v22  ;;  %v2977_v16 = vadd.f32 %v11640_v33, %v2844_v39  ;;  %v9854_v6 = vmul.f32 %v11560_v36, %v8512_v4  ;;  %v11642_v41 = vld [vmem:[#allocation90_spill] sm:$0xff]  ;;  %v11644_v22 = vld [vmem:[#allocation96_spill] sm:$0xff]  ;;  %v11648_v39 = vld [vmem:[#allocation89_spill] sm:$0xff] }
 0x68b   : > { %v3292_v13 = vadd.f32 %v11641_v24, %v3239_v12  ;;  %v3111_v20 = vadd.f32 %v11642_v41, %v2978_v58  ;;  %v2263_v1 = vadd.f32 %v11644_v22, %v11643_v27  ;;  %v2665_v60 = vadd.f32 %v11645_v25, %v2532_v42  ;;  %v11649_v12 = vld [vmem:[#allocation77_spill] sm:$0xff]  ;;  %v11650_v58 = vld [vmem:[#allocation99_spill] sm:$0xff]  ;;  %v11651_v24 = vld [vmem:[#allocation104_spill] sm:$0xff] }
 0x68c   : > { %v9857_v53 = vadd.f32 %v9525_v19, %v4997_v0  ;;  %v9860_v3 = vadd.f32 %v9525_v19, %v4995_v18  ;;  %v3241_v54 = vadd.f32 %v11647_v34, %v3108_v59  ;;  %v2980_v0 = vadd.f32 %v11648_v39, %v2847_v21  ;;  %v11652_v27 = vld [vmem:[#allocation258_spill] sm:$0xff]  ;;  %v11653_v22 = vld [vmem:[#allocation92_spill] sm:$0xff]  ;;  %v11655_v34 = vld [vmem:[#allocation91_spill] sm:$0xff] }
 0x68d   : > { %v9867_v28 = vpop.permute.xlu1 %4109  ;;  %v9869_v43 = vpop.permute.xlu0 %5016  ;;  %v3425_v63 = vadd.f32 %v11649_v12, %v3292_v13  ;;  %v2396_v33 = vadd.f32 %v11650_v58, %v2263_v1  ;;  %v2846_v41 = vadd.f32 %v11651_v24, %v2713_v14  ;;  %v2716_v42 = vadd.f32 %v11652_v27, %v2663_v11  ;;  %v11658_v13 = vld [vmem:[#allocation119_spill] sm:$0xff]  ;;  %v11664_v24 = vld [vmem:[#allocation100_spill] sm:$0xff] }
 0x68e   : > { %11646 = vst [vmem:[#allocation265_spill] sm:$0xff] %v9867_v28  ;;  %v5069_v18 = vmul.f32 0.044715, %v9857_v53  ;;  %v5067_v62 = vmul.f32 0.044715, %v9860_v3  ;;  %v3113_v25 = vadd.f32 %v11653_v22, %v2980_v0  ;;  %v3110_v36 = vadd.f32 %v11654_v9, %v2977_v16  ;;  %v11657_v28 = vld [vmem:[#allocation61_spill] sm:$0xff] }
 0x68f   : > { %v3244_v39 = vadd.f32 %v11655_v34, %v3111_v20  ;;  %v2979_v61 = vadd.f32 %v11656_v23, %v2846_v41  ;;  %v2268_v1 = vadd.f32 %v11658_v13, %v11657_v28  ;;  %v11659_v12 = vld [vmem:[#allocation323_spill] sm:$0xff]  ;;  %v11663_v16 = vld [vmem:[#allocation125_spill] sm:$0xff]  ;;  %v2529_v23 = vadd.f32 %v11664_v24, %v2396_v33  ;;  %v11665_v41 = vld [vmem:[#allocation220_spill] sm:$0xff] }
 0x690   : > { %v5089_v59 = vmul.f32 %v5069_v18, %v9857_v53  ;;  %v5087_v21 = vmul.f32 %v5067_v62, %v9860_v3  ;;  %v2718_v14 = vadd.f32 %v11659_v12, %v2665_v60  ;;  %v11662_v0 = vld [vmem:[#allocation111_spill] sm:$0xff]  ;;  %v2849_v18 = vadd.f32 %v11663_v16, %v2716_v42  ;;  %v11667_v34 = vld [vmem:[#allocation93_spill] sm:$0xff]  ;;  %v11668_v12 = vld [vmem:[#allocation76_spill] sm:$0xff] }
 0x691   : > { %v9888_v58 = vpop.permute.xlu1 %4367  ;;  %v9890_v11 = vpop.permute.xlu0 %4113  ;;  %v3243_v9 = vadd.f32 %v11662_v0, %v3110_v36  ;;  %v3294_v27 = vadd.f32 %v11665_v41, %v3241_v54  ;;  %v11666_v22 = vld [vmem:[#allocation127_spill] sm:$0xff]  ;;  %v9901_v60 = vmul.f32 %v11568_v5, %v8537_v52  ;;  %v3246_v13 = vadd.f32 %v11667_v34, %v3113_v25  ;;  %v11671_v54 = vld [vmem:[#allocation109_spill] sm:$0xff]  ;;  %v11675_v25 = vld [vmem:[#allocation222_spill] sm:$0xff] }
 0x692   : > { %11660 = vst [vmem:[#allocation78_spill] sm:$0xff] %v9888_v58  ;;  %11661 = vst [vmem:[#allocation266_spill] sm:$0xff] %v9890_v11  ;;  %v5109_v62 = vmul.f32 %v5089_v59, %v9857_v53  ;;  %v5107_v20 = vmul.f32 %v5087_v21, %v9860_v3  ;;  %v2851_v28 = vadd.f32 %v11666_v22, %v2718_v14  ;;  %v11669_v21 = vld [vmem:[#allocation58_spill] sm:$0xff]  ;;  %v11670_v33 = vld [vmem:[#allocation103_spill] sm:$0xff] }
 0x693   : > { %v3558_v36 = vadd.f32 %v11668_v12, %v3425_v63  ;;  %v3297_v0 = vadd.f32 %v11669_v21, %v3244_v39  ;;  %v2662_v16 = vadd.f32 %v11670_v33, %v2529_v23  ;;  %v3112_v24 = vadd.f32 %v11671_v54, %v2979_v61  ;;  %v11672_v14 = vld [vmem:[#allocation118_spill] sm:$0xff]  ;;  %v11676_v63 = vld [vmem:[#allocation124_spill] sm:$0xff]  ;;  %v11677_v58 = vld [vmem:[#allocation113_spill] sm:$0xff] }
 0x694   : > { %v5129_v42 = vadd.f32 %v5109_v62, %v9857_v53  ;;  %v5127_v59 = vadd.f32 %v5107_v20, %v9860_v3  ;;  %v2401_v41 = vadd.f32 %v11672_v14, %v2268_v1  ;;  %v3296_v34 = vadd.f32 %v11675_v25, %v3243_v9  ;;  %v11678_v52 = vld [vmem:[#allocation123_spill] sm:$0xff]  ;;  %v11679_v21 = vld [vmem:[#allocation126_spill] sm:$0xff]  ;;  %v11681_v61 = vld [vmem:[#allocation112_spill] sm:$0xff] }
 0x695   : > { %v9912_v22 = vpop.permute.xlu1 %4545  ;;  %v9914_v5 = vpop.permute.xlu0 %4371  ;;  %v2982_v12 = vadd.f32 %v11676_v63, %v2849_v18  ;;  %v3245_v20 = vadd.f32 %v11677_v58, %v3112_v24  ;;  %v2984_v23 = vadd.f32 %v11679_v21, %v2851_v28  ;;  %v9921_v33 = vstv %s5224_s11  ;;  %v11682_v54 = vld [vmem:[#allocation130_spill] sm:$0xff]  ;;  %v11684_v9 = vld [vmem:[#allocation95_spill] sm:$0xff]  ;;  %v11685_v18 = vld [vmem:[#allocation132_spill] sm:$0xff] }
 0x696   : > { %11673 = vst [vmem:[#allocation48_spill] sm:$0xff] %v9912_v22  ;;  %11674 = vst [vmem:[#allocation64_spill] sm:$0xff] %v9914_v5  ;;  %v5149_v62 = vmul.f32 0.7978846, %v5129_v42  ;;  %v5147_v11 = vmul.f32 0.7978846, %v5127_v59  ;;  %v2534_v39 = vadd.f32 %v11678_v52, %v2401_v41  ;;  %v3427_v1 = vadd.f32 %v11681_v61, %v3294_v27 }
 0x697   : > { %11680 = vst [vmem:[#allocation62_spill] sm:$0xff] %v9921_v33  ;;  %v3115_v14 = vadd.f32 %v11682_v54, %v2982_v12  ;;  %v3299_v5 = vadd.f32 %v11683_v56, %v3246_v13  ;;  %v3430_v25 = vadd.f32 %v11684_v9, %v3297_v0  ;;  %v3117_v42 = vadd.f32 %v11685_v18, %v2984_v23  ;;  %v11686_v59 = vld [vmem:[#allocation329_spill] sm:$0xff]  ;;  %v11688_v28 = vld [vmem:[#allocation115_spill] sm:$0xff]  ;;  %v11692_v0 = vld [vmem:[#allocation114_spill] sm:$0xff] }
 0x698   : > { %6776 = vtanh.f32 %v5149_v62  ;;  %v9929_v63 = vadd.f32 %v11686_v59, %v2662_v16  ;;  %v3560_v24 = vadd.f32 %v11688_v28, %v3427_v1  ;;  %v11689_v27 = vld [vmem:[#allocation219_spill] sm:$0xff]  ;;  %v11690_v12 = vld [vmem:[#allocation45_spill] sm:$0xff]  ;;  %v5227_v13 = vadd.s32 2, %v9921_v33  ;;  %v11693_v23 = vld [vmem:[#allocation122_spill] sm:$0xff] }
 0x699   : > { %v9931_v58 = vpop.permute.xlu1 %4803  ;;  %v9933_v52 = vpop.permute.xlu0 %4549  ;;  %6778 = vtanh.f32 %v5147_v11  ;;  %v3691_v41 = vadd.f32 %v11689_v27, %v3558_v36  ;;  %v11691_v21 = vld [vmem:[#allocation257_spill] sm:$0xff]  ;;  %v9941_v62 = vadd.f32 %v11692_v0, %v3296_v34  ;;  %v2667_v16 = vadd.f32 %v11693_v23, %v2534_v39  ;;  %v11694_v11 = vld [vmem:[#allocation128_spill] sm:$0xff]  ;;  %v11698_v27 = vld [vmem:[#allocation259_spill] sm:$0xff] }
 0x69a   : > { %11687 = vst [vmem:[#allocation51_spill] sm:$0xff] %v9933_v52  ;;  %v3857_v56 = vmul.f32 %v11691_v21, %v11690_v12  ;;  %v9945_v61 = vadd.f32 %v9715_v49, %v3245_v20  ;;  %v5226_v54 = vadd.s32 1, %v9921_v33  ;;  %v3248_v9 = vadd.f32 %v11694_v11, %v3115_v14  ;;  %v11695_v1 = vld [vmem:[#allocation324_spill] sm:$0xff]  ;;  %v11696_v18 = vld [vmem:[#allocation133_spill] sm:$0xff]  ;;  %v11700_v34 = vld [vmem:[#allocation135_spill] sm:$0xff] }
 0x69b   : > { %v2265_v36 = vadd.f32 %v11696_v18, %v11695_v1  ;;  %v11697_v59 = vld [vmem:[#allocation221_spill] sm:$0xff]  ;;  %v3824_v12 = vadd.f32 %v11698_v27, %v3691_v41  ;;  %v3250_v4 = vadd.f32 %v11699_v38, %v3117_v42  ;;  %v3432_v0 = vadd.f32 %v11700_v34, %v3299_v5  ;;  %v11703_v20 = vld [vmem:[#allocation34_spill] sm:$0xff]  ;;  %v11705_v14 = vld [vmem:[#allocation260_spill] sm:$0xff] }
 0x69c   : > { %v3693_v28 = vadd.f32 %v11697_v59, %v3560_v24  ;;  %v11701_v52 = vld [vmem:[#allocation205_spill] sm:$0xff]  ;;  %v9961_v31 = vadd.s32 4294967295, %v11703_v20  ;;  %vm5238_vm11 = vcmp.ge.s32.totalorder %v5227_v13, 0  ;;  %vm5248_vm0 = vcmp.lt.s32.totalorder %v5227_v13, 16  ;;  %v11706_v24 = vld [vmem:[#allocation140_spill] sm:$0xff]  ;;  %v11708_v5 = vld [vmem:[#allocation326_spill] sm:$0xff] }
 0x69d   : > { %v3563_v39 = vadd.f32 %v11701_v52, %v3430_v25  ;;  %v9956_v23 = vpop.permute.xlu1 %4377  ;;  %v9958_v49 = vpop.permute.xlu0 %4807  ;;  %v3877_v1 = vadd.f32 %v3857_v56, %v3824_v12  ;;  %v2398_v41 = vadd.f32 %v11706_v24, %v2265_v36  ;;  %v11707_v18 = vld [vmem:[#allocation224_spill] sm:$0xff]  ;;  %vm5237_vm7 = vcmp.ge.s32.totalorder %v5226_v54, 0  ;;  %v11709_v52 = vld [vmem:[#allocation46_spill] sm:$0xff]  ;;  %v11711_v56 = vld [vmem:[#allocation157_spill] sm:$0xff] }
 0x69e   : > { %11702 = vst [vmem:[#allocation79_spill] sm:$0xff] %v9956_v23  ;;  %11704 = vst [vmem:[#allocation67_spill] sm:$0xff] %v9961_v31  ;;  %v3826_v11 = vadd.f32 %v11705_v14, %v3693_v28  ;;  %vm5247_vm15 = vcmp.lt.s32.totalorder %v5226_v54, 16  ;;  %v3301_v25 = vadd.f32 %v11708_v5, %v3248_v9  ;;  %v9968_v42 = vadd.f32 %v9731_v57, %v2667_v16  ;;  %v11710_v27 = vld [vmem:[#allocation270_spill] sm:$0xff]  ;;  %v11712_v12 = vld [vmem:[#allocation207_spill] sm:$0xff] }
 0x69f   : > { %v3696_v38 = vadd.f32 %v11707_v18, %v3563_v39  ;;  %v3859_v59 = vmul.f32 %v11691_v21, %v11709_v52  ;;  %v4010_v34 = vadd.f32 %v11710_v27, %v3877_v1  ;;  %v2270_v28 = vadd.f32 %v11711_v56, %v9723_v8  ;;  %v11713_v36 = vld [vmem:[#allocation261_spill] sm:$0xff]  ;;  %vm5258_vm1 = vmand %vm5238_vm11, %vm5248_vm0  ;;  %v11717_v16 = vld [vmem:[#allocation136_spill] sm:$0xff] }
 0x6a0   : > { %v3565_v20 = vadd.f32 %v11712_v12, %v3432_v0  ;;  %vm5266_vm4 = vcmp.ge.s32.totalorder %v9961_v31, 0  ;;  %v11716_v57 = vld [vmem:[#allocation325_spill] sm:$0xff]  ;;  %v9986_v1 = vadd.f32 %v9758_v26, %v3250_v4  ;;  %v11718_v8 = vld [vmem:[#allocation275_spill] sm:$0xff]  ;;  %vm9991_vm3 = vmand %vm5237_vm7, %vm5247_vm15  ;;  %vm5277_vm13 = vcmp.lt.s32.totalorder %v9961_v31, 16 }
 0x6a1   : > { %v3829_v14 = vadd.f32 %v11713_v36, %v3696_v38  ;;  %v9977_v39 = vpop.permute.xlu1 %4555  ;;  %v9979_v24 = vpop.permute.xlu0 %4381  ;;  %v2267_v9 = vadd.f32 %v11717_v16, %v11716_v57  ;;  %v3879_v18 = vadd.f32 %v3859_v59, %v3826_v11  ;;  %v4143_v5 = vadd.f32 %v11718_v8, %v4010_v34  ;;  %v11721_v38 = vld [vmem:[#allocation137_spill] sm:$0xff]  ;;  %v11722_v27 = vld [vmem:[#allocation138_spill] sm:$0xff]  ;;  %v11724_v57 = vld [vmem:[#allocation256_spill] sm:$0xff] }
 0x6a2   : > { %11714 = vst [vmem:[#allocation277_spill] sm:$0xff] %v9977_v39  ;;  %11715 = vst [vmem:[#allocation47_spill] sm:$0xff] %v9979_v24  ;;  %v9996_v13 = vadd.f32 %v11721_v38, %v3301_v25  ;;  %v2531_v56 = vadd.f32 %v11722_v27, %v2398_v41  ;;  %v11723_v12 = vld [vmem:[#allocation225_spill] sm:$0xff]  ;;  %v3862_v4 = vmul.f32 %v11724_v57, %v8112_v17  ;;  %v11725_v26 = vld [vmem:[#allocation143_spill] sm:$0xff] }
 0x6a3   : > { %v3698_v36 = vadd.f32 %v11723_v12, %v3565_v20  ;;  %v2400_v11 = vadd.f32 %v11725_v26, %v2267_v9  ;;  %v11726_v59 = vld [vmem:[#allocation269_spill] sm:$0xff]  ;;  %v11727_v16 = vld [vmem:[#allocation283_spill] sm:$0xff]  ;;  %vm10007_vm6 = vmand %vm5258_vm1, %vm5266_vm4 }
 0x6a4   : > { %v4012_v34 = vadd.f32 %v11726_v59, %v3879_v18  ;;  %v4276_v54 = vadd.f32 %v11727_v16, %v4143_v5  ;;  %v11730_v25 = vld [vmem:[#allocation145_spill] sm:$0xff]  ;;  %v11731_v38 = vld [vmem:[#allocation156_spill] sm:$0xff]  ;;  %v11732_v17 = vld [vmem:[#allocation262_spill] sm:$0xff]  ;;  %v3882_v9 = vadd.f32 %v3862_v4, %v3829_v14 }
 0x6a5   : > { %v6777_v41 = vpop.eup %6776  ;;  %v2664_v20 = vadd.f32 %v11730_v25, %v2531_v56  ;;  %v2403_v27 = vadd.f32 %v11731_v38, %v2270_v28  ;;  %v3831_v12 = vadd.f32 %v11732_v17, %v3698_v36  ;;  %v10015_v26 = vpop.permute.xlu1 %4813  ;;  %vm10023_vm12 = vmand %vm9991_vm3, %vm5266_vm4  ;;  %v11736_v16 = vld [vmem:[#allocation280_spill] sm:$0xff]  ;;  %v5049_v36 = vmul.f32 0.5, %v9857_v53  ;;  %v11738_v4 = vld [vmem:[#allocation161_spill] sm:$0xff] }
 0x6a6   : > { %v10017_v18 = vpop.permute.xlu0 %4559  ;;  %v6779_v59 = vpop.eup %6778  ;;  %v4145_v56 = vadd.f32 %v11736_v16, %v4012_v34  ;;  %v11737_v25 = vld [vmem:[#allocation292_spill] sm:$0xff]  ;;  %v5189_v14 = vadd.f32 1.0, %v6777_v41  ;;  %v11739_v17 = vld [vmem:[#allocation57_spill] sm:$0xff]  ;;  %vm10037_vm14 = vmand %vm10007_vm6, %vm5277_vm13  ;;  %v5047_v34 = vmul.f32 0.5, %v9860_v3 }
 0x6a7   : > { %11733 = vst [vmem:[#allocation69_spill] sm:$0xff] %v10017_v18  ;;  %v4409_v28 = vadd.f32 %v11737_v25, %v4276_v54  ;;  %v2536_v38 = vadd.f32 %v11738_v4, %v2403_v27  ;;  %v3864_v24 = vmul.f32 %v11724_v57, %v11739_v17  ;;  %v5187_v16 = vadd.f32 1.0, %v6779_v59  ;;  %v11742_v54 = vld [vmem:[#allocation274_spill] sm:$0xff]  ;;  %v11743_v53 = vld [vmem:[#allocation289_spill] sm:$0xff]  ;;  %vm10050_vm10 = vmand %vm10023_vm12, %vm5277_vm13 }
 0x6a8   : > { %v4015_v25 = vadd.f32 %v11742_v54, %v3882_v9  ;;  %v4278_v41 = vadd.f32 %v11743_v53, %v4145_v56  ;;  %v11744_v27 = vld [vmem:[#allocation278_spill] sm:$0xff]  ;;  %v5209_v23 = vmul.f32 %v5189_v14, %v5049_v36  ;;  %v11747_v18 = vld [vmem:[#allocation144_spill] sm:$0xff]  ;;  %v2717_v59 = vadd.f32 %v9704_v47, %v2664_v20  ;;  %v11752_v22 = vld [vmem:[#allocation149_spill] sm:$0xff] }
 0x6a9   : > { %v4442_v4 = vmul.f32 %v11744_v27, %v11709_v52  ;;  %v2848_v3 = vadd.f32 %v11747_v18, %v9929_v63  ;;  %v3884_v9 = vadd.f32 %v3864_v24, %v3831_v12  ;;  %v10057_v54 = vpop.permute.xlu1 %4242  ;;  %v5207_v52 = vmul.f32 %v5187_v16, %v5047_v34  ;;  %v11749_v36 = vld [vmem:[#allocation276_spill] sm:$0xff]  ;;  %v11750_v53 = vld [vmem:[#allocation298_spill] sm:$0xff] }
 0x6aa   : > { %11748 = vst [vmem:[#allocation82_spill] sm:$0xff] %v10057_v54  ;;  %v10059_v56 = vpop.permute.xlu0 %4817  ;;  %v4148_v14 = vadd.f32 %v11749_v36, %v4015_v25  ;;  %v4411_v39 = vadd.f32 %v11750_v53, %v4278_v41  ;;  %v10065_v31 = vsel %vm10037_vm14, %v5209_v23, 0.0  ;;  %v11753_v63 = vld [vmem:[#allocation160_spill] sm:$0xff]  ;;  %v11760_v41 = vld [vmem:[#allocation141_spill] sm:$0xff] }
 0x6ab   : > { %v4462_v5 = vadd.f32 %v4442_v4, %v4409_v28  ;;  %11751 = vst [vmem:[#allocation94_spill] sm:$0xff] %v10065_v31  ;;  %v2981_v33 = vadd.f32 %v11752_v22, %v2848_v3  ;;  %v2669_v18 = vadd.f32 %v11753_v63, %v2536_v38  ;;  %v11754_v47 = vld [vmem:[#allocation172_spill] sm:$0xff]  ;;  %5350 = vrot.lane.b32.xlu0 %v10065_v31, %s6856_s24  ;;  %v10075_v20 = vsel %vm10050_vm10, %v5207_v52, 0.0  ;;  %v11761_v3 = vld [vmem:[#allocation165_spill] sm:$0xff]  ;;  %v11765_v31 = vld [vmem:[#allocation147_spill] sm:$0xff] }
 0x6ac   : > { %v2269_v24 = vadd.f32 %v11754_v47, %v9754_v35  ;;  %11755 = vst [vmem:[#allocation264_spill] sm:$0xff] %v10075_v20  ;;  %v11756_v12 = vld [vmem:[#allocation272_spill] sm:$0xff]  ;;  %v4444_v22 = vmul.f32 %v11744_v27, %v8202_v45  ;;  %5346 = vrot.lane.b32.xlu1 %v10075_v20, %s6856_s24  ;;  %v11759_v35 = vld [vmem:[#allocation146_spill] sm:$0xff]  ;;  %v2533_v4 = vadd.f32 %v11760_v41, %v2400_v11  ;;  %v11762_v36 = vld [vmem:[#allocation177_spill] sm:$0xff] }
 0x6ad   : > { %v4017_v28 = vadd.f32 %v11756_v12, %v3884_v9  ;;  %v11757_v34 = vld [vmem:[#allocation288_spill] sm:$0xff]  ;;  %v2850_v38 = vadd.f32 %v11759_v35, %v2717_v59  ;;  %v2853_v52 = vadd.f32 %v11761_v3, %v9968_v42  ;;  %v10089_v9 = vpop.permute.xlu1 %4678  ;;  %v11766_v35 = vld [vmem:[#allocation151_spill] sm:$0xff]  ;;  %v2722_v42 = vadd.f32 %v9742_v10, %v2669_v18  ;;  %v11774_v10 = vld [vmem:[#allocation302_spill] sm:$0xff] }
 0x6ae   : > { %v4281_v16 = vadd.f32 %v11757_v34, %v4148_v14  ;;  %v11758_v23 = vld [vmem:[#allocation316_spill] sm:$0xff]  ;;  %v2402_v53 = vadd.f32 %v11762_v36, %v2269_v24  ;;  %v10091_v14 = vpop.permute.xlu0 %4246  ;;  %v4464_v34 = vadd.f32 %v4444_v22, %v4411_v39  ;;  %v2666_v59 = vadd.f32 %v11765_v31, %v2533_v4  ;;  %v11768_v24 = vld [vmem:[#allocation295_spill] sm:$0xff]  ;;  %v11769_v36 = vld [vmem:[#allocation318_spill] sm:$0xff] }
 0x6af   : > { %v4595_v25 = vadd.f32 %v11758_v23, %v4462_v5  ;;  %v11763_v5 = vld [vmem:[#allocation282_spill] sm:$0xff]  ;;  %v11764_v47 = vld [vmem:[#allocation296_spill] sm:$0xff]  ;;  %v2983_v11 = vadd.f32 %v11766_v35, %v2850_v38  ;;  %v11770_v39 = vld [vmem:[#allocation153_spill] sm:$0xff] }
 0x6b0   : > { %v4150_v63 = vadd.f32 %v11763_v5, %v4017_v28  ;;  %v4414_v12 = vadd.f32 %v11764_v47, %v4281_v16  ;;  %v11767_v41 = vld [vmem:[#allocation148_spill] sm:$0xff]  ;;  %v4597_v54 = vadd.f32 %v11769_v36, %v4464_v34  ;;  %v4447_v28 = vmul.f32 %v11613_v2, %v11739_v17  ;;  %v11775_v17 = vld [vmem:[#allocation150_spill] sm:$0xff] }
 0x6b1   : > { %v4728_v23 = vadd.f32 %v9762_v40, %v4595_v25  ;;  %v3114_v20 = vadd.f32 %v11767_v41, %v2981_v33  ;;  %v11771_v40 = vld [vmem:[#allocation167_spill] sm:$0xff]  ;;  %v11772_v31 = vld [vmem:[#allocation164_spill] sm:$0xff]  ;;  %v4937_v33 = vpop.permute.xlu1 %4936  ;;  %v3116_v41 = vadd.f32 %v11775_v17, %v2983_v11 }
 0x6b2   : > { %v4283_v3 = vadd.f32 %v11768_v24, %v4150_v63  ;;  %v2855_v25 = vadd.f32 %v11771_v40, %v2722_v42  ;;  %v2986_v4 = vadd.f32 %v11772_v31, %v2853_v52  ;;  %v11773_v38 = vld [vmem:[#allocation176_spill] sm:$0xff]  ;;  %v10109_v47 = vpop.permute.xlu0 %4682  ;;  %v4467_v63 = vadd.f32 %v4447_v28, %v4414_v12  ;;  %v11777_v42 = vld [vmem:[#allocation181_spill] sm:$0xff] }
 0x6b3   : > { %v4861_v16 = vadd.f32 %v9931_v58, %v4728_v23  ;;  %v3247_v22 = vadd.f32 %v11770_v39, %v3114_v20  ;;  %v2535_v5 = vadd.f32 %v11773_v38, %v2402_v53  ;;  %v4730_v34 = vadd.f32 %v9760_v55, %v4597_v54  ;;  %v11776_v58 = vld [vmem:[#allocation169_spill] sm:$0xff]  ;;  %v11779_v55 = vld [vmem:[#allocation152_spill] sm:$0xff] }
 0x6b4   : > { %v4416_v18 = vadd.f32 %v11774_v10, %v4283_v3  ;;  %v3119_v23 = vadd.f32 %v11776_v58, %v2986_v4  ;;  %v2719_v20 = vadd.f32 %v9804_v51, %v2666_v59  ;;  %v4449_v52 = vmul.f32 %v11613_v2, %v8312_v7  ;;  %v11778_v53 = vld [vmem:[#allocation321_spill] sm:$0xff]  ;;  %v11780_v3 = vld [vmem:[#allocation155_spill] sm:$0xff]  ;;  %v11781_v51 = vld [vmem:[#allocation166_spill] sm:$0xff] }
 0x6b5   : > { %v4994_v35 = vadd.f32 %v4937_v33, %v4861_v16  ;;  %v2668_v24 = vadd.f32 %v11777_v42, %v2535_v5  ;;  %v4600_v36 = vadd.f32 %v11778_v53, %v4467_v63  ;;  %v4863_v39 = vadd.f32 %v9958_v49, %v4730_v34  ;;  %v10129_v16 = vpop.permute.xlu1 %4688  ;;  %v11782_v5 = vld [vmem:[#allocation168_spill] sm:$0xff]  ;;  %v11783_v10 = vld [vmem:[#allocation171_spill] sm:$0xff]  ;;  %v11787_v58 = vld [vmem:[#allocation185_spill] sm:$0xff] }
 0x6b6   : > { %v3431_v54 = vadd.f32 %v11779_v55, %v9945_v61  ;;  %v3300_v11 = vadd.f32 %v9719_v50, %v3247_v22  ;;  %v3249_v28 = vadd.f32 %v11780_v3, %v3116_v41  ;;  %v2988_v59 = vadd.f32 %v11781_v51, %v2855_v25  ;;  %v4941_v40 = vpop.permute.xlu0 %4940  ;;  %v11784_v61 = vld [vmem:[#allocation180_spill] sm:$0xff]  ;;  %v11785_v22 = vld [vmem:[#allocation38_spill] sm:$0xff] }
 0x6b7   : > { %v10122_v12 = vadd.f32 %v9869_v43, %v4994_v35  ;;  %v4469_v31 = vadd.f32 %v4449_v52, %v4416_v18  ;;  %v4733_v4 = vadd.f32 %v9817_v44, %v4600_v36  ;;  %v4996_v38 = vadd.f32 %v4941_v40, %v4863_v39  ;;  %v11786_v18 = vld [vmem:[#allocation154_spill] sm:$0xff] }
 0x6b8   : > { %v3252_v33 = vadd.f32 %v11782_v5, %v3119_v23  ;;  %v3121_v63 = vadd.f32 %v11783_v10, %v2988_v59  ;;  %v2852_v34 = vadd.f32 %v11784_v61, %v2719_v20  ;;  %v2721_v50 = vadd.f32 %v9822_v48, %v2668_v24  ;;  %v11788_v20 = vld [vmem:[#allocation204_spill] sm:$0xff]  ;;  %v11789_v55 = vld [vmem:[#allocation170_spill] sm:$0xff] }
 0x6b9   : > { %v5066_v49 = vmul.f32 0.044715, %v10122_v12  ;;  %v4602_v35 = vadd.f32 %v11785_v22, %v4469_v31  ;;  %v4866_v25 = vadd.f32 %v10015_v26, %v4733_v4  ;;  %v10140_v17 = vadd.f32 %v9869_v43, %v4996_v38  ;;  %v4947_v24 = vpop.permute.xlu1 %4946  ;;  %v11790_v51 = vld [vmem:[#allocation182_spill] sm:$0xff]  ;;  %v11792_v4 = vld [vmem:[#allocation173_spill] sm:$0xff]  ;;  %v11793_v38 = vld [vmem:[#allocation184_spill] sm:$0xff] }
 0x6ba   : > { %v10144_v41 = vadd.f32 %v11786_v18, %v3300_v11  ;;  %v2985_v23 = vadd.f32 %v11787_v58, %v2852_v34  ;;  %v10148_v42 = vadd.f32 %v9840_v37, %v3249_v28  ;;  %v3562_v48 = vadd.f32 %v11788_v20, %v9941_v62  ;;  %v10152_v52 = vpop.permute.xlu0 %4692  ;;  %v11791_v28 = vld [vmem:[#allocation223_spill] sm:$0xff]  ;;  %v11794_v10 = vld [vmem:[#allocation206_spill] sm:$0xff] }
 0x6bb   : > { %v5086_v44 = vmul.f32 %v5066_v49, %v10122_v12  ;;  %v4735_v26 = vadd.f32 %v9815_v30, %v4602_v35  ;;  %v5068_v53 = vmul.f32 0.044715, %v10140_v17  ;;  %v4999_v36 = vadd.f32 %v4947_v24, %v4866_v25  ;;  %v11797_v18 = vld [vmem:[#allocation226_spill] sm:$0xff] }
 0x6bc   : > { %v3254_v11 = vadd.f32 %v11789_v55, %v3121_v63  ;;  %v3305_v3 = vadd.f32 %v9789_v32, %v3252_v33  ;;  %v2854_v37 = vadd.f32 %v11790_v51, %v2721_v50  ;;  %v3695_v59 = vadd.f32 %v11791_v28, %v3562_v48  ;;  %v11795_v33 = vld [vmem:[#allocation268_spill] sm:$0xff]  ;;  %v11801_v51 = vld [vmem:[#allocation186_spill] sm:$0xff]  ;;  %v11802_v28 = vld [vmem:[#allocation211_spill] sm:$0xff] }
 0x6bd   : > { %v5106_v39 = vmul.f32 %v5086_v44, %v10122_v12  ;;  %v4868_v62 = vadd.f32 %v10059_v56, %v4735_v26  ;;  %v10163_v40 = vadd.f32 %v9525_v19, %v4999_v36  ;;  %v5088_v31 = vmul.f32 %v5068_v53, %v10140_v17  ;;  %v10172_v61 = vpop.permute.xlu1 %4375  ;;  %v11796_v56 = vld [vmem:[#allocation187_spill] sm:$0xff]  ;;  %v11799_v26 = vld [vmem:[#allocation209_spill] sm:$0xff] }
 0x6be   : > { %v3436_v49 = vadd.f32 %v11792_v4, %v9986_v1  ;;  %v3118_v5 = vadd.f32 %v11793_v38, %v2985_v23  ;;  %v3564_v32 = vadd.f32 %v11794_v10, %v3431_v54  ;;  %v3828_v63 = vadd.f32 %v11795_v33, %v3695_v59  ;;  %v4951_v34 = vpop.permute.xlu0 %4950  ;;  %v11798_v23 = vld [vmem:[#allocation189_spill] sm:$0xff]  ;;  %v11800_v36 = vld [vmem:[#allocation267_spill] sm:$0xff] }
 0x6bf   : > { %v5126_v30 = vadd.f32 %v5106_v39, %v10122_v12  ;;  %v2987_v50 = vadd.f32 %v11796_v56, %v2854_v37  ;;  %v5071_v22 = vmul.f32 0.044715, %v10163_v40  ;;  %v5001_v35 = vadd.f32 %v4951_v34, %v4868_v62  ;;  %v11805_v33 = vld [vmem:[#allocation229_spill] sm:$0xff] }
 0x6c0   : > { %v3307_v44 = vadd.f32 %v9854_v6, %v3254_v11  ;;  %v3697_v58 = vadd.f32 %v11797_v18, %v3564_v32  ;;  %v3861_v1 = vmul.f32 %v11691_v21, %v8202_v45  ;;  %v5108_v54 = vmul.f32 %v5088_v31, %v10140_v17  ;;  %v11803_v31 = vld [vmem:[#allocation227_spill] sm:$0xff]  ;;  %v11806_v56 = vld [vmem:[#allocation273_spill] sm:$0xff] }
 0x6c1   : > { %v5146_v25 = vmul.f32 0.7978846, %v5126_v30  ;;  %v3251_v20 = vadd.f32 %v11798_v23, %v3118_v5  ;;  %v10183_v48 = vadd.f32 %v9525_v19, %v5001_v35  ;;  %v5091_v24 = vmul.f32 %v5071_v22, %v10163_v40  ;;  %v10189_v55 = vpop.permute.xlu1 %4553  ;;  %v11807_v35 = vld [vmem:[#allocation290_spill] sm:$0xff]  ;;  %v11809_v23 = vld [vmem:[#allocation191_spill] sm:$0xff] }
 0x6c2   : > { %v3567_v53 = vadd.f32 %v11799_v26, %v9996_v13  ;;  %v3830_v6 = vadd.f32 %v11800_v36, %v3697_v58  ;;  %v3881_v39 = vadd.f32 %v3861_v1, %v3828_v63  ;;  %v10191_v11 = vpop.permute.xlu0 %4379  ;;  %v5128_v45 = vadd.f32 %v5108_v54, %v10140_v17  ;;  %v11804_v13 = vld [vmem:[#allocation281_spill] sm:$0xff]  ;;  %v11808_v1 = vld [vmem:[#allocation175_spill] sm:$0xff] }
 0x6c3   : > { %6780 = vtanh.f32 %v5146_v25  ;;  %v3120_v37 = vadd.f32 %v11801_v51, %v2987_v50  ;;  %v3569_v59 = vadd.f32 %v11802_v28, %v3436_v49  ;;  %v5073_v62 = vmul.f32 0.044715, %v10183_v48  ;;  %v11810_v26 = vld [vmem:[#allocation271_spill] sm:$0xff]  ;;  %v11813_v28 = vld [vmem:[#allocation188_spill] sm:$0xff] }
 0x6c4   : > { %v5111_v30 = vmul.f32 %v5091_v24, %v10163_v40  ;;  %v3700_v4 = vadd.f32 %v11803_v31, %v3567_v53  ;;  %v4014_v38 = vadd.f32 %v11804_v13, %v3881_v39  ;;  %v3863_v5 = vmul.f32 %v11691_v21, %v8217_v29 }
 0x6c5   : > { %v5148_v10 = vmul.f32 0.7978846, %v5128_v45  ;;  %v3304_v32 = vadd.f32 %v9849_v46, %v3251_v20  ;;  %v3702_v63 = vadd.f32 %v11805_v33, %v3569_v59  ;;  %v5093_v49 = vmul.f32 %v5073_v62, %v10183_v48  ;;  %v10208_v18 = vpop.permute.xlu1 %4811  ;;  %v11812_v45 = vld [vmem:[#allocation303_spill] sm:$0xff]  ;;  %v11814_v62 = vld [vmem:[#allocation190_spill] sm:$0xff]  ;;  %v11817_v33 = vld [vmem:[#allocation197_spill] sm:$0xff] }
 0x6c6   : > { %v5131_v34 = vadd.f32 %v5111_v30, %v10163_v40  ;;  %v3833_v50 = vadd.f32 %v11806_v56, %v3700_v4  ;;  %v3883_v22 = vadd.f32 %v3863_v5, %v3830_v6  ;;  %v4147_v25 = vadd.f32 %v11807_v35, %v4014_v38  ;;  %v10210_v58 = vpop.permute.xlu0 %4557  ;;  %v11811_v6 = vld [vmem:[#allocation287_spill] sm:$0xff]  ;;  %v11815_v4 = vld [vmem:[#allocation297_spill] sm:$0xff]  ;;  %v11816_v38 = vld [vmem:[#allocation314_spill] sm:$0xff] }
 0x6c7   : > { %6782 = vtanh.f32 %v5148_v10  ;;  %v3438_v54 = vadd.f32 %v11808_v1, %v3305_v3  ;;  %v3253_v46 = vadd.f32 %v11809_v23, %v3120_v37  ;;  %v5113_v24 = vmul.f32 %v5093_v49, %v10183_v48  ;;  %v11819_v56 = vld [vmem:[#allocation286_spill] sm:$0xff]  ;;  %v11820_v35 = vld [vmem:[#allocation309_spill] sm:$0xff]  ;;  %v11821_v23 = vld [vmem:[#allocation200_spill] sm:$0xff] }
 0x6c8   : > { %v5151_v20 = vmul.f32 0.7978846, %v5131_v34  ;;  %v3835_v53 = vadd.f32 %v11810_v26, %v3702_v63  ;;  %v3866_v36 = vmul.f32 %v11724_v57, %v8312_v7  ;;  %v4016_v39 = vadd.f32 %v11811_v6, %v3883_v22 }
 0x6c9   : > { %v4280_v51 = vadd.f32 %v11812_v45, %v4147_v25  ;;  %v3435_v59 = vadd.f32 %v11813_v28, %v10148_v42  ;;  %v3437_v30 = vadd.f32 %v11814_v62, %v3304_v32  ;;  %v5133_v3 = vadd.f32 %v5113_v24, %v10183_v48  ;;  %v10228_v5 = vpop.permute.xlu1 %4563  ;;  %v11818_v32 = vld [vmem:[#allocation62_spill] sm:$0xff]  ;;  %v11822_v24 = vld [vmem:[#allocation208_spill] sm:$0xff] }
 0x6ca   : > { %6784 = vtanh.f32 %v5151_v20  ;;  %v3886_v37 = vadd.f32 %v3866_v36, %v3833_v50  ;;  %v3868_v31 = vmul.f32 %v11724_v57, %v8327_v15  ;;  %v4149_v13 = vadd.f32 %v11815_v4, %v4016_v39  ;;  %v10230_v10 = vpop.permute.xlu0 %4815  ;;  %v11823_v36 = vld [vmem:[#allocation210_spill] sm:$0xff] }
 0x6cb   : > { %v4413_v7 = vadd.f32 %v11816_v38, %v4280_v51  ;;  %v3440_v63 = vadd.f32 %v11817_v33, %v3307_v44  ;;  %v3306_v42 = vadd.f32 %v9901_v60, %v3253_v46  ;;  %v5228_v34 = vadd.s32 3, %v11818_v32  ;;  %v11824_v46 = vld [vmem:[#allocation293_spill] sm:$0xff]  ;;  %v11825_v39 = vld [vmem:[#allocation294_spill] sm:$0xff] }
 0x6cc   : > { %v5153_v49 = vmul.f32 0.7978846, %v5133_v3  ;;  %v4019_v50 = vadd.f32 %v11819_v56, %v3886_v37  ;;  %v3888_v22 = vadd.f32 %v3868_v31, %v3835_v53  ;;  %v4282_v25 = vadd.f32 %v11820_v35, %v4149_v13  ;;  %v11826_v51 = vld [vmem:[#allocation317_spill] sm:$0xff]  ;;  %v11829_v13 = vld [vmem:[#allocation307_spill] sm:$0xff] }
 0x6cd   : > { %v4446_v1 = vmul.f32 %v11744_v27, %v8217_v29  ;;  %v3439_v20 = vadd.f32 %v11821_v23, %v3306_v42  ;;  %v3566_v26 = vadd.f32 %v11822_v24, %v10144_v41  ;;  %v3568_v44 = vadd.f32 %v11823_v36, %v3435_v59  ;;  %v10246_v62 = vpop.permute.xlu1 %4821  ;;  %v11827_v41 = vld [vmem:[#allocation212_spill] sm:$0xff]  ;;  %v11828_v31 = vld [vmem:[#allocation213_spill] sm:$0xff] }
 0x6ce   : > { %6786 = vtanh.f32 %v5153_v49  ;;  %v4021_v6 = vadd.f32 %v11824_v46, %v3888_v22  ;;  %v4152_v45 = vadd.f32 %v11825_v39, %v4019_v50  ;;  %v4415_v53 = vadd.f32 %v11826_v51, %v4282_v25  ;;  %v10248_v3 = vpop.permute.xlu0 %4567  ;;  %v11830_v42 = vld [vmem:[#allocation300_spill] sm:$0xff]  ;;  %v11832_v50 = vld [vmem:[#allocation107_spill] sm:$0xff]  ;;  %v11838_v39 = vld [vmem:[#allocation313_spill] sm:$0xff] }
 0x6cf   : > { %v4466_v28 = vadd.f32 %v4446_v1, %v4413_v7  ;;  %v5046_v29 = vmul.f32 0.5, %v10122_v12  ;;  %vm5239_vm9 = vcmp.ge.s32.totalorder %v5228_v34, 0  ;;  %vm5249_vm8 = vcmp.lt.s32.totalorder %v5228_v34, 16  ;;  %v11831_v7 = vld [vmem:[#allocation48_spill] sm:$0xff]  ;;  %v11833_v12 = vld [vmem:[#allocation214_spill] sm:$0xff]  ;;  %v11834_v1 = vld [vmem:[#allocation215_spill] sm:$0xff] }
 0x6d0   : > { %v6781_v60 = vpop.eup %6780  ;;  %v3570_v59 = vadd.f32 %v11827_v41, %v3437_v30  ;;  %v3571_v4 = vadd.f32 %v11828_v31, %v3438_v54  ;;  %v4285_v38 = vadd.f32 %v11829_v13, %v4152_v45  ;;  %v5229_v33 = vadd.s32 4, %v11818_v32  ;;  %v11835_v24 = vld [vmem:[#allocation320_spill] sm:$0xff]  ;;  %vm10270_vm5 = vmand %vm5239_vm9, %vm5249_vm8  ;;  %v11840_v41 = vld [vmem:[#allocation230_spill] sm:$0xff] }
 0x6d1   : > { %v5186_v37 = vadd.f32 1.0, %v6781_v60  ;;  %v4154_v49 = vadd.f32 %v11830_v42, %v4021_v6  ;;  %v4599_v56 = vadd.f32 %v11831_v7, %v4466_v28  ;;  %v4448_v22 = vmul.f32 %v11744_v27, %v11832_v50  ;;  %v10264_v36 = vpop.permute.xlu1 %4686  ;;  %v11841_v13 = vld [vmem:[#allocation51_spill] sm:$0xff]  ;;  %vm10291_vm7 = vmand %vm10270_vm5, %vm5266_vm4  ;;  %v11845_v42 = vld [vmem:[#allocation232_spill] sm:$0xff] }
 0x6d2   : > { %v3572_v25 = vadd.f32 %v11833_v12, %v3439_v20  ;;  %v3573_v23 = vadd.f32 %v11834_v1, %v3440_v63  ;;  %v4418_v30 = vadd.f32 %v11835_v24, %v4285_v38  ;;  %v4451_v54 = vmul.f32 %v11613_v2, %v8327_v15  ;;  %v10266_v60 = vpop.permute.xlu0 %4825  ;;  %v11846_v7 = vld [vmem:[#allocation319_spill] sm:$0xff]  ;;  %vm10323_vm1 = vmand %vm10291_vm7, %vm5277_vm13 }
 0x6d3   : > { %v5206_v35 = vmul.f32 %v5186_v37, %v5046_v29  ;;  %v4287_v20 = vadd.f32 %v11838_v39, %v4154_v49  ;;  %v4468_v45 = vadd.f32 %v4448_v22, %v4415_v53  ;;  %v4732_v63 = vadd.f32 %v10089_v9, %v4599_v56  ;;  %v11839_v29 = vld [vmem:[#allocation228_spill] sm:$0xff]  ;;  %v11850_v39 = vld [vmem:[#allocation234_spill] sm:$0xff] }
 0x6d4   : > { %v6783_v6 = vpop.eup %6782  ;;  %v5048_v28 = vmul.f32 0.5, %v10140_v17  ;;  %vm5240_vm11 = vcmp.ge.s32.totalorder %v5229_v33, 0  ;;  %vm5250_vm0 = vcmp.lt.s32.totalorder %v5229_v33, 16  ;;  %v3699_v37 = vadd.f32 %v11839_v29, %v3566_v26  ;;  %v11854_v33 = vld [vmem:[#allocation277_spill] sm:$0xff]  ;;  %v11856_v29 = vld [vmem:[#allocation279_spill] sm:$0xff] }
 0x6d5   : > { %v10278_v51 = vsel %vm10050_vm10, %v5206_v35, 0.0  ;;  %v5188_v34 = vadd.f32 1.0, %v6783_v6  ;;  %v3701_v31 = vadd.f32 %v11840_v41, %v3568_v44  ;;  %v4601_v53 = vadd.f32 %v11841_v13, %v4468_v45  ;;  %v4945_v44 = vpop.permute.xlu1 %4944  ;;  %vm10305_vm15 = vmand %vm5240_vm11, %vm5250_vm0 }
 0x6d6   : > { %5344 = vrot.lane.b32.xlu1 %v10278_v51, %s6856_s24  ;;  %v4865_v9 = vadd.f32 %v10208_v18, %v4732_v63  ;;  %v10296_v49 = vadd.f32 %v11845_v42, %v3570_v59  ;;  %v4420_v26 = vadd.f32 %v11846_v7, %v4287_v20  ;;  %v4471_v56 = vadd.f32 %v4451_v54, %v4418_v30  ;;  %v10299_v22 = vpop.permute.xlu0 %4690  ;;  %v11849_v59 = vld [vmem:[#allocation231_spill] sm:$0xff]  ;;  %v11851_v54 = vld [vmem:[#allocation129_spill] sm:$0xff]  ;;  %vm5271_vm3 = vmand %vm10305_vm15, %vm5266_vm4 }
 0x6d7   : > { %v6785_v17 = vpop.eup %6784  ;;  %v5208_v35 = vmul.f32 %v5188_v34, %v5048_v28  ;;  %v4734_v18 = vadd.f32 %v10109_v47, %v4601_v53  ;;  %v5051_v1 = vmul.f32 0.5, %v10163_v40  ;;  %v3704_v6 = vadd.f32 %v11849_v59, %v3571_v4  ;;  %v11855_v28 = vld [vmem:[#allocation233_spill] sm:$0xff]  ;;  %v11858_v7 = vld [vmem:[#allocation139_spill] sm:$0xff]  ;;  %vm10364_vm6 = vmand %vm5271_vm3, %vm5277_vm13 }
 0x6d8   : > { %v4998_v12 = vadd.f32 %v4945_v44, %v4865_v9  ;;  %v5191_v24 = vadd.f32 1.0, %v6785_v17  ;;  %v10311_v30 = vadd.f32 %v11850_v39, %v3572_v25  ;;  %v4453_v20 = vmul.f32 %v11613_v2, %v11851_v54  ;;  %v11863_v59 = vld [vmem:[#allocation285_spill] sm:$0xff] }
 0x6d9   : > { %v10317_v47 = vsel %vm10037_vm14, %v5208_v35, 0.0  ;;  %v4604_v4 = vadd.f32 %v11854_v33, %v4471_v56  ;;  %v4867_v25 = vadd.f32 %v10230_v10, %v4734_v18  ;;  %v3706_v34 = vadd.f32 %v11855_v28, %v3573_v23  ;;  %v10338_v9 = vpop.permute.xlu1 %4696  ;;  %v11864_v28 = vld [vmem:[#allocation301_spill] sm:$0xff] }
 0x6da   : > { %v10330_v45 = vadd.f32 %v9869_v43, %v4998_v12  ;;  %5348 = vrot.lane.b32.xlu0 %v10317_v47, %s6856_s24  ;;  %v5211_v0 = vmul.f32 %v5191_v24, %v5051_v1  ;;  %v3832_v41 = vadd.f32 %v11856_v29, %v3699_v37  ;;  %v3870_v13 = vmul.f32 %v11724_v57, %v11851_v54  ;;  %v4949_v8 = vpop.permute.xlu0 %4948  ;;  %v11862_v24 = vld [vmem:[#allocation284_spill] sm:$0xff] }
 0x6db   : > { %v6787_v63 = vpop.eup %6786  ;;  %v4473_v53 = vadd.f32 %v4453_v20, %v4420_v26  ;;  %v4737_v10 = vadd.f32 %v10129_v16, %v4604_v4  ;;  %v5000_v42 = vadd.f32 %v4949_v8, %v4867_v25  ;;  %v3865_v37 = vmul.f32 %v11691_v21, %v11832_v50  ;;  %v11859_v16 = vld [vmem:[#allocation69_spill] sm:$0xff] }
 0x6dc   : > { %v5070_v17 = vmul.f32 0.044715, %v10330_v45  ;;  %v10348_v23 = vsel %vm10323_vm1, %v5211_v0, 0.0  ;;  %v3872_v26 = vmul.f32 %v11724_v57, %v11858_v7  ;;  %v5053_v56 = vmul.f32 0.5, %v10183_v48 }
 0x6dd   : > { %11857 = vst [vmem:[#allocation50_spill] sm:$0xff] %v10348_v23  ;;  %5354 = vrot.lane.b32.xlu1 %v10348_v23, %s6856_s24  ;;  %v5193_v44 = vadd.f32 1.0, %v6787_v63  ;;  %v4606_v35 = vadd.f32 %v11859_v16, %v4473_v53  ;;  %v4870_v18 = vadd.f32 %v10246_v62, %v4737_v10  ;;  %v10360_v12 = vadd.f32 %v9869_v43, %v5000_v42  ;;  %v4955_v20 = vpop.permute.xlu1 %4954  ;;  %v11865_v53 = vld [vmem:[#allocation110_spill] sm:$0xff]  ;;  %v11867_v42 = vld [vmem:[#allocation291_spill] sm:$0xff]  ;;  %v11883_v23 = vld [vmem:[#allocation64_spill] sm:$0xff] }
 0x6de   : > { %v5090_v1 = vmul.f32 %v5070_v17, %v10330_v45  ;;  %v3837_v46 = vadd.f32 %v11862_v24, %v3704_v6  ;;  %v3834_v48 = vadd.f32 %v11863_v59, %v3701_v31  ;;  %v3885_v39 = vadd.f32 %v3865_v37, %v3832_v41  ;;  %v10371_v33 = vpop.permute.xlu0 %4700  ;;  %v11868_v16 = vld [vmem:[#allocation142_spill] sm:$0xff] }
 0x6df   : > { %v5213_v62 = vmul.f32 %v5193_v44, %v5053_v56  ;;  %v4739_v4 = vadd.f32 %v10152_v52, %v4606_v35  ;;  %v5072_v25 = vmul.f32 0.044715, %v10360_v12  ;;  %v5003_v0 = vadd.f32 %v4955_v20, %v4870_v18 }
 0x6e0   : > { %v5110_v63 = vmul.f32 %v5090_v1, %v10330_v45  ;;  %v4018_v29 = vadd.f32 %v11864_v28, %v3885_v39  ;;  %v3867_v8 = vmul.f32 %v11691_v21, %v11865_v53  ;;  %v10381_v31 = vmul.f32 %v11613_v2, %v11858_v7  ;;  %v11869_v1 = vld [vmem:[#allocation312_spill] sm:$0xff] }
 0x6e1   : > { %v10385_v6 = vsel %vm10364_vm6, %v5213_v62, 0.0  ;;  %v4872_v52 = vadd.f32 %v10266_v60, %v4739_v4  ;;  %v10389_v41 = vadd.f32 %v9525_v19, %v5003_v0  ;;  %v5092_v17 = vmul.f32 %v5072_v25, %v10360_v12  ;;  %v10398_v18 = vpop.permute.xlu1 %4561  ;;  %v11870_v62 = vld [vmem:[#allocation305_spill] sm:$0xff]  ;;  %v11871_v0 = vld [vmem:[#allocation308_spill] sm:$0xff] }
 0x6e2   : > { %11866 = vst [vmem:[#allocation80_spill] sm:$0xff] %v10385_v6  ;;  %5358 = vrot.lane.b32.xlu0 %v10385_v6, %s6856_s24  ;;  %v5130_v10 = vadd.f32 %v5110_v63, %v10330_v45  ;;  %v3839_v37 = vadd.f32 %v11867_v42, %v3706_v34  ;;  %v3890_v56 = vadd.f32 %v3870_v13, %v3837_v46  ;;  %v4959_v60 = vpop.permute.xlu0 %4958  ;;  %v11872_v63 = vld [vmem:[#allocation134_spill] sm:$0xff]  ;;  %v11873_v46 = vld [vmem:[#allocation63_spill] sm:$0xff]  ;;  %v11879_v6 = vld [vmem:[#allocation49_spill] sm:$0xff] }
 0x6e3   : > { %v3887_v44 = vadd.f32 %v3867_v8, %v3834_v48  ;;  %v3871_v35 = vmul.f32 %v11691_v21, %v11868_v16  ;;  %v4151_v24 = vadd.f32 %v11869_v1, %v4018_v29  ;;  %v5075_v59 = vmul.f32 0.044715, %v10389_v41  ;;  %v11874_v8 = vld [vmem:[#allocation299_spill] sm:$0xff] }
 0x6e4   : > { %v5005_v39 = vadd.f32 %v4959_v60, %v4872_v52  ;;  %v5150_v20 = vmul.f32 0.7978846, %v5130_v10  ;;  %v4023_v4 = vadd.f32 %v11870_v62, %v3890_v56  ;;  %v3869_v34 = vmul.f32 %v11691_v21, %v11872_v63  ;;  %v11875_v42 = vld [vmem:[#allocation315_spill] sm:$0xff] }
 0x6e5   : > { %v4020_v25 = vadd.f32 %v11871_v0, %v3887_v44  ;;  %v5112_v13 = vmul.f32 %v5092_v17, %v10360_v12  ;;  %v4284_v48 = vadd.f32 %v11873_v46, %v4151_v24  ;;  %v5095_v29 = vmul.f32 %v5075_v59, %v10389_v41  ;;  %v4820_v44 = vpop.permute.xlu1 %4819  ;;  %v11876_v17 = vld [vmem:[#allocation52_spill] sm:$0xff]  ;;  %v11877_v24 = vld [vmem:[#allocation78_spill] sm:$0xff] }
 0x6e6   : > { %v10409_v28 = vadd.f32 %v9525_v19, %v5005_v39  ;;  %6788 = vtanh.f32 %v5150_v20  ;;  %v3836_v52 = vadd.f32 %v11874_v8, %v10296_v49  ;;  %v3892_v10 = vadd.f32 %v3872_v26, %v3839_v37  ;;  %v10415_v60 = vpop.permute.xlu0 %4565  ;;  %v11878_v59 = vld [vmem:[#allocation310_spill] sm:$0xff] }
 0x6e7   : > { %v4153_v56 = vadd.f32 %v11875_v42, %v4020_v25  ;;  %v5132_v1 = vadd.f32 %v5112_v13, %v10360_v12  ;;  %v4156_v62 = vadd.f32 %v11876_v17, %v4023_v4  ;;  %v4417_v0 = vadd.f32 %v11877_v24, %v4284_v48  ;;  %v11880_v25 = vld [vmem:[#allocation306_spill] sm:$0xff]  ;;  %v11881_v13 = vld [vmem:[#allocation263_spill] sm:$0xff] }
 0x6e8   : > { %v5077_v39 = vmul.f32 0.044715, %v10409_v28  ;;  %v5115_v20 = vmul.f32 %v5095_v29, %v10389_v41  ;;  %v4025_v46 = vadd.f32 %v11878_v59, %v3892_v10  ;;  %v4450_v26 = vmul.f32 %v11744_v27, %v11865_v53  ;;  %v11882_v17 = vld [vmem:[#allocation54_spill] sm:$0xff] }
 0x6e9   : > { %v4286_v49 = vadd.f32 %v11879_v6, %v4153_v56  ;;  %v5152_v37 = vmul.f32 0.7978846, %v5132_v1  ;;  %v3838_v8 = vadd.f32 %v11880_v25, %v10311_v30  ;;  %v4289_v42 = vadd.f32 %v11881_v13, %v4156_v62  ;;  %v4830_v59 = vpop.permute.xlu1 %4829  ;;  %v11884_v56 = vld [vmem:[#allocation79_spill] sm:$0xff]  ;;  %v11885_v25 = vld [vmem:[#allocation328_spill] sm:$0xff]  ;;  %v11886_v13 = vld [vmem:[#allocation65_spill] sm:$0xff] }
 0x6ea   : > { %v5135_v4 = vadd.f32 %v5115_v20, %v10389_v41  ;;  %v5097_v48 = vmul.f32 %v5077_v39, %v10409_v28  ;;  %v4158_v24 = vadd.f32 %v11882_v17, %v4025_v46  ;;  %v3889_v29 = vadd.f32 %v3869_v34, %v3836_v52  ;;  %v4824_v6 = vpop.permute.xlu0 %4823 }
 0x6eb   : > { %v4419_v10 = vadd.f32 %v11883_v23, %v4286_v49  ;;  %6790 = vtanh.f32 %v5152_v37  ;;  %v4422_v21 = vadd.f32 %v11884_v56, %v4289_v42  ;;  %v4470_v1 = vadd.f32 %v4450_v26, %v4417_v0  ;;  %v11887_v49 = vld [vmem:[#allocation265_spill] sm:$0xff]  ;;  %v11888_v26 = vld [vmem:[#allocation47_spill] sm:$0xff] }
 0x6ec   : > { %v5155_v54 = vmul.f32 0.7978846, %v5135_v4  ;;  %v5117_v30 = vmul.f32 %v5097_v48, %v10409_v28  ;;  %v4022_v62 = vadd.f32 %v11885_v25, %v3889_v29  ;;  %v4291_v20 = vadd.f32 %v11886_v13, %v4158_v24  ;;  %v11889_v4 = vld [vmem:[#allocation311_spill] sm:$0xff] }
 0x6ed   : > { %v4452_v39 = vmul.f32 %v11744_v27, %v11872_v63  ;;  %v5230_v34 = vadd.s32 5, %v11818_v32  ;;  %v3891_v52 = vadd.f32 %v3871_v35, %v3838_v8  ;;  %v4603_v23 = vadd.f32 %v10189_v55, %v4470_v1  ;;  %v4695_v17 = vpop.permute.xlu1 %4694  ;;  %v11890_v29 = vld [vmem:[#allocation327_spill] sm:$0xff] }
 0x6ee   : > { %6792 = vtanh.f32 %v5155_v54  ;;  %v5137_v46 = vadd.f32 %v5117_v30, %v10409_v28  ;;  %v4155_v0 = vadd.f32 %v11887_v49, %v4022_v62  ;;  %v4424_v37 = vadd.f32 %v11888_v26, %v4291_v20  ;;  %v4834_v24 = vpop.permute.xlu0 %4833  ;;  %v11891_v54 = vld [vmem:[#allocation82_spill] sm:$0xff] }
 0x6ef   : > { %v4472_v42 = vadd.f32 %v4452_v39, %v4419_v10  ;;  %v4457_v48 = vmul.f32 %v11613_v2, %v11889_v4  ;;  %v4024_v56 = vadd.f32 %v11890_v29, %v3891_v52  ;;  %v4475_v25 = vadd.f32 %v10381_v31, %v4422_v21  ;;  %v11892_v20 = vld [vmem:[#allocation266_spill] sm:$0xff] }
 0x6f0   : > { %v4736_v35 = vadd.f32 %v10264_v36, %v4603_v23  ;;  %v5157_v55 = vmul.f32 0.7978846, %v5137_v46  ;;  %v4288_v8 = vadd.f32 %v11891_v54, %v4155_v0  ;;  %vm5241_vm12 = vcmp.ge.s32.totalorder %v5230_v34, 0 }
 0x6f1   : > { %v4605_v1 = vadd.f32 %v10210_v58, %v4472_v42  ;;  %v5231_v30 = vadd.s32 6, %v11818_v32  ;;  %v4608_v10 = vadd.f32 %v10228_v5, %v4475_v25  ;;  %vm5251_vm14 = vcmp.lt.s32.totalorder %v5230_v34, 16  ;;  %v4953_v52 = vpop.permute.xlu1 %4952 }
 0x6f2   : > { %v4869_v62 = vadd.f32 %v4820_v44, %v4736_v35  ;;  %6794 = vtanh.f32 %v5157_v55  ;;  %v4157_v39 = vadd.f32 %v11892_v20, %v4024_v56  ;;  %v4421_v21 = vadd.f32 %v10172_v61, %v4288_v8  ;;  %v10456_v23 = vpop.permute.xlu0 %4698  ;;  %vm10471_vm9 = vmand %vm5241_vm12, %vm5251_vm14  ;;  %v11895_v35 = vld [vmem:[#allocation53_spill] sm:$0xff] }
 0x6f3   : > { %v6789_v13 = vpop.eup %6788  ;;  %v4477_v31 = vadd.f32 %v4457_v48, %v4424_v37  ;;  %v4738_v36 = vadd.f32 %v10299_v22, %v4605_v1  ;;  %v4741_v58 = vadd.f32 %v10338_v9, %v4608_v10  ;;  %v5050_v49 = vmul.f32 0.5, %v10330_v45  ;;  %vm10496_vm5 = vmand %vm10471_vm9, %vm5266_vm4 }
 0x6f4   : > { %v5002_v46 = vadd.f32 %v4953_v52, %v4869_v62  ;;  %v5190_v5 = vadd.f32 1.0, %v6789_v13  ;;  %v4290_v44 = vadd.f32 %v10091_v14, %v4157_v39  ;;  %v4454_v26 = vmul.f32 %v11744_v27, %v11868_v16  ;;  %vm10515_vm0 = vmand %vm10496_vm5, %vm5277_vm13 }
 0x6f5   : > { %v4610_v0 = vadd.f32 %v10248_v3, %v4477_v31  ;;  %vm5242_vm10 = vcmp.ge.s32.totalorder %v5231_v30, 0  ;;  %v4874_v61 = vadd.f32 %v4830_v59, %v4741_v58  ;;  %v4871_v37 = vadd.f32 %v4824_v6, %v4738_v36  ;;  %v4963_v29 = vpop.permute.xlu1 %4962 }
 0x6f6   : > { %v10465_v22 = vadd.f32 %v9869_v43, %v5002_v46  ;;  %v5210_v42 = vmul.f32 %v5190_v5, %v5050_v49  ;;  %v4423_v9 = vadd.f32 %v10191_v11, %v4290_v44  ;;  %v4474_v45 = vadd.f32 %v4454_v26, %v4421_v21  ;;  %v4957_v56 = vpop.permute.xlu0 %4956 }
 0x6f7   : > { %v4743_v48 = vadd.f32 %v10371_v33, %v4610_v0  ;;  %vm5252_vm8 = vcmp.lt.s32.totalorder %v5231_v30, 16  ;;  %v5007_v6 = vadd.f32 %v4963_v29, %v4874_v61  ;;  %v5004_v25 = vadd.f32 %v4957_v56, %v4871_v37 }
 0x6f8   : > { %v6791_v3 = vpop.eup %6790  ;;  %v5074_v59 = vmul.f32 0.044715, %v10465_v22  ;;  %v10478_v11 = vsel %vm10323_vm1, %v5210_v42, 0.0  ;;  %v4607_v33 = vadd.f32 %v10398_v18, %v4474_v45  ;;  %v4456_v55 = vmul.f32 %v11744_v27, %v11895_v35  ;;  %vm5262_vm11 = vmand %vm5242_vm10, %vm5252_vm8 }
 0x6f9   : > { %5352 = vrot.lane.b32.xlu1 %v10478_v11, %s6856_s24  ;;  %v5052_v34 = vmul.f32 0.5, %v10360_v12  ;;  %v5192_v54 = vadd.f32 1.0, %v6791_v3  ;;  %v4876_v8 = vadd.f32 %v4834_v24, %v4743_v48  ;;  %v10487_v1 = vadd.f32 %v9525_v19, %v5007_v6  ;;  %v4828_v13 = vpop.permute.xlu1 %4827  ;;  %vm5273_vm7 = vmand %vm5262_vm11, %vm5266_vm4 }
 0x6fa   : > { %v10490_v10 = vadd.f32 %v9869_v43, %v5004_v25  ;;  %v5094_v18 = vmul.f32 %v5074_v59, %v10465_v22  ;;  %v4476_v12 = vadd.f32 %v4456_v55, %v4423_v9  ;;  %v4967_v24 = vpop.permute.xlu0 %4966  ;;  %v5055_v39 = vmul.f32 0.5, %v10389_v41  ;;  %vm10539_vm15 = vmand %vm5273_vm7, %vm5277_vm13  ;;  %v11904_v41 = vld [vmem:[#allocation241_spill] sm:$0xff] }
 0x6fb   : > { %v6793_v62 = vpop.eup %6792  ;;  %v5212_v20 = vmul.f32 %v5192_v54, %v5052_v34  ;;  %v4740_v21 = vadd.f32 %v4695_v17, %v4607_v33  ;;  %v5079_v31 = vmul.f32 0.044715, %v10487_v1  ;;  %v5009_v52 = vadd.f32 %v4967_v24, %v4876_v8  ;;  %v11902_v34 = vld [vmem:[#allocation37_spill] sm:$0xff]  ;;  %v11903_v54 = vld [vmem:[#allocation239_spill] sm:$0xff] }
 0x6fc   : > { %v5076_v36 = vmul.f32 0.044715, %v10490_v10  ;;  %v4609_v58 = vadd.f32 %v10415_v60, %v4476_v12  ;;  %v5195_v49 = vadd.f32 1.0, %v6793_v62  ;;  %v5114_v17 = vmul.f32 %v5094_v18, %v10465_v22 }
 0x6fd   : > { %v10509_v46 = vsel %vm10364_vm6, %v5212_v20, 0.0  ;;  %v5099_v30 = vmul.f32 %v5079_v31, %v10487_v1  ;;  %v4873_v5 = vadd.f32 %v4828_v13, %v4740_v21  ;;  %v10522_v60 = vadd.f32 %v9525_v19, %v5009_v52  ;;  %v4961_v0 = vpop.permute.xlu1 %4960 }
 0x6fe   : > { %5356 = vrot.lane.b32.xlu0 %v10509_v46, %s6856_s24  ;;  %v5096_v50 = vmul.f32 %v5076_v36, %v10490_v10  ;;  %v4832_v26 = vpop.permute.xlu0 %4831  ;;  %v5215_v61 = vmul.f32 %v5195_v49, %v5055_v39  ;;  %v5057_v37 = vmul.f32 0.5, %v10409_v28  ;;  %v5134_v42 = vadd.f32 %v5114_v17, %v10465_v22 }
 0x6ff   : > { %v6795_v44 = vpop.eup %6794  ;;  %v4742_v9 = vadd.f32 %v10456_v23, %v4609_v58  ;;  %v5081_v48 = vmul.f32 0.044715, %v10522_v60  ;;  %v5006_v45 = vadd.f32 %v4961_v0, %v4873_v5  ;;  %v5119_v59 = vmul.f32 %v5099_v30, %v10487_v1 }
 0x700   : > { %v5197_v29 = vadd.f32 1.0, %v6795_v44  ;;  %v10535_v56 = vsel %vm10515_vm0, %v5215_v61, 0.0  ;;  %v5154_v3 = vmul.f32 0.7978846, %v5134_v42  ;;  %v5116_v28 = vmul.f32 %v5096_v50, %v10490_v10 }
 0x701   : > { %v5101_v23 = vmul.f32 %v5081_v48, %v10522_v60  ;;  %v10547_v6 = vadd.f32 %v9869_v43, %v5006_v45  ;;  %v4875_v25 = vadd.f32 %v4832_v26, %v4742_v9  ;;  %5362 = vrot.lane.b32.xlu1 %v10535_v56, %s6856_s24  ;;  %v3909_v8 = vmul.f32 %v11903_v54, %v11902_v34 }
 0x702   : > { %v5217_v33 = vmul.f32 %v5197_v29, %v5057_v37  ;;  %v4965_v55 = vpop.permute.xlu0 %4964  ;;  %6796 = vtanh.f32 %v5154_v3  ;;  %v5136_v40 = vadd.f32 %v5116_v28, %v10490_v10  ;;  %v5139_v18 = vadd.f32 %v5119_v59, %v10487_v1 }
 0x703   : > { %v5078_v62 = vmul.f32 0.044715, %v10547_v6  ;;  %v5008_v12 = vadd.f32 %v4965_v55, %v4875_v25  ;;  %v5121_v24 = vmul.f32 %v5101_v23, %v10522_v60  ;;  %v5233_v5 = vadd.s32 8, %v11818_v32 }
 0x704   : > { %v10558_v13 = vsel %vm10539_vm15, %v5217_v33, 0.0  ;;  %v5156_v20 = vmul.f32 0.7978846, %v5136_v40  ;;  %v5159_v39 = vmul.f32 0.7978846, %v5139_v18  ;;  %v5232_v0 = vadd.s32 7, %v11818_v32 }
 0x705   : > { %5366 = vrot.lane.b32.xlu0 %v10558_v13, %s6856_s24  ;;  %v5098_v21 = vmul.f32 %v5078_v62, %v10547_v6  ;;  %v5040_v31 = vadd.f32 %v9869_v43, %v5008_v12  ;;  %3950 = vrot.lane.b32.xlu1 %v3909_v8, %s6859_s10  ;;  %v5141_v36 = vadd.f32 %v5121_v24, %v10522_v60  ;;  %vm5244_vm1 = vcmp.ge.s32.totalorder %v5233_v5, 0 }
 0x706   : > { %6798 = vtanh.f32 %v5156_v20  ;;  %vm5254_vm3 = vcmp.lt.s32.totalorder %v5233_v5, 16  ;;  %v5054_v42 = vmul.f32 0.5, %v10465_v22  ;;  %vm5243_vm6 = vcmp.ge.s32.totalorder %v5232_v0, 0  ;;  %v11908_v5 = vld [vmem:[#allocation245_spill] sm:$0xff] }
 0x707   : > { %v5080_v52 = vmul.f32 0.044715, %v5040_v31  ;;  %6800 = vtanh.f32 %v5159_v39  ;;  %v5161_v58 = vmul.f32 0.7978846, %v5141_v36  ;;  %v5118_v49 = vmul.f32 %v5098_v21, %v10547_v6  ;;  %vm5264_vm14 = vmand %vm5244_vm1, %vm5254_vm3  ;;  %v11907_v36 = vld [vmem:[#allocation243_spill] sm:$0xff] }
 0x708   : > { %vm5253_vm12 = vcmp.lt.s32.totalorder %v5232_v0, 16  ;;  %v5056_v28 = vmul.f32 0.5, %v10490_v10  ;;  %vm5275_vm9 = vmand %vm5264_vm14, %vm5266_vm4  ;;  %v5059_v33 = vmul.f32 0.5, %v10487_v1  ;;  %v4042_v55 = vmul.f32 %v11904_v41, %v11902_v34  ;;  %v11910_v0 = vld [vmem:[#allocation39_spill] sm:$0xff] }
 0x709   : > { %v5100_v17 = vmul.f32 %v5080_v52, %v5040_v31  ;;  %6802 = vtanh.f32 %v5161_v58  ;;  %v5138_v30 = vadd.f32 %v5118_v49, %v10547_v6  ;;  %vm5263_vm10 = vmand %vm5243_vm6, %vm5253_vm12  ;;  %v5061_v10 = vmul.f32 0.5, %v10522_v60 }
 0x70a   : > { %vm5274_vm8 = vmand %vm5263_vm10, %vm5266_vm4  ;;  %v5058_v12 = vmul.f32 0.5, %v10547_v6  ;;  %v4175_v52 = vmul.f32 %v11907_v36, %v11902_v34  ;;  %v5060_v49 = vmul.f32 0.5, %v5040_v31  ;;  %vm5246_vm7 = vcmp.lt.s32.totalorder %v11818_v32, 16 }
 0x70b   : > { %v5158_v50 = vmul.f32 0.7978846, %v5138_v30  ;;  %v5120_v44 = vmul.f32 %v5100_v17, %v5040_v31  ;;  %vm10593_vm5 = vmand %vm5275_vm9, %vm5277_vm13  ;;  %vm11969_vm1 = vcmask 130048  }
 0x70c   : > { %vm5285_vm11 = vmand %vm5274_vm8, %vm5277_vm13 }
 0x70d   : > { %6804 = vtanh.f32 %v5158_v50  ;;  %v5140_v26 = vadd.f32 %v5120_v44, %v5040_v31  ;;  %v4308_v50 = vmul.f32 %v11908_v5, %v11902_v34  ;;  %v11909_v31 = vld [vmem:[#allocation237_spill] sm:$0xff]  ;;  %vm11970_vm3 = vmmov %vm11969_vm1 }
 0x70e   : > { %v3741_v44 = vmul.f32 %v11909_v31, %v11858_v7 }
 0x70f   : > { %v6797_v61 = vpop.eup %6796  ;;  %v5160_v37 = vmul.f32 0.7978846, %v5140_v26  ;;  %v11911_v26 = vld [vmem:[#allocation248_spill] sm:$0xff] }
 0x710   : > { %v5194_v9 = vadd.f32 1.0, %v6797_v61  ;;  %v4494_v61 = vmul.f32 %v11911_v26, %v11910_v0 }
 0x711   : > { %6806 = vtanh.f32 %v5160_v37  ;;  %v11912_v37 = vld [vmem:[#allocation238_spill] sm:$0xff] }
 0x712   : > { %v5214_v48 = vmul.f32 %v5194_v9, %v5054_v42  ;;  %v3740_v42 = vmul.f32 %v11912_v37, %v11868_v16  ;;  %v3927_v9 = vmul.f32 %v11903_v54, %v11889_v4 }
 0x713   : > { %v6799_v45 = vpop.eup %6798 }
 0x714   : > { %v6801_v29 = vpop.eup %6800  ;;  %v10574_v3 = vsel %vm10515_vm0, %v5214_v48, 0.0  ;;  %v5196_v59 = vadd.f32 1.0, %v6799_v45  ;;  %v11913_v48 = vld [vmem:[#allocation249_spill] sm:$0xff]  ;;  %vm5236_vm0 = vcmp.ge.s32.totalorder %v11818_v32, 0 }
 0x715   : > { %5360 = vrot.lane.b32.xlu0 %v10574_v3, %s6856_s24  ;;  %v5199_v22 = vadd.f32 1.0, %v6801_v29  ;;  %v4627_v45 = vmul.f32 %v11913_v48, %v11910_v0  ;;  %v4060_v29 = vmul.f32 %v11904_v41, %v11889_v4  ;;  %v6671_v41 = vpop.f32.mrf.mxu1 }
 0x716   : > { %v6803_v23 = vpop.eup %6802  ;;  %v5216_v25 = vmul.f32 %v5196_v59, %v5056_v28  ;;  %v11914_v28 = vld [vmem:[#allocation251_spill] sm:$0xff] }
 0x717   : > { %v5201_v8 = vadd.f32 1.0, %v6803_v23  ;;  %v5219_v18 = vmul.f32 %v5199_v22, %v5059_v33  ;;  %v4760_v59 = vmul.f32 %v11914_v28, %v11910_v0  ;;  %v11915_v22 = vld [vmem:[#allocation242_spill] sm:$0xff]  ;;  %v4193_v23 = vmul.f32 %v11907_v36, %v11889_v4 }
 0x718   : > { %v10589_v40 = vsel %vm10539_vm15, %v5216_v25, 0.0  ;;  %v3926_v54 = vmul.f32 %v11915_v22, %v11895_v35  ;;  %v11916_v25 = vld [vmem:[#allocation253_spill] sm:$0xff]  ;;  %vm5256_vm15 = vmand %vm5236_vm0, %vm5246_vm7 }
 0x719   : > { %5364 = vrot.lane.b32.xlu1 %v10589_v40, %s6856_s24  ;;  %4083 = vrot.lane.b32.xlu0 %v4042_v55, %s6856_s24  ;;  %v5221_v1 = vmul.f32 %v5201_v8, %v5061_v10  ;;  %v10607_v20 = vsel %vm5285_vm11, %v5219_v18, 0.0  ;;  %v4893_v33 = vmul.f32 %v11916_v25, %v11910_v0  ;;  %v11917_v55 = vld [vmem:[#allocation244_spill] sm:$0xff]  ;;  %v4326_v8 = vmul.f32 %v11908_v5, %v11889_v4  ;;  %vm5267_vm6 = vmand %vm5256_vm15, %vm5266_vm4 }
 0x71a   : > { %v6805_v60 = vpop.eup %6804  ;;  %v4059_v10 = vmul.f32 %v11917_v55, %v11895_v35  ;;  %v11918_v18 = vld [vmem:[#allocation24_spill] sm:$0xff]  ;;  %vm5278_vm14 = vmand %vm5267_vm6, %vm5277_vm13 }
 0x71b   : > { %v10604_v14 = vsel %vm10593_vm5, %v5221_v1, 0.0  ;;  %v5198_v24 = vadd.f32 1.0, %v6805_v60  ;;  %v1959_v62 = vadd.f32 %v6671_v41, %v11918_v18  ;;  %v1953_v1 = vpop.f32.mrf.mxu1  ;;  %v11919_v60 = vld [vmem:[#allocation246_spill] sm:$0xff] }
 0x71d   : > { %5370 = vrot.lane.b32.xlu1 %v10607_v20, %s6856_s24  ;;  %5374 = vrot.lane.b32.xlu0 %v10604_v14, %s6856_s24  ;;  %v5218_v39 = vmul.f32 %v5198_v24, %v5058_v12  ;;  %v4192_v12 = vmul.f32 %v11919_v60, %v11895_v35  ;;  %v11920_v24 = vld [vmem:[#allocation247_spill] sm:$0xff]  ;;  %v10674_v36 = vsel %vm7691_vm2, %v1959_v62, 0.0  ;;  %v11930_v60 = vld [vmem:[#allocation42_spill] sm:$0xff] }
 0x71e   : > { %v6807_v21 = vpop.eup %6806  ;;  %v4911_v37 = vmul.f32 %v11916_v25, %v10674_v36 }
 0x71f   : > { %v10615_v58 = vsel %vm5285_vm11, %v5218_v39, 0.0  ;;  %v5200_v17 = vadd.f32 1.0, %v6807_v21  ;;  %v4325_v39 = vmul.f32 %v11920_v24, %v11895_v35  ;;  %v11931_v24 = vld [vmem:[#allocation41_spill] sm:$0xff]  ;;  %v11932_v21 = vld [vmem:[#allocation44_spill] sm:$0xff] }
 0x721   : > { %4216 = vrot.lane.b32.xlu1 %v4175_v52, %s6861_s16  ;;  %5368 = vrot.lane.b32.xlu0 %v10615_v58, %s6856_s24  ;;  %v5220_v6 = vmul.f32 %v5200_v17, %v5060_v49  ;;  %v11922_v52 = vld [vmem:[#allocation25_spill] sm:$0xff]  ;;  %v4512_v17 = vmul.f32 %v11911_v26, %v10674_v36  ;;  %v11924_v26 = vld [vmem:[#allocation252_spill] sm:$0xff] }
 0x722   : > { %v1954_v49 = vadd.f32 %v1953_v1, %v11922_v52  ;;  %v11929_v1 = vld [vmem:[#allocation40_spill] sm:$0xff] }
 0x723   : > { %v10622_v30 = vsel %vm10593_vm5, %v5220_v6, 0.0  ;;  %v4645_v6 = vmul.f32 %v11913_v48, %v10674_v36  ;;  %v11926_v48 = vld [vmem:[#allocation255_spill] sm:$0xff] }
 0x724   : > { %v10685_v5 = vsel %vm7691_vm2, %v1954_v49, 0.0  ;;  %v11933_v49 = vld [vmem:[#allocation43_spill] sm:$0xff] }
 0x725   : > { %5372 = vrot.lane.b32.xlu1 %v10622_v30, %s6856_s24  ;;  %4349 = vrot.lane.b32.xlu0 %v4308_v50, %s6860_s15  ;;  %v11923_v50 = vld [vmem:[#allocation250_spill] sm:$0xff] }
 0x726   : > { %v4511_v31 = vmul.f32 %v11923_v50, %v10685_v5  ;;  %v11935_v50 = vld [vmem:[#allocation33_spill] sm:$0xff] }
 0x729   : > { %3800 = vrot.lane.b32.xlu1 %v3741_v44, %s6860_s15  ;;  %4535 = vrot.lane.b32.xlu0 %v4494_v61, %s6859_s10  ;;  %v4778_v44 = vmul.f32 %v11914_v28, %v10674_v36  ;;  %v4644_v61 = vmul.f32 %v11924_v26, %v10685_v5  ;;  %v5351_v28 = vpop.permute.xlu0 %5350 }
 0x72d   : > { %3798 = vrot.lane.b32.xlu1 %v3740_v42, %s6860_s15  ;;  %3986 = vrot.lane.b32.xlu0 %v3927_v9, %s6859_s10  ;;  %v11925_v42 = vld [vmem:[#allocation254_spill] sm:$0xff] }
 0x72e   : > { %v4777_v9 = vmul.f32 %v11925_v42, %v10685_v5 }
 0x731   : > { %4668 = vrot.lane.b32.xlu1 %v4627_v45, %s6856_s24  ;;  %4119 = vrot.lane.b32.xlu0 %v4060_v29, %s6856_s24  ;;  %v4910_v45 = vmul.f32 %v11926_v48, %v10685_v5  ;;  %v5347_v29 = vpop.permute.xlu1 %5346  ;;  %v11937_v48 = vld [vmem:[#allocation159_spill] sm:$0xff] }
 0x735   : > { %4801 = vrot.lane.b32.xlu1 %v4760_v59, %s6861_s16  ;;  %3984 = vrot.lane.b32.xlu0 %v3926_v54, %s6859_s10  ;;  %v11927_v54 = vld [vmem:[#allocation23_spill] sm:$0xff] }
 0x736   : > { %vm11928_vm2 = vnez %v11927_v54 }
 0x739   : > { %4252 = vrot.lane.b32.xlu1 %v4193_v23, %s6861_s16  ;;  %4934 = vrot.lane.b32.xlu0 %v4893_v33, %s6860_s15 }
 0x73d   : > { %4117 = vrot.lane.b32.xlu1 %v4059_v10, %s6856_s24  ;;  %4385 = vrot.lane.b32.xlu0 %v4326_v8, %s6860_s15 }
 0x741   : > { %4250 = vrot.lane.b32.xlu1 %v4192_v12, %s6861_s16  ;;  %4383 = vrot.lane.b32.xlu0 %v4325_v39, %s6860_s15  ;;  %v2839_v12 = vadd.f32 %v11930_v60, %v11929_v1  ;;  %v11943_v1 = vld [vmem:[#allocation240_spill] sm:$0xff] }
 0x743   : > { %v2972_v39 = vadd.f32 %v11931_v24, %v2839_v12  ;;  %v11944_v12 = vld [vmem:[#allocation162_spill] sm:$0xff] }
 0x745   : > { %4571 = vrot.lane.b32.xlu1 %v4512_v17, %s6859_s10  ;;  %4704 = vrot.lane.b32.xlu0 %v4645_v6, %s6856_s24  ;;  %v3105_v52 = vadd.f32 %v11932_v21, %v2972_v39  ;;  %v11934_v6 = vld [vmem:[#allocation36_spill] sm:$0xff]  ;;  %v11945_v39 = vld [vmem:[#allocation27_spill] sm:$0xff] }
 0x746   : > { %v2138_v21 = vmul.f32 %v11945_v39, %v11865_v53  ;;  %v4441_v39 = vmul.f32 %v11613_v2, %v11910_v0 }
 0x747   : > { %v3238_v17 = vadd.f32 %v11933_v49, %v3105_v52 }
 0x748   : > { %v5345_v59 = vpop.permute.xlu1 %5344 }
 0x749   : > { %4569 = vrot.lane.b32.xlu1 %v4511_v31, %s6859_s10  ;;  %4837 = vrot.lane.b32.xlu0 %v4778_v44, %s6861_s16  ;;  %v5392_v23 = vsel %vm11928_vm2, %v10278_v51, %v5345_v59  ;;  %v3271_v31 = vmul.f32 %v11935_v50, %v11934_v6  ;;  %v11936_v44 = vld [vmem:[#allocation29_spill] sm:$0xff] }
 0x74a   : > { %v2139_v26 = vmul.f32 %v11936_v44, %v8327_v15  ;;  %v11939_v15 = vld [vmem:[#allocation158_spill] sm:$0xff] }
 0x74b   : > { %v3291_v42 = vadd.f32 %v3271_v31, %v3238_v17  ;;  %v3856_v17 = vmul.f32 %v11724_v57, %v11902_v34  ;;  %v11946_v31 = vld [vmem:[#allocation174_spill] sm:$0xff] }
 0x74c   : > { %v5349_v22 = vpop.permute.xlu0 %5348  ;;  %v2271_v44 = vadd.f32 %v11946_v31, %v2138_v21  ;;  %v11955_v21 = vld [vmem:[#allocation195_spill] sm:$0xff] }
 0x74d   : > { %4702 = vrot.lane.b32.xlu1 %v4644_v61, %s6856_s24  ;;  %4970 = vrot.lane.b32.xlu0 %v4911_v37, %s6860_s15  ;;  %v5394_v25 = vsel %vm11928_vm2, %v10317_v47, %v5349_v22 }
 0x74f   : > { %v5355_v33 = vpop.permute.xlu1 %5354 }
 0x751   : > { %4835 = vrot.lane.b32.xlu1 %v4777_v9, %s6861_s16  ;;  %4968 = vrot.lane.b32.xlu0 %v4910_v45, %s6860_s15  ;;  %v2272_v45 = vadd.f32 %v11937_v48, %v2139_v26  ;;  %v11947_v26 = vld [vmem:[#allocation129_spill] sm:$0xff]  ;;  %v11949_v48 = vld [vmem:[#allocation179_spill] sm:$0xff] }
 0x754   : > { %v5359_v41 = vpop.permute.xlu0 %5358 }
 0x755   : > { %5426 = vrot.lane.b32.xlu1 %v5347_v29, %s6858_s14  ;;  %5430 = vrot.lane.b32.xlu0 %v5351_v28, %s6858_s14  ;;  %v11938_v29 = vld [vmem:[#allocation56_spill] sm:$0xff] }
 0x756   : > { %v3424_v28 = vadd.f32 %v11938_v29, %v3291_v42 }
 0x759   : > { %5424 = vrot.lane.b32.xlu1 %v5392_v23, %s6858_s14  ;;  %5428 = vrot.lane.b32.xlu0 %v5394_v25, %s6858_s14  ;;  %v2405_v25 = vadd.f32 %v11939_v15, %v2272_v45  ;;  %v2404_v45 = vadd.f32 %v11949_v48, %v2271_v44 }
 0x75d   : > { %5434 = vrot.lane.b32.xlu1 %v5355_v33, %s6858_s14  ;;  %5438 = vrot.lane.b32.xlu0 %v5359_v41, %s6858_s14  ;;  %v11940_v33 = vld [vmem:[#allocation55_spill] sm:$0xff] }
 0x75e   : > { %v3557_v41 = vadd.f32 %v11940_v33, %v3424_v28  ;;  %v11951_v33 = vld [vmem:[#allocation178_spill] sm:$0xff] }
 0x76b   : > { %v5353_v55 = vpop.permute.xlu1 %5352 }
 0x76c   : > { %v5396_v10 = vsel %vm11928_vm2, %v10478_v11, %v5353_v55  ;;  %v11941_v55 = vld [vmem:[#allocation163_spill] sm:$0xff] }
 0x76d   : > { %5432 = vrot.lane.b32.xlu1 %v5396_v10, %s6858_s14  ;;  %v2538_v10 = vadd.f32 %v11941_v55, %v2405_v25 }
 0x76f   : > { %v2671_v24 = vadd.f32 %v11944_v12, %v2538_v10 }
 0x770   : > { %v5357_v51 = vpop.permute.xlu0 %5356 }
 0x771   : > { %v5398_v8 = vsel %vm11928_vm2, %v10509_v46, %v5357_v51 }
 0x772   : > { %5436 = vrot.lane.b32.xlu0 %v5398_v8, %s6858_s14 }
 0x773   : > { %v5363_v18 = vpop.permute.xlu1 %5362 }
 0x774   : > { %5442 = vrot.lane.b32.xlu1 %v5363_v18, %s6858_s14  ;;  %v11942_v18 = vld [vmem:[#allocation218_spill] sm:$0xff] }
 0x777   : > { %v5367_v62 = vpop.permute.xlu0 %5366  ;;  %v3951_v61 = vpop.permute.xlu1 %3950 }
 0x778   : > { %5446 = vrot.lane.b32.xlu0 %v5367_v62, %s6858_s14  ;;  %v3690_v62 = vadd.f32 %v11942_v18, %v3557_v41  ;;  %v2537_v41 = vadd.f32 %v11951_v33, %v2404_v45 }
 0x77a   : > { %v3823_v60 = vadd.f32 %v11943_v1, %v3690_v62  ;;  %v11953_v62 = vld [vmem:[#allocation192_spill] sm:$0xff] }
 0x787   : > { %v5361_v37 = vpop.permute.xlu0 %5360 }
 0x788   : > { %v5400_v9 = vsel %vm11928_vm2, %v10574_v3, %v5361_v37  ;;  %v11948_v37 = vld [vmem:[#allocation31_spill] sm:$0xff] }
 0x789   : > { %5440 = vrot.lane.b32.xlu1 %v5400_v9, %s6858_s14  ;;  %v2704_v42 = vmul.f32 %v11948_v37, %v11947_v26  ;;  %v3876_v9 = vadd.f32 %v3856_v17, %v3823_v60  ;;  %v11957_v26 = vld [vmem:[#allocation194_spill] sm:$0xff] }
 0x78b   : > { %v5365_v59 = vpop.permute.xlu1 %5364  ;;  %v4084_v22 = vpop.permute.xlu0 %4083  ;;  %v2724_v53 = vadd.f32 %v2704_v42, %v2671_v24  ;;  %v11958_v42 = vld [vmem:[#allocation201_spill] sm:$0xff] }
 0x78c   : > { %v5402_v23 = vsel %vm11928_vm2, %v10589_v40, %v5365_v59  ;;  %v4009_v59 = vadd.f32 %v3951_v61, %v3876_v9  ;;  %v11954_v61 = vld [vmem:[#allocation30_spill] sm:$0xff] }
 0x78d   : > { %5444 = vrot.lane.b32.xlu0 %v5402_v23, %s6858_s14  ;;  %v11950_v23 = vld [vmem:[#allocation193_spill] sm:$0xff]  ;;  %v2703_v12 = vmul.f32 %v11954_v61, %v11872_v63  ;;  %v3289_v63 = vmul.f32 %v11935_v50, %v11858_v7  ;;  %v11963_v7 = vld [vmem:[#allocation32_spill] sm:$0xff] }
 0x78e   : > { %v2857_v15 = vadd.f32 %v11950_v23, %v2724_v53  ;;  %v4142_v25 = vadd.f32 %v4084_v22, %v4009_v59  ;;  %v11960_v23 = vld [vmem:[#allocation199_spill] sm:$0xff]  ;;  %v3288_v50 = vmul.f32 %v11963_v7, %v11868_v16 }
 0x78f   : > { %v5371_v51 = vpop.permute.xlu1 %5370  ;;  %v5375_v8 = vpop.permute.xlu0 %5374 }
 0x790   : > { %5450 = vrot.lane.b32.xlu1 %v5371_v51, %s6858_s14  ;;  %v2990_v1 = vadd.f32 %v11953_v62, %v2857_v15 }
 0x791   : > { %5454 = vrot.lane.b32.xlu0 %v5375_v8, %s6858_s14  ;;  %v11952_v8 = vld [vmem:[#allocation183_spill] sm:$0xff] }
 0x792   : > { %v2670_v18 = vadd.f32 %v11952_v8, %v2537_v41  ;;  %v3123_v22 = vadd.f32 %v11955_v21, %v2990_v1  ;;  %v11964_v1 = vld [vmem:[#allocation235_spill] sm:$0xff] }
 0x793   : > { %v4217_v52 = vpop.permute.xlu1 %4216  ;;  %v5369_v49 = vpop.permute.xlu0 %5368 }
 0x794   : > { %v5404_v6 = vsel %vm11928_vm2, %v10615_v58, %v5369_v49  ;;  %v4275_v51 = vadd.f32 %v4217_v52, %v4142_v25  ;;  %v2723_v49 = vadd.f32 %v2703_v12, %v2670_v18  ;;  %v3256_v37 = vadd.f32 %v11957_v26, %v3123_v22  ;;  %v11962_v18 = vld [vmem:[#allocation217_spill] sm:$0xff]  ;;  %v11965_v26 = vld [vmem:[#allocation202_spill] sm:$0xff] }
 0x795   : > { %5448 = vrot.lane.b32.xlu1 %v5404_v6, %s6858_s14  ;;  %v11956_v6 = vld [vmem:[#allocation196_spill] sm:$0xff] }
 0x796   : > { %v2856_v31 = vadd.f32 %v11956_v6, %v2723_v49  ;;  %v3309_v0 = vadd.f32 %v3289_v63, %v3256_v37 }
 0x797   : > { %v5373_v29 = vpop.permute.xlu1 %5372  ;;  %v4350_v28 = vpop.permute.xlu0 %4349 }
 0x798   : > { %v5406_v34 = vsel %vm11928_vm2, %v10622_v30, %v5373_v29  ;;  %v4408_v60 = vadd.f32 %v4350_v28, %v4275_v51  ;;  %v2989_v9 = vadd.f32 %v11958_v42, %v2856_v31  ;;  %v11959_v28 = vld [vmem:[#allocation198_spill] sm:$0xff]  ;;  %v3442_v15 = vadd.f32 %v11960_v23, %v3309_v0  ;;  %v11961_v51 = vld [vmem:[#allocation203_spill] sm:$0xff]  ;;  %v11967_v0 = vld [vmem:[#allocation236_spill] sm:$0xff] }
 0x799   : > { %5452 = vrot.lane.b32.xlu0 %v5406_v34, %s6858_s14 }
 0x79a   : > { %v4461_v17 = vadd.f32 %v4441_v39, %v4408_v60  ;;  %v3122_v59 = vadd.f32 %v11959_v28, %v2989_v9  ;;  %v3575_v62 = vadd.f32 %v11962_v18, %v3442_v15 }
 0x79b   : > { %v3801_v55 = vpop.permute.xlu1 %3800  ;;  %v4536_v10 = vpop.permute.xlu0 %4535 }
 0x79c   : > { %v4594_v48 = vadd.f32 %v4536_v10, %v4461_v17  ;;  %v3255_v8 = vadd.f32 %v11961_v51, %v3122_v59  ;;  %v3708_v60 = vadd.f32 %v11964_v1, %v3575_v62  ;;  %v3874_v17 = vmul.f32 %v11724_v57, %v11889_v4  ;;  %v11968_v4 = vld [vmem:[#allocation257_spill] sm:$0xff] }
 0x79d   : > { %v3873_v15 = vmul.f32 %v11968_v4, %v11895_v35  ;;  %v10806_v35 = vld [vmem:[%s11075_s5] sm:$0xff] }
 0x79e   : > { %v3308_v21 = vadd.f32 %v3288_v50, %v3255_v8  ;;  %v3841_v22 = vadd.f32 %v3801_v55, %v3708_v60  ;;  %6683 = vmatprep.mubr.msk.f32.mxu1 %vm11969_vm1, %v10806_v35  ;;  %6676 = vmatprep.mubr.msk.f32.mxu0 %vm11970_vm3, %v10806_v35 }
 0x79f   : > { %v3799_v54 = vpop.permute.xlu1 %3798  ;;  %v3987_v24 = vpop.permute.xlu0 %3986 }
 0x7a0   : > { %v3441_v37 = vadd.f32 %v11965_v26, %v3308_v21  ;;  %v3894_v42 = vadd.f32 %v3874_v17, %v3841_v22  ;;  %v11974_v17 = vld [vmem:[#allocation264_spill] sm:$0xff] }
 0x7a2   : > { %v4027_v59 = vadd.f32 %v3987_v24, %v3894_v42  ;;  %v4459_v24 = vmul.f32 %v11613_v2, %v10674_v36 }
 0x7a3   : > { %v4669_v52 = vpop.permute.xlu1 %4668  ;;  %v4120_v44 = vpop.permute.xlu0 %4119 }
 0x7a4   : > { %v4727_v29 = vadd.f32 %v4669_v52, %v4594_v48  ;;  %v11966_v48 = vld [vmem:[#allocation216_spill] sm:$0xff] }
 0x7a5   : > { %v3574_v16 = vadd.f32 %v11966_v48, %v3441_v37  ;;  %v11977_v37 = vld [vmem:[#allocation94_spill] sm:$0xff] }
 0x7a7   : > { %v4802_v45 = vpop.permute.xlu1 %4801  ;;  %v3985_v53 = vpop.permute.xlu0 %3984  ;;  %v3707_v28 = vadd.f32 %v11967_v0, %v3574_v16  ;;  %v11980_v0 = vld [vmem:[#allocation22_spill] sm:$0xff] }
 0x7a8   : > { %v4860_v34 = vadd.f32 %v4802_v45, %v4727_v29  ;;  %vm11981_vm5 = vcmp.ge.s32.totalorder %v11980_v0, 6  ;;  %v12008_v0 = vld [vmem:[#allocation9_spill] sm:$0xff] }
 0x7a9   : > { %v3840_v55 = vadd.f32 %v3799_v54, %v3707_v28  ;;  %vm11986_vm7 = vmmov %vm11981_vm5 }
 0x7aa   : > { %vm11989_vm3 = vmmov %vm11981_vm5 }
 0x7ab   : > { %v4253_v25 = vpop.permute.xlu1 %4252  ;;  %v4935_v33 = vpop.permute.xlu0 %4934  ;;  %vm11990_vm6 = vmmov %vm11989_vm3 }
 0x7ac   : > { %v4993_v41 = vadd.f32 %v4935_v33, %v4860_v34  ;;  %v4160_v34 = vadd.f32 %v4120_v44, %v4027_v59 }
 0x7ae   : > { %v5025_v10 = vadd.f32 %v9525_v19, %v4993_v41  ;;  %v4293_v33 = vadd.f32 %v4253_v25, %v4160_v34  ;;  %v3893_v41 = vadd.f32 %v3873_v15, %v3840_v55 }
 0x7af   : > { %v4118_v61 = vpop.permute.xlu1 %4117  ;;  %v4386_v12 = vpop.permute.xlu0 %4385 }
 0x7b0   : > { %v5065_v39 = vmul.f32 0.044715, %v5025_v10  ;;  %v4426_v51 = vadd.f32 %v4386_v12, %v4293_v33  ;;  %v4026_v62 = vadd.f32 %v3985_v53, %v3893_v41  ;;  %v5045_v60 = vmul.f32 0.5, %v5025_v10  ;;  %v11971_v12 = vld [vmem:[#allocation50_spill] sm:$0xff] }
 0x7b2   : > { %v5085_v49 = vmul.f32 %v5065_v39, %v5025_v10  ;;  %v4159_v54 = vadd.f32 %v4118_v61, %v4026_v62  ;;  %v4479_v44 = vadd.f32 %v4459_v24, %v4426_v51  ;;  %v11972_v39 = vld [vmem:[#allocation26_spill] sm:$0xff] }
 0x7b3   : > { %v4251_v6 = vpop.permute.xlu1 %4250  ;;  %v4384_v31 = vpop.permute.xlu0 %4383  ;;  %vm11973_vm12 = vcmp.lt.s32.totalorder %v11972_v39, 9  ;;  %vm11978_vm9 = vcmp.ge.s32.totalorder %v11972_v39, 12  ;;  %v12005_v39 = vld [vmem:[#allocation6_spill] sm:$0xff] }
 0x7b4   : > { %v5105_v52 = vmul.f32 %v5085_v49, %v5025_v10  ;;  %v4292_v53 = vadd.f32 %v4251_v6, %v4159_v54  ;;  %v11975_v6 = vld [vmem:[#allocation28_spill] sm:$0xff]  ;;  %vm11979_vm8 = vmmov %vm11973_vm12 }
 0x7b5   : > { %vm11976_vm10 = vnez %v11975_v6  ;;  %vm11982_vm11 = vmmov %vm11978_vm9 }
 0x7b6   : > { %v5125_v9 = vadd.f32 %v5105_v52, %v5025_v10  ;;  %v4425_v22 = vadd.f32 %v4384_v31, %v4292_v53  ;;  %v4458_v10 = vmul.f32 %v11744_v27, %v10685_v5  ;;  %vm11984_vm2 = vmmov %vm11979_vm8 }
 0x7b7   : > { %v4572_v63 = vpop.permute.xlu1 %4571  ;;  %v4705_v45 = vpop.permute.xlu0 %4704  ;;  %vm11985_vm0 = vmmov %vm11984_vm2 }
 0x7b8   : > { %v5145_v29 = vmul.f32 0.7978846, %v5125_v9  ;;  %v4612_v25 = vadd.f32 %v4572_v63, %v4479_v44  ;;  %v4478_v63 = vadd.f32 %v4458_v10, %v4425_v22  ;;  %vm11987_vm15 = vmmov %vm11978_vm9 }
 0x7b9   : > { %vm11988_vm1 = vmmov %vm11978_vm9 }
 0x7ba   : > { %6808 = vtanh.f32 %v5145_v29  ;;  %v4745_v49 = vadd.f32 %v4705_v45, %v4612_v25 }
 0x7bb   : > { %v4570_v23 = vpop.permute.xlu1 %4569  ;;  %v4838_v57 = vpop.permute.xlu0 %4837 }
 0x7bc   : > { %v4878_v45 = vadd.f32 %v4838_v57, %v4745_v49  ;;  %v4611_v5 = vadd.f32 %v4570_v23, %v4478_v63  ;;  %v11983_v57 = vld [vmem:[#allocation80_spill] sm:$0xff] }
 0x7bf   : > { %v4703_v8 = vpop.permute.xlu1 %4702  ;;  %v4971_v18 = vpop.permute.xlu0 %4970 }
 0x7c0   : > { %v5011_v59 = vadd.f32 %v4971_v18, %v4878_v45  ;;  %v4744_v15 = vadd.f32 %v4703_v8, %v4611_v5 }
 0x7c2   : > { %v5043_v51 = vadd.f32 %v9525_v19, %v5011_v59 }
 0x7c3   : > { %v4836_v7 = vpop.permute.xlu1 %4835  ;;  %v4969_v50 = vpop.permute.xlu0 %4968 }
 0x7c4   : > { %v4877_v18 = vadd.f32 %v4836_v7, %v4744_v15  ;;  %v5522_v15 = vld [vmem:[%s11076_s6] sm:$0xff] }
 0x7c6   : > { %v5010_v24 = vadd.f32 %v4969_v50, %v4877_v18  ;;  %v12011_v18 = vld [vmem:[#allocation12_spill] sm:$0xff] }
 0x7c7   : > { %v6809_v2 = vpop.eup %6808  ;;  %v5427_v36 = vpop.permute.xlu1 %5426 }
 0x7c8   : > { %v5431_v1 = vpop.permute.xlu0 %5430  ;;  %v5185_v61 = vadd.f32 1.0, %v6809_v2  ;;  %v5473_v16 = vsel %vm11979_vm8, %v11977_v37, %v5427_v36  ;;  %v5042_v19 = vadd.f32 %v9869_v43, %v5010_v24  ;;  %vm11994_vm8 = vmmov %vm11988_vm1  ;;  %v12015_v24 = vld [vmem:[#allocation16_spill] sm:$0xff] }
 0x7c9   : > { %v5475_v21 = vsel %vm11973_vm12, %v11971_v12, %v5431_v1  ;;  %vm11991_vm12 = vmmov %vm11985_vm0 }
 0x7ca   : > { %v5491_v52 = vsel %vm11976_vm10, %v11974_v17, %v5475_v21  ;;  %v5205_v26 = vmul.f32 %v5185_v61, %v5045_v60  ;;  %v5082_v7 = vmul.f32 0.044715, %v5042_v19 }
 0x7cb   : > { %v5507_v42 = vsel %vm11978_vm9, %v11977_v37, %v5491_v52  ;;  %v5425_v9 = vpop.permute.xlu1 %5424  ;;  %vm11993_vm9 = vmmov %vm11985_vm0 }
 0x7cc   : > { %5627 = vrot.lane.b32.xlu0 %v5507_v42, %s6859_s10  ;;  %v5429_v31 = vpop.permute.xlu0 %5428  ;;  %v5309_v48 = vsel %vm5278_vm14, %v5205_v26, 0.0  ;;  %v5472_v33 = vsel %vm11986_vm7, %v10317_v47, %v5425_v9  ;;  %v5083_v47 = vmul.f32 0.044715, %v5043_v51  ;;  %v5102_v2 = vmul.f32 %v5082_v7, %v5042_v19  ;;  %vm11992_vm14 = vmmov %vm11988_vm1  ;;  %v12019_v7 = vld [vmem:[#allocation20_spill] sm:$0xff] }
 0x7cd   : > { %v5489_v29 = vsel %vm11976_vm10, %v5309_v48, %v5473_v16  ;;  %v5474_v28 = vsel %vm11981_vm5, %v10478_v11, %v5429_v31  ;;  %v5063_v31 = vmul.f32 0.5, %v5043_v51 }
 0x7ce   : > { %v5505_v27 = vsel %vm11982_vm11, %v11974_v17, %v5489_v29  ;;  %v5103_v54 = vmul.f32 %v5083_v47, %v5043_v51  ;;  %v12014_v47 = vld [vmem:[#allocation15_spill] sm:$0xff] }
 0x7cf   : > { %v5435_v55 = vpop.permute.xlu1 %5434  ;;  %5538 = vrot.lane.b32.xlu1 %v5505_v27, %s6859_s10 }
 0x7d0   : > { %5625 = vrot.lane.b32.xlu0 %v5474_v28, %s6859_s10  ;;  %v5439_v34 = vpop.permute.xlu0 %5438  ;;  %v5477_v4 = vsel %vm11984_vm2, %v11983_v57, %v5435_v55  ;;  %v5123_v25 = vmul.f32 %v5103_v54, %v5043_v51  ;;  %v12016_v54 = vld [vmem:[#allocation17_spill] sm:$0xff] }
 0x7d1   : > { %v5479_v11 = vsel %vm11985_vm0, %v10535_v56, %v5439_v34  ;;  %v5493_v62 = vsel %vm11976_vm10, %v11977_v37, %v5477_v4  ;;  %v5234_v37 = vadd.s32 9, %v11818_v32  ;;  %vm11995_vm0 = vmmov %vm11989_vm3  ;;  %v5062_v34 = vmul.f32 0.5, %v5042_v19 }
 0x7d2   : > { %v5495_v23 = vsel %vm11976_vm10, %v11971_v12, %v5479_v11  ;;  %v5509_v8 = vsel %vm11988_vm1, %v11971_v12, %v5493_v62  ;;  %v5143_v1 = vadd.f32 %v5123_v25, %v5043_v51  ;;  %v5122_v12 = vmul.f32 %v5102_v2, %v5042_v19  ;;  %v12010_v51 = vld [vmem:[#allocation11_spill] sm:$0xff]  ;;  %v12012_v62 = vld [vmem:[#allocation13_spill] sm:$0xff] }
 0x7d3   : > { %v5511_v41 = vsel %vm11987_vm15, %v11983_v57, %v5495_v23  ;;  %5536 = vrot.lane.b32.xlu1 %v5472_v33, %s6859_s10  ;;  %vm5245_vm5 = vcmp.ge.s32.totalorder %v5234_v37, 0  ;;  %vm5255_vm11 = vcmp.lt.s32.totalorder %v5234_v37, 16  ;;  %vm11996_vm15 = vmmov %vm11995_vm0  ;;  %v12006_v23 = vld [vmem:[#allocation7_spill] sm:$0xff]  ;;  %v12007_v33 = vld [vmem:[#allocation8_spill] sm:$0xff] }
 0x7d4   : > { %5793 = vrot.lane.b32.xlu0 %v5511_v41, %s6859_s10  ;;  %v5163_v61 = vmul.f32 0.7978846, %v5143_v1  ;;  %v5142_v17 = vadd.f32 %v5122_v12, %v5042_v19  ;;  %vm5265_vm2 = vmand %vm5245_vm5, %vm5255_vm11  ;;  %v12009_v41 = vld [vmem:[#allocation10_spill] sm:$0xff]  ;;  %v5521_v1 = vld [vmem:[%s11075_s5 + $0x8] sm:$0xff] }
 0x7d5   : > { %vm5276_vm7 = vmand %vm5265_vm2, %vm5266_vm4  ;;  %v12017_v19 = vld [vmem:[#allocation18_spill] sm:$0xff] }
 0x7d6   : > { %6810 = vtanh.f32 %v5163_v61  ;;  %v5162_v26 = vmul.f32 0.7978846, %v5142_v17  ;;  %vm10907_vm1 = vmand %vm5276_vm7, %vm5277_vm13 }
 0x7d7   : > { %5710 = vrot.lane.b32.xlu1 %v5509_v8, %s6859_s10  ;;  %vm12001_vm13 = vmmov %vm11994_vm8  ;;  %v12013_v8 = vld [vmem:[#allocation14_spill] sm:$0xff] }
 0x7d8   : > { %6812 = vtanh.f32 %v5162_v26 }
 0x7df   : > { %v5433_v44 = vpop.permute.xlu1 %5432 }
 0x7e0   : > { %v5476_v53 = vsel %vm11989_vm3, %v10509_v46, %v5433_v44  ;;  %vm11999_vm3 = vmmov %vm11993_vm9  ;;  %v12018_v44 = vld [vmem:[#allocation19_spill] sm:$0xff] }
 0x7e1   : > { %5708 = vrot.lane.b32.xlu1 %v5476_v53, %s6859_s10  ;;  %vm12000_vm4 = vmmov %vm11999_vm3  ;;  %v12020_v53 = vld [vmem:[#allocation21_spill] sm:$0xff] }
 0x7e3   : > { %v6811_v42 = vpop.eup %6810 }
 0x7e4   : > { %v5437_v36 = vpop.permute.xlu0 %5436  ;;  %v5203_v9 = vadd.f32 1.0, %v6811_v42 }
 0x7e5   : > { %v5478_v50 = vsel %vm11990_vm6, %v10574_v3, %v5437_v36  ;;  %v6813_v32 = vpop.eup %6812  ;;  %vm12002_vm6 = vmmov %vm11994_vm8 }
 0x7e6   : > { %5791 = vrot.lane.b32.xlu0 %v5478_v50, %s6859_s10  ;;  %v5443_v60 = vpop.permute.xlu1 %5442  ;;  %v5223_v16 = vmul.f32 %v5203_v9, %v5063_v31  ;;  %v5202_v5 = vadd.f32 1.0, %v6813_v32 }
 0x7e7   : > { %v5481_v43 = vsel %vm11991_vm12, %v10558_v13, %v5443_v60  ;;  %vm12003_vm12 = vmmov %vm11995_vm0 }
 0x7e8   : > { %v5497_v46 = vsel %vm11976_vm10, %v11983_v57, %v5481_v43  ;;  %v5327_v28 = vsel %vm10907_vm1, %v5223_v16, 0.0 }
 0x7e9   : > { %v5513_v22 = vsel %vm11992_vm14, %v10535_v56, %v5497_v46  ;;  %vm12021_vm14 = vcmask 130048  }
 0x7ea   : > { %v5447_v21 = vpop.permute.xlu0 %5446  ;;  %5876 = vrot.lane.b32.xlu1 %v5513_v22, %s6859_s10 }
 0x7eb   : > { %v5483_v3 = vsel %vm11993_vm9, %v10607_v20, %v5447_v21  ;;  %vm12022_vm9 = vmmov %vm12021_vm14 }
 0x7ec   : > { %v5499_v49 = vsel %vm11976_vm10, %v10535_v56, %v5483_v3 }
 0x7ed   : > { %v5515_v52 = vsel %vm11994_vm8, %v10558_v13, %v5499_v49  ;;  %vm12023_vm8 = vmmov %vm12022_vm9 }
 0x7ee   : > { %5959 = vrot.lane.b32.xlu0 %v5515_v52, %s6859_s10  ;;  %vm12024_vm5 = vmmov %vm12023_vm8 }
 0x7ef   : > { %vm12025_vm11 = vmmov %vm12024_vm5 }
 0x7f0   : > { %vm12026_vm2 = vmmov %vm12024_vm5 }
 0x7fb   : > { %v5441_v10 = vpop.permute.xlu1 %5440 }
 0x7fc   : > { %v5480_v56 = vsel %vm11995_vm0, %v10589_v40, %v5441_v10 }
 0x7fd   : > { %5874 = vrot.lane.b32.xlu1 %v5480_v56, %s6859_s10 }
 0x7ff   : > { %v5445_v48 = vpop.permute.xlu0 %5444 }
 0x800   : > { %v5482_v63 = vsel %vm11996_vm15, %v10615_v58, %v5445_v48 }
 0x801   : > { %5957 = vrot.lane.b32.xlu0 %v5482_v63, %s6859_s10 }
 0x802   : > { %v5451_v40 = vpop.permute.xlu1 %5450 }
 0x803   : > { %v5485_v29 = vsel %vm11999_vm3, %v10604_v14, %v5451_v40  ;;  %v5455_v27 = vpop.permute.xlu0 %5454 }
 0x804   : > { %v5501_v38 = vsel %vm11976_vm10, %v10558_v13, %v5485_v29  ;;  %v5487_v58 = vsel %vm12000_vm4, %v5327_v28, %v5455_v27  ;;  %v5222_v13 = vmul.f32 %v5202_v5, %v5062_v34 }
 0x805   : > { %v5503_v59 = vsel %vm11976_vm10, %v10607_v20, %v5487_v58  ;;  %v5517_v55 = vsel %vm12001_vm13, %v10607_v20, %v5501_v38  ;;  %vm12004_vm10 = vmmov %vm11995_vm0 }
 0x806   : > { %6042 = vrot.lane.b32.xlu1 %v5517_v55, %s6859_s10  ;;  %v5519_v57 = vsel %vm12002_vm6, %v10604_v14, %v5503_v59  ;;  %v5326_v20 = vsel %vm10907_vm1, %v5222_v13, 0.0  ;;  %vm12027_vm0 = vmmov %vm12026_vm2 }
 0x807   : > { %v5449_v4 = vpop.permute.xlu1 %5448  ;;  %6125 = vrot.lane.b32.xlu0 %v5519_v57, %s6859_s10  ;;  %vm12028_vm7 = vmmov %vm12027_vm0 }
 0x808   : > { %v5484_v6 = vsel %vm12003_vm12, %v10622_v30, %v5449_v4  ;;  %v5523_v30 = vld [vmem:[%s11076_s6 + $0x8] sm:$0xff]  ;;  %vm12029_vm15 = vmmov %vm12027_vm0 }
 0x809   : > { %vm12030_vm1 = vmmov %vm12027_vm0 }
 0x80a   : > { %6040 = vrot.lane.b32.xlu1 %v5484_v6, %s6859_s10  ;;  %vm12031_vm3 = vmmov %vm12027_vm0 }
 0x80b   : > { %v5453_v11 = vpop.permute.xlu0 %5452  ;;  %vm12032_vm4 = vmmov %vm12027_vm0 }
 0x80c   : > { %v5486_v14 = vsel %vm12004_vm10, %v5326_v20, %v5453_v11  ;;  %vm12033_vm13 = vmmov %vm12027_vm0 }
 0x80d   : > { %6123 = vrot.lane.b32.xlu0 %v5486_v14, %s6859_s10  ;;  %vm12034_vm6 = vmmov %vm12027_vm0 }
 0x80e   : > { %5526 = vperm.xlu1 %6775, %v5522_v15   ;;  %vm12035_vm12 = vmmov %vm12027_vm0 }
 0x80f   : > { %vm12036_vm10 = vmmov %vm12027_vm0 }
 0x811   : > { %5531 = vperm.xlu0 %6774, %v5523_v30  }
 0x812   : > { %6204 = vrot.lane.b32.xlu1 %v12005_v39, %s6860_s15 }
 0x815   : > { %6206 = vrot.lane.b32.xlu0 %v12006_v23, %s6860_s15 }
 0x816   : > { %6208 = vrot.lane.b32.xlu1 %v12007_v33, %s6860_s15 }
 0x819   : > { %6210 = vrot.lane.b32.xlu0 %v12008_v0, %s6860_s15 }
 0x81a   : > { %6212 = vrot.lane.b32.xlu1 %v12009_v41, %s6860_s15 }
 0x81d   : > { %6214 = vrot.lane.b32.xlu0 %v12010_v51, %s6860_s15 }
 0x81e   : > { %6216 = vrot.lane.b32.xlu1 %v12011_v18, %s6860_s15 }
 0x821   : > { %6218 = vrot.lane.b32.xlu0 %v12012_v62, %s6860_s15 }
 0x822   : > { %6220 = vrot.lane.b32.xlu1 %v12013_v8, %s6860_s15 }
 0x825   : > { %6222 = vrot.lane.b32.xlu0 %v12014_v47, %s6860_s15 }
 0x826   : > { %6224 = vrot.lane.b32.xlu1 %v12015_v24, %s6860_s15 }
 0x829   : > { %6226 = vrot.lane.b32.xlu0 %v12016_v54, %s6860_s15 }
 0x82a   : > { %6228 = vrot.lane.b32.xlu1 %v12017_v19, %s6860_s15 }
 0x82d   : > { %6230 = vrot.lane.b32.xlu0 %v12018_v44, %s6860_s15 }
 0x82e   : > { %6232 = vrot.lane.b32.xlu1 %v12019_v7, %s6860_s15 }
 0x831   : > { %6234 = vrot.lane.b32.xlu0 %v12020_v53, %s6860_s15 }
 0x83e   : > { %v5628_v25 = vpop.permute.xlu0 %5627 }
 0x83f   : > { %6679 = vmatprep.subr.mxu1 %v5628_v25 }
 0x840   : > { %6680 = vmatpush3.msra.mxu1 %v5628_v25 }
 0x841   : > { %v5539_v2 = vpop.permute.xlu1 %5538 }
 0x842   : > { %v5626_v36 = vpop.permute.xlu0 %5625  ;;  %6672 = vmatprep.subr.mxu0 %v5539_v2 }
 0x843   : > { %6681 = vmatprep.subr.mxu1 %v5626_v36  ;;  %6673 = vmatpush3.msra.mxu0 %v5539_v2 }
 0x844   : > { %6682 = vmatpush3.msra.mxu1 %v5626_v36 }
 0x845   : > { %6684 = vmatmul.mubr.msk.f32.vlgmr.msra.gmra.mxu1 %vm12021_vm14, %v5521_v1  ;;  %v5537_v60 = vpop.permute.xlu1 %5536  ;;  %vm12037_vm14 = vmmov %vm12027_vm0 }
 0x846   : > { %v5794_v50 = vpop.permute.xlu0 %5793  ;;  %6697 = vmatprep.mubr.msk.f32.mxu1 %vm12022_vm9, %v10806_v35  ;;  %6674 = vmatprep.subr.mxu0 %v5537_v60  ;;  %vm12038_vm9 = vmmov %vm12027_vm0 }
 0x847   : > { %6693 = vmatprep.subr.mxu1 %v5794_v50  ;;  %6675 = vmatpush3.msra.mxu0 %v5537_v60 }
 0x848   : > { %6694 = vmatpush3.msra.mxu1 %v5794_v50  ;;  %6677 = vmatmul.mubr.msk.f32.vlgmr.msra.gmra.mxu0 %vm12023_vm8, %v5521_v1  ;;  %vm12039_vm8 = vmmov %vm12027_vm0 }
 0x849   : > { %v5711_v43 = vpop.permute.xlu1 %5710  ;;  %6690 = vmatprep.mubr.msk.f32.mxu0 %vm12024_vm5, %v10806_v35  ;;  %vm12040_vm5 = vmmov %vm12027_vm0 }
 0x84a   : > { %6686 = vmatprep.subr.mxu0 %v5711_v43 }
 0x84b   : > { %6687 = vmatpush3.msra.mxu0 %v5711_v43 }
 0x853   : > { %v5709_v61 = vpop.permute.xlu1 %5708 }
 0x854   : > { %6688 = vmatprep.subr.mxu0 %v5709_v61 }
 0x855   : > { %6689 = vmatpush3.msra.mxu0 %v5709_v61 }
 0x856   : > { %6691 = vmatmul.mubr.msk.f32.vlgmr.msra.gmra.mxu0 %vm12025_vm11, %v5521_v1  ;;  %vm12041_vm11 = vmmov %vm12027_vm0 }
 0x857   : > { %6704 = vmatprep.mubr.msk.f32.mxu0 %vm12026_vm2, %v10806_v35  ;;  %vm12042_vm2 = vmmov %vm12027_vm0 }
 0x858   : > { %v5792_v12 = vpop.permute.xlu0 %5791 }
 0x859   : > { %6695 = vmatprep.subr.mxu1 %v5792_v12 }
 0x85a   : > { %6696 = vmatpush3.msra.mxu1 %v5792_v12 }
 0x85b   : > { %6698 = vmatmul.mubr.msk.f32.vlgmr.msra.gmra.mxu1 %vm12027_vm0, %v5521_v1 }
 0x85c   : > { %6711 = vmatprep.mubr.msk.f32.mxu1 %vm12028_vm7, %v10806_v35  ;;  %v5877_v46 = vpop.permute.xlu1 %5876  ;;  %vm12043_vm7 = vmmov %vm12027_vm0 }
 0x85d   : > { %6700 = vmatprep.subr.mxu0 %v5877_v46 }
 0x85e   : > { %6701 = vmatpush3.msra.mxu0 %v5877_v46 }
 0x860   : > { %v5960_v21 = vpop.permute.xlu0 %5959 }
 0x861   : > { %6707 = vmatprep.subr.mxu1 %v5960_v21 }
 0x862   : > { %6708 = vmatpush3.msra.mxu1 %v5960_v21 }
 0x86f   : > { %v5875_v22 = vpop.permute.xlu1 %5874 }
 0x870   : > { %6702 = vmatprep.subr.mxu0 %v5875_v22 }
 0x871   : > { %6703 = vmatpush3.msra.mxu0 %v5875_v22 }
 0x872   : > { %6705 = vmatmul.mubr.msk.f32.vlgmr.msra.gmra.mxu0 %vm12029_vm15, %v5521_v1  ;;  %vm12044_vm15 = vmmov %vm12027_vm0 }
 0x873   : > { %v5958_v3 = vpop.permute.xlu0 %5957  ;;  %6718 = vmatprep.mubr.msk.f32.mxu0 %vm12030_vm1, %v10806_v35  ;;  %vm12045_vm1 = vmmov %vm12027_vm0 }
 0x874   : > { %6709 = vmatprep.subr.mxu1 %v5958_v3 }
 0x875   : > { %6710 = vmatpush3.msra.mxu1 %v5958_v3 }
 0x876   : > { %6712 = vmatmul.mubr.msk.f32.vlgmr.msra.gmra.mxu1 %vm12031_vm3, %v5521_v1  ;;  %vm12046_vm3 = vmmov %vm12027_vm0 }
 0x877   : > { %6725 = vmatprep.mubr.msk.f32.mxu1 %vm12032_vm4, %v10806_v35  ;;  %vm12047_vm4 = vmmov %vm12027_vm0 }
 0x878   : > { %v6043_v49 = vpop.permute.xlu1 %6042 }
 0x879   : > { %v6126_v17 = vpop.permute.xlu0 %6125  ;;  %6714 = vmatprep.subr.mxu0 %v6043_v49 }
 0x87a   : > { %6715 = vmatpush3.msra.mxu0 %v6043_v49  ;;  %6721 = vmatprep.subr.mxu1 %v6126_v17 }
 0x87b   : > { %6722 = vmatpush3.msra.mxu1 %v6126_v17 }
 0x87c   : > { %v6041_v52 = vpop.permute.xlu1 %6040 }
 0x87d   : > { %6716 = vmatprep.subr.mxu0 %v6041_v52 }
 0x87e   : > { %6717 = vmatpush3.msra.mxu0 %v6041_v52 }
 0x87f   : > { %v6124_v26 = vpop.permute.xlu0 %6123  ;;  %6719 = vmatmul.mubr.msk.f32.vlgmr.msra.gmra.mxu0 %vm12033_vm13, %v5521_v1  ;;  %vm12048_vm13 = vmmov %vm12027_vm0 }
 0x880   : > { %6723 = vmatprep.subr.mxu1 %v6124_v26 }
 0x881   : > { %6724 = vmatpush3.msra.mxu1 %v6124_v26 }
 0x882   : > { %6726 = vmatmul.mubr.msk.f32.vlgmr.msra.gmra.mxu1 %vm12034_vm6, %v5521_v1  ;;  %vm12049_vm6 = vmmov %vm12027_vm0 }
 0x889   : > { %v11005_v35 = vpop.permute.xlu1 %5526 }
 0x88c   : > { %v11003_v37 = vpop.permute.xlu0 %5531 }
 0x88d   : > { %v6205_v10 = vpop.permute.xlu1 %6204 }
 0x890   : > { %v6207_v42 = vpop.permute.xlu0 %6206 }
 0x891   : > { %v6209_v16 = vpop.permute.xlu1 %6208 }
 0x894   : > { %v6211_v56 = vpop.permute.xlu0 %6210 }
 0x895   : > { %v6213_v34 = vpop.permute.xlu1 %6212 }
 0x898   : > { %v6215_v58 = vpop.permute.xlu0 %6214 }
 0x899   : > { %v6217_v30 = vpop.permute.xlu1 %6216 }
 0x89c   : > { %v6219_v11 = vpop.permute.xlu0 %6218 }
 0x89d   : > { %v6221_v51 = vpop.permute.xlu1 %6220 }
 0x8a0   : > { %v6223_v0 = vpop.permute.xlu0 %6222 }
 0x8a1   : > { %v6225_v53 = vpop.permute.xlu1 %6224 }
 0x8a4   : > { %v6227_v54 = vpop.permute.xlu0 %6226 }
 0x8a5   : > { %v6229_v50 = vpop.permute.xlu1 %6228 }
 0x8a8   : > { %v6231_v1 = vpop.permute.xlu0 %6230 }
 0x8a9   : > { %v6233_v52 = vpop.permute.xlu1 %6232 }
 0x8ac   : > { %v6235_v22 = vpop.permute.xlu0 %6234 }
 0x905   : > { %v6685_v9 = vpop.f32.mrf.mxu1 }
 0x906   : > { %v5703_v31 = vadd.f32 %v6685_v9, %v11003_v37 }
 0x907   : > { %v5697_v48 = vpop.f32.mrf.mxu1 }
 0x908   : > { %v5698_v32 = vadd.f32 %v5697_v48, %v11005_v35  ;;  %v6255_v63 = vadd.f32 %v6211_v56, %v5703_v31  ;;  %v6678_v45 = vpop.f32.mrf.mxu0 }
 0x909   : > { %v5620_v40 = vadd.f32 %v6678_v45, %v11003_v37 }
 0x90a   : > { %6271 = vst.msk [vmem:[%s6944_s23 + $0x18] sm:$0xff] %vm12035_vm12, %v6255_v63  ;;  %v6254_v29 = vadd.f32 %v6209_v16, %v5698_v32  ;;  %v5614_v28 = vpop.f32.mrf.mxu0 }
 0x90b   : > { %v6253_v27 = vadd.f32 %v6207_v42, %v5620_v40  ;;  %v5615_v5 = vadd.f32 %v5614_v28, %v11005_v35 }
 0x90c   : > { %6270 = vst.msk [vmem:[%s6944_s23 + $0x10] sm:$0xff] %vm12036_vm10, %v6254_v29 }
 0x90d   : > { %6269 = vst.msk [vmem:[%s6944_s23 + $0x8] sm:$0xff] %vm12037_vm14, %v6253_v27  ;;  %v6252_v38 = vadd.f32 %v6205_v10, %v5615_v5 }
 0x90f   : > { %6268 = vst.msk [vmem:[%s6944_s23] sm:$0xff] %vm12038_vm9, %v6252_v38 }
 0x916   : > { %v6692_v59 = vpop.f32.mrf.mxu0 }
 0x917   : > { %v5786_v55 = vadd.f32 %v6692_v59, %v11003_v37 }
 0x918   : > { %v5780_v57 = vpop.f32.mrf.mxu0 }
 0x919   : > { %v6257_v4 = vadd.f32 %v6215_v58, %v5786_v55  ;;  %v5781_v13 = vadd.f32 %v5780_v57, %v11005_v35 }
 0x91b   : > { %6273 = vst.msk [vmem:[%s6944_s23 + $0x28] sm:$0xff] %vm12039_vm8, %v6257_v4  ;;  %v6699_v6 = vpop.f32.mrf.mxu1  ;;  %v6256_v20 = vadd.f32 %v6213_v34, %v5781_v13 }
 0x91c   : > { %v5869_v15 = vadd.f32 %v6699_v6, %v11003_v37 }
 0x91d   : > { %6272 = vst.msk [vmem:[%s6944_s23 + $0x20] sm:$0xff] %vm12040_vm5, %v6256_v20  ;;  %v5863_v14 = vpop.f32.mrf.mxu1 }
 0x91e   : > { %v5864_v39 = vadd.f32 %v5863_v14, %v11005_v35  ;;  %v6259_v23 = vadd.f32 %v6219_v11, %v5869_v15 }
 0x920   : > { %6275 = vst.msk [vmem:[%s6944_s23 + $0x38] sm:$0xff] %vm12041_vm11, %v6259_v23  ;;  %v6258_v33 = vadd.f32 %v6217_v30, %v5864_v39 }
 0x922   : > { %6274 = vst.msk [vmem:[%s6944_s23 + $0x30] sm:$0xff] %vm12042_vm2, %v6258_v33 }
 0x932   : > { %v6706_v41 = vpop.f32.mrf.mxu0 }
 0x933   : > { %v5952_v18 = vadd.f32 %v6706_v41, %v11003_v37 }
 0x934   : > { %v5946_v62 = vpop.f32.mrf.mxu0 }
 0x935   : > { %v6261_v8 = vadd.f32 %v6223_v0, %v5952_v18  ;;  %v5947_v47 = vadd.f32 %v5946_v62, %v11005_v35 }
 0x936   : > { %v6713_v24 = vpop.f32.mrf.mxu1 }
 0x937   : > { %6277 = vst.msk [vmem:[%s6944_s23 + $0x48] sm:$0xff] %vm12027_vm0, %v6261_v8  ;;  %v6035_v19 = vadd.f32 %v6713_v24, %v11003_v37  ;;  %v6260_v44 = vadd.f32 %v6221_v51, %v5947_v47 }
 0x938   : > { %v6029_v7 = vpop.f32.mrf.mxu1 }
 0x939   : > { %6276 = vst.msk [vmem:[%s6944_s23 + $0x40] sm:$0xff] %vm12043_vm7, %v6260_v44  ;;  %v6030_v25 = vadd.f32 %v6029_v7, %v11005_v35  ;;  %v6263_v2 = vadd.f32 %v6227_v54, %v6035_v19 }
 0x93b   : > { %6279 = vst.msk [vmem:[%s6944_s23 + $0x58] sm:$0xff] %vm12044_vm15, %v6263_v2  ;;  %v6262_v36 = vadd.f32 %v6225_v53, %v6030_v25 }
 0x93d   : > { %6278 = vst.msk [vmem:[%s6944_s23 + $0x50] sm:$0xff] %vm12045_vm1, %v6262_v36 }
 0x93f   : > { %v6720_v60 = vpop.f32.mrf.mxu0 }
 0x940   : > { %v6118_v43 = vadd.f32 %v6720_v60, %v11003_v37 }
 0x941   : > { %v6112_v61 = vpop.f32.mrf.mxu0 }
 0x942   : > { %v6265_v12 = vadd.f32 %v6231_v1, %v6118_v43  ;;  %v6113_v46 = vadd.f32 %v6112_v61, %v11005_v35  ;;  %v6727_v21 = vpop.f32.mrf.mxu1 }
 0x943   : > { %v6201_v3 = vadd.f32 %v6727_v21, %v11003_v37 }
 0x944   : > { %6281 = vst.msk [vmem:[%s6944_s23 + $0x68] sm:$0xff] %vm12046_vm3, %v6265_v12  ;;  %v6264_v49 = vadd.f32 %v6229_v50, %v6113_v46  ;;  %v6195_v17 = vpop.f32.mrf.mxu1 }
 0x945   : > { %v6196_v26 = vadd.f32 %v6195_v17, %v11005_v35  ;;  %v6267_v42 = vadd.f32 %v6235_v22, %v6201_v3 }
 0x946   : > { %6280 = vst.msk [vmem:[%s6944_s23 + $0x60] sm:$0xff] %vm12047_vm4, %v6264_v49 }
 0x947   : > { %6283 = vst.msk [vmem:[%s6944_s23 + $0x78] sm:$0xff] %vm12048_vm13, %v6267_v42  ;;  %v6266_v10 = vadd.f32 %v6233_v52, %v6196_v26 }
 0x949   : > { %6282 = vst.msk [vmem:[%s6944_s23 + $0x70] sm:$0xff] %vm12049_vm6, %v6266_v10 }
 0x94a PF: > { %s17_s28 = sadd.s32 1, %s6854_s28   ;;  %s12050_s24 = smov %s6846_s26 }
 0x94b   : > { %p14_p7 = scmp.ge.s32.totalorder %s17_s28, 6   ;;  %s12051_s25 = smov %s6850_s27 }
 0x94c   : > { %s12052_s26 = smov %s12055_s29  ;;  %s12053_s27 = smov %s12059_s30 }
 0x94d   :  { %16 = sbr.rel (!%p14_p7) target bundleno = 3 (0x3), region = 138 }
 0x952   :  { %6316 = vsyncmov [#allocation3] }
 0x955   :  { %s6317_s23 = vpop.sfrf %6316 }
 0x956   :  { %p6484_p8 = scmp.ne.s32.totalorder %s6317_s23, 0 }
 0x958   :  { %6321 = shalt.err (%p6484_p8)  }

</bundles_post_ra>
